<compile_context>
chip_gen: v7x
topology: tpu7x:2x2x1
jax: 0.10.0
libtpu: 0.0.40
codegen_flags: <defaults>
</compile_context>

<pallas_src>
import jax
import jax.numpy as jnp
import numpy as np
from jax import lax
from jax.experimental import pallas as pl
from jax.experimental.pallas import tpu as pltpu

BT = 32             # batch tile (sublane dim of in-kernel activations); multiple of 8.
                    # 32-64 recommended on v7x, up to 96-128 on v5e/v6e (128 MiB VMEM).
NUM_CLASSES = 100
CLS_PAD = 128       # classifier padded to a full 128-lane register


# ----------------------------------------------------------------------------
# Fused Pallas kernel: whole forward pass for one batch tile of BT images
# ----------------------------------------------------------------------------
def fused_cnn_kernel(x_ref, w1_ref, b1_ref, w2_ref, b2_ref,
                     wf1_ref, bf1_ref, wc_ref, bc_ref, out_ref):
    bt = x_ref.shape[1]

    # ---- conv1 (5x5, 1->32) as ONE K=140 Toeplitz matmul ---------------------
    # LHS rows = (out_h=24, b); result lanes = (w_parity, w//2, c) -> 768 lanes.
    lhs1 = x_ref[...].reshape(24 * bt, 140)                       # bf16
    acc1 = jnp.dot(lhs1, w1_ref[...], preferred_element_type=jnp.float32)
    y1 = jnp.maximum(acc1 + b1_ref[...], 0.0)                     # (24*bt, 768) f32

    # ---- 2x2 max-pool #1: H pairs via outer dim, W pairs via parity halves ---
    y1 = y1.reshape(12, 2, bt, 768)
    a1 = jnp.maximum(y1[:, 0], y1[:, 1])                          # (12, bt, 768)
    f1 = jnp.maximum(a1[..., :384], a1[..., 384:])                # (12, bt, 384)
    f1 = f1.astype(jnp.bfloat16)     # pooled (w, c) lives at lane 32*w + c (compact)

    # ---- conv2 (5x5, 32->32): 5 H-tap Toeplitz matmuls, K=384, no zero rows --
    acc2 = None
    for i in range(5):
        lhs = f1[i:i + 8].reshape(8 * bt, 384)
        t = jnp.dot(lhs, w2_ref[i], preferred_element_type=jnp.float32)
        acc2 = t if acc2 is None else acc2 + t
    y2 = jnp.maximum(acc2 + b2_ref[...], 0.0)                     # (8*bt, 256) f32

    # ---- 2x2 max-pool #2 (same parity trick, 256 -> 128 compact lanes) -------
    y2 = y2.reshape(4, 2, bt, 256)
    a2 = jnp.maximum(y2[:, 0], y2[:, 1])                          # (4, bt, 256)
    f2 = jnp.maximum(a2[..., :128], a2[..., 128:]).astype(jnp.bfloat16)  # (4, bt, 128)

    # ---- fc1 + tanh (NCHW flatten folded into the pre-permuted weights) ------
    acc3 = None
    for h in range(4):
        t = jnp.dot(f2[h], wf1_ref[h], preferred_element_type=jnp.float32)
        acc3 = t if acc3 is None else acc3 + t                    # (bt, 128)
    hidden = jnp.tanh(acc3 + bf1_ref[...])

    # ---- classifier (padded to 128 lanes -> unmasked full-lane store) --------
    out_ref[...] = (jnp.dot(hidden.astype(jnp.bfloat16), wc_ref[...],
                            preferred_element_type=jnp.float32) + bc_ref[...])


# ----------------------------------------------------------------------------
# One-time parameter preparation (Toeplitz conv matrices, permuted fc weights)
# ----------------------------------------------------------------------------
def prepare_fused_params(params, num_classes=NUM_CLASSES):
    w1 = np.asarray(params["conv1_w"], np.float32)    # (32, 1, 5, 5)
    b1 = np.asarray(params["conv1_b"], np.float32)
    w2 = np.asarray(params["conv2_w"], np.float32)    # (32, 32, 5, 5)
    b2 = np.asarray(params["conv2_b"], np.float32)
    f1w = np.asarray(params["fc1_w"], np.float32)     # (128, 512) PyTorch layout
    f1b = np.asarray(params["fc1_b"], np.float32)
    cw = np.asarray(params["cls_w"], np.float32)      # (num_classes, 128)
    cb = np.asarray(params["cls_b"], np.float32)

    # Output-column layouts (pool compaction folded into the weights):
    #   conv1 column for (ow, c) = 384*(ow % 2) + 32*(ow // 2) + c   (768 lanes)
    #   conv2 column for (ow, c) = 128*(ow % 2) + 32*(ow // 2) + c   (256 lanes)
    def col1(ow):
        return 384 * (ow % 2) + 32 * (ow // 2)

    def col2(ow):
        return 128 * (ow % 2) + 32 * (ow // 2)

    # conv1: single K=140 Toeplitz matrix; K index = 28*i + iw (H-only im2col).
    W1 = np.zeros((140, 768), np.float32)
    for i in range(5):
        for ow in range(24):
            for j in range(5):
                W1[28 * i + ow + j, col1(ow):col1(ow) + 32] = w1[:, 0, i, j]
    B1 = np.tile(b1, 24)[None, :]                     # (1, 768)

    # conv2: per kernel row i, (384 compact pooled lanes: 32*w + ci) -> 256 lanes.
    W2 = np.zeros((5, 384, 256), np.float32)
    for i in range(5):
        for j in range(5):
            wij = w2[:, :, i, j].T                    # (ci, co)
            for ow in range(8):
                r0 = 32 * (ow + j)
                W2[i, r0:r0 + 32, col2(ow):col2(ow) + 32] = wij
    B2 = np.tile(b2, 8)[None, :]                      # (1, 256)

    # fc1: per pooled row h, (128 compact lanes: 32*w + c) -> 128 hidden.
    # PyTorch flatten order of (C=32, H=4, W=4) is index c*16 + h*4 + w.
    WF1 = np.zeros((4, 128, 128), np.float32)
    for h in range(4):
        for w in range(4):
            for c in range(32):
                WF1[h, 32 * w + c, :] = f1w[:, c * 16 + h * 4 + w]
    BF1 = f1b[None, :]                                # (1, 128)

    # classifier padded to 128 outputs (logits sliced back outside the kernel)
    WC = np.zeros((128, CLS_PAD), np.float32)
    WC[:, :num_classes] = cw.T
    BC = np.zeros((1, CLS_PAD), np.float32)
    BC[0, :num_classes] = cb

    # Matmul weights in bf16 (MXU-native on v5e/v6e/v7x); biases stay f32 and
    # are added to the f32 accumulators.
    return (jnp.asarray(W1, jnp.bfloat16), jnp.asarray(B1),
            jnp.asarray(W2, jnp.bfloat16), jnp.asarray(B2),
            jnp.asarray(WF1, jnp.bfloat16), jnp.asarray(BF1),
            jnp.asarray(WC, jnp.bfloat16), jnp.asarray(BC))


# ----------------------------------------------------------------------------
# Forward wrapper
# ----------------------------------------------------------------------------
def fused_forward(x_nchw, prep, bt=BT):
    W1, B1, W2, B2, WF1, BF1, WC, BC = prep
    B = x_nchw.shape[0]

    # H-only im2col in the wrapper: (24, B, 140) bf16 with lane index 28*i + iw.
    img = x_nchw[:, 0, :, :]                                              # (B, 28, 28)
    xc = jnp.concatenate([img[:, i:i + 24, :] for i in range(5)], axis=-1)  # (B, 24, 140)
    xc = jnp.transpose(xc, (1, 0, 2)).astype(jnp.bfloat16)                # (24, B, 140)

    bp = ((B + bt - 1) // bt) * bt
    if bp != B:
        xc = jnp.pad(xc, ((0, 0), (0, bp - B), (0, 0)))
    n_blocks = bp // bt
    # NOTE: on v7x (2 TensorCores) an even n_blocks >= 2 keeps both cores busy
    # under dimension_semantics=("parallel",).

    flops_per_img = 2 * (24 * 24 * 25 * 32 + 8 * 8 * 25 * 32 * 32
                         + 512 * 128 + 128 * CLS_PAD)
    weight_bytes = sum(int(np.prod(a.shape)) * a.dtype.itemsize for a in prep)
    cost = pl.CostEstimate(
        flops=flops_per_img * bp,
        transcendentals=128 * bp,
        bytes_accessed=int(xc.size) * 2 + bp * CLS_PAD * 4 + weight_bytes)

    out = pl.pallas_call(
        fused_cnn_kernel,
        out_shape=jax.ShapeDtypeStruct((bp, CLS_PAD), jnp.float32),
        grid=(n_blocks,),
        in_specs=[
            pl.BlockSpec((24, bt, 140), lambda b: (0, b, 0)),   # im2col'd input batch tile
            pl.BlockSpec(W1.shape, lambda b: (0, 0)),           # conv1 Toeplitz (VMEM-resident)
            pl.BlockSpec(B1.shape, lambda b: (0, 0)),
            pl.BlockSpec(W2.shape, lambda b: (0, 0, 0)),        # conv2 Toeplitz
            pl.BlockSpec(B2.shape, lambda b: (0, 0)),
            pl.BlockSpec(WF1.shape, lambda b: (0, 0, 0)),       # fc1 (flatten folded in)
            pl.BlockSpec(BF1.shape, lambda b: (0, 0)),
            pl.BlockSpec(WC.shape, lambda b: (0, 0)),           # classifier (padded to 128)
            pl.BlockSpec(BC.shape, lambda b: (0, 0)),
        ],
        out_specs=pl.BlockSpec((bt, CLS_PAD), lambda b: (b, 0)),
        compiler_params=pltpu.CompilerParams(
            dimension_semantics=("parallel",),                  # batch tiles independent
            vmem_limit_bytes=48 * 1024 * 1024,                  # headroom under v7x's 64 MiB
        ),
        cost_estimate=cost,
    )(xc, W1, B1, W2, B2, WF1, BF1, WC, BC)
    return out[:B, :NUM_CLASSES]


cnn_mnist_forward = jax.jit(fused_forward, static_argnames=("bt",))


# ----------------------------------------------------------------------------
# Parameters (PyTorch-style init) and pure-JAX reference for verification
# ----------------------------------------------------------------------------
def init_params(key, num_classes=NUM_CLASSES):
    ks = jax.random.split(key, 8)

    def u(k, shape, fan_in):
        bound = 1.0 / np.sqrt(fan_in)
        return jax.random.uniform(k, shape, jnp.float32, -bound, bound)

    return {
        "conv1_w": u(ks[0], (32, 1, 5, 5), 1 * 5 * 5),
        "conv1_b": u(ks[1], (32,), 1 * 5 * 5),
        "conv2_w": u(ks[2], (32, 32, 5, 5), 32 * 5 * 5),
        "conv2_b": u(ks[3], (32,), 32 * 5 * 5),
        "fc1_w": u(ks[4], (128, 512), 512),
        "fc1_b": u(ks[5], (128,), 512),
        "cls_w": u(ks[6], (num_classes, 128), 128),
        "cls_b": u(ks[7], (num_classes,), 128),
    }


def reference_forward(x, params):
    dn = ("NCHW", "OIHW", "NCHW")

    def conv(x, w, b):
        y = lax.conv_general_dilated(x, w, (1, 1), "VALID", dimension_numbers=dn)
        return y + b.reshape(1, -1, 1, 1)

    def pool(x):
        return lax.reduce_window(x, -jnp.inf, lax.max, (1, 1, 2, 2), (1, 1, 2, 2), "VALID")

    y = pool(jnp.maximum(conv(x, params["conv1_w"], params["conv1_b"]), 0.0))
    y = pool(jnp.maximum(conv(y, params["conv2_w"], params["conv2_b"]), 0.0))
    y = y.reshape(x.shape[0], -1)
    y = jnp.tanh(y @ params["fc1_w"].T + params["fc1_b"])
    return y @ params["cls_w"].T + params["cls_b"]


# ----------------------------------------------------------------------------
if __name__ == "__main__":
    key = jax.random.PRNGKey(0)
    k_params, k_x = jax.random.split(key)
    params = init_params(k_params, num_classes=NUM_CLASSES)
    # Small MNIST-shaped batch (28x28 is fixed by the module's fc dimensions);
    # B=40 exercises batch padding and a multi-block grid.
    x = jax.random.normal(k_x, (40, 1, 28, 28), dtype=jnp.float32)

    prep = prepare_fused_params(params, num_classes=NUM_CLASSES)
    out = jax.block_until_ready(cnn_mnist_forward(x, prep))

    ref = jax.block_until_ready(reference_forward(x, params))
    assert out.shape == (40, NUM_CLASSES), out.shape
    max_err = float(jnp.max(jnp.abs(out - ref)))
    # bf16 matmul inputs (f32 accumulation) -> looser tolerance than pure f32.
    assert np.allclose(np.asarray(out), np.asarray(ref), atol=4e-2, rtol=4e-2), (
        f"mismatch vs reference, max abs err {max_err}"
    )
    print("KERNEL_OK")
</pallas_src>

<mosaic_0001>
module attributes {stable_mosaic.version = 11 : i64} {
  func.func @fused_cnn_kernel(%arg0: i32, %arg1: memref<24x32x140xbf16, #tpu.memory_space<vmem>>, %arg2: memref<140x768xbf16, #tpu.memory_space<vmem>>, %arg3: memref<1x768xf32, #tpu.memory_space<vmem>>, %arg4: memref<5x384x256xbf16, #tpu.memory_space<vmem>>, %arg5: memref<1x256xf32, #tpu.memory_space<vmem>>, %arg6: memref<4x128x128xbf16, #tpu.memory_space<vmem>>, %arg7: memref<1x128xf32, #tpu.memory_space<vmem>>, %arg8: memref<128x128xbf16, #tpu.memory_space<vmem>>, %arg9: memref<1x128xf32, #tpu.memory_space<vmem>>, %arg10: memref<32x128xf32, #tpu.memory_space<vmem>>) attributes {dimension_semantics = [#tpu.dimension_semantics<parallel>], iteration_bounds = array<i64: 2>, scalar_prefetch = 0 : i64, scratch_operands = 0 : i64, tpu.core_type = #tpu.core_type<tc>, window_params = [{transform_indices = @transform_0, window_bounds = array<i64: 24, 32, 140>}, {pipeline_mode = #tpu.pipeline_mode<synchronous>, transform_indices = @transform_1, window_bounds = array<i64: 140, 768>}, {pipeline_mode = #tpu.pipeline_mode<synchronous>, transform_indices = @transform_2, window_bounds = array<i64: 1, 768>}, {pipeline_mode = #tpu.pipeline_mode<synchronous>, transform_indices = @transform_3, window_bounds = array<i64: 5, 384, 256>}, {pipeline_mode = #tpu.pipeline_mode<synchronous>, transform_indices = @transform_4, window_bounds = array<i64: 1, 256>}, {pipeline_mode = #tpu.pipeline_mode<synchronous>, transform_indices = @transform_5, window_bounds = array<i64: 4, 128, 128>}, {pipeline_mode = #tpu.pipeline_mode<synchronous>, transform_indices = @transform_6, window_bounds = array<i64: 1, 128>}, {pipeline_mode = #tpu.pipeline_mode<synchronous>, transform_indices = @transform_7, window_bounds = array<i64: 128, 128>}, {pipeline_mode = #tpu.pipeline_mode<synchronous>, transform_indices = @transform_8, window_bounds = array<i64: 1, 128>}, {transform_indices = @transform_9, window_bounds = array<i64: 32, 128>}]} {
    %c0 = arith.constant 0 : index
    %c0_0 = arith.constant 0 : index
    %c0_1 = arith.constant 0 : index
    %0 = vector.load %arg1[%c0, %c0_0, %c0_1] : memref<24x32x140xbf16, #tpu.memory_space<vmem>>, vector<24x32x140xbf16>
    %1 = vector.shape_cast %0 : vector<24x32x140xbf16> to vector<768x140xbf16>
    %c0_2 = arith.constant 0 : index
    %c0_3 = arith.constant 0 : index
    %2 = vector.load %arg2[%c0_2, %c0_3] : memref<140x768xbf16, #tpu.memory_space<vmem>>, vector<140x768xbf16>
    %cst = arith.constant dense<0.000000e+00> : vector<768x768xf32>
    %3 = tpu.matmul %1, %2, %cst {dimension_numbers = #tpu.dot_dimension_numbers<[1], [0], [0], [1], [0, 0, 1, 1], [], []>} : vector<768x140xbf16>, vector<140x768xbf16>, vector<768x768xf32> -> vector<768x768xf32>
    %c0_4 = arith.constant 0 : index
    %c0_5 = arith.constant 0 : index
    %4 = vector.load %arg3[%c0_4, %c0_5] : memref<1x768xf32, #tpu.memory_space<vmem>>, vector<1x768xf32>
    %5 = vector.broadcast %4 : vector<1x768xf32> to vector<768x768xf32>
    %6 = arith.addf %3, %5 : vector<768x768xf32>
    %cst_6 = arith.constant 0.000000e+00 : f32
    %7 = vector.broadcast %cst_6 : f32 to vector<768x768xf32>
    %8 = arith.maximumf %6, %7 : vector<768x768xf32>
    %9 = vector.shape_cast %8 : vector<768x768xf32> to vector<12x2x32x768xf32>
    %10 = vector.extract_strided_slice %9 {offsets = [0, 0, 0, 0], sizes = [12, 1, 32, 768], strides = [1, 1, 1, 1]} : vector<12x2x32x768xf32> to vector<12x1x32x768xf32>
    %11 = vector.shape_cast %10 : vector<12x1x32x768xf32> to vector<12x32x768xf32>
    %12 = vector.extract_strided_slice %9 {offsets = [0, 1, 0, 0], sizes = [12, 1, 32, 768], strides = [1, 1, 1, 1]} : vector<12x2x32x768xf32> to vector<12x1x32x768xf32>
    %13 = vector.shape_cast %12 : vector<12x1x32x768xf32> to vector<12x32x768xf32>
    %14 = arith.maximumf %11, %13 : vector<12x32x768xf32>
    %15 = vector.extract_strided_slice %14 {offsets = [0, 0, 0], sizes = [12, 32, 384], strides = [1, 1, 1]} : vector<12x32x768xf32> to vector<12x32x384xf32>
    %16 = vector.extract_strided_slice %14 {offsets = [0, 0, 384], sizes = [12, 32, 384], strides = [1, 1, 1]} : vector<12x32x768xf32> to vector<12x32x384xf32>
    %17 = arith.maximumf %15, %16 : vector<12x32x384xf32>
    %18 = arith.truncf %17 : vector<12x32x384xf32> to vector<12x32x384xbf16>
    %19 = vector.extract_strided_slice %18 {offsets = [0, 0, 0], sizes = [8, 32, 384], strides = [1, 1, 1]} : vector<12x32x384xbf16> to vector<8x32x384xbf16>
    %20 = vector.shape_cast %19 : vector<8x32x384xbf16> to vector<256x384xbf16>
    %c0_7 = arith.constant 0 : index
    %c0_8 = arith.constant 0 : index
    %c0_9 = arith.constant 0 : index
    %21 = vector.load %arg4[%c0_7, %c0_8, %c0_9] : memref<5x384x256xbf16, #tpu.memory_space<vmem>>, vector<1x384x256xbf16>
    %22 = vector.shape_cast %21 : vector<1x384x256xbf16> to vector<384x256xbf16>
    %cst_10 = arith.constant dense<0.000000e+00> : vector<256x256xf32>
    %23 = tpu.matmul %20, %22, %cst_10 {dimension_numbers = #tpu.dot_dimension_numbers<[1], [0], [0], [1], [0, 0, 1, 1], [], []>} : vector<256x384xbf16>, vector<384x256xbf16>, vector<256x256xf32> -> vector<256x256xf32>
    %24 = vector.extract_strided_slice %18 {offsets = [1, 0, 0], sizes = [8, 32, 384], strides = [1, 1, 1]} : vector<12x32x384xbf16> to vector<8x32x384xbf16>
    %25 = vector.shape_cast %24 : vector<8x32x384xbf16> to vector<256x384xbf16>
    %c1 = arith.constant 1 : index
    %c0_11 = arith.constant 0 : index
    %c0_12 = arith.constant 0 : index
    %26 = vector.load %arg4[%c1, %c0_11, %c0_12] : memref<5x384x256xbf16, #tpu.memory_space<vmem>>, vector<1x384x256xbf16>
    %27 = vector.shape_cast %26 : vector<1x384x256xbf16> to vector<384x256xbf16>
    %cst_13 = arith.constant dense<0.000000e+00> : vector<256x256xf32>
    %28 = tpu.matmul %25, %27, %cst_13 {dimension_numbers = #tpu.dot_dimension_numbers<[1], [0], [0], [1], [0, 0, 1, 1], [], []>} : vector<256x384xbf16>, vector<384x256xbf16>, vector<256x256xf32> -> vector<256x256xf32>
    %29 = arith.addf %23, %28 : vector<256x256xf32>
    %30 = vector.extract_strided_slice %18 {offsets = [2, 0, 0], sizes = [8, 32, 384], strides = [1, 1, 1]} : vector<12x32x384xbf16> to vector<8x32x384xbf16>
    %31 = vector.shape_cast %30 : vector<8x32x384xbf16> to vector<256x384xbf16>
    %c2 = arith.constant 2 : index
    %c0_14 = arith.constant 0 : index
    %c0_15 = arith.constant 0 : index
    %32 = vector.load %arg4[%c2, %c0_14, %c0_15] : memref<5x384x256xbf16, #tpu.memory_space<vmem>>, vector<1x384x256xbf16>
    %33 = vector.shape_cast %32 : vector<1x384x256xbf16> to vector<384x256xbf16>
    %cst_16 = arith.constant dense<0.000000e+00> : vector<256x256xf32>
    %34 = tpu.matmul %31, %33, %cst_16 {dimension_numbers = #tpu.dot_dimension_numbers<[1], [0], [0], [1], [0, 0, 1, 1], [], []>} : vector<256x384xbf16>, vector<384x256xbf16>, vector<256x256xf32> -> vector<256x256xf32>
    %35 = arith.addf %29, %34 : vector<256x256xf32>
    %36 = vector.extract_strided_slice %18 {offsets = [3, 0, 0], sizes = [8, 32, 384], strides = [1, 1, 1]} : vector<12x32x384xbf16> to vector<8x32x384xbf16>
    %37 = vector.shape_cast %36 : vector<8x32x384xbf16> to vector<256x384xbf16>
    %c3 = arith.constant 3 : index
    %c0_17 = arith.constant 0 : index
    %c0_18 = arith.constant 0 : index
    %38 = vector.load %arg4[%c3, %c0_17, %c0_18] : memref<5x384x256xbf16, #tpu.memory_space<vmem>>, vector<1x384x256xbf16>
    %39 = vector.shape_cast %38 : vector<1x384x256xbf16> to vector<384x256xbf16>
    %cst_19 = arith.constant dense<0.000000e+00> : vector<256x256xf32>
    %40 = tpu.matmul %37, %39, %cst_19 {dimension_numbers = #tpu.dot_dimension_numbers<[1], [0], [0], [1], [0, 0, 1, 1], [], []>} : vector<256x384xbf16>, vector<384x256xbf16>, vector<256x256xf32> -> vector<256x256xf32>
    %41 = arith.addf %35, %40 : vector<256x256xf32>
    %42 = vector.extract_strided_slice %18 {offsets = [4, 0, 0], sizes = [8, 32, 384], strides = [1, 1, 1]} : vector<12x32x384xbf16> to vector<8x32x384xbf16>
    %43 = vector.shape_cast %42 : vector<8x32x384xbf16> to vector<256x384xbf16>
    %c4 = arith.constant 4 : index
    %c0_20 = arith.constant 0 : index
    %c0_21 = arith.constant 0 : index
    %44 = vector.load %arg4[%c4, %c0_20, %c0_21] : memref<5x384x256xbf16, #tpu.memory_space<vmem>>, vector<1x384x256xbf16>
    %45 = vector.shape_cast %44 : vector<1x384x256xbf16> to vector<384x256xbf16>
    %cst_22 = arith.constant dense<0.000000e+00> : vector<256x256xf32>
    %46 = tpu.matmul %43, %45, %cst_22 {dimension_numbers = #tpu.dot_dimension_numbers<[1], [0], [0], [1], [0, 0, 1, 1], [], []>} : vector<256x384xbf16>, vector<384x256xbf16>, vector<256x256xf32> -> vector<256x256xf32>
    %47 = arith.addf %41, %46 : vector<256x256xf32>
    %c0_23 = arith.constant 0 : index
    %c0_24 = arith.constant 0 : index
    %48 = vector.load %arg5[%c0_23, %c0_24] : memref<1x256xf32, #tpu.memory_space<vmem>>, vector<1x256xf32>
    %49 = vector.broadcast %48 : vector<1x256xf32> to vector<256x256xf32>
    %50 = arith.addf %47, %49 : vector<256x256xf32>
    %cst_25 = arith.constant 0.000000e+00 : f32
    %51 = vector.broadcast %cst_25 : f32 to vector<256x256xf32>
    %52 = arith.maximumf %50, %51 : vector<256x256xf32>
    %53 = vector.shape_cast %52 : vector<256x256xf32> to vector<4x2x32x256xf32>
    %54 = vector.extract_strided_slice %53 {offsets = [0, 0, 0, 0], sizes = [4, 1, 32, 256], strides = [1, 1, 1, 1]} : vector<4x2x32x256xf32> to vector<4x1x32x256xf32>
    %55 = vector.shape_cast %54 : vector<4x1x32x256xf32> to vector<4x32x256xf32>
    %56 = vector.extract_strided_slice %53 {offsets = [0, 1, 0, 0], sizes = [4, 1, 32, 256], strides = [1, 1, 1, 1]} : vector<4x2x32x256xf32> to vector<4x1x32x256xf32>
    %57 = vector.shape_cast %56 : vector<4x1x32x256xf32> to vector<4x32x256xf32>
    %58 = arith.maximumf %55, %57 : vector<4x32x256xf32>
    %59 = vector.extract_strided_slice %58 {offsets = [0, 0, 0], sizes = [4, 32, 128], strides = [1, 1, 1]} : vector<4x32x256xf32> to vector<4x32x128xf32>
    %60 = vector.extract_strided_slice %58 {offsets = [0, 0, 128], sizes = [4, 32, 128], strides = [1, 1, 1]} : vector<4x32x256xf32> to vector<4x32x128xf32>
    %61 = arith.maximumf %59, %60 : vector<4x32x128xf32>
    %62 = arith.truncf %61 : vector<4x32x128xf32> to vector<4x32x128xbf16>
    %63 = vector.extract_strided_slice %62 {offsets = [0, 0, 0], sizes = [1, 32, 128], strides = [1, 1, 1]} : vector<4x32x128xbf16> to vector<1x32x128xbf16>
    %64 = vector.shape_cast %63 : vector<1x32x128xbf16> to vector<32x128xbf16>
    %c0_26 = arith.constant 0 : index
    %c0_27 = arith.constant 0 : index
    %c0_28 = arith.constant 0 : index
    %65 = vector.load %arg6[%c0_26, %c0_27, %c0_28] : memref<4x128x128xbf16, #tpu.memory_space<vmem>>, vector<1x128x128xbf16>
    %66 = vector.shape_cast %65 : vector<1x128x128xbf16> to vector<128x128xbf16>
    %cst_29 = arith.constant dense<0.000000e+00> : vector<32x128xf32>
    %67 = tpu.matmul %64, %66, %cst_29 {dimension_numbers = #tpu.dot_dimension_numbers<[1], [0], [0], [1], [0, 0, 1, 1], [], []>} : vector<32x128xbf16>, vector<128x128xbf16>, vector<32x128xf32> -> vector<32x128xf32>
    %68 = vector.extract_strided_slice %62 {offsets = [1, 0, 0], sizes = [1, 32, 128], strides = [1, 1, 1]} : vector<4x32x128xbf16> to vector<1x32x128xbf16>
    %69 = vector.shape_cast %68 : vector<1x32x128xbf16> to vector<32x128xbf16>
    %c1_30 = arith.constant 1 : index
    %c0_31 = arith.constant 0 : index
    %c0_32 = arith.constant 0 : index
    %70 = vector.load %arg6[%c1_30, %c0_31, %c0_32] : memref<4x128x128xbf16, #tpu.memory_space<vmem>>, vector<1x128x128xbf16>
    %71 = vector.shape_cast %70 : vector<1x128x128xbf16> to vector<128x128xbf16>
    %cst_33 = arith.constant dense<0.000000e+00> : vector<32x128xf32>
    %72 = tpu.matmul %69, %71, %cst_33 {dimension_numbers = #tpu.dot_dimension_numbers<[1], [0], [0], [1], [0, 0, 1, 1], [], []>} : vector<32x128xbf16>, vector<128x128xbf16>, vector<32x128xf32> -> vector<32x128xf32>
    %73 = arith.addf %67, %72 : vector<32x128xf32>
    %74 = vector.extract_strided_slice %62 {offsets = [2, 0, 0], sizes = [1, 32, 128], strides = [1, 1, 1]} : vector<4x32x128xbf16> to vector<1x32x128xbf16>
    %75 = vector.shape_cast %74 : vector<1x32x128xbf16> to vector<32x128xbf16>
    %c2_34 = arith.constant 2 : index
    %c0_35 = arith.constant 0 : index
    %c0_36 = arith.constant 0 : index
    %76 = vector.load %arg6[%c2_34, %c0_35, %c0_36] : memref<4x128x128xbf16, #tpu.memory_space<vmem>>, vector<1x128x128xbf16>
    %77 = vector.shape_cast %76 : vector<1x128x128xbf16> to vector<128x128xbf16>
    %cst_37 = arith.constant dense<0.000000e+00> : vector<32x128xf32>
    %78 = tpu.matmul %75, %77, %cst_37 {dimension_numbers = #tpu.dot_dimension_numbers<[1], [0], [0], [1], [0, 0, 1, 1], [], []>} : vector<32x128xbf16>, vector<128x128xbf16>, vector<32x128xf32> -> vector<32x128xf32>
    %79 = arith.addf %73, %78 : vector<32x128xf32>
    %80 = vector.extract_strided_slice %62 {offsets = [3, 0, 0], sizes = [1, 32, 128], strides = [1, 1, 1]} : vector<4x32x128xbf16> to vector<1x32x128xbf16>
    %81 = vector.shape_cast %80 : vector<1x32x128xbf16> to vector<32x128xbf16>
    %c3_38 = arith.constant 3 : index
    %c0_39 = arith.constant 0 : index
    %c0_40 = arith.constant 0 : index
    %82 = vector.load %arg6[%c3_38, %c0_39, %c0_40] : memref<4x128x128xbf16, #tpu.memory_space<vmem>>, vector<1x128x128xbf16>
    %83 = vector.shape_cast %82 : vector<1x128x128xbf16> to vector<128x128xbf16>
    %cst_41 = arith.constant dense<0.000000e+00> : vector<32x128xf32>
    %84 = tpu.matmul %81, %83, %cst_41 {dimension_numbers = #tpu.dot_dimension_numbers<[1], [0], [0], [1], [0, 0, 1, 1], [], []>} : vector<32x128xbf16>, vector<128x128xbf16>, vector<32x128xf32> -> vector<32x128xf32>
    %85 = arith.addf %79, %84 : vector<32x128xf32>
    %c0_42 = arith.constant 0 : index
    %c0_43 = arith.constant 0 : index
    %86 = vector.load %arg7[%c0_42, %c0_43] : memref<1x128xf32, #tpu.memory_space<vmem>>, vector<1x128xf32>
    %87 = vector.broadcast %86 : vector<1x128xf32> to vector<32x128xf32>
    %88 = arith.addf %85, %87 : vector<32x128xf32>
    %89 = math.tanh %88 : vector<32x128xf32>
    %90 = arith.truncf %89 : vector<32x128xf32> to vector<32x128xbf16>
    %c0_44 = arith.constant 0 : index
    %c0_45 = arith.constant 0 : index
    %91 = vector.load %arg8[%c0_44, %c0_45] : memref<128x128xbf16, #tpu.memory_space<vmem>>, vector<128x128xbf16>
    %cst_46 = arith.constant dense<0.000000e+00> : vector<32x128xf32>
    %92 = tpu.matmul %90, %91, %cst_46 {dimension_numbers = #tpu.dot_dimension_numbers<[1], [0], [0], [1], [0, 0, 1, 1], [], []>} : vector<32x128xbf16>, vector<128x128xbf16>, vector<32x128xf32> -> vector<32x128xf32>
    %c0_47 = arith.constant 0 : index
    %c0_48 = arith.constant 0 : index
    %93 = vector.load %arg9[%c0_47, %c0_48] : memref<1x128xf32, #tpu.memory_space<vmem>>, vector<1x128xf32>
    %94 = vector.broadcast %93 : vector<1x128xf32> to vector<32x128xf32>
    %95 = arith.addf %92, %94 : vector<32x128xf32>
    %c0_49 = arith.constant 0 : index
    %c0_50 = arith.constant 0 : index
    %96 = vector.load %arg10[%c0_49, %c0_50] : memref<32x128xf32, #tpu.memory_space<vmem>>, vector<32x128xf32>
    tpu.vector_store %arg10[%c0_49, %c0_50], %95 {strides = array<i32>} : memref<32x128xf32, #tpu.memory_space<vmem>>, vector<32x128xf32>,
    return
  }
  func.func @transform_0(%arg0: i32) -> (i32, i32, i32) {
    %c0_i32 = arith.constant 0 : i32
    %c0_i32_0 = arith.constant 0 : i32
    %c0_i32_1 = arith.constant 0 : i32
    return %c0_i32, %arg0, %c0_i32_0 : i32, i32, i32
  }
  func.func @transform_1(%arg0: i32) -> (i32, i32) {
    %c0_i32 = arith.constant 0 : i32
    %c0_i32_0 = arith.constant 0 : i32
    %c0_i32_1 = arith.constant 0 : i32
    return %c0_i32, %c0_i32_0 : i32, i32
  }
  func.func @transform_2(%arg0: i32) -> (i32, i32) {
    %c0_i32 = arith.constant 0 : i32
    %c0_i32_0 = arith.constant 0 : i32
    %c0_i32_1 = arith.constant 0 : i32
    return %c0_i32, %c0_i32_0 : i32, i32
  }
  func.func @transform_3(%arg0: i32) -> (i32, i32, i32) {
    %c0_i32 = arith.constant 0 : i32
    %c0_i32_0 = arith.constant 0 : i32
    %c0_i32_1 = arith.constant 0 : i32
    %c0_i32_2 = arith.constant 0 : i32
    return %c0_i32, %c0_i32_0, %c0_i32_1 : i32, i32, i32
  }
  func.func @transform_4(%arg0: i32) -> (i32, i32) {
    %c0_i32 = arith.constant 0 : i32
    %c0_i32_0 = arith.constant 0 : i32
    %c0_i32_1 = arith.constant 0 : i32
    return %c0_i32, %c0_i32_0 : i32, i32
  }
  func.func @transform_5(%arg0: i32) -> (i32, i32, i32) {
    %c0_i32 = arith.constant 0 : i32
    %c0_i32_0 = arith.constant 0 : i32
    %c0_i32_1 = arith.constant 0 : i32
    %c0_i32_2 = arith.constant 0 : i32
    return %c0_i32, %c0_i32_0, %c0_i32_1 : i32, i32, i32
  }
  func.func @transform_6(%arg0: i32) -> (i32, i32) {
    %c0_i32 = arith.constant 0 : i32
    %c0_i32_0 = arith.constant 0 : i32
    %c0_i32_1 = arith.constant 0 : i32
    return %c0_i32, %c0_i32_0 : i32, i32
  }
  func.func @transform_7(%arg0: i32) -> (i32, i32) {
    %c0_i32 = arith.constant 0 : i32
    %c0_i32_0 = arith.constant 0 : i32
    %c0_i32_1 = arith.constant 0 : i32
    return %c0_i32, %c0_i32_0 : i32, i32
  }
  func.func @transform_8(%arg0: i32) -> (i32, i32) {
    %c0_i32 = arith.constant 0 : i32
    %c0_i32_0 = arith.constant 0 : i32
    %c0_i32_1 = arith.constant 0 : i32
    return %c0_i32, %c0_i32_0 : i32, i32
  }
  func.func @transform_9(%arg0: i32) -> (i32, i32) {
    %c0_i32 = arith.constant 0 : i32
    %c0_i32_0 = arith.constant 0 : i32
    return %arg0, %c0_i32 : i32, i32
  }
}

</mosaic_0001>

<bundles_post_ra>
// kernel: fused_forward.1
= control target key start
LH: loop header
LB: loop body
LE: loop exit
PB: predicated region body
PF: predicated region fallthrough
CT: control target
= control target key end

     0   :  { %s11341_s30 = smov 0   ;;  %s11343_s10 = smov 0   ;;  %s14630_s0 = inlined_call_operand.vmem [shape: bf16[24,64,140], index: 0, kind: input, shape index: {}]   ;;  %s14631_s1 = inlined_call_operand.vmem [shape: bf16[140,768], index: 1, kind: input, shape index: {}]   ;;  %s14632_s2 = inlined_call_operand.vmem [shape: f32[1,768], index: 2, kind: input, shape index: {}]   ;;  %s14633_s3 = inlined_call_operand.vmem [shape: bf16[5,384,256], index: 3, kind: input, shape index: {}]   ;;  %s14634_s4 = inlined_call_operand.vmem [shape: f32[1,256], index: 4, kind: input, shape index: {}]   ;;  %s14635_s5 = inlined_call_operand.vmem [shape: bf16[4,128,128], index: 5, kind: input, shape index: {}]   ;;  %s14636_s6 = inlined_call_operand.vmem [shape: f32[1,128], index: 6, kind: input, shape index: {}]   ;;  %s14637_s7 = inlined_call_operand.vmem [shape: bf16[128,128], index: 7, kind: input, shape index: {}]   ;;  %s14638_s8 = inlined_call_operand.vmem [shape: f32[1,128], index: 8, kind: input, shape index: {}]   ;;  %s14639_s9 = inlined_call_operand.vmem [shape: f32[64,128], index: 9, kind: output, shape index: {}]  }
   0x1   :  { %s11345_s11 = smov 0  }
   0x2 LB: > { %s8841_s12 = sadd.s32 4294967295, %s11288_s11   ;;  %s11358_s13 = sadd.s32 1, %s11288_s11   ;;  %s11288_s11 = sphi %s11345_s11, %s14932_s11   ;;  %s11284_s10 = sphi %s11343_s10, %s14931_s10   ;;  %s11280_s30 = sphi %s11341_s30, %s14930_s30  }
   0x3   : > { %s23_s14 = ssub.s32 %s11288_s11, %s11358_s13  ;;  %s26_s15 = sadd.s32 1, %s11284_s10 }
   0x4   : > { %p24_p0 = scmp.eq.s32.totalorder %s23_s14, 0  ;;  %p33_p1 = scmp.ne.s32.totalorder %s11284_s10, %s11280_s30 }
   0x5   : > { %p34_p2 = scmp.eq.s32.totalorder %s11288_s11, 0  ;;  %p8844_p4 = scmp.ge.s32.totalorder %s11288_s11, 2 }
   0x6   : > { %s11367_s16 = scalar_select %p24_p0, %s11284_s10, %s26_s15  }
   0x7   : > { %p35_p3 = por %p34_p2, %p33_p1  ;;  %277 = sbr.rel (%p8844_p4) target bundleno = 67 (0x43), region = 48 }
   0xe   : > { %280 = sbr.rel (!%p35_p3) target bundleno = 67 (0x43), region = 52  ;;  %s282_s17 = sand.u32 (%p35_p3), 1, %s11284_s10  }
   0xf   : > { %s9673_s18 = sshll.u32 (%p35_p3), %s11288_s11, 5  ;;  %s10412_s19 = smul.u32 (%p35_p3), 768, %s282_s17 }
  0x10   : > { %s11375_s22 = scalar_lea.vmem (%p35_p3), %s14630_s0, %s9673_s18 }
  0x11   : > { %v506_v0 = vld [vmem:[%s11375_s22] sm:$0xff] (%p35_p3)  ;;  %v508_v1 = vld [vmem:[%s11375_s22 + $0x8] sm:$0xff] (%p35_p3)  ;;  %v510_v2 = vld [vmem:[%s11375_s22 + $0x10] sm:$0xff] (%p35_p3)  ;;  %s11383_s23 = scalar_lea.vmem (%p35_p3), [#allocation2], %s10412_s19 }
  0x12   : > { %v512_v3 = vld [vmem:[%s11375_s22 + $0x18] sm:$0xff] (%p35_p3)  ;;  %v514_v4 = vld [vmem:[%s11375_s22 + $0x40] sm:$0xff] (%p35_p3)  ;;  %v516_v5 = vld [vmem:[%s11375_s22 + $0x48] sm:$0xff] (%p35_p3)  ;;  %507 = vst [vmem:[%s11383_s23] sm:$0xff] (%p35_p3), %v506_v0 }
  0x13   : > { %509 = vst [vmem:[%s11383_s23 + $0x8] sm:$0xff] (%p35_p3), %v508_v1  ;;  %511 = vst [vmem:[%s11383_s23 + $0x10] sm:$0xff] (%p35_p3), %v510_v2  ;;  %v518_v6 = vld [vmem:[%s11375_s22 + $0x50] sm:$0xff] (%p35_p3)  ;;  %v520_v7 = vld [vmem:[%s11375_s22 + $0x58] sm:$0xff] (%p35_p3) }
  0x14   : > { %513 = vst [vmem:[%s11383_s23 + $0x18] sm:$0xff] (%p35_p3), %v512_v3  ;;  %515 = vst [vmem:[%s11383_s23 + $0x20] sm:$0xff] (%p35_p3), %v514_v4  ;;  %v522_v8 = vld [vmem:[%s11375_s22 + $0x80] sm:$0xff] (%p35_p3)  ;;  %v524_v9 = vld [vmem:[%s11375_s22 + $0x88] sm:$0xff] (%p35_p3) }
  0x15   : > { %517 = vst [vmem:[%s11383_s23 + $0x28] sm:$0xff] %v516_v5  ;;  %519 = vst [vmem:[%s11383_s23 + $0x30] sm:$0xff] %v518_v6  ;;  %v526_v10 = vld [vmem:[%s11375_s22 + $0x90] sm:$0xff]  ;;  %v528_v11 = vld [vmem:[%s11375_s22 + $0x98] sm:$0xff] }
  0x16   : > { %521 = vst [vmem:[%s11383_s23 + $0x38] sm:$0xff] %v520_v7  ;;  %523 = vst [vmem:[%s11383_s23 + $0x40] sm:$0xff] %v522_v8  ;;  %v530_v12 = vld [vmem:[%s11375_s22 + $0xc0] sm:$0xff]  ;;  %v532_v13 = vld [vmem:[%s11375_s22 + $0xc8] sm:$0xff] }
  0x17   : > { %525 = vst [vmem:[%s11383_s23 + $0x48] sm:$0xff] %v524_v9  ;;  %527 = vst [vmem:[%s11383_s23 + $0x50] sm:$0xff] %v526_v10  ;;  %v534_v14 = vld [vmem:[%s11375_s22 + $0xd0] sm:$0xff]  ;;  %v536_v15 = vld [vmem:[%s11375_s22 + $0xd8] sm:$0xff] }
  0x18   : > { %529 = vst [vmem:[%s11383_s23 + $0x58] sm:$0xff] %v528_v11  ;;  %531 = vst [vmem:[%s11383_s23 + $0x60] sm:$0xff] %v530_v12  ;;  %v538_v16 = vld [vmem:[%s11375_s22 + $0x100] sm:$0xff]  ;;  %v540_v17 = vld [vmem:[%s11375_s22 + $0x108] sm:$0xff] }
  0x19   : > { %533 = vst [vmem:[%s11383_s23 + $0x68] sm:$0xff] %v532_v13  ;;  %535 = vst [vmem:[%s11383_s23 + $0x70] sm:$0xff] %v534_v14  ;;  %v542_v18 = vld [vmem:[%s11375_s22 + $0x110] sm:$0xff]  ;;  %v544_v19 = vld [vmem:[%s11375_s22 + $0x118] sm:$0xff] }
  0x1a   : > { %537 = vst [vmem:[%s11383_s23 + $0x78] sm:$0xff] %v536_v15  ;;  %539 = vst [vmem:[%s11383_s23 + $0x80] sm:$0xff] %v538_v16  ;;  %v546_v20 = vld [vmem:[%s11375_s22 + $0x140] sm:$0xff]  ;;  %v548_v21 = vld [vmem:[%s11375_s22 + $0x148] sm:$0xff] }
  0x1b   : > { %541 = vst [vmem:[%s11383_s23 + $0x88] sm:$0xff] %v540_v17  ;;  %543 = vst [vmem:[%s11383_s23 + $0x90] sm:$0xff] %v542_v18  ;;  %v550_v22 = vld [vmem:[%s11375_s22 + $0x150] sm:$0xff]  ;;  %v552_v23 = vld [vmem:[%s11375_s22 + $0x158] sm:$0xff] }
  0x1c   : > { %545 = vst [vmem:[%s11383_s23 + $0x98] sm:$0xff] %v544_v19  ;;  %547 = vst [vmem:[%s11383_s23 + $0xa0] sm:$0xff] %v546_v20  ;;  %v554_v24 = vld [vmem:[%s11375_s22 + $0x180] sm:$0xff]  ;;  %v556_v25 = vld [vmem:[%s11375_s22 + $0x188] sm:$0xff] }
  0x1d   : > { %549 = vst [vmem:[%s11383_s23 + $0xa8] sm:$0xff] %v548_v21  ;;  %551 = vst [vmem:[%s11383_s23 + $0xb0] sm:$0xff] %v550_v22  ;;  %v558_v26 = vld [vmem:[%s11375_s22 + $0x190] sm:$0xff]  ;;  %v560_v27 = vld [vmem:[%s11375_s22 + $0x198] sm:$0xff] }
  0x1e   : > { %553 = vst [vmem:[%s11383_s23 + $0xb8] sm:$0xff] %v552_v23  ;;  %555 = vst [vmem:[%s11383_s23 + $0xc0] sm:$0xff] %v554_v24  ;;  %v562_v28 = vld [vmem:[%s11375_s22 + $0x1c0] sm:$0xff]  ;;  %v564_v29 = vld [vmem:[%s11375_s22 + $0x1c8] sm:$0xff] }
  0x1f   : > { %557 = vst [vmem:[%s11383_s23 + $0xc8] sm:$0xff] %v556_v25  ;;  %559 = vst [vmem:[%s11383_s23 + $0xd0] sm:$0xff] %v558_v26  ;;  %v566_v30 = vld [vmem:[%s11375_s22 + $0x1d0] sm:$0xff]  ;;  %v568_v31 = vld [vmem:[%s11375_s22 + $0x1d8] sm:$0xff] }
  0x20   : > { %561 = vst [vmem:[%s11383_s23 + $0xd8] sm:$0xff] %v560_v27  ;;  %563 = vst [vmem:[%s11383_s23 + $0xe0] sm:$0xff] %v562_v28  ;;  %v570_v32 = vld [vmem:[%s11375_s22 + $0x200] sm:$0xff]  ;;  %v572_v33 = vld [vmem:[%s11375_s22 + $0x208] sm:$0xff] }
  0x21   : > { %565 = vst [vmem:[%s11383_s23 + $0xe8] sm:$0xff] %v564_v29  ;;  %567 = vst [vmem:[%s11383_s23 + $0xf0] sm:$0xff] %v566_v30  ;;  %v574_v34 = vld [vmem:[%s11375_s22 + $0x210] sm:$0xff]  ;;  %v576_v35 = vld [vmem:[%s11375_s22 + $0x218] sm:$0xff] }
  0x22   : > { %569 = vst [vmem:[%s11383_s23 + $0xf8] sm:$0xff] %v568_v31  ;;  %571 = vst [vmem:[%s11383_s23 + $0x100] sm:$0xff] %v570_v32  ;;  %v578_v36 = vld [vmem:[%s11375_s22 + $0x240] sm:$0xff]  ;;  %v580_v37 = vld [vmem:[%s11375_s22 + $0x248] sm:$0xff] }
  0x23   : > { %573 = vst [vmem:[%s11383_s23 + $0x108] sm:$0xff] %v572_v33  ;;  %575 = vst [vmem:[%s11383_s23 + $0x110] sm:$0xff] %v574_v34  ;;  %v582_v38 = vld [vmem:[%s11375_s22 + $0x250] sm:$0xff]  ;;  %v584_v39 = vld [vmem:[%s11375_s22 + $0x258] sm:$0xff] }
  0x24   : > { %577 = vst [vmem:[%s11383_s23 + $0x118] sm:$0xff] %v576_v35  ;;  %579 = vst [vmem:[%s11383_s23 + $0x120] sm:$0xff] %v578_v36  ;;  %v586_v40 = vld [vmem:[%s11375_s22 + $0x280] sm:$0xff]  ;;  %v588_v41 = vld [vmem:[%s11375_s22 + $0x288] sm:$0xff] }
  0x25   : > { %581 = vst [vmem:[%s11383_s23 + $0x128] sm:$0xff] %v580_v37  ;;  %583 = vst [vmem:[%s11383_s23 + $0x130] sm:$0xff] %v582_v38  ;;  %v590_v42 = vld [vmem:[%s11375_s22 + $0x290] sm:$0xff]  ;;  %v592_v43 = vld [vmem:[%s11375_s22 + $0x298] sm:$0xff] }
  0x26   : > { %585 = vst [vmem:[%s11383_s23 + $0x138] sm:$0xff] %v584_v39  ;;  %587 = vst [vmem:[%s11383_s23 + $0x140] sm:$0xff] %v586_v40  ;;  %v594_v44 = vld [vmem:[%s11375_s22 + $0x2c0] sm:$0xff]  ;;  %v596_v45 = vld [vmem:[%s11375_s22 + $0x2c8] sm:$0xff] }
  0x27   : > { %589 = vst [vmem:[%s11383_s23 + $0x148] sm:$0xff] %v588_v41  ;;  %591 = vst [vmem:[%s11383_s23 + $0x150] sm:$0xff] %v590_v42  ;;  %v598_v46 = vld [vmem:[%s11375_s22 + $0x2d0] sm:$0xff]  ;;  %v600_v47 = vld [vmem:[%s11375_s22 + $0x2d8] sm:$0xff] }
  0x28   : > { %593 = vst [vmem:[%s11383_s23 + $0x158] sm:$0xff] %v592_v43  ;;  %595 = vst [vmem:[%s11383_s23 + $0x160] sm:$0xff] %v594_v44  ;;  %v602_v48 = vld [vmem:[%s11375_s22 + $0x300] sm:$0xff]  ;;  %v604_v49 = vld [vmem:[%s11375_s22 + $0x308] sm:$0xff] }
  0x29   : > { %597 = vst [vmem:[%s11383_s23 + $0x168] sm:$0xff] %v596_v45  ;;  %599 = vst [vmem:[%s11383_s23 + $0x170] sm:$0xff] %v598_v46  ;;  %v606_v50 = vld [vmem:[%s11375_s22 + $0x310] sm:$0xff]  ;;  %v608_v51 = vld [vmem:[%s11375_s22 + $0x318] sm:$0xff] }
  0x2a   : > { %601 = vst [vmem:[%s11383_s23 + $0x178] sm:$0xff] %v600_v47  ;;  %603 = vst [vmem:[%s11383_s23 + $0x180] sm:$0xff] %v602_v48  ;;  %v610_v52 = vld [vmem:[%s11375_s22 + $0x340] sm:$0xff]  ;;  %v612_v53 = vld [vmem:[%s11375_s22 + $0x348] sm:$0xff] }
  0x2b   : > { %605 = vst [vmem:[%s11383_s23 + $0x188] sm:$0xff] %v604_v49  ;;  %607 = vst [vmem:[%s11383_s23 + $0x190] sm:$0xff] %v606_v50  ;;  %v614_v54 = vld [vmem:[%s11375_s22 + $0x350] sm:$0xff]  ;;  %v616_v55 = vld [vmem:[%s11375_s22 + $0x358] sm:$0xff] }
  0x2c   : > { %609 = vst [vmem:[%s11383_s23 + $0x198] sm:$0xff] %v608_v51  ;;  %611 = vst [vmem:[%s11383_s23 + $0x1a0] sm:$0xff] %v610_v52  ;;  %v618_v56 = vld [vmem:[%s11375_s22 + $0x380] sm:$0xff]  ;;  %v620_v57 = vld [vmem:[%s11375_s22 + $0x388] sm:$0xff] }
  0x2d   : > { %613 = vst [vmem:[%s11383_s23 + $0x1a8] sm:$0xff] %v612_v53  ;;  %615 = vst [vmem:[%s11383_s23 + $0x1b0] sm:$0xff] %v614_v54  ;;  %v622_v58 = vld [vmem:[%s11375_s22 + $0x390] sm:$0xff]  ;;  %v624_v59 = vld [vmem:[%s11375_s22 + $0x398] sm:$0xff] }
  0x2e   : > { %617 = vst [vmem:[%s11383_s23 + $0x1b8] sm:$0xff] %v616_v55  ;;  %619 = vst [vmem:[%s11383_s23 + $0x1c0] sm:$0xff] %v618_v56  ;;  %v626_v60 = vld [vmem:[%s11375_s22 + $0x3c0] sm:$0xff]  ;;  %v628_v61 = vld [vmem:[%s11375_s22 + $0x3c8] sm:$0xff] }
  0x2f   : > { %621 = vst [vmem:[%s11383_s23 + $0x1c8] sm:$0xff] %v620_v57  ;;  %623 = vst [vmem:[%s11383_s23 + $0x1d0] sm:$0xff] %v622_v58  ;;  %v630_v62 = vld [vmem:[%s11375_s22 + $0x3d0] sm:$0xff]  ;;  %v632_v63 = vld [vmem:[%s11375_s22 + $0x3d8] sm:$0xff] }
  0x30   : > { %625 = vst [vmem:[%s11383_s23 + $0x1d8] sm:$0xff] %v624_v59  ;;  %627 = vst [vmem:[%s11383_s23 + $0x1e0] sm:$0xff] %v626_v60  ;;  %v634_v0 = vld [vmem:[%s11375_s22 + $0x400] sm:$0xff]  ;;  %v636_v1 = vld [vmem:[%s11375_s22 + $0x408] sm:$0xff] }
  0x31   : > { %629 = vst [vmem:[%s11383_s23 + $0x1e8] sm:$0xff] %v628_v61  ;;  %631 = vst [vmem:[%s11383_s23 + $0x1f0] sm:$0xff] %v630_v62  ;;  %v638_v2 = vld [vmem:[%s11375_s22 + $0x410] sm:$0xff]  ;;  %v640_v3 = vld [vmem:[%s11375_s22 + $0x418] sm:$0xff] }
  0x32   : > { %633 = vst [vmem:[%s11383_s23 + $0x1f8] sm:$0xff] %v632_v63  ;;  %635 = vst [vmem:[%s11383_s23 + $0x200] sm:$0xff] %v634_v0  ;;  %v642_v4 = vld [vmem:[%s11375_s22 + $0x440] sm:$0xff]  ;;  %v644_v5 = vld [vmem:[%s11375_s22 + $0x448] sm:$0xff] }
  0x33   : > { %637 = vst [vmem:[%s11383_s23 + $0x208] sm:$0xff] %v636_v1  ;;  %639 = vst [vmem:[%s11383_s23 + $0x210] sm:$0xff] %v638_v2  ;;  %v646_v6 = vld [vmem:[%s11375_s22 + $0x450] sm:$0xff]  ;;  %v648_v7 = vld [vmem:[%s11375_s22 + $0x458] sm:$0xff] }
  0x34   : > { %641 = vst [vmem:[%s11383_s23 + $0x218] sm:$0xff] %v640_v3  ;;  %643 = vst [vmem:[%s11383_s23 + $0x220] sm:$0xff] %v642_v4  ;;  %v650_v8 = vld [vmem:[%s11375_s22 + $0x480] sm:$0xff]  ;;  %v652_v9 = vld [vmem:[%s11375_s22 + $0x488] sm:$0xff] }
  0x35   : > { %645 = vst [vmem:[%s11383_s23 + $0x228] sm:$0xff] %v644_v5  ;;  %647 = vst [vmem:[%s11383_s23 + $0x230] sm:$0xff] %v646_v6  ;;  %v654_v10 = vld [vmem:[%s11375_s22 + $0x490] sm:$0xff]  ;;  %v656_v11 = vld [vmem:[%s11375_s22 + $0x498] sm:$0xff] }
  0x36   : > { %649 = vst [vmem:[%s11383_s23 + $0x238] sm:$0xff] %v648_v7  ;;  %651 = vst [vmem:[%s11383_s23 + $0x240] sm:$0xff] %v650_v8  ;;  %v658_v12 = vld [vmem:[%s11375_s22 + $0x4c0] sm:$0xff]  ;;  %v660_v13 = vld [vmem:[%s11375_s22 + $0x4c8] sm:$0xff] }
  0x37   : > { %653 = vst [vmem:[%s11383_s23 + $0x248] sm:$0xff] %v652_v9  ;;  %655 = vst [vmem:[%s11383_s23 + $0x250] sm:$0xff] %v654_v10  ;;  %v662_v14 = vld [vmem:[%s11375_s22 + $0x4d0] sm:$0xff]  ;;  %v664_v15 = vld [vmem:[%s11375_s22 + $0x4d8] sm:$0xff] }
  0x38   : > { %657 = vst [vmem:[%s11383_s23 + $0x258] sm:$0xff] %v656_v11  ;;  %659 = vst [vmem:[%s11383_s23 + $0x260] sm:$0xff] %v658_v12  ;;  %v666_v16 = vld [vmem:[%s11375_s22 + $0x500] sm:$0xff]  ;;  %v668_v17 = vld [vmem:[%s11375_s22 + $0x508] sm:$0xff] }
  0x39   : > { %661 = vst [vmem:[%s11383_s23 + $0x268] sm:$0xff] %v660_v13  ;;  %663 = vst [vmem:[%s11383_s23 + $0x270] sm:$0xff] %v662_v14  ;;  %v670_v18 = vld [vmem:[%s11375_s22 + $0x510] sm:$0xff]  ;;  %v672_v19 = vld [vmem:[%s11375_s22 + $0x518] sm:$0xff] }
  0x3a   : > { %665 = vst [vmem:[%s11383_s23 + $0x278] sm:$0xff] %v664_v15  ;;  %667 = vst [vmem:[%s11383_s23 + $0x280] sm:$0xff] %v666_v16  ;;  %v674_v20 = vld [vmem:[%s11375_s22 + $0x540] sm:$0xff]  ;;  %v676_v21 = vld [vmem:[%s11375_s22 + $0x548] sm:$0xff] }
  0x3b   : > { %669 = vst [vmem:[%s11383_s23 + $0x288] sm:$0xff] %v668_v17  ;;  %671 = vst [vmem:[%s11383_s23 + $0x290] sm:$0xff] %v670_v18  ;;  %v678_v22 = vld [vmem:[%s11375_s22 + $0x550] sm:$0xff]  ;;  %v680_v23 = vld [vmem:[%s11375_s22 + $0x558] sm:$0xff] }
  0x3c   : > { %673 = vst [vmem:[%s11383_s23 + $0x298] sm:$0xff] %v672_v19  ;;  %675 = vst [vmem:[%s11383_s23 + $0x2a0] sm:$0xff] %v674_v20  ;;  %v682_v24 = vld [vmem:[%s11375_s22 + $0x580] sm:$0xff]  ;;  %v684_v25 = vld [vmem:[%s11375_s22 + $0x588] sm:$0xff] }
  0x3d   : > { %677 = vst [vmem:[%s11383_s23 + $0x2a8] sm:$0xff] %v676_v21  ;;  %679 = vst [vmem:[%s11383_s23 + $0x2b0] sm:$0xff] %v678_v22  ;;  %v686_v26 = vld [vmem:[%s11375_s22 + $0x590] sm:$0xff]  ;;  %v688_v27 = vld [vmem:[%s11375_s22 + $0x598] sm:$0xff] }
  0x3e   : > { %681 = vst [vmem:[%s11383_s23 + $0x2b8] sm:$0xff] %v680_v23  ;;  %683 = vst [vmem:[%s11383_s23 + $0x2c0] sm:$0xff] %v682_v24  ;;  %v690_v28 = vld [vmem:[%s11375_s22 + $0x5c0] sm:$0xff]  ;;  %v692_v29 = vld [vmem:[%s11375_s22 + $0x5c8] sm:$0xff] }
  0x3f   : > { %685 = vst [vmem:[%s11383_s23 + $0x2c8] sm:$0xff] %v684_v25  ;;  %687 = vst [vmem:[%s11383_s23 + $0x2d0] sm:$0xff] %v686_v26  ;;  %v694_v30 = vld [vmem:[%s11375_s22 + $0x5d0] sm:$0xff]  ;;  %v696_v31 = vld [vmem:[%s11375_s22 + $0x5d8] sm:$0xff] }
  0x40   : > { %689 = vst [vmem:[%s11383_s23 + $0x2d8] sm:$0xff] %v688_v27  ;;  %691 = vst [vmem:[%s11383_s23 + $0x2e0] sm:$0xff] %v690_v28 }
  0x41   : > { %693 = vst [vmem:[%s11383_s23 + $0x2e8] sm:$0xff] %v692_v29  ;;  %695 = vst [vmem:[%s11383_s23 + $0x2f0] sm:$0xff] %v694_v30 }
  0x42   : > { %697 = vst [vmem:[%s11383_s23 + $0x2f8] sm:$0xff] %v696_v31 }
  0x43 PF: > { %p8848_p5 = scmp.ge.s32.totalorder %s11288_s11, 1  ;;  %p702_p6 = scmp.lt.s32.totalorder %s11288_s11, 3 }
  0x45   : > { %p703_p7 = pnand %p8848_p5, %p702_p6 }
  0x47   : > { %706 = sbr.rel (%p703_p7) target bundleno = 3246 (0xcae), region = 90 }
  0x4e   : > { %v10439_v32 = vld [vmem:[%s14631_s1 + $0x4] ss:$24 sps:$4 sm:$0xff]   ;;  %v10441_v33 = vld [vmem:[%s14631_s1] ss:$24 sps:$4 sm:$0xff]   ;;  %v10442_v34 = vld [vmem:[%s14631_s1 + $0x34] ss:$24 sps:$4 sm:$0xff]  }
  0x4f   : > { %1794 = vmatprep.subr.bf16.mxu0 %v10439_v32  ;;  %s709_s14 = sand.u32 1, %s11280_s30   ;;  %v10444_v35 = vld [vmem:[%s14631_s1 + $0x30] ss:$24 sps:$4 sm:$0xff]   ;;  %v10445_v36 = vld [vmem:[%s14631_s1 + $0x64] ss:$24 sps:$4 sm:$0xff]   ;;  %vm1630_vm0 = vcmask 97280  }
  0x50   : > { %1795 = vmatpush1.bf16.msra.mxu0 %v10441_v33  ;;  %s10413_s20 = smul.u32 768, %s709_s14  ;;  %v10447_v37 = vld [vmem:[%s14631_s1 + $0x60] ss:$24 sps:$4 sm:$0xff]   ;;  %v10448_v38 = vld [vmem:[%s14631_s1 + $0x94] ss:$24 sps:$4 sm:$0xff]   ;;  %vm1775_vm1 = vcmask 1045504  }
  0x51   : > { %1796 = vmatprep.subr.bf16.mxu0 %v10442_v34  ;;  %v10450_v39 = vld [vmem:[%s14631_s1 + $0x90] ss:$24 sps:$4 sm:$0xff]   ;;  %v10451_v40 = vld [vmem:[%s14631_s1 + $0xc4] ss:$24 sps:$4 sm:$0xff]   ;;  %v10453_v42 = vld [vmem:[%s14631_s1 + $0xc0] ss:$24 sps:$4 sm:$0xff]  }
  0x52   : > { %s11598_s26 = scalar_lea.vmem [#allocation2], %s10413_s20  ;;  %v10454_v43 = vld [vmem:[%s14631_s1 + $0xf4] ss:$24 sps:$4 sm:$0xff]   ;;  %v10456_v44 = vld [vmem:[%s14631_s1 + $0xf0] ss:$24 sps:$4 sm:$0xff]   ;;  %s8849_s29 = sshll.u32 %s8841_s12, 2 }
  0x53   : > { %v10466_v41 = vld [vmem:[%s11598_s26 + $0x4] ss:$8 sps:$4 sm:$0xff]   ;;  %v10459_v46 = vld [vmem:[%s14631_s1 + $0x120] ss:$24 sps:$4 sm:$0xff]   ;;  %v10462_v48 = vld [vmem:[%s14631_s1 + $0x150] ss:$24 sps:$4 sm:$0xff]  }
  0x54   : > { %1797 = vmatpush1.bf16.msra.mxu0 %v10444_v35  ;;  %9002 = vmatprep.mubr.msk.bf16.mxu0 %vm1630_vm0, %v10466_v41  ;;  %v10457_v45 = vld [vmem:[%s14631_s1 + $0x124] ss:$24 sps:$4 sm:$0xff]   ;;  %v10460_v47 = vld [vmem:[%s14631_s1 + $0x154] ss:$24 sps:$4 sm:$0xff]   ;;  %v10468_v53 = vld [vmem:[%s11598_s26] ss:$8 sps:$4 sm:$0xff]  }
  0x55   : > { %1798 = vmatprep.subr.bf16.mxu0 %v10445_v36  ;;  %v10463_v49 = vld [vmem:[%s14631_s1 + $0x184] ss:$24 sps:$4 sm:$0x3f]   ;;  %v10465_v50 = vld [vmem:[%s14631_s1 + $0x180] ss:$24 sps:$4 sm:$0x3f]  }
  0x56   : > { %v1777_v51 = vsel %vm1775_vm1, %v10465_v50, 0  ;;  %v10471_v52 = vld [vmem:[%s14631_s1 + $0xc] ss:$24 sps:$4 sm:$0xff]   ;;  %v10469_v54 = vld [vmem:[%s14631_s1 + $0x8] ss:$24 sps:$4 sm:$0xff]   ;;  %p746_p8 = scmp.lt.s32.totalorder %s8849_s29, 7 }
  0x57   : > { %v10472_v55 = vld [vmem:[%s11598_s26 + $0x14] ss:$8 sps:$4 sm:$0xff]   ;;  %v10487_v57 = vld [vmem:[%s14631_s1 + $0x38] ss:$24 sps:$4 sm:$0xff]   ;;  %v10507_v59 = vld [vmem:[%s14631_s1 + $0x6c] ss:$24 sps:$4 sm:$0xff]  }
  0x58   : > { %1799 = vmatpush1.bf16.msra.mxu0 %v10447_v37  ;;  %v10489_v56 = vld [vmem:[%s14631_s1 + $0x3c] ss:$24 sps:$4 sm:$0xff]   ;;  %v10474_v58 = vld [vmem:[%s11598_s26 + $0x10] ss:$8 sps:$4 sm:$0xff]   ;;  %v10475_v60 = vld [vmem:[%s11598_s26 + $0x24] ss:$8 sps:$4 sm:$0xff]  }
  0x59   : > { %1800 = vmatprep.subr.bf16.mxu0 %v10448_v38  ;;  %v10505_v61 = vld [vmem:[%s14631_s1 + $0x68] ss:$24 sps:$4 sm:$0xff]   ;;  %v10528_v62 = vld [vmem:[%s14631_s1 + $0x9c] ss:$24 sps:$4 sm:$0xff]   ;;  %v10526_v63 = vld [vmem:[%s14631_s1 + $0x98] ss:$24 sps:$4 sm:$0xff]  }
  0x5a   : > { %v10477_v0 = vld [vmem:[%s11598_s26 + $0x20] ss:$8 sps:$4 sm:$0xff]   ;;  %v10478_v1 = vld [vmem:[%s11598_s26 + $0x34] ss:$8 sps:$4 sm:$0xff]   ;;  %v10480_v2 = vld [vmem:[%s11598_s26 + $0x30] ss:$8 sps:$4 sm:$0xff]  }
  0x5b   : > { %v10481_v3 = vld [vmem:[%s11598_s26 + $0x44] ss:$8 sps:$4 sm:$0xff]   ;;  %v10483_v4 = vld [vmem:[%s11598_s26 + $0x40] ss:$8 sps:$4 sm:$0xff]   ;;  %v10484_v5 = vld [vmem:[%s11598_s26 + $0x54] ss:$8 sps:$4 sm:$0xff]  }
  0x5c   : > { %1801 = vmatpush1.bf16.msra.mxu0 %v10450_v39  ;;  %v10486_v6 = vld [vmem:[%s11598_s26 + $0x50] ss:$8 sps:$4 sm:$0xff]   ;;  %v10490_v7 = vld [vmem:[%s11598_s26 + $0x64] ss:$8 sps:$4 sm:$0xff]   ;;  %v10544_v8 = vld [vmem:[%s14631_s1 + $0xc8] ss:$24 sps:$4 sm:$0xff]  }
  0x5d   : > { %1802 = vmatprep.subr.bf16.mxu0 %v10451_v40  ;;  %v10546_v9 = vld [vmem:[%s14631_s1 + $0xcc] ss:$24 sps:$4 sm:$0xff]   ;;  %v10492_v10 = vld [vmem:[%s11598_s26 + $0x60] ss:$8 sps:$4 sm:$0xff]   ;;  %v10493_v11 = vld [vmem:[%s11598_s26 + $0x74] ss:$8 sps:$4 sm:$0xff]  }
  0x5e   : > { %v10495_v12 = vld [vmem:[%s11598_s26 + $0x70] ss:$8 sps:$4 sm:$0xff]   ;;  %v10496_v13 = vld [vmem:[%s11598_s26 + $0x84] ss:$8 sps:$4 sm:$0xff]   ;;  %v10498_v14 = vld [vmem:[%s11598_s26 + $0x80] ss:$8 sps:$4 sm:$0xff]  }
  0x5f   : > { %v10499_v15 = vld [vmem:[%s11598_s26 + $0x94] ss:$8 sps:$4 sm:$0xff]   ;;  %v10501_v16 = vld [vmem:[%s11598_s26 + $0x90] ss:$8 sps:$4 sm:$0xff]   ;;  %v10502_v17 = vld [vmem:[%s11598_s26 + $0xa4] ss:$8 sps:$4 sm:$0xff]  }
  0x60   : > { %1803 = vmatpush1.bf16.msra.mxu0 %v10453_v42  ;;  %v10504_v18 = vld [vmem:[%s11598_s26 + $0xa0] ss:$8 sps:$4 sm:$0xff]   ;;  %v10508_v19 = vld [vmem:[%s11598_s26 + $0xb4] ss:$8 sps:$4 sm:$0xff]   ;;  %v10510_v20 = vld [vmem:[%s11598_s26 + $0xb0] ss:$8 sps:$4 sm:$0xff]  }
  0x61   : > { %1804 = vmatprep.subr.bf16.mxu0 %v10454_v43  ;;  %v10511_v21 = vld [vmem:[%s11598_s26 + $0xc4] ss:$8 sps:$4 sm:$0xff]   ;;  %v10562_v22 = vld [vmem:[%s14631_s1 + $0xf8] ss:$24 sps:$4 sm:$0xff]   ;;  %v10564_v23 = vld [vmem:[%s14631_s1 + $0xfc] ss:$24 sps:$4 sm:$0xff]  }
  0x62   : > { %v10513_v24 = vld [vmem:[%s11598_s26 + $0xc0] ss:$8 sps:$4 sm:$0xff]   ;;  %v10514_v25 = vld [vmem:[%s11598_s26 + $0xd4] ss:$8 sps:$4 sm:$0xff]   ;;  %v10516_v26 = vld [vmem:[%s11598_s26 + $0xd0] ss:$8 sps:$4 sm:$0xff]  }
  0x63   : > { %v10517_v27 = vld [vmem:[%s11598_s26 + $0xe4] ss:$8 sps:$4 sm:$0xff]   ;;  %v10519_v28 = vld [vmem:[%s11598_s26 + $0xe0] ss:$8 sps:$4 sm:$0xff]   ;;  %v10520_v29 = vld [vmem:[%s11598_s26 + $0xf4] ss:$8 sps:$4 sm:$0xff]  }
  0x64   : > { %1805 = vmatpush1.bf16.msra.mxu0 %v10456_v44  ;;  %v10522_v30 = vld [vmem:[%s11598_s26 + $0xf0] ss:$8 sps:$4 sm:$0xff]   ;;  %v10523_v31 = vld [vmem:[%s11598_s26 + $0x104] ss:$8 sps:$4 sm:$0xff]   ;;  %v10525_v32 = vld [vmem:[%s11598_s26 + $0x100] ss:$8 sps:$4 sm:$0xff]  }
  0x65   : > { %1806 = vmatprep.subr.bf16.mxu0 %v10457_v45  ;;  %v10529_v33 = vld [vmem:[%s11598_s26 + $0x114] ss:$8 sps:$4 sm:$0xff]   ;;  %v10583_v34 = vld [vmem:[%s14631_s1 + $0x128] ss:$24 sps:$4 sm:$0xff]   ;;  %v10585_v35 = vld [vmem:[%s14631_s1 + $0x12c] ss:$24 sps:$4 sm:$0xff]  }
  0x66   : > { %v10531_v36 = vld [vmem:[%s11598_s26 + $0x110] ss:$8 sps:$4 sm:$0xff]   ;;  %v10532_v37 = vld [vmem:[%s11598_s26 + $0x124] ss:$8 sps:$4 sm:$0xff]   ;;  %v10534_v38 = vld [vmem:[%s11598_s26 + $0x120] ss:$8 sps:$4 sm:$0xff]  }
  0x67   : > { %v10535_v39 = vld [vmem:[%s11598_s26 + $0x134] ss:$8 sps:$4 sm:$0xff]   ;;  %v10537_v40 = vld [vmem:[%s11598_s26 + $0x130] ss:$8 sps:$4 sm:$0xff]   ;;  %v10538_v41 = vld [vmem:[%s11598_s26 + $0x144] ss:$8 sps:$4 sm:$0xff]  }
  0x68   : > { %1807 = vmatpush1.bf16.msra.mxu0 %v10459_v46  ;;  %v10540_v42 = vld [vmem:[%s11598_s26 + $0x140] ss:$8 sps:$4 sm:$0xff]   ;;  %v10541_v43 = vld [vmem:[%s11598_s26 + $0x154] ss:$8 sps:$4 sm:$0xff]   ;;  %v10543_v44 = vld [vmem:[%s11598_s26 + $0x150] ss:$8 sps:$4 sm:$0xff]  }
  0x69   : > { %1808 = vmatprep.subr.bf16.mxu0 %v10460_v47  ;;  %v10547_v45 = vld [vmem:[%s11598_s26 + $0x164] ss:$8 sps:$4 sm:$0xff]   ;;  %v10549_v46 = vld [vmem:[%s11598_s26 + $0x160] ss:$8 sps:$4 sm:$0xff]   ;;  %v10550_v47 = vld [vmem:[%s11598_s26 + $0x174] ss:$8 sps:$4 sm:$0xff]  }
  0x6a   : > { %v10552_v50 = vld [vmem:[%s11598_s26 + $0x170] ss:$8 sps:$4 sm:$0xff]   ;;  %s14934_s29 = smov (!%p746_p8, %s8849_s29), 7 }
  0x6b   : > { %s8850_s14 = sshll.u32 %s14934_s29, 3 }
  0x6c   : > { %1809 = vmatpush1.bf16.msra.mxu0 %v10462_v48  ;;  %v10601_v48 = vld [vmem:[%s14631_s1 + $0x158] ss:$24 sps:$4 sm:$0xff]   ;;  %s749_s20 = scalar_lea.vmem %s14639_s9, %s8850_s14 }
  0x6d   : > { %9001 = vmatprep.subr.msk.bf16.mxu0 %vm1775_vm1, %v10463_v49  ;;  %v10603_v49 = vld [vmem:[%s14631_s1 + $0x15c] ss:$24 sps:$4 sm:$0xff]  }
  0x70   : > { %1811 = vmatpush1.bf16.msra.mxu0 %v1777_v51  ;;  %v10553_v51 = vld [vmem:[%s11598_s26 + $0x184] ss:$8 sps:$4 sm:$0xff]  }
  0x71   : > { %2307 = vmatprep.subr.bf16.mxu0 %v10471_v52  ;;  %v10555_v52 = vld [vmem:[%s11598_s26 + $0x180] ss:$8 sps:$4 sm:$0xff]  }
  0x73   : > { %1827 = vmatmul.mubr.bf16.vlgmr.msra.gmra.mrb[0].mxu0 %v10468_v53  ;;  %v10556_v53 = vld [vmem:[%s11598_s26 + $0x194] ss:$8 sps:$4 sm:$0xff]  }
  0x74   : > { %2308 = vmatpush1.bf16.msra.mxu0 %v10469_v54  ;;  %9003 = vmatprep.mubr.msk.bf16.mxu0 %vm1630_vm0, %v10472_v55  ;;  %v10558_v54 = vld [vmem:[%s11598_s26 + $0x190] ss:$8 sps:$4 sm:$0xff]   ;;  %v10559_v55 = vld [vmem:[%s11598_s26 + $0x1a4] ss:$8 sps:$4 sm:$0xff]  }
  0x75   : > { %2309 = vmatprep.subr.bf16.mxu0 %v10489_v56  ;;  %v10561_v56 = vld [vmem:[%s11598_s26 + $0x1a0] ss:$8 sps:$4 sm:$0xff]  }
  0x78   : > { %2310 = vmatpush1.bf16.msra.mxu0 %v10487_v57  ;;  %v10565_v57 = vld [vmem:[%s11598_s26 + $0x1b4] ss:$8 sps:$4 sm:$0xff]  }
  0x79   : > { %2311 = vmatprep.subr.bf16.mxu0 %v10507_v59 }
  0x7b   : > { %1837 = vmatmul.mubr.bf16.gmra.mrb[4].mxu0 %v10474_v58  ;;  %v904_v58 = vlaneseq }
  0x7c   : > { %9004 = vmatprep.mubr.msk.bf16.mxu0 %vm1630_vm0, %v10475_v60  ;;  %2312 = vmatpush1.bf16.msra.mxu0 %v10505_v61  ;;  %v10567_v61 = vld [vmem:[%s11598_s26 + $0x1b0] ss:$8 sps:$4 sm:$0xff]  }
  0x7d   : > { %2313 = vmatprep.subr.bf16.mxu0 %v10528_v62 }
  0x80   : > { %2314 = vmatpush1.bf16.msra.mxu0 %v10526_v63  ;;  %v10568_v63 = vld [vmem:[%s11598_s26 + $0x1c4] ss:$8 sps:$4 sm:$0xff]  }
  0x81   : > { %2315 = vmatprep.subr.bf16.mxu0 %v10546_v9  ;;  %v10570_v9 = vld [vmem:[%s11598_s26 + $0x1c0] ss:$8 sps:$4 sm:$0xff]  }
  0x83   : > { %1847 = vmatmul.mubr.bf16.gmra.mrb[8].mxu0 %v10477_v0  ;;  %v11765_v0 = vshrl.u32 %v904_v58, 7 }
  0x84   : > { %9005 = vmatprep.mubr.msk.bf16.mxu0 %vm1630_vm0, %v10478_v1  ;;  %2316 = vmatpush1.bf16.msra.mxu0 %v10544_v8 }
  0x85   : > { %2317 = vmatprep.subr.bf16.mxu0 %v10564_v23  ;;  %14685 = vst [vmem:[#allocation3_spill] sm:$0xff] %v11765_v0 }
  0x88   : > { %2318 = vmatpush1.bf16.msra.mxu0 %v10562_v22  ;;  %v10573_v22 = vld [vmem:[%s11598_s26 + $0x1d0] ss:$8 sps:$4 sm:$0xff]  }
  0x89   : > { %2319 = vmatprep.subr.bf16.mxu0 %v10585_v35 }
  0x8b   : > { %1857 = vmatmul.mubr.bf16.gmra.mrb[12].mxu0 %v10480_v2  ;;  %v10619_v2 = vld [vmem:[%s14631_s1 + $0x18c] ss:$24 sps:$4 sm:$0x3f]  }
  0x8c   : > { %9006 = vmatprep.mubr.msk.bf16.mxu0 %vm1630_vm0, %v10481_v3  ;;  %2320 = vmatpush1.bf16.msra.mxu0 %v10583_v34  ;;  %v14641_v3 = vsub.s32 0, %v11765_v0 }
  0x8d   : > { %2321 = vmatprep.subr.bf16.mxu0 %v10603_v49 }
  0x90   : > { %2322 = vmatpush1.bf16.msra.mxu0 %v10601_v48  ;;  %v10576_v48 = vld [vmem:[%s11598_s26 + $0x1e0] ss:$8 sps:$4 sm:$0xff]  }
  0x91   : > { %9050 = vmatprep.subr.msk.bf16.mxu0 %vm1775_vm1, %v10619_v2 }
  0x93   : > { %1867 = vmatmul.mubr.bf16.gmra.mrb[16].mxu0 %v10483_v4  ;;  %v10623_v4 = vld [vmem:[%s14631_s1 + $0x188] ss:$24 sps:$4 sm:$0x3f]  }
  0x94   : > { %9007 = vmatprep.mubr.msk.bf16.mxu0 %vm1630_vm0, %v10484_v5  ;;  %v902_v5 = vld [vmem:[%s14632_s2] sm:$0x3f] }
  0x9b   : > { %1877 = vmatmul.mubr.bf16.gmra.mrb[20].mxu0 %v10486_v6  ;;  %v14640_v6 = vsub.s32 1, %v11765_v0 }
  0x9c   : > { %9008 = vmatprep.mubr.msk.bf16.mxu0 %vm1630_vm0, %v10490_v7 }
  0xa3   : > { %1887 = vmatmul.mubr.bf16.gmra.mrb[24].mxu0 %v10492_v10  ;;  %v1783_v10 = vsel %vm1775_vm1, %v10623_v4, 0 }
  0xa4   : > { %9009 = vmatprep.mubr.msk.bf16.mxu0 %vm1630_vm0, %v10493_v11  ;;  %2324 = vmatpush1.bf16.msra.mxu0 %v1783_v10 }
  0xab   : > { %1897 = vmatmul.mubr.bf16.gmra.mrb[28].mxu0 %v10495_v12  ;;  %v10571_v12 = vld [vmem:[%s11598_s26 + $0x1d4] ss:$8 sps:$4 sm:$0xff]  }
  0xac   : > { %9010 = vmatprep.mubr.msk.bf16.mxu0 %vm1630_vm0, %v10496_v13  ;;  %v11785_v13 = vrot.slane %v902_v5, %v14641_v3 }
  0xb3   : > { %1907 = vmatmul.mubr.bf16.gmra.mrb[32].mxu0 %v10498_v14 }
  0xb4   : > { %9011 = vmatprep.mubr.msk.bf16.mxu0 %vm1630_vm0, %v10499_v15  ;;  %v11789_v15 = vrot.slane %v902_v5, %v14640_v6 }
  0xbb   : > { %1917 = vmatmul.mubr.bf16.gmra.mrb[36].mxu0 %v10501_v16 }
  0xbc   : > { %9012 = vmatprep.mubr.msk.bf16.mxu0 %vm1630_vm0, %v10502_v17 }
  0xc3   : > { %1927 = vmatmul.mubr.bf16.gmra.mrb[40].mxu0 %v10504_v18 }
  0xc4   : > { %9013 = vmatprep.mubr.msk.bf16.mxu0 %vm1630_vm0, %v10508_v19 }
  0xcb   : > { %1937 = vmatmul.mubr.bf16.gmra.mrb[44].mxu0 %v10510_v20 }
  0xcc   : > { %9014 = vmatprep.mubr.msk.bf16.mxu0 %vm1630_vm0, %v10511_v21 }
  0xd3   : > { %1947 = vmatmul.mubr.bf16.gmra.mrb[48].mxu0 %v10513_v24 }
  0xd4   : > { %9015 = vmatprep.mubr.msk.bf16.mxu0 %vm1630_vm0, %v10514_v25 }
  0xdb   : > { %1957 = vmatmul.mubr.bf16.gmra.mrb[52].mxu0 %v10516_v26  ;;  %v10574_v26 = vld [vmem:[%s11598_s26 + $0x1e4] ss:$8 sps:$4 sm:$0xff]  }
  0xdc   : > { %9016 = vmatprep.mubr.msk.bf16.mxu0 %vm1630_vm0, %v10517_v27 }
  0xe3   : > { %1967 = vmatmul.mubr.bf16.gmra.mrb[56].mxu0 %v10519_v28 }
  0xe4   : > { %9017 = vmatprep.mubr.msk.bf16.mxu0 %vm1630_vm0, %v10520_v29 }
  0xeb   : > { %1977 = vmatmul.mubr.bf16.gmra.mrb[60].mxu0 %v10522_v30 }
  0xec   : > { %9018 = vmatprep.mubr.msk.bf16.mxu0 %vm1630_vm0, %v10523_v31 }
  0xf3   : > { %1987 = vmatmul.mubr.bf16.gmra.mrb[64].mxu0 %v10525_v32 }
  0xf4   : > { %9019 = vmatprep.mubr.msk.bf16.mxu0 %vm1630_vm0, %v10529_v33 }
  0xfb   : > { %1997 = vmatmul.mubr.bf16.gmra.mrb[68].mxu0 %v10531_v36 }
  0xfc   : > { %9020 = vmatprep.mubr.msk.bf16.mxu0 %vm1630_vm0, %v10532_v37 }
 0x103   : > { %2007 = vmatmul.mubr.bf16.gmra.mrb[72].mxu0 %v10534_v38 }
 0x104   : > { %9021 = vmatprep.mubr.msk.bf16.mxu0 %vm1630_vm0, %v10535_v39 }
 0x10b   : > { %2017 = vmatmul.mubr.bf16.gmra.mrb[76].mxu0 %v10537_v40 }
 0x10c   : > { %9022 = vmatprep.mubr.msk.bf16.mxu0 %vm1630_vm0, %v10538_v41 }
 0x113   : > { %2027 = vmatmul.mubr.bf16.gmra.mrb[80].mxu0 %v10540_v42 }
 0x114   : > { %9023 = vmatprep.mubr.msk.bf16.mxu0 %vm1630_vm0, %v10541_v43 }
 0x11b   : > { %2037 = vmatmul.mubr.bf16.gmra.mrb[84].mxu0 %v10543_v44 }
 0x11c   : > { %9024 = vmatprep.mubr.msk.bf16.mxu0 %vm1630_vm0, %v10547_v45 }
 0x123   : > { %2047 = vmatmul.mubr.bf16.gmra.mrb[88].mxu0 %v10549_v46 }
 0x124   : > { %9025 = vmatprep.mubr.msk.bf16.mxu0 %vm1630_vm0, %v10550_v47 }
 0x12b   : > { %2057 = vmatmul.mubr.bf16.gmra.mrb[92].mxu0 %v10552_v50 }
 0x12c   : > { %9026 = vmatprep.mubr.msk.bf16.mxu0 %vm1630_vm0, %v10553_v51 }
 0x133   : > { %2067 = vmatmul.mubr.bf16.gmra.mrb[96].mxu0 %v10555_v52  ;;  %v10577_v52 = vld [vmem:[%s11598_s26 + $0x1f4] ss:$8 sps:$4 sm:$0xff]  }
 0x134   : > { %9027 = vmatprep.mubr.msk.bf16.mxu0 %vm1630_vm0, %v10556_v53 }
 0x13b   : > { %2077 = vmatmul.mubr.bf16.gmra.mrb[100].mxu0 %v10558_v54 }
 0x13c   : > { %9028 = vmatprep.mubr.msk.bf16.mxu0 %vm1630_vm0, %v10559_v55 }
 0x143   : > { %2087 = vmatmul.mubr.bf16.gmra.mrb[104].mxu0 %v10561_v56 }
 0x144   : > { %9029 = vmatprep.mubr.msk.bf16.mxu0 %vm1630_vm0, %v10565_v57 }
 0x146   : > { %v1828_v59 = vpop.f32.mrb[0].mxu0 }
 0x147   : > { %v1830_v60 = vpop.f32.mrb[1].mxu0  ;;  %v1829_v16 = vadd.f32 %v1828_v59, %v11785_v13 }
 0x148   : > { %v1832_v62 = vpop.f32.mrb[2].mxu0  ;;  %v1831_v17 = vadd.f32 %v1830_v60, %v11789_v15 }
 0x149   : > { %v1834_v1 = vpop.f32.mrb[3].mxu0  ;;  %v1833_v19 = vadd.f32 %v1832_v62, %v11785_v13  ;;  %v3333_v27 = vmax.f32 %v1829_v16, 0.0 }
 0x14a   : > { %v1835_v23 = vadd.f32 %v1834_v1, %v11789_v15  ;;  %v3334_v31 = vmax.f32 %v1831_v17, 0.0  ;;  %v10582_v17 = vld [vmem:[%s11598_s26 + $0x200] ss:$8 sps:$4 sm:$0xff]  }
 0x14b   : > { %2097 = vmatmul.mubr.bf16.gmra.mrb[108].mxu0 %v10567_v61  ;;  %v3339_v34 = vmax.f32 %v1833_v19, 0.0  ;;  %v10586_v19 = vld [vmem:[%s11598_s26 + $0x214] ss:$8 sps:$4 sm:$0xff]  }
 0x14c   : > { %9030 = vmatprep.mubr.msk.bf16.mxu0 %vm1630_vm0, %v10568_v63  ;;  %v3340_v37 = vmax.f32 %v1835_v23, 0.0 }
 0x14e   : > { %v1838_v7 = vpop.f32.mrb[4].mxu0 }
 0x14f   : > { %v1840_v8 = vpop.f32.mrb[5].mxu0  ;;  %v1839_v40 = vadd.f32 %v1838_v7, %v11785_v13 }
 0x150   : > { %v1842_v11 = vpop.f32.mrb[6].mxu0  ;;  %v1841_v42 = vadd.f32 %v1840_v8, %v11789_v15 }
 0x151   : > { %v1844_v14 = vpop.f32.mrb[7].mxu0  ;;  %v1843_v45 = vadd.f32 %v1842_v11, %v11785_v13  ;;  %v3345_v53 = vmax.f32 %v1839_v40, 0.0  ;;  %v10580_v11 = vld [vmem:[%s11598_s26 + $0x204] ss:$8 sps:$4 sm:$0xff]  }
 0x152   : > { %v1845_v49 = vadd.f32 %v1844_v14, %v11789_v15  ;;  %v3346_v57 = vmax.f32 %v1841_v42, 0.0 }
 0x153   : > { %2107 = vmatmul.mubr.bf16.gmra.mrb[112].mxu0 %v10570_v9  ;;  %v3351_v60 = vmax.f32 %v1843_v45, 0.0  ;;  %v10579_v9 = vld [vmem:[%s11598_s26 + $0x1f0] ss:$8 sps:$4 sm:$0xff]  }
 0x154   : > { %9031 = vmatprep.mubr.msk.bf16.mxu0 %vm1630_vm0, %v10571_v12  ;;  %v3352_v63 = vmax.f32 %v1845_v49, 0.0 }
 0x156   : > { %v1848_v18 = vpop.f32.mrb[8].mxu0 }
 0x157   : > { %v1849_v20 = vadd.f32 %v1848_v18, %v11785_v13  ;;  %v1850_v21 = vpop.f32.mrb[9].mxu0 }
 0x158   : > { %v1851_v24 = vadd.f32 %v1850_v21, %v11789_v15  ;;  %v1852_v25 = vpop.f32.mrb[10].mxu0  ;;  %v10639_v21 = vld [vmem:[%s14631_s1 + $0x14] ss:$24 sps:$4 sm:$0xff]  }
 0x159   : > { %v3357_v28 = vmax.f32 %v1849_v20, 0.0  ;;  %v1853_v29 = vadd.f32 %v1852_v25, %v11785_v13  ;;  %v1854_v30 = vpop.f32.mrb[11].mxu0  ;;  %2820 = vmatprep.subr.bf16.mxu0 %v10639_v21 }
 0x15a   : > { %v3358_v32 = vmax.f32 %v1851_v24, 0.0  ;;  %v1855_v33 = vadd.f32 %v1854_v30, %v11789_v15 }
 0x15b   : > { %v11802_v35 = vmax.f32 %v3333_v27, %v3357_v28  ;;  %v3363_v36 = vmax.f32 %v1853_v29, 0.0  ;;  %2117 = vmatmul.mubr.bf16.gmra.mrb[116].mxu0 %v10573_v22  ;;  %v10588_v28 = vld [vmem:[%s11598_s26 + $0x210] ss:$8 sps:$4 sm:$0xff]  }
 0x15c   : > { %v11804_v38 = vmax.f32 %v3334_v31, %v3358_v32  ;;  %v3364_v39 = vmax.f32 %v1855_v33, 0.0  ;;  %9032 = vmatprep.mubr.msk.bf16.mxu0 %vm1630_vm0, %v10574_v26  ;;  %v10589_v32 = vld [vmem:[%s11598_s26 + $0x224] ss:$8 sps:$4 sm:$0xff]  }
 0x15d   : > { %v11808_v41 = vmax.f32 %v3339_v34, %v3363_v36 }
 0x15e   : > { %14686 = vst [vmem:[#allocation4_spill] sm:$0xff] %v11804_v38  ;;  %v11811_v43 = vmax.f32 %v3340_v37, %v3364_v39  ;;  %v1858_v44 = vpop.f32.mrb[12].mxu0 }
 0x15f   : > { %v1859_v46 = vadd.f32 %v1858_v44, %v11785_v13  ;;  %v1860_v47 = vpop.f32.mrb[13].mxu0 }
 0x160   : > { %14687 = vst [vmem:[#allocation5_spill] sm:$0xff] %v11811_v43  ;;  %v1861_v50 = vadd.f32 %v1860_v47, %v11789_v15  ;;  %v1862_v51 = vpop.f32.mrb[14].mxu0 }
 0x161   : > { %v3369_v54 = vmax.f32 %v1859_v46, 0.0  ;;  %v1863_v55 = vadd.f32 %v1862_v51, %v11785_v13  ;;  %v1864_v56 = vpop.f32.mrb[15].mxu0 }
 0x162   : > { %v3370_v58 = vmax.f32 %v1861_v50, 0.0  ;;  %v1865_v59 = vadd.f32 %v1864_v56, %v11789_v15 }
 0x163   : > { %v11821_v61 = vmax.f32 %v3345_v53, %v3369_v54  ;;  %v3375_v62 = vmax.f32 %v1863_v55, 0.0  ;;  %2127 = vmatmul.mubr.bf16.gmra.mrb[120].mxu0 %v10576_v48 }
 0x164   : > { %v11823_v1 = vmax.f32 %v3346_v57, %v3370_v58  ;;  %v3376_v2 = vmax.f32 %v1865_v59, 0.0  ;;  %9033 = vmatprep.mubr.msk.bf16.mxu0 %vm1630_vm0, %v10577_v52  ;;  %v10591_v58 = vld [vmem:[%s11598_s26 + $0x220] ss:$8 sps:$4 sm:$0xff]  }
 0x165   : > { %v11826_v4 = vmax.f32 %v3351_v60, %v3375_v62 }
 0x166   : > { %14688 = vst [vmem:[#allocation6_spill] sm:$0xff] %v11823_v1  ;;  %v11828_v5 = vmax.f32 %v3352_v63, %v3376_v2  ;;  %v1868_v7 = vpop.f32.mrb[16].mxu0  ;;  %v10592_v63 = vld [vmem:[%s11598_s26 + $0x234] ss:$8 sps:$4 sm:$0xff]  }
 0x167   : > { %v1870_v8 = vpop.f32.mrb[17].mxu0  ;;  %v1869_v22 = vadd.f32 %v1868_v7, %v11785_v13 }
 0x168   : > { %14689 = vst [vmem:[#allocation7_spill] sm:$0xff] %v11828_v5  ;;  %v1872_v10 = vpop.f32.mrb[18].mxu0  ;;  %v1871_v23 = vadd.f32 %v1870_v8, %v11789_v15  ;;  %v11100_v5 = vld [vmem:[%s11598_s26 + $0xe4] ss:$8 sps:$4 sm:$0xff]  }
 0x169   : > { %v1874_v12 = vpop.f32.mrb[19].mxu0  ;;  %v1873_v25 = vadd.f32 %v1872_v10, %v11785_v13  ;;  %v3381_v33 = vmax.f32 %v1869_v22, 0.0 }
 0x16a   : > { %v1875_v29 = vadd.f32 %v1874_v12, %v11789_v15  ;;  %v3382_v39 = vmax.f32 %v1871_v23, 0.0 }
 0x16b   : > { %2137 = vmatmul.mubr.bf16.gmra.mrb[124].mxu0 %v10579_v9  ;;  %v3387_v44 = vmax.f32 %v1873_v25, 0.0  ;;  %v10594_v25 = vld [vmem:[%s11598_s26 + $0x230] ss:$8 sps:$4 sm:$0xff]  }
 0x16c   : > { %9034 = vmatprep.mubr.msk.bf16.mxu0 %vm1630_vm0, %v10580_v11  ;;  %v3388_v47 = vmax.f32 %v1875_v29, 0.0 }
 0x16e   : > { %v1878_v14 = vpop.f32.mrb[20].mxu0 }
 0x16f   : > { %v1880_v16 = vpop.f32.mrb[21].mxu0  ;;  %v1879_v50 = vadd.f32 %v1878_v14, %v11785_v13 }
 0x170   : > { %v1882_v18 = vpop.f32.mrb[22].mxu0  ;;  %v1881_v52 = vadd.f32 %v1880_v16, %v11789_v15 }
 0x171   : > { %v1884_v20 = vpop.f32.mrb[23].mxu0  ;;  %v1883_v55 = vadd.f32 %v1882_v18, %v11785_v13  ;;  %v3393_v2 = vmax.f32 %v1879_v50, 0.0 }
 0x172   : > { %v1885_v59 = vadd.f32 %v1884_v20, %v11789_v15  ;;  %v3394_v10 = vmax.f32 %v1881_v52, 0.0  ;;  %v10604_v52 = vld [vmem:[%s11598_s26 + $0x264] ss:$8 sps:$4 sm:$0xff]  }
 0x173   : > { %2147 = vmatmul.mubr.bf16.gmra.mrb[128].mxu0 %v10582_v17  ;;  %v3399_v14 = vmax.f32 %v1883_v55, 0.0 }
 0x174   : > { %9035 = vmatprep.mubr.msk.bf16.mxu0 %vm1630_vm0, %v10586_v19  ;;  %v3400_v18 = vmax.f32 %v1885_v59, 0.0 }
 0x176   : > { %v1888_v24 = vpop.f32.mrb[24].mxu0 }
 0x177   : > { %v1889_v26 = vadd.f32 %v1888_v24, %v11785_v13  ;;  %v1890_v27 = vpop.f32.mrb[25].mxu0 }
 0x178   : > { %v1891_v30 = vadd.f32 %v1890_v27, %v11789_v15  ;;  %v1892_v31 = vpop.f32.mrb[26].mxu0  ;;  %v10595_v27 = vld [vmem:[%s11598_s26 + $0x244] ss:$8 sps:$4 sm:$0xff]  }
 0x179   : > { %v3405_v34 = vmax.f32 %v1889_v26, 0.0  ;;  %v1893_v36 = vadd.f32 %v1892_v31, %v11785_v13  ;;  %v1894_v37 = vpop.f32.mrb[27].mxu0  ;;  %v10597_v31 = vld [vmem:[%s11598_s26 + $0x240] ss:$8 sps:$4 sm:$0xff]  }
 0x17a   : > { %v3406_v40 = vmax.f32 %v1891_v30, 0.0  ;;  %v1895_v42 = vadd.f32 %v1894_v37, %v11789_v15 }
 0x17b   : > { %v11849_v45 = vmax.f32 %v3381_v33, %v3405_v34  ;;  %v3411_v46 = vmax.f32 %v1893_v36, 0.0  ;;  %2157 = vmatmul.mubr.bf16.gmra.mrb[132].mxu0 %v10588_v28  ;;  %v10598_v33 = vld [vmem:[%s11598_s26 + $0x254] ss:$8 sps:$4 sm:$0xff]  }
 0x17c   : > { %v3412_v48 = vmax.f32 %v1895_v42, 0.0  ;;  %9036 = vmatprep.mubr.msk.bf16.mxu0 %vm1630_vm0, %v10589_v32  ;;  %v11852_v49 = vmax.f32 %v3382_v39, %v3406_v40 }
 0x17d   : > { %v11855_v51 = vmax.f32 %v3387_v44, %v3411_v46  ;;  %v10600_v46 = vld [vmem:[%s11598_s26 + $0x250] ss:$8 sps:$4 sm:$0xff]  }
 0x17e   : > { %14690 = vst [vmem:[#allocation8_spill] sm:$0xff] %v11852_v49  ;;  %v1898_v53 = vpop.f32.mrb[28].mxu0  ;;  %v11858_v54 = vmax.f32 %v3388_v47, %v3412_v48 }
 0x17f   : > { %v1899_v56 = vadd.f32 %v1898_v53, %v11785_v13  ;;  %v1900_v57 = vpop.f32.mrb[29].mxu0 }
 0x180   : > { %14691 = vst [vmem:[#allocation9_spill] sm:$0xff] %v11858_v54  ;;  %v1901_v60 = vadd.f32 %v1900_v57, %v11789_v15  ;;  %v1902_v62 = vpop.f32.mrb[30].mxu0  ;;  %v11099_v54 = vld [vmem:[%s11598_s26 + $0xd0] ss:$8 sps:$4 sm:$0xff]  }
 0x181   : > { %v3417_v7 = vmax.f32 %v1899_v56, 0.0  ;;  %v1903_v8 = vadd.f32 %v1902_v62, %v11785_v13  ;;  %v1904_v9 = vpop.f32.mrb[31].mxu0 }
 0x182   : > { %v3418_v11 = vmax.f32 %v1901_v60, 0.0  ;;  %v1905_v12 = vadd.f32 %v1904_v9, %v11789_v15 }
 0x183   : > { %v11868_v16 = vmax.f32 %v3393_v2, %v3417_v7  ;;  %v3423_v17 = vmax.f32 %v1903_v8, 0.0  ;;  %2167 = vmatmul.mubr.bf16.gmra.mrb[136].mxu0 %v10591_v58 }
 0x184   : > { %v11870_v19 = vmax.f32 %v3394_v10, %v3418_v11  ;;  %v3424_v20 = vmax.f32 %v1905_v12, 0.0  ;;  %9037 = vmatprep.mubr.msk.bf16.mxu0 %vm1630_vm0, %v10592_v63 }
 0x185   : > { %v11873_v21 = vmax.f32 %v3399_v14, %v3423_v17 }
 0x186   : > { %14692 = vst [vmem:[#allocation10_spill] sm:$0xff] %v11870_v19  ;;  %v11875_v22 = vmax.f32 %v3400_v18, %v3424_v20  ;;  %v1908_v23 = vpop.f32.mrb[32].mxu0 }
 0x187   : > { %v1910_v24 = vpop.f32.mrb[33].mxu0  ;;  %v1909_v36 = vadd.f32 %v1908_v23, %v11785_v13 }
 0x188   : > { %14693 = vst [vmem:[#allocation11_spill] sm:$0xff] %v11875_v22  ;;  %v1912_v26 = vpop.f32.mrb[34].mxu0  ;;  %v1911_v37 = vadd.f32 %v1910_v24, %v11789_v15  ;;  %v10606_v24 = vld [vmem:[%s11598_s26 + $0x260] ss:$8 sps:$4 sm:$0xff]   ;;  %v11092_v22 = vld [vmem:[%s11598_s26 + $0xa4] ss:$8 sps:$4 sm:$0xff]  }
 0x189   : > { %v1914_v28 = vpop.f32.mrb[35].mxu0  ;;  %v1913_v40 = vadd.f32 %v1912_v26, %v11785_v13  ;;  %v3429_v53 = vmax.f32 %v1909_v36, 0.0 }
 0x18a   : > { %v1915_v47 = vadd.f32 %v1914_v28, %v11789_v15  ;;  %v3430_v58 = vmax.f32 %v1911_v37, 0.0  ;;  %v10607_v28 = vld [vmem:[%s11598_s26 + $0x274] ss:$8 sps:$4 sm:$0xff]  }
 0x18b   : > { %2177 = vmatmul.mubr.bf16.gmra.mrb[140].mxu0 %v10594_v25  ;;  %v3435_v62 = vmax.f32 %v1913_v40, 0.0 }
 0x18c   : > { %9038 = vmatprep.mubr.msk.bf16.mxu0 %vm1630_vm0, %v10595_v27  ;;  %v3436_v7 = vmax.f32 %v1915_v47, 0.0 }
 0x18e   : > { %v1918_v29 = vpop.f32.mrb[36].mxu0 }
 0x18f   : > { %v1920_v30 = vpop.f32.mrb[37].mxu0  ;;  %v1919_v10 = vadd.f32 %v1918_v29, %v11785_v13 }
 0x190   : > { %v1922_v32 = vpop.f32.mrb[38].mxu0  ;;  %v1921_v12 = vadd.f32 %v1920_v30, %v11789_v15 }
 0x191   : > { %v1924_v34 = vpop.f32.mrb[39].mxu0  ;;  %v1923_v18 = vadd.f32 %v1922_v32, %v11785_v13  ;;  %v3441_v29 = vmax.f32 %v1919_v10, 0.0 }
 0x192   : > { %v1925_v25 = vadd.f32 %v1924_v34, %v11789_v15  ;;  %v3442_v36 = vmax.f32 %v1921_v12, 0.0 }
 0x193   : > { %2187 = vmatmul.mubr.bf16.gmra.mrb[144].mxu0 %v10597_v31 }
 0x194   : > { %9039 = vmatprep.mubr.msk.bf16.mxu0 %vm1630_vm0, %v10598_v33  ;;  %v3448_v34 = vmax.f32 %v1925_v25, 0.0 }
 0x196   : > { %v1928_v39 = vpop.f32.mrb[40].mxu0 }
 0x197   : > { %v1929_v42 = vadd.f32 %v1928_v39, %v11785_v13  ;;  %v1930_v44 = vpop.f32.mrb[41].mxu0  ;;  %v3447_v39 = vmax.f32 %v1923_v18, 0.0 }
 0x198   : > { %v1931_v48 = vadd.f32 %v1930_v44, %v11789_v15  ;;  %v1932_v50 = vpop.f32.mrb[42].mxu0 }
 0x199   : > { %v3453_v55 = vmax.f32 %v1929_v42, 0.0  ;;  %v1933_v56 = vadd.f32 %v1932_v50, %v11785_v13  ;;  %v1934_v57 = vpop.f32.mrb[43].mxu0 }
 0x19a   : > { %v3454_v59 = vmax.f32 %v1931_v48, 0.0  ;;  %v1935_v60 = vadd.f32 %v1934_v57, %v11789_v15 }
 0x19b   : > { %v11893_v63 = vmax.f32 %v3429_v53, %v3453_v55  ;;  %v3459_v2 = vmax.f32 %v1933_v56, 0.0  ;;  %2197 = vmatmul.mubr.bf16.gmra.mrb[148].mxu0 %v10600_v46  ;;  %v10609_v53 = vld [vmem:[%s11598_s26 + $0x270] ss:$8 sps:$4 sm:$0xff]   ;;  %v10610_v56 = vld [vmem:[%s11598_s26 + $0x284] ss:$8 sps:$4 sm:$0xff]  }
 0x19c   : > { %v11895_v8 = vmax.f32 %v3430_v58, %v3454_v59  ;;  %v3460_v9 = vmax.f32 %v1935_v60, 0.0  ;;  %9040 = vmatprep.mubr.msk.bf16.mxu0 %vm1630_vm0, %v10604_v52  ;;  %v10612_v60 = vld [vmem:[%s11598_s26 + $0x280] ss:$8 sps:$4 sm:$0xff]  }
 0x19d   : > { %v11899_v11 = vmax.f32 %v3435_v62, %v3459_v2  ;;  %v10613_v2 = vld [vmem:[%s11598_s26 + $0x294] ss:$8 sps:$4 sm:$0xff]  }
 0x19e   : > { %14694 = vst [vmem:[#allocation12_spill] sm:$0xff] %v11895_v8  ;;  %v11902_v14 = vmax.f32 %v3436_v7, %v3460_v9  ;;  %v1938_v17 = vpop.f32.mrb[44].mxu0 }
 0x19f   : > { %v1939_v20 = vadd.f32 %v1938_v17, %v11785_v13  ;;  %v1940_v23 = vpop.f32.mrb[45].mxu0 }
 0x1a0   : > { %14695 = vst [vmem:[#allocation13_spill] sm:$0xff] %v11902_v14  ;;  %v1941_v26 = vadd.f32 %v1940_v23, %v11789_v15  ;;  %v1942_v27 = vpop.f32.mrb[46].mxu0  ;;  %v10615_v23 = vld [vmem:[%s11598_s26 + $0x290] ss:$8 sps:$4 sm:$0xff]  }
 0x1a1   : > { %v3465_v31 = vmax.f32 %v1939_v20, 0.0  ;;  %v1943_v33 = vadd.f32 %v1942_v27, %v11785_v13  ;;  %v1944_v30 = vpop.f32.mrb[47].mxu0  ;;  %v10616_v27 = vld [vmem:[%s11598_s26 + $0x2a4] ss:$8 sps:$4 sm:$0xff]   ;;  %v11091_v14 = vld [vmem:[%s11598_s26 + $0x90] ss:$8 sps:$4 sm:$0xff]  }
 0x1a2   : > { %v3466_v37 = vmax.f32 %v1941_v26, 0.0  ;;  %v1945_v32 = vadd.f32 %v1944_v30, %v11789_v15 }
 0x1a3   : > { %v11912_v40 = vmax.f32 %v3441_v29, %v3465_v31  ;;  %v3471_v42 = vmax.f32 %v1943_v33, 0.0  ;;  %2207 = vmatmul.mubr.bf16.gmra.mrb[152].mxu0 %v10606_v24 }
 0x1a4   : > { %v11914_v44 = vmax.f32 %v3442_v36, %v3466_v37  ;;  %v3472_v46 = vmax.f32 %v1945_v32, 0.0  ;;  %9041 = vmatprep.mubr.msk.bf16.mxu0 %vm1630_vm0, %v10607_v28 }
 0x1a5   : > { %v11917_v47 = vmax.f32 %v3447_v39, %v3471_v42 }
 0x1a6   : > { %14696 = vst [vmem:[#allocation14_spill] sm:$0xff] %v11914_v44  ;;  %v11919_v48 = vmax.f32 %v3448_v34, %v3472_v46  ;;  %v1948_v50 = vpop.f32.mrb[48].mxu0 }
 0x1a7   : > { %v1950_v52 = vpop.f32.mrb[49].mxu0  ;;  %v1949_v9 = vadd.f32 %v1948_v50, %v11785_v13 }
 0x1a8   : > { %14697 = vst [vmem:[#allocation15_spill] sm:$0xff] %v11919_v48  ;;  %v1952_v55 = vpop.f32.mrb[50].mxu0  ;;  %v1951_v10 = vadd.f32 %v1950_v52, %v11789_v15  ;;  %v11084_v48 = vld [vmem:[%s11598_s26 + $0x64] ss:$8 sps:$4 sm:$0xff]  }
 0x1a9   : > { %v1954_v57 = vpop.f32.mrb[51].mxu0  ;;  %v1953_v17 = vadd.f32 %v1952_v55, %v11785_v13  ;;  %v3477_v28 = vmax.f32 %v1949_v9, 0.0 }
 0x1aa   : > { %v1955_v24 = vadd.f32 %v1954_v57, %v11789_v15  ;;  %v3478_v30 = vmax.f32 %v1951_v10, 0.0  ;;  %v10618_v10 = vld [vmem:[%s11598_s26 + $0x2a0] ss:$8 sps:$4 sm:$0xff]  }
 0x1ab   : > { %2217 = vmatmul.mubr.bf16.gmra.mrb[156].mxu0 %v10609_v53  ;;  %v3483_v32 = vmax.f32 %v1953_v17, 0.0 }
 0x1ac   : > { %9042 = vmatprep.mubr.msk.bf16.mxu0 %vm1630_vm0, %v10610_v56  ;;  %v3484_v34 = vmax.f32 %v1955_v24, 0.0 }
 0x1ae   : > { %v1958_v58 = vpop.f32.mrb[52].mxu0 }
 0x1af   : > { %v1960_v59 = vpop.f32.mrb[53].mxu0  ;;  %v1959_v52 = vadd.f32 %v1958_v58, %v11785_v13 }
 0x1b0   : > { %v1962_v62 = vpop.f32.mrb[54].mxu0  ;;  %v1961_v55 = vadd.f32 %v1960_v59, %v11789_v15 }
 0x1b1   : > { %v1964_v7 = vpop.f32.mrb[55].mxu0  ;;  %v3489_v58 = vmax.f32 %v1959_v52, 0.0 }
 0x1b3   : > { %2227 = vmatmul.mubr.bf16.gmra.mrb[160].mxu0 %v10612_v60  ;;  %v1963_v60 = vadd.f32 %v1962_v62, %v11785_v13 }
 0x1b4   : > { %9043 = vmatprep.mubr.msk.bf16.mxu0 %vm1630_vm0, %v10613_v2 }
 0x1b6   : > { %v1968_v12 = vpop.f32.mrb[56].mxu0 }
 0x1b7   : > { %v1969_v18 = vadd.f32 %v1968_v12, %v11785_v13  ;;  %v1970_v20 = vpop.f32.mrb[57].mxu0  ;;  %v1965_v12 = vadd.f32 %v1964_v7, %v11789_v15 }
 0x1b8   : > { %v1971_v25 = vadd.f32 %v1970_v20, %v11789_v15  ;;  %v1972_v26 = vpop.f32.mrb[58].mxu0  ;;  %v10621_v20 = vld [vmem:[%s11598_s26 + $0x2b4] ss:$8 sps:$4 sm:$0xff]  }
 0x1b9   : > { %v3501_v29 = vmax.f32 %v1969_v18, 0.0  ;;  %v1973_v31 = vadd.f32 %v1972_v26, %v11785_v13  ;;  %v1974_v33 = vpop.f32.mrb[59].mxu0  ;;  %v3496_v7 = vmax.f32 %v1965_v12, 0.0 }
 0x1ba   : > { %v3502_v36 = vmax.f32 %v1971_v25, 0.0  ;;  %v1975_v37 = vadd.f32 %v1974_v33, %v11789_v15  ;;  %v3490_v25 = vmax.f32 %v1961_v55, 0.0 }
 0x1bb   : > { %v11937_v39 = vmax.f32 %v3477_v28, %v3501_v29  ;;  %v3507_v42 = vmax.f32 %v1973_v31, 0.0  ;;  %2237 = vmatmul.mubr.bf16.gmra.mrb[164].mxu0 %v10615_v23 }
 0x1bc   : > { %v11939_v46 = vmax.f32 %v3478_v30, %v3502_v36  ;;  %v3508_v50 = vmax.f32 %v1975_v37, 0.0  ;;  %9044 = vmatprep.mubr.msk.bf16.mxu0 %vm1630_vm0, %v10616_v27  ;;  %v3495_v27 = vmax.f32 %v1963_v60, 0.0  ;;  %v10627_v60 = vld [vmem:[%s11598_s26 + $0x2c0] ss:$8 sps:$4 sm:$0xff]  }
 0x1bd   : > { %v11943_v53 = vmax.f32 %v3483_v32, %v3507_v42  ;;  %v10624_v42 = vld [vmem:[%s11598_s26 + $0x2b0] ss:$8 sps:$4 sm:$0xff]  }
 0x1be   : > { %14698 = vst [vmem:[#allocation16_spill] sm:$0xff] %v11939_v46  ;;  %v11946_v56 = vmax.f32 %v3484_v34, %v3508_v50  ;;  %v1978_v57 = vpop.f32.mrb[60].mxu0  ;;  %v10625_v50 = vld [vmem:[%s11598_s26 + $0x2c4] ss:$8 sps:$4 sm:$0xff]  }
 0x1bf   : > { %v1979_v2 = vadd.f32 %v1978_v57, %v11785_v13  ;;  %v1980_v9 = vpop.f32.mrb[61].mxu0 }
 0x1c0   : > { %14699 = vst [vmem:[#allocation17_spill] sm:$0xff] %v11946_v56  ;;  %v1981_v17 = vadd.f32 %v1980_v9, %v11789_v15  ;;  %v1982_v18 = vpop.f32.mrb[62].mxu0  ;;  %v10628_v9 = vld [vmem:[%s11598_s26 + $0x2d4] ss:$8 sps:$4 sm:$0xff]   ;;  %v11083_v56 = vld [vmem:[%s11598_s26 + $0x50] ss:$8 sps:$4 sm:$0xff]  }
 0x1c1   : > { %v3513_v23 = vmax.f32 %v1979_v2, 0.0  ;;  %v1983_v24 = vadd.f32 %v1982_v18, %v11785_v13  ;;  %v1984_v59 = vpop.f32.mrb[63].mxu0 }
 0x1c2   : > { %v3514_v26 = vmax.f32 %v1981_v17, 0.0  ;;  %v1985_v62 = vadd.f32 %v1984_v59, %v11789_v15 }
 0x1c3   : > { %v11956_v28 = vmax.f32 %v3489_v58, %v3513_v23  ;;  %v3519_v29 = vmax.f32 %v1983_v24, 0.0  ;;  %2247 = vmatmul.mubr.bf16.gmra.mrb[168].mxu0 %v10618_v10  ;;  %v10630_v24 = vld [vmem:[%s11598_s26 + $0x2d0] ss:$8 sps:$4 sm:$0xff]  }
 0x1c4   : > { %v11958_v31 = vmax.f32 %v3490_v25, %v3514_v26  ;;  %v3520_v33 = vmax.f32 %v1985_v62, 0.0  ;;  %9045 = vmatprep.mubr.msk.bf16.mxu0 %vm1630_vm0, %v10621_v20  ;;  %v10631_v62 = vld [vmem:[%s11598_s26 + $0x2e4] ss:$8 sps:$4 sm:$0xff]  }
 0x1c5   : > { %v11961_v30 = vmax.f32 %v3495_v27, %v3519_v29 }
 0x1c6   : > { %14700 = vst [vmem:[#allocation18_spill] sm:$0xff] %v11958_v31  ;;  %v11963_v36 = vmax.f32 %v3496_v7, %v3520_v33  ;;  %v1988_v37 = vpop.f32.mrb[64].mxu0 }
 0x1c7   : > { %v1990_v32 = vpop.f32.mrb[65].mxu0  ;;  %v1989_v12 = vadd.f32 %v1988_v37, %v11785_v13 }
 0x1c8   : > { %14701 = vst [vmem:[#allocation19_spill] sm:$0xff] %v11963_v36  ;;  %v1992_v34 = vpop.f32.mrb[66].mxu0  ;;  %v1991_v17 = vadd.f32 %v1990_v32, %v11789_v15  ;;  %v11076_v36 = vld [vmem:[%s11598_s26 + $0x24] ss:$8 sps:$4 sm:$0xff]  }
 0x1c9   : > { %v1994_v52 = vpop.f32.mrb[67].mxu0  ;;  %v1993_v20 = vadd.f32 %v1992_v34, %v11785_v13  ;;  %v3525_v27 = vmax.f32 %v1989_v12, 0.0 }
 0x1ca   : > { %v1995_v59 = vadd.f32 %v1994_v52, %v11789_v15  ;;  %v3526_v37 = vmax.f32 %v1991_v17, 0.0 }
 0x1cb   : > { %2257 = vmatmul.mubr.bf16.gmra.mrb[172].mxu0 %v10624_v42  ;;  %v3531_v34 = vmax.f32 %v1993_v20, 0.0 }
 0x1cc   : > { %9046 = vmatprep.mubr.msk.bf16.mxu0 %vm1630_vm0, %v10625_v50  ;;  %v3532_v52 = vmax.f32 %v1995_v59, 0.0 }
 0x1ce   : > { %v1998_v55 = vpop.f32.mrb[68].mxu0 }
 0x1cf   : > { %v2000_v57 = vpop.f32.mrb[69].mxu0  ;;  %v1999_v12 = vadd.f32 %v1998_v55, %v11785_v13 }
 0x1d0   : > { %v2002_v2 = vpop.f32.mrb[70].mxu0  ;;  %v2001_v17 = vadd.f32 %v2000_v57, %v11789_v15 }
 0x1d1   : > { %v2004_v10 = vpop.f32.mrb[71].mxu0  ;;  %v3537_v55 = vmax.f32 %v1999_v12, 0.0 }
 0x1d3   : > { %2267 = vmatmul.mubr.bf16.gmra.mrb[176].mxu0 %v10627_v60 }
 0x1d4   : > { %9047 = vmatprep.mubr.msk.bf16.mxu0 %vm1630_vm0, %v10628_v9 }
 0x1d6   : > { %v2008_v18 = vpop.f32.mrb[72].mxu0 }
 0x1d7   : > { %v2009_v58 = vadd.f32 %v2008_v18, %v11785_v13  ;;  %v2010_v23 = vpop.f32.mrb[73].mxu0 }
 0x1d8   : > { %v2011_v25 = vadd.f32 %v2010_v23, %v11789_v15  ;;  %v2012_v26 = vpop.f32.mrb[74].mxu0 }
 0x1d9   : > { %v3549_v29 = vmax.f32 %v2009_v58, 0.0  ;;  %v2013_v7 = vadd.f32 %v2012_v26, %v11785_v13  ;;  %v2014_v33 = vpop.f32.mrb[75].mxu0  ;;  %v10633_v26 = vld [vmem:[%s11598_s26 + $0x2e0] ss:$8 sps:$4 sm:$0xff]  }
 0x1da   : > { %v3550_v32 = vmax.f32 %v2011_v25, 0.0  ;;  %v2015_v42 = vadd.f32 %v2014_v33, %v11789_v15  ;;  %v2003_v25 = vadd.f32 %v2002_v2, %v11785_v13 }
 0x1db   : > { %v11981_v50 = vmax.f32 %v3525_v27, %v3549_v29  ;;  %v3555_v60 = vmax.f32 %v2013_v7, 0.0  ;;  %2277 = vmatmul.mubr.bf16.gmra.mrb[180].mxu0 %v10630_v24  ;;  %v2005_v27 = vadd.f32 %v2004_v10, %v11789_v15  ;;  %v10634_v7 = vld [vmem:[%s11598_s26 + $0x2f4] ss:$8 sps:$4 sm:$0xff]  }
 0x1dc   : > { %v11983_v9 = vmax.f32 %v3526_v37, %v3550_v32  ;;  %v3556_v18 = vmax.f32 %v2015_v42, 0.0  ;;  %9048 = vmatprep.mubr.msk.bf16.mxu0 %vm1630_vm0, %v10631_v62  ;;  %v3538_v32 = vmax.f32 %v2001_v17, 0.0 }
 0x1dd   : > { %v11987_v58 = vmax.f32 %v3531_v34, %v3555_v60  ;;  %v3543_v34 = vmax.f32 %v2003_v25, 0.0  ;;  %v3544_v10 = vmax.f32 %v2005_v27, 0.0  ;;  %v10636_v25 = vld [vmem:[%s11598_s26 + $0x2f0] ss:$8 sps:$4 sm:$0xff]  }
 0x1de   : > { %14702 = vst [vmem:[#allocation20_spill] sm:$0xff] %v11983_v9  ;;  %v11990_v23 = vmax.f32 %v3532_v52, %v3556_v18  ;;  %v2018_v20 = vpop.f32.mrb[76].mxu0  ;;  %v11075_v9 = vld [vmem:[%s11598_s26 + $0x10] ss:$8 sps:$4 sm:$0xff]  }
 0x1df   : > { %v2019_v24 = vadd.f32 %v2018_v20, %v11785_v13  ;;  %v2020_v59 = vpop.f32.mrb[77].mxu0 }
 0x1e0   : > { %14703 = vst [vmem:[#allocation21_spill] sm:$0xff] %v11990_v23  ;;  %v2021_v29 = vadd.f32 %v2020_v59, %v11789_v15  ;;  %v2022_v62 = vpop.f32.mrb[78].mxu0 }
 0x1e1   : > { %v3561_v33 = vmax.f32 %v2019_v24, 0.0  ;;  %v2023_v37 = vadd.f32 %v2022_v62, %v11785_v13  ;;  %v2024_v57 = vpop.f32.mrb[79].mxu0 }
 0x1e2   : > { %v3562_v42 = vmax.f32 %v2021_v29, 0.0  ;;  %v2025_v2 = vadd.f32 %v2024_v57, %v11789_v15  ;;  %v10642_v57 = vld [vmem:[%s14631_s1 + $0x44] ss:$24 sps:$4 sm:$0xff]  }
 0x1e3   : > { %v12000_v60 = vmax.f32 %v3537_v55, %v3561_v33  ;;  %v3567_v52 = vmax.f32 %v2023_v37, 0.0  ;;  %2287 = vmatmul.mubr.bf16.gmra.mrb[184].mxu0 %v10633_v26  ;;  %v11072_v55 = vld [vmem:[%s11598_s26 + $0x4] ss:$8 sps:$4 sm:$0xff]  }
 0x1e4   : > { %v12002_v18 = vmax.f32 %v3538_v32, %v3562_v42  ;;  %v3568_v20 = vmax.f32 %v2025_v2, 0.0  ;;  %9049 = vmatprep.mubr.msk.bf16.mxu0 %vm1630_vm0, %v10634_v7  ;;  %v10637_v7 = vld [vmem:[%s14631_s1 + $0x10] ss:$24 sps:$4 sm:$0xff]   ;;  %v11074_v42 = vld [vmem:[%s11598_s26 + $0x14] ss:$8 sps:$4 sm:$0xff]  }
 0x1e5   : > { %v12005_v12 = vmax.f32 %v3543_v34, %v3567_v52  ;;  %v11073_v32 = vld [vmem:[%s11598_s26] ss:$8 sps:$4 sm:$0xff]   ;;  %v10645_v52 = vld [vmem:[%s14631_s1 + $0x74] ss:$24 sps:$4 sm:$0xff]  }
 0x1e6   : > { %14704 = vst [vmem:[#allocation22_spill] sm:$0xff] %v12002_v18  ;;  %v12007_v24 = vmax.f32 %v3544_v10, %v3568_v20  ;;  %v2028_v17 = vpop.f32.mrb[80].mxu0  ;;  %v10640_v2 = vld [vmem:[%s14631_s1 + $0x40] ss:$24 sps:$4 sm:$0xff]  }
 0x1e7   : > { %v2030_v59 = vpop.f32.mrb[81].mxu0  ;;  %v2029_v34 = vadd.f32 %v2028_v17, %v11785_v13  ;;  %v10643_v17 = vld [vmem:[%s14631_s1 + $0x70] ss:$24 sps:$4 sm:$0xff]  }
 0x1e8   : > { %14705 = vst [vmem:[#allocation23_spill] sm:$0xff] %v12007_v24  ;;  %v2032_v29 = vpop.f32.mrb[82].mxu0  ;;  %v2031_v10 = vadd.f32 %v2030_v59, %v11789_v15 }
 0x1e9   : > { %v2034_v62 = vpop.f32.mrb[83].mxu0 }
 0x1eb   : > { %2297 = vmatmul.mubr.bf16.gmra.mrb[188].mxu0 %v10636_v25  ;;  %v2033_v25 = vadd.f32 %v2032_v29, %v11785_v13 }
 0x1ec   : > { %9051 = vmatprep.mubr.msk.bf16.mxu0 %vm1630_vm0, %v11072_v55 }
 0x1ee   : > { %v2038_v26 = vpop.f32.mrb[84].mxu0 }
 0x1ef   : > { %v2040_v27 = vpop.f32.mrb[85].mxu0 }
 0x1f0   : > { %v2042_v33 = vpop.f32.mrb[86].mxu0 }
 0x1f1   : > { %v2044_v37 = vpop.f32.mrb[87].mxu0 }
 0x1f3   : > { %2340 = vmatmul.mubr.bf16.vlgmr.msra.gmra.mrb[192].mxu0 %v11073_v32  ;;  %v2035_v32 = vadd.f32 %v2034_v62, %v11789_v15  ;;  %v10648_v62 = vld [vmem:[%s14631_s1 + $0xa4] ss:$24 sps:$4 sm:$0xff]  }
 0x1f4   : > { %2821 = vmatpush1.bf16.msra.mxu0 %v10637_v7  ;;  %9052 = vmatprep.mubr.msk.bf16.mxu0 %vm1630_vm0, %v11074_v42 }
 0x1f5   : > { %2822 = vmatprep.subr.bf16.mxu0 %v10642_v57  ;;  %v3573_v57 = vmax.f32 %v2029_v34, 0.0  ;;  %v3580_v34 = vmax.f32 %v2035_v32, 0.0 }
 0x1f6   : > { %v2048_v20 = vpop.f32.mrb[88].mxu0 }
 0x1f7   : > { %v2049_v55 = vadd.f32 %v2048_v20, %v11785_v13  ;;  %v2050_v7 = vpop.f32.mrb[89].mxu0  ;;  %v3574_v20 = vmax.f32 %v2031_v10, 0.0  ;;  %v2039_v10 = vadd.f32 %v2038_v26, %v11785_v13 }
 0x1f8   : > { %v2051_v42 = vadd.f32 %v2050_v7, %v11789_v15  ;;  %v2052_v6 = vpop.f32.mrb[90].mxu0  ;;  %2823 = vmatpush1.bf16.msra.mxu0 %v10640_v2  ;;  %v3579_v2 = vmax.f32 %v2033_v25, 0.0 }
 0x1f9   : > { %v3597_v3 = vmax.f32 %v2049_v55, 0.0  ;;  %v2053_v59 = vadd.f32 %v2052_v6, %v11785_v13  ;;  %v2054_v29 = vpop.f32.mrb[91].mxu0  ;;  %2824 = vmatprep.subr.bf16.mxu0 %v10645_v52  ;;  %v10646_v52 = vld [vmem:[%s14631_s1 + $0xa0] ss:$24 sps:$4 sm:$0xff]  }
 0x1fa   : > { %v3598_v7 = vmax.f32 %v2051_v42, 0.0  ;;  %v2055_v24 = vadd.f32 %v2054_v29, %v11789_v15 }
 0x1fb   : > { %v12041_v18 = vmax.f32 %v3573_v57, %v3597_v3  ;;  %v3603_v23 = vmax.f32 %v2053_v59, 0.0  ;;  %2350 = vmatmul.mubr.bf16.gmra.mrb[196].mxu0 %v11075_v9  ;;  %v2041_v3 = vadd.f32 %v2040_v27, %v11789_v15 }
 0x1fc   : > { %v12044_v55 = vmax.f32 %v3574_v20, %v3598_v7  ;;  %v3604_v6 = vmax.f32 %v2055_v24, 0.0  ;;  %9053 = vmatprep.mubr.msk.bf16.mxu0 %vm1630_vm0, %v11076_v36  ;;  %2825 = vmatpush1.bf16.msra.mxu0 %v10643_v17  ;;  %v2043_v24 = vadd.f32 %v2042_v33, %v11785_v13  ;;  %v2045_v17 = vadd.f32 %v2044_v37, %v11789_v15  ;;  %v11077_v37 = vld [vmem:[%s11598_s26 + $0x20] ss:$8 sps:$4 sm:$0xff]  }
 0x1fd   : > { %v12052_v25 = vmax.f32 %v3579_v2, %v3603_v23  ;;  %2826 = vmatprep.subr.bf16.mxu0 %v10648_v62  ;;  %v3585_v23 = vmax.f32 %v2039_v10, 0.0  ;;  %v3586_v62 = vmax.f32 %v2041_v3, 0.0 }
 0x1fe   : > { %14706 = vst [vmem:[#allocation24_spill] sm:$0xff] %v12044_v55  ;;  %v12055_v9 = vmax.f32 %v3580_v34, %v3604_v6  ;;  %v2058_v32 = vpop.f32.mrb[92].mxu0  ;;  %v3591_v7 = vmax.f32 %v2043_v24, 0.0  ;;  %v3592_v6 = vmax.f32 %v2045_v17, 0.0 }
 0x1ff   : > { %v2059_v42 = vadd.f32 %v2058_v32, %v11785_v13  ;;  %v2060_v36 = vpop.f32.mrb[93].mxu0  ;;  %v11078_v32 = vld [vmem:[%s11598_s26 + $0x34] ss:$8 sps:$4 sm:$0xff]  }
 0x200   : > { %14707 = vst [vmem:[#allocation25_spill] sm:$0xff] %v12055_v9  ;;  %v2061_v57 = vadd.f32 %v2060_v36, %v11789_v15  ;;  %v2062_v59 = vpop.f32.mrb[94].mxu0  ;;  %2827 = vmatpush1.bf16.msra.mxu0 %v10646_v52 }
 0x201   : > { %v3609_v26 = vmax.f32 %v2059_v42, 0.0  ;;  %v2063_v27 = vadd.f32 %v2062_v59, %v11785_v13  ;;  %v2064_v29 = vpop.f32.mrb[95].mxu0 }
 0x202   : > { %v3610_v20 = vmax.f32 %v2061_v57, 0.0  ;;  %v2065_v33 = vadd.f32 %v2064_v29, %v11789_v15 }
 0x203   : > { %v12063_v2 = vmax.f32 %v3585_v23, %v3609_v26  ;;  %v3615_v34 = vmax.f32 %v2063_v27, 0.0  ;;  %2360 = vmatmul.mubr.bf16.gmra.mrb[200].mxu0 %v11077_v37  ;;  %v11079_v23 = vld [vmem:[%s11598_s26 + $0x30] ss:$8 sps:$4 sm:$0xff]   ;;  %v11080_v26 = vld [vmem:[%s11598_s26 + $0x44] ss:$8 sps:$4 sm:$0xff]  }
 0x204   : > { %v12066_v52 = vmax.f32 %v3586_v62, %v3610_v20  ;;  %v3616_v10 = vmax.f32 %v2065_v33, 0.0  ;;  %9054 = vmatprep.mubr.msk.bf16.mxu0 %vm1630_vm0, %v11078_v32  ;;  %v11081_v20 = vld [vmem:[%s11598_s26 + $0x40] ss:$8 sps:$4 sm:$0xff]   ;;  %v11082_v33 = vld [vmem:[%s11598_s26 + $0x54] ss:$8 sps:$4 sm:$0xff]  }
 0x205   : > { %v12070_v3 = vmax.f32 %v3591_v7, %v3615_v34 }
 0x206   : > { %14708 = vst [vmem:[#allocation26_spill] sm:$0xff] %v12066_v52  ;;  %v12072_v42 = vmax.f32 %v3592_v6, %v3616_v10  ;;  %v2068_v24 = vpop.f32.mrb[96].mxu0 }
 0x207   : > { %v2070_v36 = vpop.f32.mrb[97].mxu0  ;;  %v2069_v7 = vadd.f32 %v2068_v24, %v11785_v13 }
 0x208   : > { %14709 = vst [vmem:[#allocation27_spill] sm:$0xff] %v12072_v42  ;;  %v2072_v57 = vpop.f32.mrb[98].mxu0  ;;  %v2071_v34 = vadd.f32 %v2070_v36, %v11789_v15 }
 0x209   : > { %v2074_v59 = vpop.f32.mrb[99].mxu0  ;;  %v2073_v6 = vadd.f32 %v2072_v57, %v11785_v13 }
 0x20a   : > { %v3622_v9 = vmax.f32 %v2071_v34, 0.0 }
 0x20b   : > { %2370 = vmatmul.mubr.bf16.gmra.mrb[204].mxu0 %v11079_v23  ;;  %v2075_v23 = vadd.f32 %v2074_v59, %v11789_v15  ;;  %v3627_v57 = vmax.f32 %v2073_v6, 0.0 }
 0x20c   : > { %9055 = vmatprep.mubr.msk.bf16.mxu0 %vm1630_vm0, %v11080_v26 }
 0x20d   : > { %v3628_v59 = vmax.f32 %v2075_v23, 0.0 }
 0x20e   : > { %v2078_v17 = vpop.f32.mrb[100].mxu0 }
 0x20f   : > { %v2080_v27 = vpop.f32.mrb[101].mxu0 }
 0x210   : > { %v2082_v29 = vpop.f32.mrb[102].mxu0  ;;  %v2081_v34 = vadd.f32 %v2080_v27, %v11789_v15 }
 0x211   : > { %v2084_v62 = vpop.f32.mrb[103].mxu0  ;;  %v2083_v6 = vadd.f32 %v2082_v29, %v11785_v13 }
 0x213   : > { %2380 = vmatmul.mubr.bf16.gmra.mrb[208].mxu0 %v11081_v20  ;;  %v3621_v20 = vmax.f32 %v2069_v7, 0.0  ;;  %v3639_v29 = vmax.f32 %v2083_v6, 0.0  ;;  %v11086_v6 = vld [vmem:[%s11598_s26 + $0x74] ss:$8 sps:$4 sm:$0xff]  }
 0x214   : > { %9056 = vmatprep.mubr.msk.bf16.mxu0 %vm1630_vm0, %v11082_v33 }
 0x216   : > { %v2088_v37 = vpop.f32.mrb[104].mxu0 }
 0x217   : > { %v2089_v10 = vadd.f32 %v2088_v37, %v11785_v13  ;;  %v2090_v32 = vpop.f32.mrb[105].mxu0 }
 0x218   : > { %v2091_v26 = vadd.f32 %v2090_v32, %v11789_v15  ;;  %v2092_v42 = vpop.f32.mrb[106].mxu0 }
 0x219   : > { %v3645_v52 = vmax.f32 %v2089_v10, 0.0  ;;  %v2093_v33 = vadd.f32 %v2092_v42, %v11785_v13  ;;  %v2094_v24 = vpop.f32.mrb[107].mxu0  ;;  %v2079_v42 = vadd.f32 %v2078_v17, %v11785_v13 }
 0x21a   : > { %v3646_v36 = vmax.f32 %v2091_v26, 0.0  ;;  %v2095_v55 = vadd.f32 %v2094_v24, %v11789_v15 }
 0x21b   : > { %v12088_v31 = vmax.f32 %v3621_v20, %v3645_v52  ;;  %v3651_v37 = vmax.f32 %v2093_v33, 0.0  ;;  %2390 = vmatmul.mubr.bf16.gmra.mrb[212].mxu0 %v11083_v56  ;;  %v3633_v26 = vmax.f32 %v2079_v42, 0.0  ;;  %v3634_v33 = vmax.f32 %v2081_v34, 0.0 }
 0x21c   : > { %v12091_v46 = vmax.f32 %v3622_v9, %v3646_v36  ;;  %v3652_v32 = vmax.f32 %v2095_v55, 0.0  ;;  %9057 = vmatprep.mubr.msk.bf16.mxu0 %vm1630_vm0, %v11084_v48  ;;  %v2085_v55 = vadd.f32 %v2084_v62, %v11789_v15  ;;  %v10649_v62 = vld [vmem:[%s14631_s1 + $0xd0] ss:$24 sps:$4 sm:$0xff]  }
 0x21d   : > { %v12096_v7 = vmax.f32 %v3627_v57, %v3651_v37 }
 0x21e   : > { %14710 = vst [vmem:[#allocation28_spill] sm:$0xff] %v12091_v46  ;;  %v12099_v10 = vmax.f32 %v3628_v59, %v3652_v32  ;;  %v2098_v52 = vpop.f32.mrb[108].mxu0  ;;  %v11085_v59 = vld [vmem:[%s11598_s26 + $0x60] ss:$8 sps:$4 sm:$0xff]   ;;  %v10651_v32 = vld [vmem:[%s14631_s1 + $0xd4] ss:$24 sps:$4 sm:$0xff]  }
 0x21f   : > { %v2099_v56 = vadd.f32 %v2098_v52, %v11785_v13  ;;  %v2100_v9 = vpop.f32.mrb[109].mxu0  ;;  %v3640_v42 = vmax.f32 %v2085_v55, 0.0  ;;  %2828 = vmatprep.subr.bf16.mxu0 %v10651_v32  ;;  %v11088_v55 = vld [vmem:[%s11598_s26 + $0x84] ss:$8 sps:$4 sm:$0xff]  }
 0x220   : > { %14711 = vst [vmem:[#allocation29_spill] sm:$0xff] %v12099_v10  ;;  %v2101_v23 = vadd.f32 %v2100_v9, %v11789_v15  ;;  %v2102_v48 = vpop.f32.mrb[110].mxu0  ;;  %2829 = vmatpush1.bf16.msra.mxu0 %v10649_v62 }
 0x221   : > { %v3657_v17 = vmax.f32 %v2099_v56, 0.0  ;;  %v2103_v20 = vadd.f32 %v2102_v48, %v11785_v13  ;;  %v2104_v27 = vpop.f32.mrb[111].mxu0 }
 0x222   : > { %v3658_v24 = vmax.f32 %v2101_v23, 0.0  ;;  %v2105_v36 = vadd.f32 %v2104_v27, %v11789_v15 }
 0x223   : > { %v12107_v57 = vmax.f32 %v3633_v26, %v3657_v17  ;;  %v3663_v37 = vmax.f32 %v2103_v20, 0.0  ;;  %2400 = vmatmul.mubr.bf16.gmra.mrb[216].mxu0 %v11085_v59  ;;  %v11087_v20 = vld [vmem:[%s11598_s26 + $0x70] ss:$8 sps:$4 sm:$0xff]  }
 0x224   : > { %v12116_v34 = vmax.f32 %v3634_v33, %v3658_v24  ;;  %v3664_v52 = vmax.f32 %v2105_v36, 0.0  ;;  %9058 = vmatprep.mubr.msk.bf16.mxu0 %vm1630_vm0, %v11086_v6 }
 0x225   : > { %v12120_v56 = vmax.f32 %v3639_v29, %v3663_v37  ;;  %v11089_v29 = vld [vmem:[%s11598_s26 + $0x80] ss:$8 sps:$4 sm:$0xff]   ;;  %v11090_v37 = vld [vmem:[%s11598_s26 + $0x94] ss:$8 sps:$4 sm:$0xff]  }
 0x226   : > { %14712 = vst [vmem:[#allocation30_spill] sm:$0xff] %v12116_v34  ;;  %v12122_v9 = vmax.f32 %v3640_v42, %v3664_v52  ;;  %v2108_v23 = vpop.f32.mrb[112].mxu0 }
 0x227   : > { %v2110_v48 = vpop.f32.mrb[113].mxu0  ;;  %v2109_v59 = vadd.f32 %v2108_v23, %v11785_v13 }
 0x228   : > { %14713 = vst [vmem:[#allocation31_spill] sm:$0xff] %v12122_v9  ;;  %v2112_v26 = vpop.f32.mrb[114].mxu0  ;;  %v2111_v62 = vadd.f32 %v2110_v48, %v11789_v15 }
 0x229   : > { %v2114_v17 = vpop.f32.mrb[115].mxu0  ;;  %v2113_v42 = vadd.f32 %v2112_v26, %v11785_v13 }
 0x22a   : > { %v3670_v10 = vmax.f32 %v2111_v62, 0.0 }
 0x22b   : > { %2410 = vmatmul.mubr.bf16.gmra.mrb[220].mxu0 %v11087_v20  ;;  %v2115_v20 = vadd.f32 %v2114_v17, %v11789_v15  ;;  %v3675_v26 = vmax.f32 %v2113_v42, 0.0 }
 0x22c   : > { %9059 = vmatprep.mubr.msk.bf16.mxu0 %vm1630_vm0, %v11088_v55 }
 0x22d   : > { %v3676_v17 = vmax.f32 %v2115_v20, 0.0 }
 0x22e   : > { %v2118_v27 = vpop.f32.mrb[116].mxu0 }
 0x22f   : > { %v2120_v33 = vpop.f32.mrb[117].mxu0 }
 0x230   : > { %v2122_v24 = vpop.f32.mrb[118].mxu0  ;;  %v2121_v62 = vadd.f32 %v2120_v33, %v11789_v15 }
 0x231   : > { %v2124_v36 = vpop.f32.mrb[119].mxu0  ;;  %v2123_v42 = vadd.f32 %v2122_v24, %v11785_v13 }
 0x233   : > { %2420 = vmatmul.mubr.bf16.gmra.mrb[224].mxu0 %v11089_v29  ;;  %v3669_v29 = vmax.f32 %v2109_v59, 0.0  ;;  %v3687_v24 = vmax.f32 %v2123_v42, 0.0 }
 0x234   : > { %9060 = vmatprep.mubr.msk.bf16.mxu0 %vm1630_vm0, %v11090_v37 }
 0x236   : > { %v2128_v32 = vpop.f32.mrb[120].mxu0 }
 0x237   : > { %v2129_v52 = vadd.f32 %v2128_v32, %v11785_v13  ;;  %v2130_v6 = vpop.f32.mrb[121].mxu0 }
 0x238   : > { %v2131_v55 = vadd.f32 %v2130_v6, %v11789_v15  ;;  %v2132_v9 = vpop.f32.mrb[122].mxu0 }
 0x239   : > { %v3693_v34 = vmax.f32 %v2129_v52, 0.0  ;;  %v2133_v37 = vadd.f32 %v2132_v9, %v11785_v13  ;;  %v2134_v23 = vpop.f32.mrb[123].mxu0  ;;  %v2119_v9 = vadd.f32 %v2118_v27, %v11785_v13 }
 0x23a   : > { %v3694_v48 = vmax.f32 %v2131_v55, 0.0  ;;  %v2135_v46 = vadd.f32 %v2134_v23, %v11789_v15 }
 0x23b   : > { %v12138_v44 = vmax.f32 %v3669_v29, %v3693_v34  ;;  %v3699_v32 = vmax.f32 %v2133_v37, 0.0  ;;  %2430 = vmatmul.mubr.bf16.gmra.mrb[228].mxu0 %v11091_v14  ;;  %v3681_v27 = vmax.f32 %v2119_v9, 0.0  ;;  %v3682_v37 = vmax.f32 %v2121_v62, 0.0 }
 0x23c   : > { %v12141_v8 = vmax.f32 %v3670_v10, %v3694_v48  ;;  %v3700_v6 = vmax.f32 %v2135_v46, 0.0  ;;  %9061 = vmatprep.mubr.msk.bf16.mxu0 %vm1630_vm0, %v11092_v22  ;;  %v2125_v46 = vadd.f32 %v2124_v36, %v11789_v15  ;;  %v11093_v36 = vld [vmem:[%s11598_s26 + $0xa0] ss:$8 sps:$4 sm:$0xff]  }
 0x23d   : > { %v12146_v59 = vmax.f32 %v3675_v26, %v3699_v32 }
 0x23e   : > { %14714 = vst [vmem:[#allocation32_spill] sm:$0xff] %v12141_v8  ;;  %v12149_v52 = vmax.f32 %v3676_v17, %v3700_v6  ;;  %v2138_v34 = vpop.f32.mrb[124].mxu0  ;;  %v3688_v17 = vmax.f32 %v2125_v46, 0.0  ;;  %v10652_v46 = vld [vmem:[%s14631_s1 + $0x100] ss:$24 sps:$4 sm:$0xff]  }
 0x23f   : > { %v2139_v14 = vadd.f32 %v2138_v34, %v11785_v13  ;;  %v2140_v10 = vpop.f32.mrb[125].mxu0  ;;  %v11094_v34 = vld [vmem:[%s11598_s26 + $0xb4] ss:$8 sps:$4 sm:$0xff]  }
 0x240   : > { %14715 = vst [vmem:[#allocation33_spill] sm:$0xff] %v12149_v52  ;;  %v2141_v20 = vadd.f32 %v2140_v10, %v11789_v15  ;;  %v2142_v22 = vpop.f32.mrb[126].mxu0 }
 0x241   : > { %v3705_v55 = vmax.f32 %v2139_v14, 0.0  ;;  %v2143_v29 = vadd.f32 %v2142_v22, %v11785_v13  ;;  %v2144_v33 = vpop.f32.mrb[127].mxu0 }
 0x242   : > { %v3706_v23 = vmax.f32 %v2141_v20, 0.0  ;;  %v2145_v48 = vadd.f32 %v2144_v33, %v11789_v15 }
 0x243   : > { %v12157_v26 = vmax.f32 %v3681_v27, %v3705_v55  ;;  %v3711_v32 = vmax.f32 %v2143_v29, 0.0  ;;  %2440 = vmatmul.mubr.bf16.gmra.mrb[232].mxu0 %v11093_v36  ;;  %v11095_v27 = vld [vmem:[%s11598_s26 + $0xb0] ss:$8 sps:$4 sm:$0xff]   ;;  %v11096_v55 = vld [vmem:[%s11598_s26 + $0xc4] ss:$8 sps:$4 sm:$0xff]  }
 0x244   : > { %v12160_v6 = vmax.f32 %v3682_v37, %v3706_v23  ;;  %v3712_v9 = vmax.f32 %v2145_v48, 0.0  ;;  %9062 = vmatprep.mubr.msk.bf16.mxu0 %vm1630_vm0, %v11094_v34  ;;  %v10654_v29 = vld [vmem:[%s14631_s1 + $0x104] ss:$24 sps:$4 sm:$0xff]  }
 0x245   : > { %v12164_v14 = vmax.f32 %v3687_v24, %v3711_v32  ;;  %2830 = vmatprep.subr.bf16.mxu0 %v10654_v29  ;;  %v11097_v24 = vld [vmem:[%s11598_s26 + $0xc0] ss:$8 sps:$4 sm:$0xff]   ;;  %v11098_v32 = vld [vmem:[%s11598_s26 + $0xd4] ss:$8 sps:$4 sm:$0xff]  }
 0x246   : > { %14716 = vst [vmem:[#allocation34_spill] sm:$0xff] %v12160_v6  ;;  %v12166_v62 = vmax.f32 %v3688_v17, %v3712_v9  ;;  %v2148_v10 = vpop.f32.mrb[128].mxu0  ;;  %2831 = vmatpush1.bf16.msra.mxu0 %v10652_v46 }
 0x247   : > { %v2150_v42 = vpop.f32.mrb[129].mxu0  ;;  %v2149_v36 = vadd.f32 %v2148_v10, %v11785_v13 }
 0x248   : > { %14717 = vst [vmem:[#allocation35_spill] sm:$0xff] %v12166_v62  ;;  %v2152_v20 = vpop.f32.mrb[130].mxu0  ;;  %v2151_v17 = vadd.f32 %v2150_v42, %v11789_v15 }
 0x249   : > { %v2154_v22 = vpop.f32.mrb[131].mxu0  ;;  %v2153_v34 = vadd.f32 %v2152_v20, %v11785_v13 }
 0x24a   : > { %v2155_v46 = vadd.f32 %v2154_v22, %v11789_v15  ;;  %v3718_v52 = vmax.f32 %v2151_v17, 0.0 }
 0x24b   : > { %2450 = vmatmul.mubr.bf16.gmra.mrb[236].mxu0 %v11095_v27  ;;  %v3723_v20 = vmax.f32 %v2153_v34, 0.0 }
 0x24c   : > { %9063 = vmatprep.mubr.msk.bf16.mxu0 %vm1630_vm0, %v11096_v55  ;;  %v3724_v22 = vmax.f32 %v2155_v46, 0.0 }
 0x24e   : > { %v2158_v33 = vpop.f32.mrb[132].mxu0 }
 0x24f   : > { %v2160_v37 = vpop.f32.mrb[133].mxu0 }
 0x250   : > { %v2162_v23 = vpop.f32.mrb[134].mxu0  ;;  %v2161_v17 = vadd.f32 %v2160_v37, %v11789_v15 }
 0x251   : > { %v2164_v48 = vpop.f32.mrb[135].mxu0  ;;  %v2163_v34 = vadd.f32 %v2162_v23, %v11785_v13 }
 0x253   : > { %2460 = vmatmul.mubr.bf16.gmra.mrb[240].mxu0 %v11097_v24  ;;  %v3717_v24 = vmax.f32 %v2149_v36, 0.0  ;;  %v3735_v23 = vmax.f32 %v2163_v34, 0.0 }
 0x254   : > { %9064 = vmatprep.mubr.msk.bf16.mxu0 %vm1630_vm0, %v11098_v32 }
 0x256   : > { %v2168_v9 = vpop.f32.mrb[136].mxu0 }
 0x257   : > { %v2169_v27 = vadd.f32 %v2168_v9, %v11785_v13  ;;  %v2170_v55 = vpop.f32.mrb[137].mxu0 }
 0x258   : > { %v2171_v29 = vadd.f32 %v2170_v55, %v11789_v15  ;;  %v2172_v62 = vpop.f32.mrb[138].mxu0 }
 0x259   : > { %v3741_v6 = vmax.f32 %v2169_v27, 0.0  ;;  %v2173_v32 = vadd.f32 %v2172_v62, %v11785_v13  ;;  %v2174_v10 = vpop.f32.mrb[139].mxu0  ;;  %v2159_v62 = vadd.f32 %v2158_v33, %v11785_v13 }
 0x25a   : > { %v3742_v42 = vmax.f32 %v2171_v29, 0.0  ;;  %v2175_v8 = vadd.f32 %v2174_v10, %v11789_v15 }
 0x25b   : > { %v12188_v19 = vmax.f32 %v3717_v24, %v3741_v6  ;;  %v3747_v9 = vmax.f32 %v2173_v32, 0.0  ;;  %2470 = vmatmul.mubr.bf16.gmra.mrb[244].mxu0 %v11099_v54  ;;  %v3729_v33 = vmax.f32 %v2159_v62, 0.0  ;;  %v3730_v32 = vmax.f32 %v2161_v17, 0.0 }
 0x25c   : > { %v12191_v49 = vmax.f32 %v3718_v52, %v3742_v42  ;;  %v3748_v55 = vmax.f32 %v2175_v8, 0.0  ;;  %9065 = vmatprep.mubr.msk.bf16.mxu0 %vm1630_vm0, %v11100_v5  ;;  %v2165_v8 = vadd.f32 %v2164_v48, %v11789_v15  ;;  %v11101_v48 = vld [vmem:[%s11598_s26 + $0xe0] ss:$8 sps:$4 sm:$0xff]  }
 0x25d   : > { %v12196_v36 = vmax.f32 %v3723_v20, %v3747_v9 }
 0x25e   : > { %14718 = vst [vmem:[#allocation36_spill] sm:$0xff] %v12191_v49  ;;  %v12199_v27 = vmax.f32 %v3724_v22, %v3748_v55  ;;  %v2178_v6 = vpop.f32.mrb[140].mxu0  ;;  %v3736_v22 = vmax.f32 %v2165_v8, 0.0 }
 0x25f   : > { %v2179_v54 = vadd.f32 %v2178_v6, %v11785_v13  ;;  %v2180_v52 = vpop.f32.mrb[141].mxu0  ;;  %v11102_v6 = vld [vmem:[%s11598_s26 + $0xf4] ss:$8 sps:$4 sm:$0xff]  }
 0x260   : > { %14719 = vst [vmem:[#allocation37_spill] sm:$0xff] %v12199_v27  ;;  %v2181_v46 = vadd.f32 %v2180_v52, %v11789_v15  ;;  %v2182_v5 = vpop.f32.mrb[142].mxu0 }
 0x261   : > { %v3753_v29 = vmax.f32 %v2179_v54, 0.0  ;;  %v2183_v24 = vadd.f32 %v2182_v5, %v11785_v13  ;;  %v2184_v37 = vpop.f32.mrb[143].mxu0 }
 0x262   : > { %v3754_v10 = vmax.f32 %v2181_v46, 0.0  ;;  %v2185_v42 = vadd.f32 %v2184_v37, %v11789_v15 }
 0x263   : > { %v12207_v20 = vmax.f32 %v3729_v33, %v3753_v29  ;;  %v3759_v9 = vmax.f32 %v2183_v24, 0.0  ;;  %2480 = vmatmul.mubr.bf16.gmra.mrb[248].mxu0 %v11101_v48  ;;  %v11103_v33 = vld [vmem:[%s11598_s26 + $0xf0] ss:$8 sps:$4 sm:$0xff]   ;;  %v11104_v29 = vld [vmem:[%s11598_s26 + $0x104] ss:$8 sps:$4 sm:$0xff]  }
 0x264   : > { %v12210_v55 = vmax.f32 %v3730_v32, %v3754_v10  ;;  %v3760_v62 = vmax.f32 %v2185_v42, 0.0  ;;  %9066 = vmatprep.mubr.msk.bf16.mxu0 %vm1630_vm0, %v11102_v6  ;;  %v11105_v10 = vld [vmem:[%s11598_s26 + $0x100] ss:$8 sps:$4 sm:$0xff]   ;;  %v11106_v42 = vld [vmem:[%s11598_s26 + $0x114] ss:$8 sps:$4 sm:$0xff]  }
 0x265   : > { %v12214_v17 = vmax.f32 %v3735_v23, %v3759_v9  ;;  %v10655_v23 = vld [vmem:[%s14631_s1 + $0x130] ss:$24 sps:$4 sm:$0xff]   ;;  %v10657_v9 = vld [vmem:[%s14631_s1 + $0x134] ss:$24 sps:$4 sm:$0xff]  }
 0x266   : > { %14720 = vst [vmem:[#allocation38_spill] sm:$0xff] %v12210_v55  ;;  %v12216_v54 = vmax.f32 %v3736_v22, %v3760_v62  ;;  %v2188_v34 = vpop.f32.mrb[144].mxu0  ;;  %2832 = vmatprep.subr.bf16.mxu0 %v10657_v9 }
 0x267   : > { %14721 = vst [vmem:[#allocation39_spill] sm:$0xff] %v12214_v17  ;;  %v2190_v52 = vpop.f32.mrb[145].mxu0  ;;  %v2189_v48 = vadd.f32 %v2188_v34, %v11785_v13  ;;  %2833 = vmatpush1.bf16.msra.mxu0 %v10655_v23  ;;  %v11107_v23 = vld [vmem:[%s11598_s26 + $0x110] ss:$8 sps:$4 sm:$0xff]   ;;  %v11108_v17 = vld [vmem:[%s11598_s26 + $0x124] ss:$8 sps:$4 sm:$0xff]  }
 0x268   : > { %14722 = vst [vmem:[#allocation40_spill] sm:$0xff] %v12216_v54  ;;  %v2192_v46 = vpop.f32.mrb[146].mxu0  ;;  %v2191_v22 = vadd.f32 %v2190_v52, %v11789_v15 }
 0x269   : > { %v2194_v5 = vpop.f32.mrb[147].mxu0  ;;  %v2193_v6 = vadd.f32 %v2192_v46, %v11785_v13  ;;  %v3765_v55 = vmax.f32 %v2189_v48, 0.0 }
 0x26a   : > { %v3766_v49 = vmax.f32 %v2191_v22, 0.0 }
 0x26b   : > { %2490 = vmatmul.mubr.bf16.gmra.mrb[252].mxu0 %v11103_v33  ;;  %v3771_v1 = vmax.f32 %v2193_v6, 0.0 }
 0x26c   : > { %9067 = vmatprep.mubr.msk.bf16.mxu0 %vm1630_vm0, %v11104_v29 }
 0x26e   : > { %v2198_v8 = vpop.f32.mrb[148].mxu0 }
 0x26f   : > { %v2200_v24 = vpop.f32.mrb[149].mxu0 }
 0x270   : > { %v2202_v37 = vpop.f32.mrb[150].mxu0  ;;  %v2201_v22 = vadd.f32 %v2200_v24, %v11789_v15 }
 0x271   : > { %v2204_v32 = vpop.f32.mrb[151].mxu0 }
 0x273   : > { %2500 = vmatmul.mubr.bf16.gmra.mrb[0].mxu0 %v11105_v10  ;;  %v2195_v10 = vadd.f32 %v2194_v5, %v11789_v15 }
 0x274   : > { %9068 = vmatprep.mubr.msk.bf16.mxu0 %vm1630_vm0, %v11106_v42 }
 0x275   : > { %v3772_v5 = vmax.f32 %v2195_v10, 0.0  ;;  %v2205_v10 = vadd.f32 %v2204_v32, %v11789_v15  ;;  %v11109_v32 = vld [vmem:[%s11598_s26 + $0x120] ss:$8 sps:$4 sm:$0xff]  }
 0x276   : > { %v2208_v62 = vpop.f32.mrb[152].mxu0 }
 0x277   : > { %v2209_v33 = vadd.f32 %v2208_v62, %v11785_v13  ;;  %v2210_v29 = vpop.f32.mrb[153].mxu0 }
 0x278   : > { %v2211_v42 = vadd.f32 %v2210_v29, %v11789_v15  ;;  %v2212_v54 = vpop.f32.mrb[154].mxu0 }
 0x279   : > { %v3789_v27 = vmax.f32 %v2209_v33, 0.0  ;;  %v2213_v34 = vadd.f32 %v2212_v54, %v11785_v13  ;;  %v2214_v52 = vpop.f32.mrb[155].mxu0  ;;  %v2199_v54 = vadd.f32 %v2198_v8, %v11785_v13 }
 0x27a   : > { %v3790_v9 = vmax.f32 %v2211_v42, 0.0  ;;  %v2215_v46 = vadd.f32 %v2214_v52, %v11789_v15 }
 0x27b   : > { %v12238_v62 = vmax.f32 %v3765_v55, %v3789_v27  ;;  %v3795_v43 = vmax.f32 %v2213_v34, 0.0  ;;  %2510 = vmatmul.mubr.bf16.gmra.mrb[4].mxu0 %v11107_v23  ;;  %v2203_v55 = vadd.f32 %v2202_v37, %v11785_v13  ;;  %v3777_v8 = vmax.f32 %v2199_v54, 0.0 }
 0x27c   : > { %v12241_v38 = vmax.f32 %v3766_v49, %v3790_v9  ;;  %v3796_v29 = vmax.f32 %v2215_v46, 0.0  ;;  %9069 = vmatprep.mubr.msk.bf16.mxu0 %vm1630_vm0, %v11108_v17  ;;  %v3778_v34 = vmax.f32 %v2201_v22, 0.0 }
 0x27d   : > { %14723 = vst [vmem:[#allocation41_spill] sm:$0xff] %v12238_v62  ;;  %v12246_v48 = vmax.f32 %v3771_v1, %v3795_v43  ;;  %v3783_v37 = vmax.f32 %v2203_v55, 0.0  ;;  %v11116_v62 = vld [vmem:[%s11598_s26 + $0x164] ss:$8 sps:$4 sm:$0xff]  }
 0x27e   : > { %14724 = vst [vmem:[#allocation42_spill] sm:$0xff] %v12241_v38  ;;  %v12249_v33 = vmax.f32 %v3772_v5, %v3796_v29  ;;  %v2218_v27 = vpop.f32.mrb[156].mxu0  ;;  %v3784_v5 = vmax.f32 %v2205_v10, 0.0 }
 0x27f   : > { %14725 = vst [vmem:[#allocation43_spill] sm:$0xff] %v12246_v48  ;;  %v2219_v6 = vadd.f32 %v2218_v27, %v11785_v13  ;;  %v2220_v49 = vpop.f32.mrb[157].mxu0  ;;  %v11110_v27 = vld [vmem:[%s11598_s26 + $0x134] ss:$8 sps:$4 sm:$0xff]  }
 0x280   : > { %14726 = vst [vmem:[#allocation44_spill] sm:$0xff] %v12249_v33  ;;  %v2221_v42 = vadd.f32 %v2220_v49, %v11789_v15  ;;  %v2222_v17 = vpop.f32.mrb[158].mxu0 }
 0x281   : > { %v3801_v43 = vmax.f32 %v2219_v6, 0.0  ;;  %v2223_v1 = vadd.f32 %v2222_v17, %v11785_v13  ;;  %v2224_v24 = vpop.f32.mrb[159].mxu0 }
 0x282   : > { %v3802_v52 = vmax.f32 %v2221_v42, 0.0  ;;  %v2225_v9 = vadd.f32 %v2224_v24, %v11789_v15 }
 0x283   : > { %v12257_v46 = vmax.f32 %v3777_v8, %v3801_v43  ;;  %v3807_v23 = vmax.f32 %v2223_v1, 0.0  ;;  %2520 = vmatmul.mubr.bf16.gmra.mrb[8].mxu0 %v11109_v32  ;;  %v11111_v8 = vld [vmem:[%s11598_s26 + $0x130] ss:$8 sps:$4 sm:$0xff]   ;;  %v11112_v43 = vld [vmem:[%s11598_s26 + $0x144] ss:$8 sps:$4 sm:$0xff]  }
 0x284   : > { %v12260_v29 = vmax.f32 %v3778_v34, %v3802_v52  ;;  %v3808_v54 = vmax.f32 %v2225_v9, 0.0  ;;  %9070 = vmatprep.mubr.msk.bf16.mxu0 %vm1630_vm0, %v11110_v27  ;;  %v11113_v52 = vld [vmem:[%s11598_s26 + $0x140] ss:$8 sps:$4 sm:$0xff]   ;;  %v11114_v9 = vld [vmem:[%s11598_s26 + $0x154] ss:$8 sps:$4 sm:$0xff]  }
 0x285   : > { %14727 = vst [vmem:[#allocation45_spill] sm:$0xff] %v12257_v46  ;;  %v12264_v22 = vmax.f32 %v3783_v37, %v3807_v23  ;;  %v11115_v46 = vld [vmem:[%s11598_s26 + $0x150] ss:$8 sps:$4 sm:$0xff]  }
 0x286   : > { %14728 = vst [vmem:[#allocation46_spill] sm:$0xff] %v12260_v29  ;;  %v12266_v6 = vmax.f32 %v3784_v5, %v3808_v54  ;;  %v2228_v55 = vpop.f32.mrb[160].mxu0 }
 0x287   : > { %14729 = vst [vmem:[#allocation47_spill] sm:$0xff] %v12264_v22  ;;  %v2230_v49 = vpop.f32.mrb[161].mxu0  ;;  %v2229_v37 = vadd.f32 %v2228_v55, %v11785_v13 }
 0x288   : > { %14730 = vst [vmem:[#allocation48_spill] sm:$0xff] %v12266_v6  ;;  %v2232_v42 = vpop.f32.mrb[162].mxu0  ;;  %v2231_v23 = vadd.f32 %v2230_v49, %v11789_v15 }
 0x289   : > { %v2234_v17 = vpop.f32.mrb[163].mxu0  ;;  %v2233_v5 = vadd.f32 %v2232_v42, %v11785_v13 }
 0x28a   : > { %v3814_v33 = vmax.f32 %v2231_v23, 0.0 }
 0x28b   : > { %2530 = vmatmul.mubr.bf16.gmra.mrb[12].mxu0 %v11111_v8  ;;  %v2235_v8 = vadd.f32 %v2234_v17, %v11789_v15  ;;  %v3819_v42 = vmax.f32 %v2233_v5, 0.0 }
 0x28c   : > { %9071 = vmatprep.mubr.msk.bf16.mxu0 %vm1630_vm0, %v11112_v43 }
 0x28d   : > { %v3820_v17 = vmax.f32 %v2235_v8, 0.0 }
 0x28e   : > { %v2238_v10 = vpop.f32.mrb[164].mxu0 }
 0x28f   : > { %v2240_v1 = vpop.f32.mrb[165].mxu0 }
 0x290   : > { %v2242_v24 = vpop.f32.mrb[166].mxu0  ;;  %v2241_v23 = vadd.f32 %v2240_v1, %v11789_v15 }
 0x291   : > { %v2244_v34 = vpop.f32.mrb[167].mxu0  ;;  %v2243_v5 = vadd.f32 %v2242_v24, %v11785_v13 }
 0x293   : > { %2540 = vmatmul.mubr.bf16.gmra.mrb[16].mxu0 %v11113_v52  ;;  %v3813_v52 = vmax.f32 %v2229_v37, 0.0  ;;  %v3831_v24 = vmax.f32 %v2243_v5, 0.0  ;;  %v11118_v5 = vld [vmem:[%s11598_s26 + $0x174] ss:$8 sps:$4 sm:$0xff]  }
 0x294   : > { %9072 = vmatprep.mubr.msk.bf16.mxu0 %vm1630_vm0, %v11114_v9 }
 0x296   : > { %v2248_v32 = vpop.f32.mrb[168].mxu0 }
 0x297   : > { %v2249_v54 = vadd.f32 %v2248_v32, %v11785_v13  ;;  %v2250_v27 = vpop.f32.mrb[169].mxu0 }
 0x298   : > { %v2251_v43 = vadd.f32 %v2250_v27, %v11789_v15  ;;  %v2252_v6 = vpop.f32.mrb[170].mxu0 }
 0x299   : > { %v3837_v29 = vmax.f32 %v2249_v54, 0.0  ;;  %v2253_v9 = vadd.f32 %v2252_v6, %v11785_v13  ;;  %v2254_v55 = vpop.f32.mrb[171].mxu0  ;;  %v2239_v6 = vadd.f32 %v2238_v10, %v11785_v13 }
 0x29a   : > { %v3838_v49 = vmax.f32 %v2251_v43, 0.0  ;;  %v2255_v38 = vadd.f32 %v2254_v55, %v11789_v15 }
 0x29b   : > { %v12282_v22 = vmax.f32 %v3813_v52, %v3837_v29  ;;  %v3843_v32 = vmax.f32 %v2253_v9, 0.0  ;;  %2550 = vmatmul.mubr.bf16.gmra.mrb[20].mxu0 %v11115_v46  ;;  %v3825_v43 = vmax.f32 %v2239_v6, 0.0  ;;  %v3826_v9 = vmax.f32 %v2241_v23, 0.0 }
 0x29c   : > { %v12285_v48 = vmax.f32 %v3814_v33, %v3838_v49  ;;  %v3844_v27 = vmax.f32 %v2255_v38, 0.0  ;;  %9073 = vmatprep.mubr.msk.bf16.mxu0 %vm1630_vm0, %v11116_v62  ;;  %v2245_v38 = vadd.f32 %v2244_v34, %v11789_v15  ;;  %v10658_v34 = vld [vmem:[%s14631_s1 + $0x160] ss:$24 sps:$4 sm:$0xff]  }
 0x29d   : > { %14731 = vst [vmem:[#allocation49_spill] sm:$0xff] %v12282_v22  ;;  %v12290_v37 = vmax.f32 %v3819_v42, %v3843_v32  ;;  %v11124_v22 = vld [vmem:[%s11598_s26 + $0x1a4] ss:$8 sps:$4 sm:$0xff]  }
 0x29e   : > { %14732 = vst [vmem:[#allocation50_spill] sm:$0xff] %v12285_v48  ;;  %v12293_v54 = vmax.f32 %v3820_v17, %v3844_v27  ;;  %v2258_v29 = vpop.f32.mrb[172].mxu0  ;;  %v11117_v17 = vld [vmem:[%s11598_s26 + $0x160] ss:$8 sps:$4 sm:$0xff]   ;;  %v10660_v27 = vld [vmem:[%s14631_s1 + $0x164] ss:$24 sps:$4 sm:$0xff]  }
 0x29f   : > { %14733 = vst [vmem:[#allocation51_spill] sm:$0xff] %v12290_v37  ;;  %v2259_v46 = vadd.f32 %v2258_v29, %v11785_v13  ;;  %v2260_v33 = vpop.f32.mrb[173].mxu0  ;;  %v3832_v6 = vmax.f32 %v2245_v38, 0.0  ;;  %2834 = vmatprep.subr.bf16.mxu0 %v10660_v27  ;;  %v11120_v38 = vld [vmem:[%s11598_s26 + $0x184] ss:$8 sps:$4 sm:$0xff]  }
 0x2a0   : > { %14734 = vst [vmem:[#allocation52_spill] sm:$0xff] %v12293_v54  ;;  %v2261_v8 = vadd.f32 %v2260_v33, %v11789_v15  ;;  %v2262_v62 = vpop.f32.mrb[174].mxu0  ;;  %2835 = vmatpush1.bf16.msra.mxu0 %v10658_v34 }
 0x2a1   : > { %v3849_v10 = vmax.f32 %v2259_v46, 0.0  ;;  %v2263_v52 = vadd.f32 %v2262_v62, %v11785_v13  ;;  %v2264_v1 = vpop.f32.mrb[175].mxu0 }
 0x2a2   : > { %v3850_v55 = vmax.f32 %v2261_v8, 0.0  ;;  %v2265_v49 = vadd.f32 %v2264_v1, %v11789_v15 }
 0x2a3   : > { %v12301_v42 = vmax.f32 %v3825_v43, %v3849_v10  ;;  %v3855_v32 = vmax.f32 %v2263_v52, 0.0  ;;  %2560 = vmatmul.mubr.bf16.gmra.mrb[24].mxu0 %v11117_v17  ;;  %v11119_v52 = vld [vmem:[%s11598_s26 + $0x170] ss:$8 sps:$4 sm:$0xff]  }
 0x2a4   : > { %v12310_v23 = vmax.f32 %v3826_v9, %v3850_v55  ;;  %v3856_v29 = vmax.f32 %v2265_v49, 0.0  ;;  %9074 = vmatprep.mubr.msk.bf16.mxu0 %vm1630_vm0, %v11118_v5 }
 0x2a5   : > { %14735 = vst [vmem:[#allocation53_spill] sm:$0xff] %v12301_v42  ;;  %v12314_v46 = vmax.f32 %v3831_v24, %v3855_v32  ;;  %v11121_v24 = vld [vmem:[%s11598_s26 + $0x180] ss:$8 sps:$4 sm:$0xff]   ;;  %v11122_v32 = vld [vmem:[%s11598_s26 + $0x194] ss:$8 sps:$4 sm:$0xff]  }
 0x2a6   : > { %14736 = vst [vmem:[#allocation54_spill] sm:$0xff] %v12310_v23  ;;  %v12316_v33 = vmax.f32 %v3832_v6, %v3856_v29  ;;  %v2268_v8 = vpop.f32.mrb[176].mxu0  ;;  %v11123_v42 = vld [vmem:[%s11598_s26 + $0x190] ss:$8 sps:$4 sm:$0xff]  }
 0x2a7   : > { %14737 = vst [vmem:[#allocation55_spill] sm:$0xff] %v12314_v46  ;;  %v2270_v62 = vpop.f32.mrb[177].mxu0  ;;  %v2269_v17 = vadd.f32 %v2268_v8, %v11785_v13 }
 0x2a8   : > { %14738 = vst [vmem:[#allocation56_spill] sm:$0xff] %v12316_v33  ;;  %v2272_v43 = vpop.f32.mrb[178].mxu0  ;;  %v2271_v34 = vadd.f32 %v2270_v62, %v11789_v15 }
 0x2a9   : > { %v2274_v10 = vpop.f32.mrb[179].mxu0  ;;  %v2273_v6 = vadd.f32 %v2272_v43, %v11785_v13 }
 0x2aa   : > { %v3862_v54 = vmax.f32 %v2271_v34, 0.0 }
 0x2ab   : > { %2570 = vmatmul.mubr.bf16.gmra.mrb[28].mxu0 %v11119_v52  ;;  %v2275_v52 = vadd.f32 %v2274_v10, %v11789_v15  ;;  %v3867_v43 = vmax.f32 %v2273_v6, 0.0 }
 0x2ac   : > { %9075 = vmatprep.mubr.msk.bf16.mxu0 %vm1630_vm0, %v11120_v38 }
 0x2ad   : > { %v3868_v10 = vmax.f32 %v2275_v52, 0.0 }
 0x2ae   : > { %v2278_v1 = vpop.f32.mrb[180].mxu0 }
 0x2af   : > { %v2280_v9 = vpop.f32.mrb[181].mxu0 }
 0x2b0   : > { %v2282_v55 = vpop.f32.mrb[182].mxu0  ;;  %v2281_v34 = vadd.f32 %v2280_v9, %v11789_v15 }
 0x2b1   : > { %v2284_v49 = vpop.f32.mrb[183].mxu0  ;;  %v2283_v6 = vadd.f32 %v2282_v55, %v11785_v13 }
 0x2b3   : > { %2580 = vmatmul.mubr.bf16.gmra.mrb[32].mxu0 %v11121_v24  ;;  %v3861_v24 = vmax.f32 %v2269_v17, 0.0  ;;  %v3879_v55 = vmax.f32 %v2283_v6, 0.0 }
 0x2b4   : > { %9076 = vmatprep.mubr.msk.bf16.mxu0 %vm1630_vm0, %v11122_v32 }
 0x2b6   : > { %v2288_v27 = vpop.f32.mrb[184].mxu0 }
 0x2b7   : > { %v2289_v29 = vadd.f32 %v2288_v27, %v11785_v13  ;;  %v2290_v5 = vpop.f32.mrb[185].mxu0 }
 0x2b8   : > { %v2291_v38 = vadd.f32 %v2290_v5, %v11789_v15  ;;  %v2292_v33 = vpop.f32.mrb[186].mxu0 }
 0x2b9   : > { %v3885_v23 = vmax.f32 %v2289_v29, 0.0  ;;  %v2293_v32 = vadd.f32 %v2292_v33, %v11785_v13  ;;  %v2294_v8 = vpop.f32.mrb[187].mxu0  ;;  %v2279_v33 = vadd.f32 %v2278_v1, %v11785_v13 }
 0x2ba   : > { %v3886_v62 = vmax.f32 %v2291_v38, 0.0  ;;  %v2295_v48 = vadd.f32 %v2294_v8, %v11789_v15 }
 0x2bb   : > { %v12332_v46 = vmax.f32 %v3861_v24, %v3885_v23  ;;  %v3891_v27 = vmax.f32 %v2293_v32, 0.0  ;;  %2590 = vmatmul.mubr.bf16.gmra.mrb[36].mxu0 %v11123_v42  ;;  %v3873_v1 = vmax.f32 %v2279_v33, 0.0  ;;  %v3874_v32 = vmax.f32 %v2281_v34, 0.0 }
 0x2bc   : > { %v12335_v37 = vmax.f32 %v3862_v54, %v3886_v62  ;;  %v3892_v5 = vmax.f32 %v2295_v48, 0.0  ;;  %9077 = vmatprep.mubr.msk.bf16.mxu0 %vm1630_vm0, %v11124_v22  ;;  %v2285_v48 = vadd.f32 %v2284_v49, %v11789_v15  ;;  %v11125_v49 = vld [vmem:[%s11598_s26 + $0x1a0] ss:$8 sps:$4 sm:$0xff]  }
 0x2bd   : > { %v12340_v17 = vmax.f32 %v3867_v43, %v3891_v27 }
 0x2be   : > { %14739 = vst [vmem:[#allocation57_spill] sm:$0xff] %v12335_v37  ;;  %v12343_v29 = vmax.f32 %v3868_v10, %v3892_v5  ;;  %v2298_v23 = vpop.f32.mrb[188].mxu0  ;;  %v3880_v10 = vmax.f32 %v2285_v48, 0.0  ;;  %v10661_v48 = vld [vmem:[%s14631_s1 + $0x194] ss:$24 sps:$4 sm:$0x3f]  }
 0x2bf   : > { %14740 = vst [vmem:[#allocation58_spill] sm:$0xff] %v12340_v17  ;;  %v2299_v42 = vadd.f32 %v2298_v23, %v11785_v13  ;;  %v2300_v54 = vpop.f32.mrb[189].mxu0  ;;  %v11126_v23 = vld [vmem:[%s11598_s26 + $0x1b4] ss:$8 sps:$4 sm:$0xff]   ;;  %9099 = vmatprep.subr.msk.bf16.mxu0 %vm1775_vm1, %v10661_v48  ;;  %v11133_v17 = vld [vmem:[%s11598_s26 + $0x1e4] ss:$8 sps:$4 sm:$0xff]  }
 0x2c0   : > { %14741 = vst [vmem:[#allocation59_spill] sm:$0xff] %v12343_v29  ;;  %v2301_v52 = vadd.f32 %v2300_v54, %v11789_v15  ;;  %v2302_v22 = vpop.f32.mrb[190].mxu0 }
 0x2c1   : > { %v3897_v38 = vmax.f32 %v2299_v42, 0.0  ;;  %v2303_v24 = vadd.f32 %v2302_v22, %v11785_v13  ;;  %v2304_v9 = vpop.f32.mrb[191].mxu0  ;;  %v11128_v22 = vld [vmem:[%s11598_s26 + $0x1c4] ss:$8 sps:$4 sm:$0xff]  }
 0x2c2   : > { %v3898_v8 = vmax.f32 %v2301_v52, 0.0  ;;  %v2305_v62 = vadd.f32 %v2304_v9, %v11789_v15  ;;  %v11127_v52 = vld [vmem:[%s11598_s26 + $0x1b0] ss:$8 sps:$4 sm:$0xff]  }
 0x2c3   : > { %v12351_v43 = vmax.f32 %v3873_v1, %v3897_v38  ;;  %v3903_v27 = vmax.f32 %v2303_v24, 0.0  ;;  %2600 = vmatmul.mubr.bf16.gmra.mrb[40].mxu0 %v11125_v49  ;;  %v914_v1 = vsub.s32 2, %v11765_v0  ;;  %v10663_v38 = vld [vmem:[%s14631_s1 + $0x190] ss:$24 sps:$4 sm:$0x3f]   ;;  %v918_v24 = vsub.s32 3, %v11765_v0 }
 0x2c4   : > { %v12354_v5 = vmax.f32 %v3874_v32, %v3898_v8  ;;  %v3904_v33 = vmax.f32 %v2305_v62, 0.0  ;;  %9078 = vmatprep.mubr.msk.bf16.mxu0 %vm1630_vm0, %v11126_v23  ;;  %v1789_v8 = vsel %vm1775_vm1, %v10663_v38, 0  ;;  %v11131_v23 = vld [vmem:[%s11598_s26 + $0x1d4] ss:$8 sps:$4 sm:$0xff]  }
 0x2c5   : > { %14742 = vst [vmem:[#allocation60_spill] sm:$0xff] %v12351_v43  ;;  %v12358_v13 = vmax.f32 %v3879_v55, %v3903_v27  ;;  %2837 = vmatpush1.bf16.msra.mxu0 %v1789_v8  ;;  %v11129_v55 = vld [vmem:[%s14632_s2] sm:$0x3f] }
 0x2c6   : > { %14743 = vst [vmem:[#allocation61_spill] sm:$0xff] %v12354_v5  ;;  %v12360_v34 = vmax.f32 %v3880_v10, %v3904_v33  ;;  %v2341_v15 = vpop.f32.mrb[192].mxu0  ;;  %v12378_v27 = vrot.slane %v11129_v55, %v914_v1  ;;  %v12380_v10 = vrot.slane %v11129_v55, %v918_v24  ;;  %v11130_v33 = vld [vmem:[%s11598_s26 + $0x1c0] ss:$8 sps:$4 sm:$0xff]  }
 0x2c7   : > { %14744 = vst [vmem:[#allocation62_spill] sm:$0xff] %v12358_v13  ;;  %v2343_v6 = vpop.f32.mrb[193].mxu0  ;;  %v11132_v13 = vld [vmem:[%s11598_s26 + $0x1d0] ss:$8 sps:$4 sm:$0xff]  }
 0x2c8   : > { %14745 = vst [vmem:[#allocation63_spill] sm:$0xff] %v12360_v34  ;;  %v2345_v42 = vpop.f32.mrb[194].mxu0 }
 0x2c9   : > { %v2347_v54 = vpop.f32.mrb[195].mxu0  ;;  %v2346_v38 = vadd.f32 %v2345_v42, %v12378_v27 }
 0x2ca   : > { %v2348_v34 = vadd.f32 %v2347_v54, %v12380_v10 }
 0x2cb   : > { %2610 = vmatmul.mubr.bf16.gmra.mrb[44].mxu0 %v11127_v52  ;;  %v2342_v52 = vadd.f32 %v2341_v15, %v12378_v27  ;;  %v3341_v42 = vmax.f32 %v2346_v38, 0.0 }
 0x2cc   : > { %9079 = vmatprep.mubr.msk.bf16.mxu0 %vm1630_vm0, %v11128_v22  ;;  %v2344_v22 = vadd.f32 %v2343_v6, %v12380_v10  ;;  %v3342_v54 = vmax.f32 %v2348_v34, 0.0 }
 0x2ce   : > { %v2351_v9 = vpop.f32.mrb[196].mxu0  ;;  %v3336_v29 = vmax.f32 %v2344_v22, 0.0 }
 0x2cf   : > { %v2353_v32 = vpop.f32.mrb[197].mxu0 }
 0x2d0   : > { %v2355_v62 = vpop.f32.mrb[198].mxu0  ;;  %v2354_v22 = vadd.f32 %v2353_v32, %v12380_v10 }
 0x2d1   : > { %v2357_v49 = vpop.f32.mrb[199].mxu0 }
 0x2d3   : > { %2620 = vmatmul.mubr.bf16.gmra.mrb[48].mxu0 %v11130_v33  ;;  %v3335_v33 = vmax.f32 %v2342_v52, 0.0  ;;  %v2352_v52 = vadd.f32 %v2351_v9, %v12378_v27 }
 0x2d4   : > { %9080 = vmatprep.mubr.msk.bf16.mxu0 %vm1630_vm0, %v11131_v23 }
 0x2d6   : > { %v2361_v48 = vpop.f32.mrb[200].mxu0 }
 0x2d7   : > { %v2362_v8 = vadd.f32 %v2361_v48, %v12378_v27  ;;  %v2363_v1 = vpop.f32.mrb[201].mxu0 }
 0x2d8   : > { %v2364_v24 = vadd.f32 %v2363_v1, %v12380_v10  ;;  %v2365_v55 = vpop.f32.mrb[202].mxu0 }
 0x2d9   : > { %v3359_v5 = vmax.f32 %v2362_v8, 0.0  ;;  %v2366_v23 = vadd.f32 %v2365_v55, %v12378_v27  ;;  %v2367_v15 = vpop.f32.mrb[203].mxu0  ;;  %v2356_v55 = vadd.f32 %v2355_v62, %v12378_v27 }
 0x2da   : > { %v3360_v6 = vmax.f32 %v2364_v24, 0.0  ;;  %v2368_v37 = vadd.f32 %v2367_v15, %v12380_v10 }
 0x2db   : > { %v12393_v0 = vmax.f32 %v3335_v33, %v3359_v5  ;;  %v3365_v48 = vmax.f32 %v2366_v23, 0.0  ;;  %2630 = vmatmul.mubr.bf16.gmra.mrb[52].mxu0 %v11132_v13  ;;  %v3347_v33 = vmax.f32 %v2352_v52, 0.0  ;;  %v3348_v23 = vmax.f32 %v2354_v22, 0.0 }
 0x2dc   : > { %v3912_v43 = vmax.f32 %v3336_v29, %v3360_v6  ;;  %v3366_v1 = vmax.f32 %v2368_v37, 0.0  ;;  %9081 = vmatprep.mubr.msk.bf16.mxu0 %vm1630_vm0, %v11133_v17  ;;  %v2358_v37 = vadd.f32 %v2357_v49, %v12380_v10 }
 0x2dd   : > { %v12399_v8 = vmax.f32 %v3341_v42, %v3365_v48  ;;  %v3353_v42 = vmax.f32 %v2356_v55, 0.0 }
 0x2de   : > { %v4197_v24 = vmax.f32 %v11802_v35, %v3912_v43  ;;  %v3918_v38 = vmax.f32 %v3342_v54, %v3366_v1  ;;  %v2371_v5 = vpop.f32.mrb[204].mxu0  ;;  %v3354_v54 = vmax.f32 %v2358_v37, 0.0 }
 0x2df   : > { %v2372_v13 = vadd.f32 %v2371_v5, %v12378_v27  ;;  %v2373_v34 = vpop.f32.mrb[205].mxu0 }
 0x2e0   : > { %v4200_v17 = vmax.f32 %v11808_v41, %v3918_v38  ;;  %v2374_v29 = vadd.f32 %v2373_v34, %v12380_v10  ;;  %v2375_v9 = vpop.f32.mrb[206].mxu0  ;;  %v11134_v41 = vld [vmem:[%s11598_s26 + $0x1e0] ss:$8 sps:$4 sm:$0xff]   ;;  %v11135_v38 = vld [vmem:[%s11598_s26 + $0x1f4] ss:$8 sps:$4 sm:$0xff]  }
 0x2e1   : > { %v3371_v32 = vmax.f32 %v2372_v13, 0.0  ;;  %v2376_v35 = vadd.f32 %v2375_v9, %v12378_v27  ;;  %v2377_v43 = vpop.f32.mrb[207].mxu0  ;;  %v11136_v9 = vld [vmem:[%s11598_s26 + $0x1f0] ss:$8 sps:$4 sm:$0xff]  }
 0x2e2   : > { %v12409_v15 = vpack.c.bf16 %v4200_v17, %v4197_v24  ;;  %v3372_v62 = vmax.f32 %v2374_v29, 0.0  ;;  %v2378_v6 = vadd.f32 %v2377_v43, %v12380_v10 }
 0x2e3   : > { %v12412_v48 = vmax.f32 %v3347_v33, %v3371_v32  ;;  %v3377_v49 = vmax.f32 %v2376_v35, 0.0  ;;  %2640 = vmatmul.mubr.bf16.gmra.mrb[56].mxu0 %v11134_v41  ;;  %v11137_v33 = vld [vmem:[%s11598_s26 + $0x204] ss:$8 sps:$4 sm:$0xff]  }
 0x2e4   : > { %14746 = vst [vmem:[#allocation64_spill] sm:$0xff] %v12409_v15  ;;  %v3924_v1 = vmax.f32 %v3348_v23, %v3372_v62  ;;  %v3378_v52 = vmax.f32 %v2378_v6, 0.0  ;;  %9082 = vmatprep.mubr.msk.bf16.mxu0 %vm1630_vm0, %v11135_v38  ;;  %v11138_v62 = vld [vmem:[%s11598_s26 + $0x200] ss:$8 sps:$4 sm:$0xff]   ;;  %v11141_v15 = vld [vmem:[%s11598_s26 + $0x224] ss:$8 sps:$4 sm:$0xff]  }
 0x2e5   : > { %v12417_v22 = vmax.f32 %v3353_v42, %v3377_v49 }
 0x2e6   : > { %v3930_v24 = vmax.f32 %v3354_v54, %v3378_v52  ;;  %v2381_v5 = vpop.f32.mrb[208].mxu0  ;;  %v4203_v55 = vmax.f32 %v11821_v61, %v3924_v1  ;;  %v11139_v61 = vld [vmem:[%s11598_s26 + $0x214] ss:$8 sps:$4 sm:$0xff]  }
 0x2e7   : > { %v2383_v13 = vpop.f32.mrb[209].mxu0  ;;  %v2382_v6 = vadd.f32 %v2381_v5, %v12378_v27 }
 0x2e8   : > { %v2385_v34 = vpop.f32.mrb[210].mxu0  ;;  %v4206_v17 = vmax.f32 %v11826_v4, %v3930_v24  ;;  %v2384_v4 = vadd.f32 %v2383_v13, %v12380_v10 }
 0x2e9   : > { %v2387_v29 = vpop.f32.mrb[211].mxu0  ;;  %v2386_v49 = vadd.f32 %v2385_v34, %v12378_v27  ;;  %v3383_v24 = vmax.f32 %v2382_v6, 0.0 }
 0x2ea   : > { %v12421_v37 = vpack.c.bf16 %v4206_v17, %v4203_v55  ;;  %v2388_v1 = vadd.f32 %v2387_v29, %v12380_v10 }
 0x2eb   : > { %2650 = vmatmul.mubr.bf16.gmra.mrb[60].mxu0 %v11136_v9  ;;  %v3384_v9 = vmax.f32 %v2384_v4, 0.0  ;;  %v3389_v34 = vmax.f32 %v2386_v49, 0.0 }
 0x2ec   : > { %14747 = vst [vmem:[#allocation65_spill] sm:$0xff] %v12421_v37  ;;  %9083 = vmatprep.mubr.msk.bf16.mxu0 %vm1630_vm0, %v11137_v33  ;;  %v3390_v29 = vmax.f32 %v2388_v1, 0.0 }
 0x2ee   : > { %v2391_v32 = vpop.f32.mrb[212].mxu0 }
 0x2ef   : > { %v2393_v35 = vpop.f32.mrb[213].mxu0  ;;  %v2392_v6 = vadd.f32 %v2391_v32, %v12378_v27 }
 0x2f0   : > { %v2395_v43 = vpop.f32.mrb[214].mxu0  ;;  %v2394_v4 = vadd.f32 %v2393_v35, %v12380_v10 }
 0x2f1   : > { %v2397_v23 = vpop.f32.mrb[215].mxu0 }
 0x2f3   : > { %2660 = vmatmul.mubr.bf16.gmra.mrb[64].mxu0 %v11138_v62 }
 0x2f4   : > { %9084 = vmatprep.mubr.msk.bf16.mxu0 %vm1630_vm0, %v11139_v61 }
 0x2f6   : > { %v2401_v42 = vpop.f32.mrb[216].mxu0 }
 0x2f7   : > { %v2402_v41 = vadd.f32 %v2401_v42, %v12378_v27  ;;  %v2403_v54 = vpop.f32.mrb[217].mxu0  ;;  %v11140_v42 = vld [vmem:[%s11598_s26 + $0x210] ss:$8 sps:$4 sm:$0xff]  }
 0x2f8   : > { %v2404_v52 = vadd.f32 %v2403_v54, %v12380_v10  ;;  %v2405_v38 = vpop.f32.mrb[218].mxu0 }
 0x2f9   : > { %v3407_v55 = vmax.f32 %v2402_v41, 0.0  ;;  %v2406_v17 = vadd.f32 %v2405_v38, %v12378_v27  ;;  %v2407_v5 = vpop.f32.mrb[219].mxu0 }
 0x2fa   : > { %v3408_v13 = vmax.f32 %v2404_v52, 0.0  ;;  %v2408_v33 = vadd.f32 %v2407_v5, %v12380_v10 }
 0x2fb   : > { %v12437_v62 = vmax.f32 %v3383_v24, %v3407_v55  ;;  %v3413_v61 = vmax.f32 %v2406_v17, 0.0  ;;  %2670 = vmatmul.mubr.bf16.gmra.mrb[68].mxu0 %v11140_v42  ;;  %v2396_v24 = vadd.f32 %v2395_v43, %v12378_v27  ;;  %v2398_v17 = vadd.f32 %v2397_v23, %v12380_v10 }
 0x2fc   : > { %v3936_v37 = vmax.f32 %v3384_v9, %v3408_v13  ;;  %v3414_v54 = vmax.f32 %v2408_v33, 0.0  ;;  %9085 = vmatprep.mubr.msk.bf16.mxu0 %vm1630_vm0, %v11141_v15  ;;  %v3395_v9 = vmax.f32 %v2392_v6, 0.0 }
 0x2fd   : > { %v12443_v41 = vmax.f32 %v3389_v34, %v3413_v61  ;;  %v3401_v61 = vmax.f32 %v2396_v24, 0.0 }
 0x2fe   : > { %v3942_v52 = vmax.f32 %v3390_v29, %v3414_v54  ;;  %v2411_v38 = vpop.f32.mrb[220].mxu0  ;;  %v4209_v49 = vmax.f32 %v11849_v45, %v3936_v37  ;;  %v3396_v45 = vmax.f32 %v2394_v4, 0.0  ;;  %v11142_v29 = vld [vmem:[%s11598_s26 + $0x220] ss:$8 sps:$4 sm:$0xff]  }
 0x2ff   : > { %v2412_v55 = vadd.f32 %v2411_v38, %v12378_v27  ;;  %v2413_v1 = vpop.f32.mrb[221].mxu0 }
 0x300   : > { %v2414_v15 = vadd.f32 %v2413_v1, %v12380_v10  ;;  %v2415_v5 = vpop.f32.mrb[222].mxu0  ;;  %v4212_v32 = vmax.f32 %v11855_v51, %v3942_v52  ;;  %v3402_v51 = vmax.f32 %v2398_v17, 0.0  ;;  %v11143_v52 = vld [vmem:[%s11598_s26 + $0x234] ss:$8 sps:$4 sm:$0xff]  }
 0x301   : > { %v3419_v35 = vmax.f32 %v2412_v55, 0.0  ;;  %v2416_v13 = vadd.f32 %v2415_v5, %v12378_v27  ;;  %v2417_v33 = vpop.f32.mrb[223].mxu0 }
 0x302   : > { %v3420_v37 = vmax.f32 %v2414_v15, 0.0  ;;  %v2418_v43 = vadd.f32 %v2417_v33, %v12380_v10  ;;  %v12454_v34 = vpack.c.bf16 %v4212_v32, %v4209_v49  ;;  %v11144_v32 = vld [vmem:[%s11598_s26 + $0x230] ss:$8 sps:$4 sm:$0xff]  }
 0x303   : > { %v12456_v42 = vmax.f32 %v3395_v9, %v3419_v35  ;;  %v3425_v23 = vmax.f32 %v2416_v13, 0.0  ;;  %2680 = vmatmul.mubr.bf16.gmra.mrb[72].mxu0 %v11142_v29  ;;  %v11145_v9 = vld [vmem:[%s11598_s26 + $0x244] ss:$8 sps:$4 sm:$0xff]  }
 0x304   : > { %v3948_v54 = vmax.f32 %v3396_v45, %v3420_v37  ;;  %v3426_v6 = vmax.f32 %v2418_v43, 0.0  ;;  %9086 = vmatprep.mubr.msk.bf16.mxu0 %vm1630_vm0, %v11143_v52  ;;  %v11146_v37 = vld [vmem:[%s11598_s26 + $0x240] ss:$8 sps:$4 sm:$0xff]  }
 0x305   : > { %v12461_v4 = vmax.f32 %v3401_v61, %v3425_v23 }
 0x306   : > { %v3954_v38 = vmax.f32 %v3402_v51, %v3426_v6  ;;  %v2421_v49 = vpop.f32.mrb[224].mxu0  ;;  %v4215_v24 = vmax.f32 %v11868_v16, %v3948_v54  ;;  %v11147_v16 = vld [vmem:[%s11598_s26 + $0x254] ss:$8 sps:$4 sm:$0xff]  }
 0x307   : > { %14748 = vst [vmem:[#allocation66_spill] sm:$0xff] %v12461_v4  ;;  %v2423_v55 = vpop.f32.mrb[225].mxu0  ;;  %v2422_v43 = vadd.f32 %v2421_v49, %v12378_v27  ;;  %v11149_v4 = vld [vmem:[%s11598_s26 + $0x264] ss:$8 sps:$4 sm:$0xff]  }
 0x308   : > { %v2425_v1 = vpop.f32.mrb[226].mxu0  ;;  %v4218_v15 = vmax.f32 %v11873_v21, %v3954_v38  ;;  %v2424_v21 = vadd.f32 %v2423_v55, %v12380_v10 }
 0x309   : > { %v2427_v5 = vpop.f32.mrb[227].mxu0  ;;  %v2426_v23 = vadd.f32 %v2425_v1, %v12378_v27  ;;  %v3431_v38 = vmax.f32 %v2422_v43, 0.0 }
 0x30a   : > { %v12465_v17 = vpack.c.bf16 %v4218_v15, %v4215_v24  ;;  %v2428_v54 = vadd.f32 %v2427_v5, %v12380_v10 }
 0x30b   : > { %2690 = vmatmul.mubr.bf16.gmra.mrb[76].mxu0 %v11144_v32  ;;  %v3432_v32 = vmax.f32 %v2424_v21, 0.0  ;;  %v3437_v1 = vmax.f32 %v2426_v23, 0.0 }
 0x30c   : > { %14749 = vst [vmem:[#allocation67_spill] sm:$0xff] %v12465_v17  ;;  %9087 = vmatprep.mubr.msk.bf16.mxu0 %vm1630_vm0, %v11145_v9  ;;  %v3438_v5 = vmax.f32 %v2428_v54, 0.0 }
 0x30e   : > { %v2431_v35 = vpop.f32.mrb[228].mxu0 }
 0x30f   : > { %v2433_v13 = vpop.f32.mrb[229].mxu0  ;;  %v2432_v43 = vadd.f32 %v2431_v35, %v12378_v27 }
 0x310   : > { %v2435_v33 = vpop.f32.mrb[230].mxu0  ;;  %v2434_v21 = vadd.f32 %v2433_v13, %v12380_v10 }
 0x311   : > { %v2437_v45 = vpop.f32.mrb[231].mxu0 }
 0x313   : > { %2700 = vmatmul.mubr.bf16.gmra.mrb[80].mxu0 %v11146_v37 }
 0x314   : > { %9088 = vmatprep.mubr.msk.bf16.mxu0 %vm1630_vm0, %v11147_v16 }
 0x316   : > { %v2441_v61 = vpop.f32.mrb[232].mxu0 }
 0x317   : > { %v2442_v29 = vadd.f32 %v2441_v61, %v12378_v27  ;;  %v2443_v51 = vpop.f32.mrb[233].mxu0  ;;  %v11148_v61 = vld [vmem:[%s11598_s26 + $0x250] ss:$8 sps:$4 sm:$0xff]  }
 0x318   : > { %v2444_v6 = vadd.f32 %v2443_v51, %v12380_v10  ;;  %v2445_v52 = vpop.f32.mrb[234].mxu0 }
 0x319   : > { %v3455_v24 = vmax.f32 %v2442_v29, 0.0  ;;  %v2446_v15 = vadd.f32 %v2445_v52, %v12378_v27  ;;  %v2447_v49 = vpop.f32.mrb[235].mxu0 }
 0x31a   : > { %v3456_v55 = vmax.f32 %v2444_v6, 0.0  ;;  %v2448_v9 = vadd.f32 %v2447_v49, %v12380_v10 }
 0x31b   : > { %v12481_v37 = vmax.f32 %v3431_v38, %v3455_v24  ;;  %v3461_v16 = vmax.f32 %v2446_v15, 0.0  ;;  %2710 = vmatmul.mubr.bf16.gmra.mrb[84].mxu0 %v11148_v61  ;;  %v2436_v38 = vadd.f32 %v2435_v33, %v12378_v27  ;;  %v2438_v15 = vadd.f32 %v2437_v45, %v12380_v10 }
 0x31c   : > { %v3960_v17 = vmax.f32 %v3432_v32, %v3456_v55  ;;  %v3462_v51 = vmax.f32 %v2448_v9, 0.0  ;;  %9089 = vmatprep.mubr.msk.bf16.mxu0 %vm1630_vm0, %v11149_v4  ;;  %v3443_v32 = vmax.f32 %v2432_v43, 0.0 }
 0x31d   : > { %v12487_v29 = vmax.f32 %v3437_v1, %v3461_v16  ;;  %v3449_v16 = vmax.f32 %v2436_v38, 0.0 }
 0x31e   : > { %v3966_v6 = vmax.f32 %v3438_v5, %v3462_v51  ;;  %v2451_v52 = vpop.f32.mrb[236].mxu0  ;;  %v4221_v23 = vmax.f32 %v11893_v63, %v3960_v17  ;;  %v3444_v63 = vmax.f32 %v2434_v21, 0.0  ;;  %v11150_v5 = vld [vmem:[%s11598_s26 + $0x260] ss:$8 sps:$4 sm:$0xff]  }
 0x31f   : > { %v2452_v24 = vadd.f32 %v2451_v52, %v12378_v27  ;;  %v2453_v54 = vpop.f32.mrb[237].mxu0 }
 0x320   : > { %v2454_v4 = vadd.f32 %v2453_v54, %v12380_v10  ;;  %v2455_v49 = vpop.f32.mrb[238].mxu0  ;;  %v4224_v35 = vmax.f32 %v11899_v11, %v3966_v6  ;;  %v3450_v11 = vmax.f32 %v2438_v15, 0.0  ;;  %v11151_v6 = vld [vmem:[%s11598_s26 + $0x274] ss:$8 sps:$4 sm:$0xff]  }
 0x321   : > { %v3467_v13 = vmax.f32 %v2452_v24, 0.0  ;;  %v2456_v55 = vadd.f32 %v2455_v49, %v12378_v27  ;;  %v2457_v9 = vpop.f32.mrb[239].mxu0 }
 0x322   : > { %v3468_v17 = vmax.f32 %v2454_v4, 0.0  ;;  %v2458_v33 = vadd.f32 %v2457_v9, %v12380_v10  ;;  %v12498_v1 = vpack.c.bf16 %v4224_v35, %v4221_v23  ;;  %v11152_v35 = vld [vmem:[%s11598_s26 + $0x270] ss:$8 sps:$4 sm:$0xff]  }
 0x323   : > { %v12500_v61 = vmax.f32 %v3443_v32, %v3467_v13  ;;  %v3473_v45 = vmax.f32 %v2456_v55, 0.0  ;;  %2720 = vmatmul.mubr.bf16.gmra.mrb[88].mxu0 %v11150_v5  ;;  %v11153_v32 = vld [vmem:[%s11598_s26 + $0x284] ss:$8 sps:$4 sm:$0xff]  }
 0x324   : > { %v3972_v51 = vmax.f32 %v3444_v63, %v3468_v17  ;;  %v3474_v43 = vmax.f32 %v2458_v33, 0.0  ;;  %9090 = vmatprep.mubr.msk.bf16.mxu0 %vm1630_vm0, %v11151_v6  ;;  %v11154_v17 = vld [vmem:[%s11598_s26 + $0x280] ss:$8 sps:$4 sm:$0xff]  }
 0x325   : > { %v12505_v21 = vmax.f32 %v3449_v16, %v3473_v45 }
 0x326   : > { %v3978_v52 = vmax.f32 %v3450_v11, %v3474_v43  ;;  %v2461_v23 = vpop.f32.mrb[240].mxu0  ;;  %v4227_v38 = vmax.f32 %v11912_v40, %v3972_v51  ;;  %v11155_v40 = vld [vmem:[%s11598_s26 + $0x294] ss:$8 sps:$4 sm:$0xff]  }
 0x327   : > { %14750 = vst [vmem:[#allocation68_spill] sm:$0xff] %v12505_v21  ;;  %v2463_v24 = vpop.f32.mrb[241].mxu0  ;;  %v2462_v33 = vadd.f32 %v2461_v23, %v12378_v27  ;;  %v11157_v21 = vld [vmem:[%s11598_s26 + $0x2a4] ss:$8 sps:$4 sm:$0xff]  }
 0x328   : > { %v2465_v54 = vpop.f32.mrb[242].mxu0  ;;  %v4230_v4 = vmax.f32 %v11917_v47, %v3978_v52  ;;  %v2464_v47 = vadd.f32 %v2463_v24, %v12380_v10 }
 0x329   : > { %v2467_v49 = vpop.f32.mrb[243].mxu0  ;;  %v2466_v45 = vadd.f32 %v2465_v54, %v12378_v27  ;;  %v3479_v52 = vmax.f32 %v2462_v33, 0.0 }
 0x32a   : > { %v12509_v15 = vpack.c.bf16 %v4230_v4, %v4227_v38  ;;  %v2468_v51 = vadd.f32 %v2467_v49, %v12380_v10 }
 0x32b   : > { %2730 = vmatmul.mubr.bf16.gmra.mrb[92].mxu0 %v11152_v35  ;;  %v3480_v35 = vmax.f32 %v2464_v47, 0.0  ;;  %v3485_v54 = vmax.f32 %v2466_v45, 0.0 }
 0x32c   : > { %14751 = vst [vmem:[#allocation69_spill] sm:$0xff] %v12509_v15  ;;  %9091 = vmatprep.mubr.msk.bf16.mxu0 %vm1630_vm0, %v11153_v32  ;;  %v3486_v49 = vmax.f32 %v2468_v51, 0.0 }
 0x32e   : > { %v2471_v13 = vpop.f32.mrb[244].mxu0 }
 0x32f   : > { %v2473_v55 = vpop.f32.mrb[245].mxu0  ;;  %v2472_v33 = vadd.f32 %v2471_v13, %v12378_v27 }
 0x330   : > { %v2475_v9 = vpop.f32.mrb[246].mxu0  ;;  %v2474_v47 = vadd.f32 %v2473_v55, %v12380_v10 }
 0x331   : > { %v2477_v63 = vpop.f32.mrb[247].mxu0 }
 0x333   : > { %2740 = vmatmul.mubr.bf16.gmra.mrb[96].mxu0 %v11154_v17 }
 0x334   : > { %9092 = vmatprep.mubr.msk.bf16.mxu0 %vm1630_vm0, %v11155_v40 }
 0x336   : > { %v2481_v16 = vpop.f32.mrb[248].mxu0 }
 0x337   : > { %v2482_v5 = vadd.f32 %v2481_v16, %v12378_v27  ;;  %v2483_v11 = vpop.f32.mrb[249].mxu0  ;;  %v11156_v16 = vld [vmem:[%s11598_s26 + $0x290] ss:$8 sps:$4 sm:$0xff]  }
 0x338   : > { %v2484_v43 = vadd.f32 %v2483_v11, %v12380_v10  ;;  %v2485_v6 = vpop.f32.mrb[250].mxu0 }
 0x339   : > { %v3503_v38 = vmax.f32 %v2482_v5, 0.0  ;;  %v2486_v4 = vadd.f32 %v2485_v6, %v12378_v27  ;;  %v2487_v23 = vpop.f32.mrb[251].mxu0 }
 0x33a   : > { %v3504_v24 = vmax.f32 %v2484_v43, 0.0  ;;  %v2488_v32 = vadd.f32 %v2487_v23, %v12380_v10 }
 0x33b   : > { %v12525_v17 = vmax.f32 %v3479_v52, %v3503_v38  ;;  %v3509_v40 = vmax.f32 %v2486_v4, 0.0  ;;  %2750 = vmatmul.mubr.bf16.gmra.mrb[100].mxu0 %v11156_v16  ;;  %v2476_v52 = vadd.f32 %v2475_v9, %v12378_v27  ;;  %v2478_v4 = vadd.f32 %v2477_v63, %v12380_v10 }
 0x33c   : > { %v3984_v15 = vmax.f32 %v3480_v35, %v3504_v24  ;;  %v3510_v11 = vmax.f32 %v2488_v32, 0.0  ;;  %9093 = vmatprep.mubr.msk.bf16.mxu0 %vm1630_vm0, %v11157_v21  ;;  %v3491_v35 = vmax.f32 %v2472_v33, 0.0  ;;  %v3492_v24 = vmax.f32 %v2474_v47, 0.0 }
 0x33d   : > { %v12531_v5 = vmax.f32 %v3485_v54, %v3509_v40  ;;  %v3497_v40 = vmax.f32 %v2476_v52, 0.0 }
 0x33e   : > { %v4233_v43 = vmax.f32 %v11937_v39, %v3984_v15  ;;  %v3990_v45 = vmax.f32 %v3486_v49, %v3510_v11  ;;  %v2491_v6 = vpop.f32.mrb[252].mxu0  ;;  %v3498_v49 = vmax.f32 %v2478_v4, 0.0 }
 0x33f   : > { %v2492_v38 = vadd.f32 %v2491_v6, %v12378_v27  ;;  %v2493_v51 = vpop.f32.mrb[253].mxu0 }
 0x340   : > { %v4236_v21 = vmax.f32 %v11943_v53, %v3990_v45  ;;  %v2494_v13 = vadd.f32 %v2493_v51, %v12380_v10  ;;  %v2495_v23 = vpop.f32.mrb[254].mxu0  ;;  %v11158_v53 = vld [vmem:[%s11598_s26 + $0x2a0] ss:$8 sps:$4 sm:$0xff]   ;;  %v11159_v45 = vld [vmem:[%s11598_s26 + $0x2b4] ss:$8 sps:$4 sm:$0xff]  }
 0x341   : > { %v3515_v55 = vmax.f32 %v2492_v38, 0.0  ;;  %v2496_v39 = vadd.f32 %v2495_v23, %v12378_v27  ;;  %v2497_v15 = vpop.f32.mrb[255].mxu0  ;;  %v11160_v23 = vld [vmem:[%s11598_s26 + $0x2b0] ss:$8 sps:$4 sm:$0xff]  }
 0x342   : > { %v3516_v32 = vmax.f32 %v2494_v13, 0.0  ;;  %v2498_v9 = vadd.f32 %v2497_v15, %v12380_v10  ;;  %v12542_v54 = vpack.c.bf16 %v4236_v21, %v4233_v43 }
 0x343   : > { %v12544_v16 = vmax.f32 %v3491_v35, %v3515_v55  ;;  %v3521_v63 = vmax.f32 %v2496_v39, 0.0  ;;  %2760 = vmatmul.mubr.bf16.gmra.mrb[104].mxu0 %v11158_v53  ;;  %v11161_v35 = vld [vmem:[%s11598_s26 + $0x2c4] ss:$8 sps:$4 sm:$0xff]  }
 0x344   : > { %v3996_v11 = vmax.f32 %v3492_v24, %v3516_v32  ;;  %v3522_v33 = vmax.f32 %v2498_v9, 0.0  ;;  %9094 = vmatprep.mubr.msk.bf16.mxu0 %vm1630_vm0, %v11159_v45  ;;  %v11162_v24 = vld [vmem:[%s11598_s26 + $0x2c0] ss:$8 sps:$4 sm:$0xff]   ;;  %v11163_v32 = vld [vmem:[%s11598_s26 + $0x2d4] ss:$8 sps:$4 sm:$0xff]  }
 0x345   : > { %v12549_v47 = vmax.f32 %v3497_v40, %v3521_v63 }
 0x346   : > { %v4239_v6 = vmax.f32 %v11956_v28, %v3996_v11  ;;  %v4002_v43 = vmax.f32 %v3498_v49, %v3522_v33  ;;  %v2501_v52 = vpop.f32.mrb[0].mxu0 }
 0x347   : > { %14752 = vst [vmem:[#allocation70_spill] sm:$0xff] %v12549_v47  ;;  %v2503_v38 = vpop.f32.mrb[1].mxu0  ;;  %v11165_v47 = vld [vmem:[%s11598_s26 + $0x2e4] ss:$8 sps:$4 sm:$0xff]  }
 0x348   : > { %v4242_v51 = vmax.f32 %v11961_v30, %v4002_v43  ;;  %v2505_v21 = vpop.f32.mrb[2].mxu0  ;;  %v2502_v30 = vadd.f32 %v2501_v52, %v12378_v27  ;;  %v2504_v9 = vadd.f32 %v2503_v38, %v12380_v10 }
 0x349   : > { %v2507_v13 = vpop.f32.mrb[3].mxu0  ;;  %v2506_v63 = vadd.f32 %v2505_v21, %v12378_v27 }
 0x34a   : > { %v12553_v4 = vpack.c.bf16 %v4242_v51, %v4239_v6  ;;  %v2508_v11 = vadd.f32 %v2507_v13, %v12380_v10  ;;  %v3527_v6 = vmax.f32 %v2502_v30, 0.0 }
 0x34b   : > { %2770 = vmatmul.mubr.bf16.gmra.mrb[108].mxu0 %v11160_v23  ;;  %v3528_v23 = vmax.f32 %v2504_v9, 0.0  ;;  %v3533_v21 = vmax.f32 %v2506_v63, 0.0 }
 0x34c   : > { %14753 = vst [vmem:[#allocation71_spill] sm:$0xff] %v12553_v4  ;;  %9095 = vmatprep.mubr.msk.bf16.mxu0 %vm1630_vm0, %v11161_v35  ;;  %v3534_v13 = vmax.f32 %v2508_v11, 0.0 }
 0x34e   : > { %v2511_v55 = vpop.f32.mrb[4].mxu0 }
 0x34f   : > { %v2513_v39 = vpop.f32.mrb[5].mxu0  ;;  %v2512_v30 = vadd.f32 %v2511_v55, %v12378_v27 }
 0x350   : > { %v2515_v15 = vpop.f32.mrb[6].mxu0  ;;  %v2514_v9 = vadd.f32 %v2513_v39, %v12380_v10 }
 0x351   : > { %v2517_v28 = vpop.f32.mrb[7].mxu0 }
 0x353   : > { %2780 = vmatmul.mubr.bf16.gmra.mrb[112].mxu0 %v11162_v24 }
 0x354   : > { %9096 = vmatprep.mubr.msk.bf16.mxu0 %vm1630_vm0, %v11163_v32 }
 0x356   : > { %v2521_v40 = vpop.f32.mrb[8].mxu0 }
 0x357   : > { %v2522_v53 = vadd.f32 %v2521_v40, %v12378_v27  ;;  %v2523_v49 = vpop.f32.mrb[9].mxu0  ;;  %v11164_v40 = vld [vmem:[%s11598_s26 + $0x2d0] ss:$8 sps:$4 sm:$0xff]  }
 0x358   : > { %v2524_v33 = vadd.f32 %v2523_v49, %v12380_v10  ;;  %v2525_v45 = vpop.f32.mrb[10].mxu0 }
 0x359   : > { %v3551_v43 = vmax.f32 %v2522_v53, 0.0  ;;  %v2526_v51 = vadd.f32 %v2525_v45, %v12378_v27  ;;  %v2527_v52 = vpop.f32.mrb[11].mxu0 }
 0x35a   : > { %v3552_v38 = vmax.f32 %v2524_v33, 0.0  ;;  %v2528_v35 = vadd.f32 %v2527_v52, %v12380_v10 }
 0x35b   : > { %v12569_v24 = vmax.f32 %v3527_v6, %v3551_v43  ;;  %v3557_v32 = vmax.f32 %v2526_v51, 0.0  ;;  %2790 = vmatmul.mubr.bf16.gmra.mrb[116].mxu0 %v11164_v40  ;;  %v2516_v6 = vadd.f32 %v2515_v15, %v12378_v27  ;;  %v2518_v51 = vadd.f32 %v2517_v28, %v12380_v10 }
 0x35c   : > { %v4008_v4 = vmax.f32 %v3528_v23, %v3552_v38  ;;  %v3558_v49 = vmax.f32 %v2528_v35, 0.0  ;;  %9097 = vmatprep.mubr.msk.bf16.mxu0 %vm1630_vm0, %v11165_v47  ;;  %v3539_v23 = vmax.f32 %v2512_v30, 0.0  ;;  %v3540_v38 = vmax.f32 %v2514_v9, 0.0 }
 0x35d   : > { %v12575_v53 = vmax.f32 %v3533_v21, %v3557_v32  ;;  %v3545_v32 = vmax.f32 %v2516_v6, 0.0 }
 0x35e   : > { %v4245_v33 = vmax.f32 %v11981_v50, %v4008_v4  ;;  %v4014_v63 = vmax.f32 %v3534_v13, %v3558_v49  ;;  %v2531_v45 = vpop.f32.mrb[12].mxu0  ;;  %v3546_v13 = vmax.f32 %v2518_v51, 0.0 }
 0x35f   : > { %v2532_v43 = vadd.f32 %v2531_v45, %v12378_v27  ;;  %v2533_v11 = vpop.f32.mrb[13].mxu0 }
 0x360   : > { %v4248_v47 = vmax.f32 %v11987_v58, %v4014_v63  ;;  %v2534_v55 = vadd.f32 %v2533_v11, %v12380_v10  ;;  %v2535_v52 = vpop.f32.mrb[14].mxu0  ;;  %v11166_v58 = vld [vmem:[%s11598_s26 + $0x2e0] ss:$8 sps:$4 sm:$0xff]   ;;  %v11167_v63 = vld [vmem:[%s11598_s26 + $0x2f4] ss:$8 sps:$4 sm:$0xff]  }
 0x361   : > { %v3563_v39 = vmax.f32 %v2532_v43, 0.0  ;;  %v2536_v50 = vadd.f32 %v2535_v52, %v12378_v27  ;;  %v2537_v4 = vpop.f32.mrb[15].mxu0  ;;  %v11168_v52 = vld [vmem:[%s11598_s26 + $0x2f0] ss:$8 sps:$4 sm:$0xff]  }
 0x362   : > { %v12585_v35 = vpack.c.bf16 %v4248_v47, %v4245_v33  ;;  %v3564_v15 = vmax.f32 %v2534_v55, 0.0  ;;  %v2538_v21 = vadd.f32 %v2537_v4, %v12380_v10 }
 0x363   : > { %v12588_v40 = vmax.f32 %v3539_v23, %v3563_v39  ;;  %v3569_v28 = vmax.f32 %v2536_v50, 0.0  ;;  %2800 = vmatmul.mubr.bf16.gmra.mrb[120].mxu0 %v11166_v58  ;;  %v11169_v23 = vld [vmem:[%s11598_s26 + $0x4] ss:$8 sps:$4 sm:$0xff]  }
 0x364   : > { %14754 = vst [vmem:[#allocation72_spill] sm:$0xff] %v12585_v35  ;;  %v4020_v49 = vmax.f32 %v3540_v38, %v3564_v15  ;;  %v3570_v30 = vmax.f32 %v2538_v21, 0.0  ;;  %9098 = vmatprep.mubr.msk.bf16.mxu0 %vm1630_vm0, %v11167_v63  ;;  %v11170_v38 = vld [vmem:[%s11598_s26] ss:$8 sps:$4 sm:$0xff]   ;;  %v11171_v15 = vld [vmem:[%s11598_s26 + $0x14] ss:$8 sps:$4 sm:$0xff]  }
 0x365   : > { %v12593_v9 = vmax.f32 %v3545_v32, %v3569_v28 }
 0x366   : > { %v4251_v33 = vmax.f32 %v12000_v60, %v4020_v49  ;;  %v4026_v45 = vmax.f32 %v3546_v13, %v3570_v30  ;;  %v2541_v6 = vpop.f32.mrb[16].mxu0 }
 0x367   : > { %14755 = vst [vmem:[#allocation73_spill] sm:$0xff] %v12593_v9  ;;  %v2543_v43 = vpop.f32.mrb[17].mxu0  ;;  %v11173_v9 = vld [vmem:[%s11598_s26 + $0x24] ss:$8 sps:$4 sm:$0xff]  }
 0x368   : > { %v4254_v11 = vmax.f32 %v12005_v12, %v4026_v45  ;;  %v2545_v47 = vpop.f32.mrb[18].mxu0  ;;  %v2542_v12 = vadd.f32 %v2541_v6, %v12378_v27  ;;  %v2544_v21 = vadd.f32 %v2543_v43, %v12380_v10 }
 0x369   : > { %v2547_v55 = vpop.f32.mrb[19].mxu0  ;;  %v2546_v28 = vadd.f32 %v2545_v47, %v12378_v27 }
 0x36a   : > { %v12597_v51 = vpack.c.bf16 %v4254_v11, %v4251_v33  ;;  %v2548_v49 = vadd.f32 %v2547_v55, %v12380_v10  ;;  %v3575_v33 = vmax.f32 %v2542_v12, 0.0 }
 0x36b   : > { %2810 = vmatmul.mubr.bf16.gmra.mrb[124].mxu0 %v11168_v52  ;;  %v3576_v52 = vmax.f32 %v2544_v21, 0.0  ;;  %v3581_v47 = vmax.f32 %v2546_v28, 0.0 }
 0x36c   : > { %14756 = vst [vmem:[#allocation74_spill] sm:$0xff] %v12597_v51  ;;  %9100 = vmatprep.mubr.msk.bf16.mxu0 %vm1630_vm0, %v11169_v23  ;;  %v3582_v55 = vmax.f32 %v2548_v49, 0.0 }
 0x36e   : > { %v2551_v39 = vpop.f32.mrb[20].mxu0 }
 0x36f   : > { %v2553_v50 = vpop.f32.mrb[21].mxu0  ;;  %v2552_v12 = vadd.f32 %v2551_v39, %v12378_v27 }
 0x370   : > { %v2555_v4 = vpop.f32.mrb[22].mxu0  ;;  %v2554_v21 = vadd.f32 %v2553_v50, %v12380_v10 }
 0x371   : > { %v2557_v60 = vpop.f32.mrb[23].mxu0 }
 0x373   : > { %2853 = vmatmul.mubr.bf16.vlgmr.msra.gmra.mrb[128].mxu0 %v11170_v38 }
 0x374   : > { %9101 = vmatprep.mubr.msk.bf16.mxu0 %vm1630_vm0, %v11171_v15 }
 0x376   : > { %v2561_v32 = vpop.f32.mrb[24].mxu0 }
 0x377   : > { %v2562_v58 = vadd.f32 %v2561_v32, %v12378_v27  ;;  %v2563_v13 = vpop.f32.mrb[25].mxu0  ;;  %v11172_v32 = vld [vmem:[%s11598_s26 + $0x10] ss:$8 sps:$4 sm:$0xff]  }
 0x378   : > { %v2564_v30 = vadd.f32 %v2563_v13, %v12380_v10  ;;  %v2565_v63 = vpop.f32.mrb[26].mxu0 }
 0x379   : > { %v3599_v45 = vmax.f32 %v2562_v58, 0.0  ;;  %v2566_v11 = vadd.f32 %v2565_v63, %v12378_v27  ;;  %v2567_v6 = vpop.f32.mrb[27].mxu0 }
 0x37a   : > { %v3600_v43 = vmax.f32 %v2564_v30, 0.0  ;;  %v2568_v23 = vadd.f32 %v2567_v6, %v12380_v10 }
 0x37b   : > { %v12613_v38 = vmax.f32 %v3575_v33, %v3599_v45  ;;  %v3605_v15 = vmax.f32 %v2566_v11, 0.0  ;;  %2863 = vmatmul.mubr.bf16.gmra.mrb[132].mxu0 %v11172_v32  ;;  %v2556_v33 = vadd.f32 %v2555_v4, %v12378_v27  ;;  %v2558_v11 = vadd.f32 %v2557_v60, %v12380_v10 }
 0x37c   : > { %v4032_v51 = vmax.f32 %v3576_v52, %v3600_v43  ;;  %v3606_v13 = vmax.f32 %v2568_v23, 0.0  ;;  %9102 = vmatprep.mubr.msk.bf16.mxu0 %vm1630_vm0, %v11173_v9  ;;  %v3587_v52 = vmax.f32 %v2552_v12, 0.0  ;;  %v3588_v43 = vmax.f32 %v2554_v21, 0.0 }
 0x37d   : > { %v12619_v58 = vmax.f32 %v3581_v47, %v3605_v15  ;;  %v3593_v15 = vmax.f32 %v2556_v33, 0.0 }
 0x37e   : > { %v4257_v30 = vmax.f32 %v12041_v18, %v4032_v51  ;;  %v4038_v28 = vmax.f32 %v3582_v55, %v3606_v13  ;;  %v2571_v63 = vpop.f32.mrb[28].mxu0  ;;  %v3594_v55 = vmax.f32 %v2558_v11, 0.0 }
 0x37f   : > { %v2572_v45 = vadd.f32 %v2571_v63, %v12378_v27  ;;  %v2573_v49 = vpop.f32.mrb[29].mxu0 }
 0x380   : > { %v4260_v9 = vmax.f32 %v12052_v25, %v4038_v28  ;;  %v2574_v39 = vadd.f32 %v2573_v49, %v12380_v10  ;;  %v2575_v6 = vpop.f32.mrb[30].mxu0  ;;  %v11174_v25 = vld [vmem:[%s11598_s26 + $0x20] ss:$8 sps:$4 sm:$0xff]   ;;  %v11175_v28 = vld [vmem:[%s11598_s26 + $0x34] ss:$8 sps:$4 sm:$0xff]  }
 0x381   : > { %v3611_v50 = vmax.f32 %v2572_v45, 0.0  ;;  %v2576_v18 = vadd.f32 %v2575_v6, %v12378_v27  ;;  %v2577_v51 = vpop.f32.mrb[31].mxu0  ;;  %v11176_v6 = vld [vmem:[%s11598_s26 + $0x30] ss:$8 sps:$4 sm:$0xff]  }
 0x382   : > { %v12629_v23 = vpack.c.bf16 %v4260_v9, %v4257_v30  ;;  %v3612_v4 = vmax.f32 %v2574_v39, 0.0  ;;  %v2578_v47 = vadd.f32 %v2577_v51, %v12380_v10 }
 0x383   : > { %v12632_v32 = vmax.f32 %v3587_v52, %v3611_v50  ;;  %v3617_v60 = vmax.f32 %v2576_v18, 0.0  ;;  %2873 = vmatmul.mubr.bf16.gmra.mrb[136].mxu0 %v11174_v25  ;;  %v11177_v52 = vld [vmem:[%s11598_s26 + $0x44] ss:$8 sps:$4 sm:$0xff]  }
 0x384   : > { %v4044_v13 = vmax.f32 %v3588_v43, %v3612_v4  ;;  %v3618_v12 = vmax.f32 %v2578_v47, 0.0  ;;  %9103 = vmatprep.mubr.msk.bf16.mxu0 %vm1630_vm0, %v11175_v28  ;;  %v11178_v43 = vld [vmem:[%s11598_s26 + $0x40] ss:$8 sps:$4 sm:$0xff]   ;;  %v11179_v4 = vld [vmem:[%s11598_s26 + $0x54] ss:$8 sps:$4 sm:$0xff]  }
 0x385   : > { %v12637_v21 = vmax.f32 %v3593_v15, %v3617_v60 }
 0x386   : > { %v4263_v30 = vmax.f32 %v12063_v2, %v4044_v13  ;;  %v4050_v63 = vmax.f32 %v3594_v55, %v3618_v12  ;;  %v2581_v33 = vpop.f32.mrb[32].mxu0 }
 0x387   : > { %14757 = vst [vmem:[#allocation75_spill] sm:$0xff] %v12637_v21  ;;  %v2583_v45 = vpop.f32.mrb[33].mxu0  ;;  %v11181_v21 = vld [vmem:[%s11598_s26 + $0x64] ss:$8 sps:$4 sm:$0xff]  }
 0x388   : > { %v4266_v49 = vmax.f32 %v12070_v3, %v4050_v63  ;;  %v2585_v9 = vpop.f32.mrb[34].mxu0  ;;  %v2582_v3 = vadd.f32 %v2581_v33, %v12378_v27  ;;  %v2584_v47 = vadd.f32 %v2583_v45, %v12380_v10 }
 0x389   : > { %v2587_v39 = vpop.f32.mrb[35].mxu0  ;;  %v2586_v60 = vadd.f32 %v2585_v9, %v12378_v27 }
 0x38a   : > { %v12641_v11 = vpack.c.bf16 %v4266_v49, %v4263_v30  ;;  %v2588_v13 = vadd.f32 %v2587_v39, %v12380_v10  ;;  %v3623_v30 = vmax.f32 %v2582_v3, 0.0 }
 0x38b   : > { %2883 = vmatmul.mubr.bf16.gmra.mrb[140].mxu0 %v11176_v6  ;;  %v3624_v6 = vmax.f32 %v2584_v47, 0.0  ;;  %v3629_v9 = vmax.f32 %v2586_v60, 0.0 }
 0x38c   : > { %14758 = vst [vmem:[#allocation76_spill] sm:$0xff] %v12641_v11  ;;  %9104 = vmatprep.mubr.msk.bf16.mxu0 %vm1630_vm0, %v11177_v52  ;;  %v3630_v39 = vmax.f32 %v2588_v13, 0.0 }
 0x38e   : > { %v2591_v50 = vpop.f32.mrb[36].mxu0 }
 0x38f   : > { %v2593_v18 = vpop.f32.mrb[37].mxu0  ;;  %v2592_v3 = vadd.f32 %v2591_v50, %v12378_v27 }
 0x390   : > { %v2595_v51 = vpop.f32.mrb[38].mxu0  ;;  %v2594_v47 = vadd.f32 %v2593_v18, %v12380_v10 }
 0x391   : > { %v2597_v2 = vpop.f32.mrb[39].mxu0 }
 0x393   : > { %2893 = vmatmul.mubr.bf16.gmra.mrb[144].mxu0 %v11178_v43 }
 0x394   : > { %9105 = vmatprep.mubr.msk.bf16.mxu0 %vm1630_vm0, %v11179_v4 }
 0x396   : > { %v2601_v15 = vpop.f32.mrb[40].mxu0 }
 0x397   : > { %v2602_v25 = vadd.f32 %v2601_v15, %v12378_v27  ;;  %v2603_v55 = vpop.f32.mrb[41].mxu0  ;;  %v11180_v15 = vld [vmem:[%s11598_s26 + $0x50] ss:$8 sps:$4 sm:$0xff]  }
 0x398   : > { %v2604_v12 = vadd.f32 %v2603_v55, %v12380_v10  ;;  %v2605_v28 = vpop.f32.mrb[42].mxu0 }
 0x399   : > { %v3647_v63 = vmax.f32 %v2602_v25, 0.0  ;;  %v2606_v49 = vadd.f32 %v2605_v28, %v12378_v27  ;;  %v2607_v33 = vpop.f32.mrb[43].mxu0 }
 0x39a   : > { %v3648_v45 = vmax.f32 %v2604_v12, 0.0  ;;  %v2608_v52 = vadd.f32 %v2607_v33, %v12380_v10 }
 0x39b   : > { %v12657_v43 = vmax.f32 %v3623_v30, %v3647_v63  ;;  %v3653_v4 = vmax.f32 %v2606_v49, 0.0  ;;  %2903 = vmatmul.mubr.bf16.gmra.mrb[148].mxu0 %v11180_v15  ;;  %v2596_v30 = vadd.f32 %v2595_v51, %v12378_v27  ;;  %v2598_v49 = vadd.f32 %v2597_v2, %v12380_v10 }
 0x39c   : > { %v4056_v11 = vmax.f32 %v3624_v6, %v3648_v45  ;;  %v3654_v55 = vmax.f32 %v2608_v52, 0.0  ;;  %9106 = vmatprep.mubr.msk.bf16.mxu0 %vm1630_vm0, %v11181_v21  ;;  %v3635_v6 = vmax.f32 %v2592_v3, 0.0  ;;  %v3636_v45 = vmax.f32 %v2594_v47, 0.0 }
 0x39d   : > { %v12663_v25 = vmax.f32 %v3629_v9, %v3653_v4  ;;  %v3641_v4 = vmax.f32 %v2596_v30, 0.0 }
 0x39e   : > { %v4269_v12 = vmax.f32 %v12088_v31, %v4056_v11  ;;  %v4062_v60 = vmax.f32 %v3630_v39, %v3654_v55  ;;  %v2611_v28 = vpop.f32.mrb[44].mxu0  ;;  %v3642_v39 = vmax.f32 %v2598_v49, 0.0 }
 0x39f   : > { %v2612_v63 = vadd.f32 %v2611_v28, %v12378_v27  ;;  %v2613_v13 = vpop.f32.mrb[45].mxu0 }
 0x3a0   : > { %v4272_v21 = vmax.f32 %v12096_v7, %v4062_v60  ;;  %v2614_v50 = vadd.f32 %v2613_v13, %v12380_v10  ;;  %v2615_v33 = vpop.f32.mrb[46].mxu0  ;;  %v11182_v7 = vld [vmem:[%s11598_s26 + $0x60] ss:$8 sps:$4 sm:$0xff]   ;;  %v11183_v60 = vld [vmem:[%s11598_s26 + $0x74] ss:$8 sps:$4 sm:$0xff]  }
 0x3a1   : > { %v3659_v18 = vmax.f32 %v2612_v63, 0.0  ;;  %v2616_v31 = vadd.f32 %v2615_v33, %v12378_v27  ;;  %v2617_v11 = vpop.f32.mrb[47].mxu0  ;;  %v11184_v33 = vld [vmem:[%s11598_s26 + $0x70] ss:$8 sps:$4 sm:$0xff]  }
 0x3a2   : > { %v12673_v52 = vpack.c.bf16 %v4272_v21, %v4269_v12  ;;  %v3660_v51 = vmax.f32 %v2614_v50, 0.0  ;;  %v2618_v9 = vadd.f32 %v2617_v11, %v12380_v10 }
 0x3a3   : > { %v12676_v15 = vmax.f32 %v3635_v6, %v3659_v18  ;;  %v3665_v2 = vmax.f32 %v2616_v31, 0.0  ;;  %2913 = vmatmul.mubr.bf16.gmra.mrb[152].mxu0 %v11182_v7  ;;  %v11185_v6 = vld [vmem:[%s11598_s26 + $0x84] ss:$8 sps:$4 sm:$0xff]  }
 0x3a4   : > { %v4068_v55 = vmax.f32 %v3636_v45, %v3660_v51  ;;  %v3666_v3 = vmax.f32 %v2618_v9, 0.0  ;;  %9107 = vmatprep.mubr.msk.bf16.mxu0 %vm1630_vm0, %v11183_v60  ;;  %v11186_v45 = vld [vmem:[%s11598_s26 + $0x80] ss:$8 sps:$4 sm:$0xff]   ;;  %v11187_v51 = vld [vmem:[%s11598_s26 + $0x94] ss:$8 sps:$4 sm:$0xff]  }
 0x3a5   : > { %v12681_v47 = vmax.f32 %v3641_v4, %v3665_v2 }
 0x3a6   : > { %v4275_v12 = vmax.f32 %v12107_v57, %v4068_v55  ;;  %v4074_v28 = vmax.f32 %v3642_v39, %v3666_v3  ;;  %v2621_v30 = vpop.f32.mrb[48].mxu0 }
 0x3a7   : > { %14759 = vst [vmem:[#allocation77_spill] sm:$0xff] %v12681_v47  ;;  %v2623_v63 = vpop.f32.mrb[49].mxu0  ;;  %v11189_v47 = vld [vmem:[%s11598_s26 + $0xa4] ss:$8 sps:$4 sm:$0xff]  }
 0x3a8   : > { %v4278_v13 = vmax.f32 %v12120_v56, %v4074_v28  ;;  %v2625_v21 = vpop.f32.mrb[50].mxu0  ;;  %v2622_v56 = vadd.f32 %v2621_v30, %v12378_v27  ;;  %v2624_v9 = vadd.f32 %v2623_v63, %v12380_v10 }
 0x3a9   : > { %v2627_v50 = vpop.f32.mrb[51].mxu0  ;;  %v2626_v2 = vadd.f32 %v2625_v21, %v12378_v27 }
 0x3aa   : > { %v12685_v49 = vpack.c.bf16 %v4278_v13, %v4275_v12  ;;  %v2628_v55 = vadd.f32 %v2627_v50, %v12380_v10  ;;  %v3671_v12 = vmax.f32 %v2622_v56, 0.0 }
 0x3ab   : > { %2923 = vmatmul.mubr.bf16.gmra.mrb[156].mxu0 %v11184_v33  ;;  %v3672_v33 = vmax.f32 %v2624_v9, 0.0  ;;  %v3677_v21 = vmax.f32 %v2626_v2, 0.0 }
 0x3ac   : > { %14760 = vst [vmem:[#allocation78_spill] sm:$0xff] %v12685_v49  ;;  %9108 = vmatprep.mubr.msk.bf16.mxu0 %vm1630_vm0, %v11185_v6  ;;  %v3678_v50 = vmax.f32 %v2628_v55, 0.0 }
 0x3ae   : > { %v2631_v18 = vpop.f32.mrb[52].mxu0 }
 0x3af   : > { %v2633_v31 = vpop.f32.mrb[53].mxu0  ;;  %v2632_v56 = vadd.f32 %v2631_v18, %v12378_v27 }
 0x3b0   : > { %v2635_v11 = vpop.f32.mrb[54].mxu0  ;;  %v2634_v9 = vadd.f32 %v2633_v31, %v12380_v10 }
 0x3b1   : > { %v2637_v57 = vpop.f32.mrb[55].mxu0 }
 0x3b3   : > { %2933 = vmatmul.mubr.bf16.gmra.mrb[160].mxu0 %v11186_v45 }
 0x3b4   : > { %9109 = vmatprep.mubr.msk.bf16.mxu0 %vm1630_vm0, %v11187_v51 }
 0x3b6   : > { %v2641_v4 = vpop.f32.mrb[56].mxu0 }
 0x3b7   : > { %v2642_v7 = vadd.f32 %v2641_v4, %v12378_v27  ;;  %v2643_v39 = vpop.f32.mrb[57].mxu0  ;;  %v11188_v4 = vld [vmem:[%s11598_s26 + $0x90] ss:$8 sps:$4 sm:$0xff]  }
 0x3b8   : > { %v2644_v3 = vadd.f32 %v2643_v39, %v12380_v10  ;;  %v2645_v60 = vpop.f32.mrb[58].mxu0 }
 0x3b9   : > { %v3695_v28 = vmax.f32 %v2642_v7, 0.0  ;;  %v2646_v13 = vadd.f32 %v2645_v60, %v12378_v27  ;;  %v2647_v30 = vpop.f32.mrb[59].mxu0 }
 0x3ba   : > { %v3696_v63 = vmax.f32 %v2644_v3, 0.0  ;;  %v2648_v6 = vadd.f32 %v2647_v30, %v12380_v10 }
 0x3bb   : > { %v12701_v45 = vmax.f32 %v3671_v12, %v3695_v28  ;;  %v3701_v51 = vmax.f32 %v2646_v13, 0.0  ;;  %2943 = vmatmul.mubr.bf16.gmra.mrb[164].mxu0 %v11188_v4  ;;  %v2636_v12 = vadd.f32 %v2635_v11, %v12378_v27  ;;  %v2638_v13 = vadd.f32 %v2637_v57, %v12380_v10  ;;  %v10664_v57 = vld [vmem:[%s14633_s3 + $0x184] ss:$8 sps:$4 sm:$0xff]  }
 0x3bc   : > { %v4080_v49 = vmax.f32 %v3672_v33, %v3696_v63  ;;  %v3702_v39 = vmax.f32 %v2648_v6, 0.0  ;;  %9110 = vmatprep.mubr.msk.bf16.mxu0 %vm1630_vm0, %v11189_v47  ;;  %v3683_v33 = vmax.f32 %v2632_v56, 0.0  ;;  %4750 = vmatprep.subr.bf16.mxu1 %v10664_v57 }
 0x3bd   : > { %v12707_v7 = vmax.f32 %v3677_v21, %v3701_v51  ;;  %v3690_v56 = vmax.f32 %v2638_v13, 0.0 }
 0x3be   : > { %v4281_v3 = vmax.f32 %v12138_v44, %v4080_v49  ;;  %v4086_v2 = vmax.f32 %v3678_v50, %v3702_v39  ;;  %v2651_v60 = vpop.f32.mrb[60].mxu0  ;;  %v3684_v49 = vmax.f32 %v2634_v9, 0.0  ;;  %v11190_v50 = vld [vmem:[%s11598_s26 + $0xa0] ss:$8 sps:$4 sm:$0xff]  }
 0x3bf   : > { %v2652_v28 = vadd.f32 %v2651_v60, %v12378_v27  ;;  %v2653_v55 = vpop.f32.mrb[61].mxu0  ;;  %v10666_v39 = vld [vmem:[%s14633_s3 + $0x180] ss:$8 sps:$4 sm:$0xff]  }
 0x3c0   : > { %v4284_v47 = vmax.f32 %v12146_v59, %v4086_v2  ;;  %v2654_v18 = vadd.f32 %v2653_v55, %v12380_v10  ;;  %v2655_v30 = vpop.f32.mrb[62].mxu0  ;;  %v3689_v59 = vmax.f32 %v2636_v12, 0.0  ;;  %v11191_v2 = vld [vmem:[%s11598_s26 + $0xb4] ss:$8 sps:$4 sm:$0xff]   ;;  %4751 = vmatpush1.bf16.msra.mxu1 %v10666_v39  ;;  %v10676_v39 = vld [vmem:[%s14633_s3 + $0x1c4] ss:$8 sps:$4 sm:$0xff]  }
 0x3c1   : > { %v3707_v63 = vmax.f32 %v2652_v28, 0.0  ;;  %v2656_v31 = vadd.f32 %v2655_v30, %v12378_v27  ;;  %v2657_v44 = vpop.f32.mrb[63].mxu0 }
 0x3c2   : > { %v12717_v6 = vpack.c.bf16 %v4284_v47, %v4281_v3  ;;  %v3708_v11 = vmax.f32 %v2654_v18, 0.0  ;;  %v2658_v21 = vadd.f32 %v2657_v44, %v12380_v10  ;;  %v10667_v47 = vld [vmem:[%s14633_s3 + $0x194] ss:$8 sps:$4 sm:$0xff]   ;;  %v10669_v18 = vld [vmem:[%s14633_s3 + $0x190] ss:$8 sps:$4 sm:$0xff]  }
 0x3c3   : > { %v12723_v51 = vmax.f32 %v3683_v33, %v3707_v63  ;;  %v3713_v4 = vmax.f32 %v2656_v31, 0.0  ;;  %2953 = vmatmul.mubr.bf16.gmra.mrb[168].mxu0 %v11190_v50  ;;  %4752 = vmatprep.subr.bf16.mxu1 %v10667_v47  ;;  %v11192_v44 = vld [vmem:[%s11598_s26 + $0xb0] ss:$8 sps:$4 sm:$0xff]   ;;  %v10679_v47 = vld [vmem:[%s14633_s3 + $0x1d4] ss:$8 sps:$4 sm:$0xff]  }
 0x3c4   : > { %v4092_v9 = vmax.f32 %v3684_v49, %v3708_v11  ;;  %v3714_v3 = vmax.f32 %v2658_v21, 0.0  ;;  %9111 = vmatprep.mubr.msk.bf16.mxu0 %vm1630_vm0, %v11191_v2  ;;  %4753 = vmatpush1.bf16.msra.mxu1 %v10669_v18  ;;  %v10672_v49 = vld [vmem:[%s14633_s3 + $0x1a0] ss:$8 sps:$4 sm:$0xff]   ;;  %v11193_v11 = vld [vmem:[%s11598_s26 + $0xc4] ss:$8 sps:$4 sm:$0xff]  }
 0x3c5   : > { %v12731_v60 = vmax.f32 %v3689_v59, %v3713_v4  ;;  %v10673_v21 = vld [vmem:[%s14633_s3 + $0x1b4] ss:$8 sps:$4 sm:$0xff]   ;;  %v10675_v59 = vld [vmem:[%s14633_s3 + $0x1b0] ss:$8 sps:$4 sm:$0xff]  }
 0x3c6   : > { %v4287_v12 = vmax.f32 %v12157_v26, %v4092_v9  ;;  %v4098_v28 = vmax.f32 %v3690_v56, %v3714_v3  ;;  %v2661_v55 = vpop.f32.mrb[64].mxu0  ;;  %v10670_v26 = vld [vmem:[%s14633_s3 + $0x1a4] ss:$8 sps:$4 sm:$0xff]   ;;  %v11194_v56 = vld [vmem:[%s11598_s26 + $0xc0] ss:$8 sps:$4 sm:$0xff]  }
 0x3c7   : > { %v2663_v13 = vpop.f32.mrb[65].mxu0  ;;  %4754 = vmatprep.subr.bf16.mxu1 %v10670_v26  ;;  %v10678_v9 = vld [vmem:[%s14633_s3 + $0x1c0] ss:$8 sps:$4 sm:$0xff]   ;;  %v11195_v3 = vld [vmem:[%s11598_s26 + $0xd4] ss:$8 sps:$4 sm:$0xff]   ;;  %v2662_v2 = vadd.f32 %v2661_v55, %v12378_v27 }
 0x3c8   : > { %v4290_v30 = vmax.f32 %v12164_v14, %v4098_v28  ;;  %v2665_v33 = vpop.f32.mrb[66].mxu0  ;;  %4755 = vmatpush1.bf16.msra.mxu1 %v10672_v49  ;;  %v2664_v28 = vadd.f32 %v2663_v13, %v12380_v10 }
 0x3c9   : > { %v2667_v63 = vpop.f32.mrb[67].mxu0  ;;  %4756 = vmatprep.subr.bf16.mxu1 %v10673_v21  ;;  %v2666_v26 = vadd.f32 %v2665_v33, %v12378_v27  ;;  %v3719_v13 = vmax.f32 %v2662_v2, 0.0  ;;  %v10684_v2 = vld [vmem:[%s14633_s3 + $0x1e0] ss:$8 sps:$4 sm:$0xff]  }
 0x3ca   : > { %v12741_v31 = vpack.c.bf16 %v4290_v30, %v4287_v12 }
 0x3cb   : > { %2963 = vmatmul.mubr.bf16.gmra.mrb[172].mxu0 %v11192_v44  ;;  %v10681_v44 = vld [vmem:[%s14633_s3 + $0x1d0] ss:$8 sps:$4 sm:$0xff]  }
 0x3cc   : > { %9112 = vmatprep.mubr.msk.bf16.mxu0 %vm1630_vm0, %v11193_v11  ;;  %4757 = vmatpush1.bf16.msra.mxu1 %v10675_v59  ;;  %v2668_v11 = vadd.f32 %v2667_v63, %v12380_v10 }
 0x3cd   : > { %4758 = vmatprep.subr.bf16.mxu1 %v10676_v39 }
 0x3ce   : > { %v2671_v14 = vpop.f32.mrb[68].mxu0 }
 0x3cf   : > { %v2673_v57 = vpop.f32.mrb[69].mxu0 }
 0x3d0   : > { %v2675_v4 = vpop.f32.mrb[70].mxu0  ;;  %4759 = vmatpush1.bf16.msra.mxu1 %v10678_v9 }
 0x3d1   : > { %v2677_v50 = vpop.f32.mrb[71].mxu0  ;;  %4760 = vmatprep.subr.bf16.mxu1 %v10679_v47  ;;  %v11196_v47 = vld [vmem:[%s11598_s26 + $0xd0] ss:$8 sps:$4 sm:$0xff]  }
 0x3d3   : > { %2973 = vmatmul.mubr.bf16.gmra.mrb[176].mxu0 %v11194_v56  ;;  %v3720_v56 = vmax.f32 %v2664_v28, 0.0 }
 0x3d4   : > { %9113 = vmatprep.mubr.msk.bf16.mxu0 %vm1630_vm0, %v11195_v3  ;;  %4761 = vmatpush1.bf16.msra.mxu1 %v10681_v44  ;;  %v10682_v3 = vld [vmem:[%s14633_s3 + $0x1e4] ss:$8 sps:$4 sm:$0xff]   ;;  %v3726_v44 = vmax.f32 %v2668_v11, 0.0  ;;  %v10685_v11 = vld [vmem:[%s14633_s3 + $0x1f4] ss:$8 sps:$4 sm:$0xff]  }
 0x3d5   : > { %4762 = vmatprep.subr.bf16.mxu1 %v10682_v3  ;;  %v2678_v3 = vadd.f32 %v2677_v50, %v12380_v10 }
 0x3d6   : > { %v2681_v12 = vpop.f32.mrb[72].mxu0 }
 0x3d7   : > { %v2682_v18 = vadd.f32 %v2681_v12, %v12378_v27  ;;  %v2683_v30 = vpop.f32.mrb[73].mxu0 }
 0x3d8   : > { %v2684_v49 = vadd.f32 %v2683_v30, %v12380_v10  ;;  %v2685_v55 = vpop.f32.mrb[74].mxu0  ;;  %v3725_v30 = vmax.f32 %v2666_v26, 0.0  ;;  %4763 = vmatpush1.bf16.msra.mxu1 %v10684_v2  ;;  %v2674_v26 = vadd.f32 %v2673_v57, %v12380_v10 }
 0x3d9   : > { %v3743_v21 = vmax.f32 %v2682_v18, 0.0  ;;  %v2686_v59 = vadd.f32 %v2685_v55, %v12378_v27  ;;  %v2687_v39 = vpop.f32.mrb[75].mxu0  ;;  %v2672_v55 = vadd.f32 %v2671_v14, %v12378_v27  ;;  %v10687_v14 = vld [vmem:[%s14633_s3 + $0x1f0] ss:$8 sps:$4 sm:$0xff]   ;;  %4764 = vmatprep.subr.bf16.mxu1 %v10685_v11  ;;  %v10690_v11 = vld [vmem:[%s14633_s3 + $0x200] ss:$8 sps:$4 sm:$0xff]  }
 0x3da   : > { %v3744_v33 = vmax.f32 %v2684_v49, 0.0  ;;  %v2688_v9 = vadd.f32 %v2687_v39, %v12380_v10  ;;  %v11197_v49 = vld [vmem:[%s11598_s26 + $0xe4] ss:$8 sps:$4 sm:$0xff]  }
 0x3db   : > { %v12784_v12 = vmax.f32 %v3719_v13, %v3743_v21  ;;  %v3749_v63 = vmax.f32 %v2686_v59, 0.0  ;;  %2983 = vmatmul.mubr.bf16.gmra.mrb[180].mxu0 %v11196_v47 }
 0x3dc   : > { %v4104_v18 = vmax.f32 %v3720_v56, %v3744_v33  ;;  %v3750_v28 = vmax.f32 %v2688_v9, 0.0  ;;  %9114 = vmatprep.mubr.msk.bf16.mxu0 %vm1630_vm0, %v11197_v49  ;;  %v2676_v56 = vadd.f32 %v2675_v4, %v12378_v27  ;;  %4765 = vmatpush1.bf16.msra.mxu1 %v10687_v14 }
 0x3dd   : > { %v12793_v39 = vmax.f32 %v3725_v30, %v3749_v63  ;;  %v3731_v63 = vmax.f32 %v2672_v55, 0.0 }
 0x3de   : > { %v4293_v13 = vmax.f32 %v12188_v19, %v4104_v18  ;;  %v4110_v21 = vmax.f32 %v3726_v44, %v3750_v28  ;;  %v2691_v59 = vpop.f32.mrb[76].mxu0  ;;  %v3732_v18 = vmax.f32 %v2674_v26, 0.0  ;;  %v3737_v49 = vmax.f32 %v2676_v56, 0.0 }
 0x3df   : > { %14761 = vst [vmem:[#allocation79_spill] sm:$0xff] %v12793_v39  ;;  %v2692_v33 = vadd.f32 %v2691_v59, %v12378_v27  ;;  %v2693_v9 = vpop.f32.mrb[77].mxu0  ;;  %v11198_v59 = vld [vmem:[%s11598_s26 + $0xe0] ss:$8 sps:$4 sm:$0xff]   ;;  %v3738_v26 = vmax.f32 %v2678_v3, 0.0 }
 0x3e0   : > { %v4296_v57 = vmax.f32 %v12196_v36, %v4110_v21  ;;  %v2694_v19 = vadd.f32 %v2693_v9, %v12380_v10  ;;  %v2695_v30 = vpop.f32.mrb[78].mxu0  ;;  %v10688_v36 = vld [vmem:[%s14633_s3 + $0x204] ss:$8 sps:$4 sm:$0xff]   ;;  %v11199_v9 = vld [vmem:[%s11598_s26 + $0xf4] ss:$8 sps:$4 sm:$0xff]  }
 0x3e1   : > { %v3755_v47 = vmax.f32 %v2692_v33, 0.0  ;;  %v2696_v4 = vadd.f32 %v2695_v30, %v12378_v27  ;;  %v2697_v2 = vpop.f32.mrb[79].mxu0  ;;  %4766 = vmatprep.subr.bf16.mxu1 %v10688_v36  ;;  %v10691_v30 = vld [vmem:[%s14633_s3 + $0x214] ss:$8 sps:$4 sm:$0xff]   ;;  %v10696_v36 = vld [vmem:[%s14633_s3 + $0x220] ss:$8 sps:$4 sm:$0xff]  }
 0x3e2   : > { %v12809_v44 = vpack.c.bf16 %v4296_v57, %v4293_v13  ;;  %v3756_v28 = vmax.f32 %v2694_v19, 0.0  ;;  %v2698_v50 = vadd.f32 %v2697_v2, %v12380_v10  ;;  %4767 = vmatpush1.bf16.msra.mxu1 %v10690_v11  ;;  %v11213_v39 = vld [vmem:[%s11598_s26 + $0x164] ss:$8 sps:$4 sm:$0xff]  }
 0x3e3   : > { %v12815_v21 = vmax.f32 %v3731_v63, %v3755_v47  ;;  %v3761_v55 = vmax.f32 %v2696_v4, 0.0  ;;  %2993 = vmatmul.mubr.bf16.gmra.mrb[184].mxu0 %v11198_v59  ;;  %v10693_v63 = vld [vmem:[%s14633_s3 + $0x210] ss:$8 sps:$4 sm:$0xff]   ;;  %v14765_v47 = vld [vmem:[#allocation39_spill] sm:$0xff]  ;;  %4768 = vmatprep.subr.bf16.mxu1 %v10691_v30  ;;  %v10697_v59 = vld [vmem:[%s14633_s3 + $0x234] ss:$8 sps:$4 sm:$0xff]  }
 0x3e4   : > { %14762 = vst [vmem:[#allocation80_spill] sm:$0xff] %v12809_v44  ;;  %v4116_v13 = vmax.f32 %v3732_v18, %v3756_v28  ;;  %v3762_v33 = vmax.f32 %v2698_v50, 0.0  ;;  %9115 = vmatprep.mubr.msk.bf16.mxu0 %vm1630_vm0, %v11199_v9  ;;  %v11200_v50 = vld [vmem:[%s11598_s26 + $0xf0] ss:$8 sps:$4 sm:$0xff]   ;;  %v10700_v9 = vld [vmem:[%s14633_s3 + $0x244] ss:$8 sps:$4 sm:$0xff]  }
 0x3e5   : > { %14763 = vst [vmem:[#allocation81_spill] sm:$0xff] %v12815_v21  ;;  %v12823_v14 = vmax.f32 %v3737_v49, %v3761_v55  ;;  %v11201_v49 = vld [vmem:[%s11598_s26 + $0x104] ss:$8 sps:$4 sm:$0xff]   ;;  %v11203_v30 = vld [vmem:[%s11598_s26 + $0x114] ss:$8 sps:$4 sm:$0xff]  }
 0x3e6   : > { %v4299_v56 = vmax.f32 %v12207_v20, %v4116_v13  ;;  %v4122_v57 = vmax.f32 %v3738_v26, %v3762_v33  ;;  %v2701_v19 = vpop.f32.mrb[80].mxu0  ;;  %4769 = vmatpush1.bf16.msra.mxu1 %v10693_v63  ;;  %v10694_v20 = vld [vmem:[%s14633_s3 + $0x224] ss:$8 sps:$4 sm:$0xff]   ;;  %v10699_v26 = vld [vmem:[%s14633_s3 + $0x230] ss:$8 sps:$4 sm:$0xff]  }
 0x3e7   : > { %14764 = vst [vmem:[#allocation82_spill] sm:$0xff] %v12823_v14  ;;  %v2703_v3 = vpop.f32.mrb[81].mxu0  ;;  %4770 = vmatprep.subr.bf16.mxu1 %v10694_v20  ;;  %v2702_v63 = vadd.f32 %v2701_v19, %v12378_v27  ;;  %v10703_v20 = vld [vmem:[%s14633_s3 + $0x254] ss:$8 sps:$4 sm:$0xff]  }
 0x3e8   : > { %v4302_v4 = vmax.f32 %v14765_v47, %v4122_v57  ;;  %v2705_v2 = vpop.f32.mrb[82].mxu0  ;;  %v10702_v57 = vld [vmem:[%s14633_s3 + $0x240] ss:$8 sps:$4 sm:$0xff]   ;;  %v2704_v47 = vadd.f32 %v2703_v3, %v12380_v10 }
 0x3e9   : > { %v2707_v18 = vpop.f32.mrb[83].mxu0 }
 0x3ea   : > { %v12833_v28 = vpack.c.bf16 %v4302_v4, %v4299_v56  ;;  %4771 = vmatpush1.bf16.msra.mxu1 %v10696_v36  ;;  %v11202_v56 = vld [vmem:[%s11598_s26 + $0x100] ss:$8 sps:$4 sm:$0xff]  }
 0x3eb   : > { %3003 = vmatmul.mubr.bf16.gmra.mrb[188].mxu0 %v11200_v50  ;;  %4772 = vmatprep.subr.bf16.mxu1 %v10697_v59  ;;  %v2706_v50 = vadd.f32 %v2705_v2, %v12378_v27  ;;  %v10705_v59 = vld [vmem:[%s14633_s3 + $0x250] ss:$8 sps:$4 sm:$0xff]  }
 0x3ec   : > { %14766 = vst [vmem:[#allocation39_spill] sm:$0xff] %v12833_v28  ;;  %9116 = vmatprep.mubr.msk.bf16.mxu0 %vm1630_vm0, %v11201_v49 }
 0x3ed   : > { %v3773_v14 = vmax.f32 %v2706_v50, 0.0 }
 0x3ee   : > { %v2711_v55 = vpop.f32.mrb[84].mxu0  ;;  %4773 = vmatpush1.bf16.msra.mxu1 %v10699_v26  ;;  %v2708_v26 = vadd.f32 %v2707_v18, %v12380_v10  ;;  %v10706_v18 = vld [vmem:[%s14633_s3 + $0x264] ss:$8 sps:$4 sm:$0xff]  }
 0x3ef   : > { %v2713_v11 = vpop.f32.mrb[85].mxu0  ;;  %4774 = vmatprep.subr.bf16.mxu1 %v10700_v9  ;;  %v3767_v9 = vmax.f32 %v2702_v63, 0.0  ;;  %v10708_v63 = vld [vmem:[%s14633_s3 + $0x260] ss:$8 sps:$4 sm:$0xff]  }
 0x3f0   : > { %v2715_v13 = vpop.f32.mrb[86].mxu0  ;;  %v2714_v50 = vadd.f32 %v2713_v11, %v12380_v10  ;;  %v14770_v11 = vld [vmem:[#allocation43_spill] sm:$0xff] }
 0x3f1   : > { %v2717_v33 = vpop.f32.mrb[87].mxu0 }
 0x3f2   : > { %4775 = vmatpush1.bf16.msra.mxu1 %v10702_v57 }
 0x3f3   : > { %3013 = vmatmul.mubr.bf16.gmra.mrb[192].mxu0 %v11202_v56  ;;  %4776 = vmatprep.subr.bf16.mxu1 %v10703_v20  ;;  %v11204_v20 = vld [vmem:[%s11598_s26 + $0x110] ss:$8 sps:$4 sm:$0xff]  }
 0x3f4   : > { %9117 = vmatprep.mubr.msk.bf16.mxu0 %vm1630_vm0, %v11203_v30  ;;  %v3768_v30 = vmax.f32 %v2704_v47, 0.0 }
 0x3f6   : > { %v2721_v4 = vpop.f32.mrb[88].mxu0  ;;  %4777 = vmatpush1.bf16.msra.mxu1 %v10705_v59 }
 0x3f7   : > { %v2722_v36 = vadd.f32 %v2721_v4, %v12378_v27  ;;  %v2723_v49 = vpop.f32.mrb[89].mxu0  ;;  %4778 = vmatprep.subr.bf16.mxu1 %v10706_v18 }
 0x3f8   : > { %v2724_v19 = vadd.f32 %v2723_v49, %v12380_v10  ;;  %v2725_v3 = vpop.f32.mrb[90].mxu0 }
 0x3f9   : > { %v3791_v56 = vmax.f32 %v2722_v36, 0.0  ;;  %v2726_v57 = vadd.f32 %v2725_v3, %v12378_v27  ;;  %v2727_v2 = vpop.f32.mrb[91].mxu0  ;;  %v3774_v36 = vmax.f32 %v2708_v26, 0.0  ;;  %v2712_v3 = vadd.f32 %v2711_v55, %v12378_v27  ;;  %v10709_v26 = vld [vmem:[%s14633_s3 + $0x274] ss:$8 sps:$4 sm:$0xff]  }
 0x3fa   : > { %v3792_v4 = vmax.f32 %v2724_v19, 0.0  ;;  %v2728_v28 = vadd.f32 %v2727_v2, %v12380_v10  ;;  %v11205_v19 = vld [vmem:[%s11598_s26 + $0x124] ss:$8 sps:$4 sm:$0xff]   ;;  %4779 = vmatpush1.bf16.msra.mxu1 %v10708_v63  ;;  %v2718_v55 = vadd.f32 %v2717_v33, %v12380_v10 }
 0x3fb   : > { %v12876_v21 = vmax.f32 %v3767_v9, %v3791_v56  ;;  %v3797_v49 = vmax.f32 %v2726_v57, 0.0  ;;  %3023 = vmatmul.mubr.bf16.gmra.mrb[196].mxu0 %v11204_v20  ;;  %v14769_v9 = vld [vmem:[#allocation41_spill] sm:$0xff]  ;;  %4780 = vmatprep.subr.bf16.mxu1 %v10709_v26 }
 0x3fc   : > { %v4128_v59 = vmax.f32 %v3768_v30, %v3792_v4  ;;  %v3798_v47 = vmax.f32 %v2728_v28, 0.0  ;;  %9118 = vmatprep.mubr.msk.bf16.mxu0 %vm1630_vm0, %v11205_v19  ;;  %v2716_v28 = vadd.f32 %v2715_v13, %v12378_v27  ;;  %v3780_v19 = vmax.f32 %v2714_v50, 0.0 }
 0x3fd   : > { %14767 = vst [vmem:[#allocation83_spill] sm:$0xff] %v12876_v21  ;;  %v12885_v2 = vmax.f32 %v3773_v14, %v3797_v49  ;;  %v10711_v14 = vld [vmem:[%s14633_s3 + $0x270] ss:$8 sps:$4 sm:$0xff]  }
 0x3fe   : > { %v4305_v56 = vmax.f32 %v14769_v9, %v4128_v59  ;;  %v4134_v57 = vmax.f32 %v3774_v36, %v3798_v47  ;;  %v2731_v20 = vpop.f32.mrb[92].mxu0  ;;  %v3779_v36 = vmax.f32 %v2712_v3, 0.0  ;;  %4781 = vmatpush1.bf16.msra.mxu1 %v10711_v14  ;;  %v3785_v33 = vmax.f32 %v2716_v28, 0.0  ;;  %v14774_v14 = vld [vmem:[#allocation45_spill] sm:$0xff] }
 0x3ff   : > { %14768 = vst [vmem:[#allocation84_spill] sm:$0xff] %v12885_v2  ;;  %v2732_v30 = vadd.f32 %v2731_v20, %v12378_v27  ;;  %v2733_v4 = vpop.f32.mrb[93].mxu0  ;;  %v3786_v3 = vmax.f32 %v2718_v55, 0.0  ;;  %v11212_v21 = vld [vmem:[%s11598_s26 + $0x150] ss:$8 sps:$4 sm:$0xff]  }
 0x400   : > { %v4308_v18 = vmax.f32 %v14770_v11, %v4134_v57  ;;  %v2734_v49 = vadd.f32 %v2733_v4, %v12380_v10  ;;  %v2735_v63 = vpop.f32.mrb[94].mxu0  ;;  %v11206_v4 = vld [vmem:[%s11598_s26 + $0x120] ss:$8 sps:$4 sm:$0xff]  }
 0x401   : > { %v3803_v59 = vmax.f32 %v2732_v30, 0.0  ;;  %v2736_v13 = vadd.f32 %v2735_v63, %v12378_v27  ;;  %v2737_v47 = vpop.f32.mrb[95].mxu0  ;;  %v11207_v63 = vld [vmem:[%s11598_s26 + $0x134] ss:$8 sps:$4 sm:$0xff]  }
 0x402   : > { %v3804_v9 = vmax.f32 %v2734_v49, 0.0  ;;  %v2738_v20 = vadd.f32 %v2737_v47, %v12380_v10  ;;  %v12902_v2 = vpack.c.bf16 %v4308_v18, %v4305_v56 }
 0x403   : > { %v12904_v57 = vmax.f32 %v3779_v36, %v3803_v59  ;;  %v3809_v11 = vmax.f32 %v2736_v13, 0.0  ;;  %3033 = vmatmul.mubr.bf16.gmra.mrb[200].mxu0 %v11206_v4  ;;  %v14775_v36 = vld [vmem:[#allocation47_spill] sm:$0xff] }
 0x404   : > { %14771 = vst [vmem:[#allocation41_spill] sm:$0xff] %v12902_v2  ;;  %v4140_v26 = vmax.f32 %v3780_v19, %v3804_v9  ;;  %v3810_v30 = vmax.f32 %v2738_v20, 0.0  ;;  %9119 = vmatprep.mubr.msk.bf16.mxu0 %vm1630_vm0, %v11207_v63  ;;  %v11208_v19 = vld [vmem:[%s11598_s26 + $0x130] ss:$8 sps:$4 sm:$0xff]   ;;  %v11209_v9 = vld [vmem:[%s11598_s26 + $0x144] ss:$8 sps:$4 sm:$0xff]  }
 0x405   : > { %14772 = vst [vmem:[#allocation43_spill] sm:$0xff] %v12904_v57  ;;  %v12909_v50 = vmax.f32 %v3785_v33, %v3809_v11 }
 0x406   : > { %v4311_v49 = vmax.f32 %v14774_v14, %v4140_v26  ;;  %v4146_v56 = vmax.f32 %v3786_v3, %v3810_v30  ;;  %v2741_v28 = vpop.f32.mrb[96].mxu0  ;;  %v11210_v26 = vld [vmem:[%s11598_s26 + $0x140] ss:$8 sps:$4 sm:$0xff]   ;;  %v11211_v3 = vld [vmem:[%s11598_s26 + $0x154] ss:$8 sps:$4 sm:$0xff]  }
 0x407   : > { %14773 = vst [vmem:[#allocation85_spill] sm:$0xff] %v12909_v50  ;;  %v2743_v18 = vpop.f32.mrb[97].mxu0  ;;  %v2742_v30 = vadd.f32 %v2741_v28, %v12378_v27 }
 0x408   : > { %v4314_v59 = vmax.f32 %v14775_v36, %v4146_v56  ;;  %v2745_v13 = vpop.f32.mrb[98].mxu0  ;;  %v2744_v63 = vadd.f32 %v2743_v18, %v12380_v10 }
 0x409   : > { %v2747_v47 = vpop.f32.mrb[99].mxu0 }
 0x40a   : > { %v12913_v55 = vpack.c.bf16 %v4314_v59, %v4311_v49  ;;  %v2746_v49 = vadd.f32 %v2745_v13, %v12378_v27  ;;  %v2748_v59 = vadd.f32 %v2747_v47, %v12380_v10  ;;  %v3816_v2 = vmax.f32 %v2744_v63, 0.0 }
 0x40b   : > { %3043 = vmatmul.mubr.bf16.gmra.mrb[204].mxu0 %v11208_v19 }
 0x40c   : > { %14776 = vst [vmem:[#allocation45_spill] sm:$0xff] %v12913_v55  ;;  %9120 = vmatprep.mubr.msk.bf16.mxu0 %vm1630_vm0, %v11209_v9  ;;  %v3821_v13 = vmax.f32 %v2746_v49, 0.0  ;;  %v3822_v47 = vmax.f32 %v2748_v59, 0.0 }
 0x40e   : > { %v2751_v20 = vpop.f32.mrb[100].mxu0 }
 0x40f   : > { %v2753_v33 = vpop.f32.mrb[101].mxu0 }
 0x410   : > { %v2755_v11 = vpop.f32.mrb[102].mxu0  ;;  %v2754_v63 = vadd.f32 %v2753_v33, %v12380_v10 }
 0x411   : > { %v2757_v4 = vpop.f32.mrb[103].mxu0 }
 0x413   : > { %3053 = vmatmul.mubr.bf16.gmra.mrb[208].mxu0 %v11210_v26  ;;  %v3815_v26 = vmax.f32 %v2742_v30, 0.0  ;;  %v2752_v30 = vadd.f32 %v2751_v20, %v12378_v27 }
 0x414   : > { %9121 = vmatprep.mubr.msk.bf16.mxu0 %vm1630_vm0, %v11211_v3 }
 0x416   : > { %v2761_v14 = vpop.f32.mrb[104].mxu0 }
 0x417   : > { %v2762_v56 = vadd.f32 %v2761_v14, %v12378_v27  ;;  %v2763_v36 = vpop.f32.mrb[105].mxu0 }
 0x418   : > { %v2764_v19 = vadd.f32 %v2763_v36, %v12380_v10  ;;  %v2765_v9 = vpop.f32.mrb[106].mxu0 }
 0x419   : > { %v3839_v55 = vmax.f32 %v2762_v56, 0.0  ;;  %v2766_v3 = vadd.f32 %v2765_v9, %v12378_v27  ;;  %v2767_v28 = vpop.f32.mrb[107].mxu0 }
 0x41a   : > { %v3840_v18 = vmax.f32 %v2764_v19, 0.0  ;;  %v2768_v50 = vadd.f32 %v2767_v28, %v12380_v10  ;;  %v14779_v19 = vld [vmem:[#allocation49_spill] sm:$0xff]  ;;  %v3827_v28 = vmax.f32 %v2752_v30, 0.0 }
 0x41b   : > { %v12929_v57 = vmax.f32 %v3815_v26, %v3839_v55  ;;  %v3845_v14 = vmax.f32 %v2766_v3, 0.0  ;;  %3063 = vmatmul.mubr.bf16.gmra.mrb[212].mxu0 %v11212_v21  ;;  %v2756_v26 = vadd.f32 %v2755_v11, %v12378_v27 }
 0x41c   : > { %v4152_v44 = vmax.f32 %v3816_v2, %v3840_v18  ;;  %v3846_v36 = vmax.f32 %v2768_v50, 0.0  ;;  %9122 = vmatprep.mubr.msk.bf16.mxu0 %vm1630_vm0, %v11213_v39  ;;  %v2758_v2 = vadd.f32 %v2757_v4, %v12380_v10  ;;  %v14780_v50 = vld [vmem:[#allocation51_spill] sm:$0xff] }
 0x41d   : > { %14777 = vst [vmem:[#allocation47_spill] sm:$0xff] %v12929_v57  ;;  %v12935_v56 = vmax.f32 %v3821_v13, %v3845_v14  ;;  %v3828_v13 = vmax.f32 %v2754_v63, 0.0  ;;  %v11221_v57 = vld [vmem:[%s11598_s26 + $0x1a4] ss:$8 sps:$4 sm:$0xff]  }
 0x41e   : > { %v4317_v9 = vmax.f32 %v14779_v19, %v4152_v44  ;;  %v4158_v49 = vmax.f32 %v3822_v47, %v3846_v36  ;;  %v2771_v55 = vpop.f32.mrb[108].mxu0  ;;  %v3833_v36 = vmax.f32 %v2756_v26, 0.0 }
 0x41f   : > { %14778 = vst [vmem:[#allocation86_spill] sm:$0xff] %v12935_v56  ;;  %v2772_v21 = vadd.f32 %v2771_v55, %v12378_v27  ;;  %v2773_v59 = vpop.f32.mrb[109].mxu0  ;;  %v3834_v55 = vmax.f32 %v2758_v2, 0.0 }
 0x420   : > { %v4320_v39 = vmax.f32 %v14780_v50, %v4158_v49  ;;  %v2774_v20 = vadd.f32 %v2773_v59, %v12380_v10  ;;  %v2775_v3 = vpop.f32.mrb[110].mxu0  ;;  %v11214_v49 = vld [vmem:[%s11598_s26 + $0x160] ss:$8 sps:$4 sm:$0xff]   ;;  %v11215_v59 = vld [vmem:[%s11598_s26 + $0x174] ss:$8 sps:$4 sm:$0xff]  }
 0x421   : > { %v3851_v33 = vmax.f32 %v2772_v21, 0.0  ;;  %v2776_v44 = vadd.f32 %v2775_v3, %v12378_v27  ;;  %v2777_v18 = vpop.f32.mrb[111].mxu0  ;;  %v14784_v50 = vld [vmem:[#allocation53_spill] sm:$0xff]  ;;  %v14785_v3 = vld [vmem:[#allocation55_spill] sm:$0xff] }
 0x422   : > { %v3852_v14 = vmax.f32 %v2774_v20, 0.0  ;;  %v2778_v11 = vadd.f32 %v2777_v18, %v12380_v10  ;;  %v12946_v47 = vpack.c.bf16 %v4320_v39, %v4317_v9  ;;  %v11216_v18 = vld [vmem:[%s11598_s26 + $0x170] ss:$8 sps:$4 sm:$0xff]  }
 0x423   : > { %v12948_v19 = vmax.f32 %v3827_v28, %v3851_v33  ;;  %v3857_v4 = vmax.f32 %v2776_v44, 0.0  ;;  %3073 = vmatmul.mubr.bf16.gmra.mrb[216].mxu0 %v11214_v49  ;;  %v11218_v49 = vld [vmem:[%s11598_s26 + $0x180] ss:$8 sps:$4 sm:$0xff]  }
 0x424   : > { %14781 = vst [vmem:[#allocation49_spill] sm:$0xff] %v12946_v47  ;;  %v4164_v30 = vmax.f32 %v3828_v13, %v3852_v14  ;;  %v3858_v21 = vmax.f32 %v2778_v11, 0.0  ;;  %9123 = vmatprep.mubr.msk.bf16.mxu0 %vm1630_vm0, %v11215_v59  ;;  %v11217_v13 = vld [vmem:[%s11598_s26 + $0x184] ss:$8 sps:$4 sm:$0xff]  }
 0x425   : > { %14782 = vst [vmem:[#allocation51_spill] sm:$0xff] %v12948_v19  ;;  %v12953_v63 = vmax.f32 %v3833_v36, %v3857_v4  ;;  %v11220_v19 = vld [vmem:[%s11598_s26 + $0x190] ss:$8 sps:$4 sm:$0xff]  }
 0x426   : > { %v4323_v20 = vmax.f32 %v14784_v50, %v4164_v30  ;;  %v4170_v9 = vmax.f32 %v3834_v55, %v3858_v21  ;;  %v2781_v26 = vpop.f32.mrb[112].mxu0  ;;  %v11219_v55 = vld [vmem:[%s11598_s26 + $0x194] ss:$8 sps:$4 sm:$0xff]  }
 0x427   : > { %14783 = vst [vmem:[#allocation87_spill] sm:$0xff] %v12953_v63  ;;  %v2783_v39 = vpop.f32.mrb[113].mxu0  ;;  %v2782_v30 = vadd.f32 %v2781_v26, %v12378_v27 }
 0x428   : > { %v4326_v28 = vmax.f32 %v14785_v3, %v4170_v9  ;;  %v2785_v33 = vpop.f32.mrb[114].mxu0  ;;  %v2784_v21 = vadd.f32 %v2783_v39, %v12380_v10 }
 0x429   : > { %v2787_v44 = vpop.f32.mrb[115].mxu0  ;;  %v2786_v50 = vadd.f32 %v2785_v33, %v12378_v27 }
 0x42a   : > { %v12957_v2 = vpack.c.bf16 %v4326_v28, %v4323_v20  ;;  %v2788_v3 = vadd.f32 %v2787_v44, %v12380_v10 }
 0x42b   : > { %3083 = vmatmul.mubr.bf16.gmra.mrb[220].mxu0 %v11216_v18  ;;  %v3869_v33 = vmax.f32 %v2786_v50, 0.0 }
 0x42c   : > { %14786 = vst [vmem:[#allocation53_spill] sm:$0xff] %v12957_v2  ;;  %9124 = vmatprep.mubr.msk.bf16.mxu0 %vm1630_vm0, %v11217_v13  ;;  %v3863_v13 = vmax.f32 %v2782_v30, 0.0  ;;  %v3864_v2 = vmax.f32 %v2784_v21, 0.0  ;;  %v3870_v44 = vmax.f32 %v2788_v3, 0.0 }
 0x42e   : > { %v2791_v14 = vpop.f32.mrb[116].mxu0 }
 0x42f   : > { %v2793_v11 = vpop.f32.mrb[117].mxu0  ;;  %v2792_v30 = vadd.f32 %v2791_v14, %v12378_v27 }
 0x430   : > { %v2795_v36 = vpop.f32.mrb[118].mxu0  ;;  %v2794_v21 = vadd.f32 %v2793_v11, %v12380_v10 }
 0x431   : > { %v2797_v4 = vpop.f32.mrb[119].mxu0 }
 0x433   : > { %3093 = vmatmul.mubr.bf16.gmra.mrb[224].mxu0 %v11218_v49 }
 0x434   : > { %9125 = vmatprep.mubr.msk.bf16.mxu0 %vm1630_vm0, %v11219_v55 }
 0x436   : > { %v2801_v59 = vpop.f32.mrb[120].mxu0 }
 0x437   : > { %v2802_v20 = vadd.f32 %v2801_v59, %v12378_v27  ;;  %v2803_v9 = vpop.f32.mrb[121].mxu0 }
 0x438   : > { %v2804_v28 = vadd.f32 %v2803_v9, %v12380_v10  ;;  %v2805_v18 = vpop.f32.mrb[122].mxu0 }
 0x439   : > { %v3887_v49 = vmax.f32 %v2802_v20, 0.0  ;;  %v2806_v55 = vadd.f32 %v2805_v18, %v12378_v27  ;;  %v2807_v26 = vpop.f32.mrb[123].mxu0 }
 0x43a   : > { %v3888_v39 = vmax.f32 %v2804_v28, 0.0  ;;  %v2808_v47 = vadd.f32 %v2807_v26, %v12380_v10  ;;  %v3876_v26 = vmax.f32 %v2794_v21, 0.0  ;;  %v14793_v21 = vld [vmem:[#allocation60_spill] sm:$0xff] }
 0x43b   : > { %v12973_v63 = vmax.f32 %v3863_v13, %v3887_v49  ;;  %v3893_v59 = vmax.f32 %v2806_v55, 0.0  ;;  %3103 = vmatmul.mubr.bf16.gmra.mrb[228].mxu0 %v11220_v19  ;;  %v2796_v13 = vadd.f32 %v2795_v36, %v12378_v27  ;;  %v3875_v55 = vmax.f32 %v2792_v30, 0.0 }
 0x43c   : > { %v4176_v56 = vmax.f32 %v3864_v2, %v3888_v39  ;;  %v3894_v9 = vmax.f32 %v2808_v47, 0.0  ;;  %9126 = vmatprep.mubr.msk.bf16.mxu0 %vm1630_vm0, %v11221_v57  ;;  %v2798_v47 = vadd.f32 %v2797_v4, %v12380_v10  ;;  %v14789_v2 = vld [vmem:[#allocation58_spill] sm:$0xff] }
 0x43d   : > { %14787 = vst [vmem:[#allocation55_spill] sm:$0xff] %v12973_v63  ;;  %v12979_v20 = vmax.f32 %v3869_v33, %v3893_v59  ;;  %v3881_v59 = vmax.f32 %v2796_v13, 0.0 }
 0x43e   : > { %v4329_v28 = vmax.f32 %v12332_v46, %v4176_v56  ;;  %v4182_v50 = vmax.f32 %v3870_v44, %v3894_v9  ;;  %v2811_v18 = vpop.f32.mrb[124].mxu0  ;;  %v11222_v9 = vld [vmem:[%s11598_s26 + $0x1a0] ss:$8 sps:$4 sm:$0xff]  }
 0x43f   : > { %14788 = vst [vmem:[#allocation88_spill] sm:$0xff] %v12979_v20  ;;  %v2812_v19 = vadd.f32 %v2811_v18, %v12378_v27  ;;  %v2813_v3 = vpop.f32.mrb[125].mxu0 }
 0x440   : > { %v4332_v57 = vmax.f32 %v14789_v2, %v4182_v50  ;;  %v2814_v14 = vadd.f32 %v2813_v3, %v12380_v10  ;;  %v2815_v49 = vpop.f32.mrb[126].mxu0  ;;  %v3882_v50 = vmax.f32 %v2798_v47, 0.0  ;;  %v14794_v2 = vld [vmem:[#allocation62_spill] sm:$0xff] }
 0x441   : > { %v3899_v11 = vmax.f32 %v2812_v19, 0.0  ;;  %v2816_v46 = vadd.f32 %v2815_v49, %v12378_v27  ;;  %v2817_v56 = vpop.f32.mrb[127].mxu0  ;;  %v11223_v19 = vld [vmem:[%s11598_s26 + $0x1b4] ss:$8 sps:$4 sm:$0xff]   ;;  %v11224_v47 = vld [vmem:[%s11598_s26 + $0x1b0] ss:$8 sps:$4 sm:$0xff]  }
 0x442   : > { %v3900_v39 = vmax.f32 %v2814_v14, 0.0  ;;  %v2818_v36 = vadd.f32 %v2817_v56, %v12380_v10  ;;  %v12990_v33 = vpack.c.bf16 %v4332_v57, %v4329_v28 }
 0x443   : > { %v12992_v44 = vmax.f32 %v3875_v55, %v3899_v11  ;;  %v3905_v4 = vmax.f32 %v2816_v46, 0.0  ;;  %3113 = vmatmul.mubr.bf16.gmra.mrb[232].mxu0 %v11222_v9  ;;  %v11225_v11 = vld [vmem:[%s11598_s26 + $0x1c4] ss:$8 sps:$4 sm:$0xff]  }
 0x444   : > { %14790 = vst [vmem:[#allocation58_spill] sm:$0xff] %v12990_v33  ;;  %v4188_v30 = vmax.f32 %v3876_v26, %v3900_v39  ;;  %v3906_v18 = vmax.f32 %v2818_v36, 0.0  ;;  %9127 = vmatprep.mubr.msk.bf16.mxu0 %vm1630_vm0, %v11223_v19  ;;  %v14796_v46 = vld [vmem:[#allocation3_spill] sm:$0xff]  ;;  %v11228_v19 = vld [vmem:[%s11598_s26 + $0x1d4] ss:$8 sps:$4 sm:$0xff]  }
 0x445   : > { %14791 = vst [vmem:[#allocation89_spill] sm:$0xff] %v12992_v44  ;;  %v12997_v27 = vmax.f32 %v3881_v59, %v3905_v4  ;;  %v922_v56 = vsub.s32 4, %v14796_v46  ;;  %v926_v26 = vsub.s32 5, %v14796_v46  ;;  %v11226_v4 = vld [vmem:[%s14632_s2] sm:$0x3f] }
 0x446   : > { %v4335_v10 = vmax.f32 %v14793_v21, %v4188_v30  ;;  %v4194_v28 = vmax.f32 %v3882_v50, %v3906_v18  ;;  %v2854_v3 = vpop.f32.mrb[128].mxu0  ;;  %v11227_v18 = vld [vmem:[%s11598_s26 + $0x1c0] ss:$8 sps:$4 sm:$0xff]  }
 0x447   : > { %14792 = vst [vmem:[#allocation90_spill] sm:$0xff] %v12997_v27  ;;  %v2856_v13 = vpop.f32.mrb[129].mxu0  ;;  %v13011_v9 = vrot.slane %v11226_v4, %v922_v56  ;;  %v13013_v30 = vrot.slane %v11226_v4, %v926_v26 }
 0x448   : > { %v4338_v57 = vmax.f32 %v14794_v2, %v4194_v28  ;;  %v2858_v14 = vpop.f32.mrb[130].mxu0 }
 0x449   : > { %v2860_v49 = vpop.f32.mrb[131].mxu0  ;;  %v2855_v21 = vadd.f32 %v2854_v3, %v13011_v9  ;;  %v2859_v2 = vadd.f32 %v2858_v14, %v13011_v9 }
 0x44a   : > { %v13001_v55 = vpack.c.bf16 %v4338_v57, %v4335_v10  ;;  %v2857_v10 = vadd.f32 %v2856_v13, %v13013_v30 }
 0x44b   : > { %3123 = vmatmul.mubr.bf16.gmra.mrb[236].mxu0 %v11224_v47  ;;  %v3337_v4 = vmax.f32 %v2855_v21, 0.0  ;;  %v3343_v14 = vmax.f32 %v2859_v2, 0.0 }
 0x44c   : > { %14795 = vst [vmem:[#allocation60_spill] sm:$0xff] %v13001_v55  ;;  %9128 = vmatprep.mubr.msk.bf16.mxu0 %vm1630_vm0, %v11225_v11  ;;  %v2861_v11 = vadd.f32 %v2860_v49, %v13013_v30  ;;  %v3338_v46 = vmax.f32 %v2857_v10, 0.0 }
 0x44e   : > { %v2864_v39 = vpop.f32.mrb[132].mxu0  ;;  %v3344_v44 = vmax.f32 %v2861_v11, 0.0 }
 0x44f   : > { %v2866_v36 = vpop.f32.mrb[133].mxu0  ;;  %v2865_v21 = vadd.f32 %v2864_v39, %v13011_v9 }
 0x450   : > { %v2868_v59 = vpop.f32.mrb[134].mxu0  ;;  %v2867_v10 = vadd.f32 %v2866_v36, %v13013_v30 }
 0x451   : > { %v2870_v50 = vpop.f32.mrb[135].mxu0  ;;  %v3349_v36 = vmax.f32 %v2865_v21, 0.0 }
 0x453   : > { %3133 = vmatmul.mubr.bf16.gmra.mrb[240].mxu0 %v11227_v18 }
 0x454   : > { %9129 = vmatprep.mubr.msk.bf16.mxu0 %vm1630_vm0, %v11228_v19 }
 0x456   : > { %v2874_v28 = vpop.f32.mrb[136].mxu0 }
 0x457   : > { %v2875_v57 = vadd.f32 %v2874_v28, %v13011_v9  ;;  %v2876_v47 = vpop.f32.mrb[137].mxu0  ;;  %v11229_v28 = vld [vmem:[%s11598_s26 + $0x1d0] ss:$8 sps:$4 sm:$0xff]  }
 0x458   : > { %v2877_v56 = vadd.f32 %v2876_v47, %v13013_v30  ;;  %v2878_v26 = vpop.f32.mrb[138].mxu0  ;;  %v11230_v47 = vld [vmem:[%s11598_s26 + $0x1e4] ss:$8 sps:$4 sm:$0xff]  }
 0x459   : > { %v3361_v18 = vmax.f32 %v2875_v57, 0.0  ;;  %v2879_v19 = vadd.f32 %v2878_v26, %v13011_v9  ;;  %v2880_v3 = vpop.f32.mrb[139].mxu0  ;;  %v14797_v57 = vld [vmem:[#allocation4_spill] sm:$0xff] }
 0x45a   : > { %v3362_v13 = vmax.f32 %v2877_v56, 0.0  ;;  %v2881_v55 = vadd.f32 %v2880_v3, %v13013_v30  ;;  %v2871_v3 = vadd.f32 %v2870_v50, %v13013_v30 }
 0x45b   : > { %v3913_v33 = vmax.f32 %v3337_v4, %v3361_v18  ;;  %v3367_v27 = vmax.f32 %v2879_v19, 0.0  ;;  %3143 = vmatmul.mubr.bf16.gmra.mrb[244].mxu0 %v11229_v28  ;;  %v2869_v18 = vadd.f32 %v2868_v59, %v13011_v9  ;;  %v14798_v19 = vld [vmem:[#allocation5_spill] sm:$0xff] }
 0x45c   : > { %v3914_v49 = vmax.f32 %v3338_v46, %v3362_v13  ;;  %v3368_v20 = vmax.f32 %v2881_v55, 0.0  ;;  %9130 = vmatprep.mubr.msk.bf16.mxu0 %vm1630_vm0, %v11230_v47  ;;  %v11231_v47 = vld [vmem:[%s11598_s26 + $0x1e0] ss:$8 sps:$4 sm:$0xff]  }
 0x45d   : > { %v4198_v26 = vmax.f32 %v14797_v57, %v3913_v33  ;;  %v3919_v63 = vmax.f32 %v3343_v14, %v3367_v27  ;;  %v3355_v28 = vmax.f32 %v2869_v18, 0.0  ;;  %v3356_v57 = vmax.f32 %v2871_v3, 0.0  ;;  %v14801_v18 = vld [vmem:[#allocation7_spill] sm:$0xff] }
 0x45e   : > { %v4199_v56 = vmax.f32 %v12393_v0, %v3914_v49  ;;  %v3920_v2 = vmax.f32 %v3344_v44, %v3368_v20  ;;  %v2884_v4 = vpop.f32.mrb[140].mxu0 }
 0x45f   : > { %v4201_v11 = vmax.f32 %v14798_v19, %v3919_v63  ;;  %v2885_v55 = vadd.f32 %v2884_v4, %v13011_v9  ;;  %v2886_v46 = vpop.f32.mrb[141].mxu0  ;;  %v3350_v63 = vmax.f32 %v2867_v10, 0.0  ;;  %v11232_v4 = vld [vmem:[%s11598_s26 + $0x1f4] ss:$8 sps:$4 sm:$0xff]  }
 0x460   : > { %v4202_v39 = vmax.f32 %v12399_v8, %v3920_v2  ;;  %v2887_v33 = vadd.f32 %v2886_v46, %v13013_v30  ;;  %v2888_v27 = vpop.f32.mrb[142].mxu0 }
 0x461   : > { %v3373_v13 = vmax.f32 %v2885_v55, 0.0  ;;  %v2889_v0 = vadd.f32 %v2888_v27, %v13011_v9  ;;  %v2890_v20 = vpop.f32.mrb[143].mxu0  ;;  %v13040_v44 = vpack.c.bf16 %v4201_v11, %v4198_v26  ;;  %v14800_v26 = vld [vmem:[#allocation6_spill] sm:$0xff] }
 0x462   : > { %v13042_v59 = vpack.c.bf16 %v4202_v39, %v4199_v56  ;;  %v3374_v14 = vmax.f32 %v2887_v33, 0.0  ;;  %v2891_v50 = vadd.f32 %v2890_v20, %v13013_v30  ;;  %v11234_v20 = vld [vmem:[%s11598_s26 + $0x204] ss:$8 sps:$4 sm:$0xff]  }
 0x463   : > { %v3925_v49 = vmax.f32 %v3349_v36, %v3373_v13  ;;  %v3379_v8 = vmax.f32 %v2889_v0, 0.0  ;;  %3153 = vmatmul.mubr.bf16.gmra.mrb[248].mxu0 %v11231_v47  ;;  %v11233_v0 = vld [vmem:[%s11598_s26 + $0x1f0] ss:$8 sps:$4 sm:$0xff]  }
 0x464   : > { %14799 = vst [vmem:[#allocation62_spill] sm:$0xff] %v13042_v59  ;;  %v3926_v21 = vmax.f32 %v3350_v63, %v3374_v14  ;;  %v3380_v2 = vmax.f32 %v2891_v50, 0.0  ;;  %9131 = vmatprep.mubr.msk.bf16.mxu0 %vm1630_vm0, %v11232_v4 }
 0x465   : > { %v4204_v10 = vmax.f32 %v14800_v26, %v3925_v49  ;;  %v3931_v56 = vmax.f32 %v3355_v28, %v3379_v8  ;;  %v11235_v28 = vld [vmem:[%s11598_s26 + $0x200] ss:$8 sps:$4 sm:$0xff]   ;;  %v11236_v49 = vld [vmem:[%s11598_s26 + $0x214] ss:$8 sps:$4 sm:$0xff]  }
 0x466   : > { %v4205_v19 = vmax.f32 %v12412_v48, %v3926_v21  ;;  %v3932_v11 = vmax.f32 %v3356_v57, %v3380_v2  ;;  %v2894_v55 = vpop.f32.mrb[144].mxu0 }
 0x467   : > { %v4207_v46 = vmax.f32 %v14801_v18, %v3931_v56  ;;  %v2896_v39 = vpop.f32.mrb[145].mxu0  ;;  %v2895_v8 = vadd.f32 %v2894_v55, %v13011_v9 }
 0x468   : > { %v4208_v3 = vmax.f32 %v12417_v22, %v3932_v11  ;;  %v2898_v33 = vpop.f32.mrb[146].mxu0  ;;  %v10714_v22 = vld [vmem:[%s14633_s3 + $0x284] ss:$8 sps:$4 sm:$0xff]   ;;  %v2897_v47 = vadd.f32 %v2896_v39, %v13013_v30 }
 0x469   : > { %v2900_v27 = vpop.f32.mrb[147].mxu0  ;;  %v13052_v36 = vpack.c.bf16 %v4207_v46, %v4204_v10  ;;  %4943 = vmatprep.subr.bf16.mxu1 %v10714_v22  ;;  %v2899_v21 = vadd.f32 %v2898_v33, %v13011_v9 }
 0x46a   : > { %v13054_v13 = vpack.c.bf16 %v4208_v3, %v4205_v19  ;;  %v2901_v26 = vadd.f32 %v2900_v27, %v13013_v30  ;;  %v3385_v19 = vmax.f32 %v2895_v8, 0.0  ;;  %v3386_v46 = vmax.f32 %v2897_v47, 0.0 }
 0x46b   : > { %3163 = vmatmul.mubr.bf16.gmra.mrb[252].mxu0 %v11233_v0  ;;  %v3391_v33 = vmax.f32 %v2899_v21, 0.0 }
 0x46c   : > { %14802 = vst [vmem:[#allocation4_spill] sm:$0xff] %v13054_v13  ;;  %9132 = vmatprep.mubr.msk.bf16.mxu0 %vm1630_vm0, %v11234_v20 }
 0x46e   : > { %v2904_v48 = vpop.f32.mrb[148].mxu0 }
 0x46f   : > { %v2906_v63 = vpop.f32.mrb[149].mxu0  ;;  %v2905_v8 = vadd.f32 %v2904_v48, %v13011_v9 }
 0x470   : > { %v2908_v14 = vpop.f32.mrb[150].mxu0  ;;  %v2907_v47 = vadd.f32 %v2906_v63, %v13013_v30 }
 0x471   : > { %v2910_v50 = vpop.f32.mrb[151].mxu0  ;;  %v3397_v63 = vmax.f32 %v2905_v8, 0.0 }
 0x473   : > { %3173 = vmatmul.mubr.bf16.gmra.mrb[0].mxu0 %v11235_v28  ;;  %v11237_v28 = vld [vmem:[%s11598_s26 + $0x210] ss:$8 sps:$4 sm:$0xff]  }
 0x474   : > { %9133 = vmatprep.mubr.msk.bf16.mxu0 %vm1630_vm0, %v11236_v49  ;;  %v3392_v49 = vmax.f32 %v2901_v26, 0.0 }
 0x476   : > { %v2914_v57 = vpop.f32.mrb[152].mxu0 }
 0x477   : > { %v2915_v2 = vadd.f32 %v2914_v57, %v13011_v9  ;;  %v2916_v4 = vpop.f32.mrb[153].mxu0  ;;  %v11238_v57 = vld [vmem:[%s11598_s26 + $0x224] ss:$8 sps:$4 sm:$0xff]  }
 0x478   : > { %v2917_v10 = vadd.f32 %v2916_v4, %v13013_v30  ;;  %v2918_v56 = vpop.f32.mrb[154].mxu0  ;;  %v14803_v4 = vld [vmem:[#allocation8_spill] sm:$0xff] }
 0x479   : > { %v3409_v11 = vmax.f32 %v2915_v2, 0.0  ;;  %v2919_v55 = vadd.f32 %v2918_v56, %v13011_v9  ;;  %v2920_v18 = vpop.f32.mrb[155].mxu0 }
 0x47a   : > { %v3410_v39 = vmax.f32 %v2917_v10, 0.0  ;;  %v2921_v3 = vadd.f32 %v2920_v18, %v13013_v30  ;;  %v14804_v18 = vld [vmem:[#allocation9_spill] sm:$0xff] }
 0x47b   : > { %v3937_v0 = vmax.f32 %v3385_v19, %v3409_v11  ;;  %v3415_v20 = vmax.f32 %v2919_v55, 0.0  ;;  %3183 = vmatmul.mubr.bf16.gmra.mrb[4].mxu0 %v11237_v28  ;;  %v2909_v11 = vadd.f32 %v2908_v14, %v13011_v9  ;;  %v10712_v14 = vld [vmem:[%s14633_s3 + $0x280] ss:$8 sps:$4 sm:$0xff]  }
 0x47c   : > { %v3938_v27 = vmax.f32 %v3386_v46, %v3410_v39  ;;  %v3416_v22 = vmax.f32 %v2921_v3, 0.0  ;;  %9134 = vmatprep.mubr.msk.bf16.mxu0 %vm1630_vm0, %v11238_v57  ;;  %v2911_v39 = vadd.f32 %v2910_v50, %v13013_v30 }
 0x47d   : > { %v3943_v2 = vmax.f32 %v3391_v33, %v3415_v20  ;;  %v4210_v56 = vmax.f32 %v14803_v4, %v3937_v0 }
 0x47e   : > { %v4211_v10 = vmax.f32 %v12437_v62, %v3938_v27  ;;  %v3944_v21 = vmax.f32 %v3392_v49, %v3416_v22  ;;  %v2924_v19 = vpop.f32.mrb[156].mxu0  ;;  %v3398_v49 = vmax.f32 %v2907_v47, 0.0  ;;  %v3403_v22 = vmax.f32 %v2909_v11, 0.0  ;;  %v14805_v47 = vld [vmem:[#allocation10_spill] sm:$0xff] }
 0x47f   : > { %v2925_v26 = vadd.f32 %v2924_v19, %v13011_v9  ;;  %v2926_v55 = vpop.f32.mrb[157].mxu0  ;;  %v4213_v46 = vmax.f32 %v14804_v18, %v3943_v2  ;;  %v11239_v2 = vld [vmem:[%s11598_s26 + $0x220] ss:$8 sps:$4 sm:$0xff]   ;;  %v3404_v4 = vmax.f32 %v2911_v39, 0.0  ;;  %v11240_v19 = vld [vmem:[%s11598_s26 + $0x234] ss:$8 sps:$4 sm:$0xff]  }
 0x480   : > { %v4214_v48 = vmax.f32 %v12443_v41, %v3944_v21  ;;  %v2927_v3 = vadd.f32 %v2926_v55, %v13013_v30  ;;  %v2928_v33 = vpop.f32.mrb[158].mxu0 }
 0x481   : > { %v3421_v0 = vmax.f32 %v2925_v26, 0.0  ;;  %v2929_v62 = vadd.f32 %v2928_v33, %v13011_v9  ;;  %v2930_v20 = vpop.f32.mrb[159].mxu0  ;;  %v13087_v28 = vpack.c.bf16 %v4213_v46, %v4210_v56  ;;  %v14806_v46 = vld [vmem:[#allocation11_spill] sm:$0xff] }
 0x482   : > { %v13092_v50 = vpack.c.bf16 %v4214_v48, %v4211_v10  ;;  %v3422_v41 = vmax.f32 %v2927_v3, 0.0  ;;  %v2931_v27 = vadd.f32 %v2930_v20, %v13013_v30  ;;  %v14807_v3 = vld [vmem:[#allocation66_spill] sm:$0xff] }
 0x483   : > { %v3949_v57 = vmax.f32 %v3397_v63, %v3421_v0  ;;  %v3427_v8 = vmax.f32 %v2929_v62, 0.0  ;;  %3193 = vmatmul.mubr.bf16.gmra.mrb[8].mxu0 %v11239_v2  ;;  %4782 = vmatprep.mubr.bf16.mxu1 %v13087_v28  ;;  %v10715_v20 = vld [vmem:[%s14633_s3 + $0x290] ss:$8 sps:$4 sm:$0xff]  }
 0x484   : > { %v3950_v56 = vmax.f32 %v3398_v49, %v3422_v41  ;;  %v3428_v21 = vmax.f32 %v2931_v27, 0.0  ;;  %4783 = vmatmul.mubr.bf16.vlgmr.msra.gmra.mrb[0].mxu1 %v12454_v34  ;;  %9135 = vmatprep.mubr.msk.bf16.mxu0 %vm1630_vm0, %v11240_v19  ;;  %v11241_v49 = vld [vmem:[%s11598_s26 + $0x230] ss:$8 sps:$4 sm:$0xff]   ;;  %v14808_v41 = vld [vmem:[#allocation67_spill] sm:$0xff] }
 0x485   : > { %v4216_v10 = vmax.f32 %v14805_v47, %v3949_v57  ;;  %v3955_v26 = vmax.f32 %v3403_v22, %v3427_v8  ;;  %4944 = vmatpush1.bf16.msra.mxu1 %v10712_v14  ;;  %v11242_v27 = vld [vmem:[%s11598_s26 + $0x244] ss:$8 sps:$4 sm:$0xff]  }
 0x486   : > { %v4217_v11 = vmax.f32 %v12456_v42, %v3950_v56  ;;  %v3956_v55 = vmax.f32 %v3404_v4, %v3428_v21  ;;  %v2934_v18 = vpop.f32.mrb[160].mxu0  ;;  %v10717_v42 = vld [vmem:[%s14633_s3 + $0x294] ss:$8 sps:$4 sm:$0xff]   ;;  %v11243_v4 = vld [vmem:[%s11598_s26 + $0x240] ss:$8 sps:$4 sm:$0xff]  }
 0x487   : > { %v4219_v48 = vmax.f32 %v14806_v46, %v3955_v26  ;;  %v2936_v39 = vpop.f32.mrb[161].mxu0  ;;  %4945 = vmatprep.subr.bf16.mxu1 %v10717_v42  ;;  %v11244_v56 = vld [vmem:[%s11598_s26 + $0x254] ss:$8 sps:$4 sm:$0xff]   ;;  %v10718_v21 = vld [vmem:[%s14633_s3 + $0x2a0] ss:$8 sps:$4 sm:$0xff]   ;;  %v2935_v47 = vadd.f32 %v2934_v18, %v13011_v9 }
 0x488   : > { %v4220_v33 = vmax.f32 %v14807_v3, %v3956_v55  ;;  %v2938_v63 = vpop.f32.mrb[162].mxu0  ;;  %v10720_v19 = vld [vmem:[%s14633_s3 + $0x2a4] ss:$8 sps:$4 sm:$0xff]  }
 0x489   : > { %v2940_v0 = vpop.f32.mrb[163].mxu0  ;;  %v13104_v62 = vpack.c.bf16 %v4219_v48, %v4216_v10  ;;  %4946 = vmatpush1.bf16.msra.mxu1 %v10715_v20  ;;  %v2937_v10 = vadd.f32 %v2936_v39, %v13013_v30  ;;  %v3433_v20 = vmax.f32 %v2935_v47, 0.0 }
 0x48a   : > { %v13112_v14 = vpack.c.bf16 %v4220_v33, %v4217_v11  ;;  %4947 = vmatprep.subr.bf16.mxu1 %v10720_v19  ;;  %v2939_v11 = vadd.f32 %v2938_v63, %v13011_v9  ;;  %v2941_v48 = vadd.f32 %v2940_v0, %v13013_v30 }
 0x48b   : > { %3203 = vmatmul.mubr.bf16.gmra.mrb[12].mxu0 %v11241_v49  ;;  %4792 = vmatprep.mubr.bf16.mxu1 %v13104_v62  ;;  %v3434_v49 = vmax.f32 %v2937_v10, 0.0 }
 0x48c   : > { %4793 = vmatmul.mubr.bf16.gmra.mrb[4].mxu1 %v14808_v41  ;;  %9136 = vmatprep.mubr.msk.bf16.mxu0 %vm1630_vm0, %v11242_v27 }
 0x48d   : > { %4948 = vmatpush1.bf16.msra.mxu1 %v10718_v21  ;;  %v3440_v21 = vmax.f32 %v2941_v48, 0.0 }
 0x48e   : > { %v2944_v22 = vpop.f32.mrb[164].mxu0 }
 0x48f   : > { %v2946_v57 = vpop.f32.mrb[165].mxu0  ;;  %v2945_v47 = vadd.f32 %v2944_v22, %v13011_v9 }
 0x490   : > { %v2948_v8 = vpop.f32.mrb[166].mxu0  ;;  %v2947_v10 = vadd.f32 %v2946_v57, %v13013_v30 }
 0x491   : > { %v2950_v2 = vpop.f32.mrb[167].mxu0  ;;  %v3445_v57 = vmax.f32 %v2945_v47, 0.0 }
 0x493   : > { %3213 = vmatmul.mubr.bf16.gmra.mrb[16].mxu0 %v11243_v4  ;;  %v3439_v4 = vmax.f32 %v2939_v11, 0.0 }
 0x494   : > { %9137 = vmatprep.mubr.msk.bf16.mxu0 %vm1630_vm0, %v11244_v56 }
 0x496   : > { %v2954_v26 = vpop.f32.mrb[168].mxu0 }
 0x497   : > { %v2955_v55 = vadd.f32 %v2954_v26, %v13011_v9  ;;  %v2956_v46 = vpop.f32.mrb[169].mxu0  ;;  %v11245_v26 = vld [vmem:[%s11598_s26 + $0x250] ss:$8 sps:$4 sm:$0xff]  }
 0x498   : > { %v2957_v3 = vadd.f32 %v2956_v46, %v13013_v30  ;;  %v2958_v33 = vpop.f32.mrb[170].mxu0  ;;  %v11246_v46 = vld [vmem:[%s11598_s26 + $0x264] ss:$8 sps:$4 sm:$0xff]  }
 0x499   : > { %v3457_v42 = vmax.f32 %v2955_v55, 0.0  ;;  %v2959_v18 = vadd.f32 %v2958_v33, %v13011_v9  ;;  %v2960_v39 = vpop.f32.mrb[171].mxu0  ;;  %v14809_v55 = vld [vmem:[#allocation12_spill] sm:$0xff] }
 0x49a   : > { %v3458_v27 = vmax.f32 %v2957_v3, 0.0  ;;  %v2961_v63 = vadd.f32 %v2960_v39, %v13013_v30 }
 0x49b   : > { %v3961_v56 = vmax.f32 %v3433_v20, %v3457_v42  ;;  %v3463_v19 = vmax.f32 %v2959_v18, 0.0  ;;  %3223 = vmatmul.mubr.bf16.gmra.mrb[20].mxu0 %v11245_v26  ;;  %v2949_v42 = vadd.f32 %v2948_v8, %v13011_v9  ;;  %v14810_v18 = vld [vmem:[#allocation13_spill] sm:$0xff] }
 0x49c   : > { %v3962_v0 = vmax.f32 %v3434_v49, %v3458_v27  ;;  %v3464_v13 = vmax.f32 %v2961_v63, 0.0  ;;  %9138 = vmatprep.mubr.msk.bf16.mxu0 %vm1630_vm0, %v11246_v46  ;;  %v2951_v27 = vadd.f32 %v2950_v2, %v13013_v30  ;;  %v11247_v46 = vld [vmem:[%s11598_s26 + $0x260] ss:$8 sps:$4 sm:$0xff]  }
 0x49d   : > { %v4222_v33 = vmax.f32 %v14809_v55, %v3961_v56  ;;  %v3967_v59 = vmax.f32 %v3439_v4, %v3463_v19  ;;  %v3451_v2 = vmax.f32 %v2949_v42, 0.0 }
 0x49e   : > { %v4223_v3 = vmax.f32 %v12481_v37, %v3962_v0  ;;  %v3968_v11 = vmax.f32 %v3440_v21, %v3464_v13  ;;  %v2964_v20 = vpop.f32.mrb[172].mxu0  ;;  %v3452_v47 = vmax.f32 %v2951_v27, 0.0  ;;  %v14813_v27 = vld [vmem:[#allocation68_spill] sm:$0xff] }
 0x49f   : > { %v4225_v48 = vmax.f32 %v14810_v18, %v3967_v59  ;;  %v2965_v39 = vadd.f32 %v2964_v20, %v13011_v9  ;;  %v2966_v49 = vpop.f32.mrb[173].mxu0  ;;  %v3446_v59 = vmax.f32 %v2947_v10, 0.0  ;;  %v14811_v10 = vld [vmem:[#allocation14_spill] sm:$0xff] }
 0x4a0   : > { %v4226_v22 = vmax.f32 %v12487_v29, %v3968_v11  ;;  %v2967_v63 = vadd.f32 %v2966_v49, %v13013_v30  ;;  %v2968_v4 = vpop.f32.mrb[174].mxu0 }
 0x4a1   : > { %v3469_v56 = vmax.f32 %v2965_v39, 0.0  ;;  %v2969_v37 = vadd.f32 %v2968_v4, %v13011_v9  ;;  %v2970_v13 = vpop.f32.mrb[175].mxu0  ;;  %v13150_v8 = vpack.c.bf16 %v4225_v48, %v4222_v33  ;;  %v11248_v33 = vld [vmem:[%s11598_s26 + $0x274] ss:$8 sps:$4 sm:$0xff]   ;;  %v14812_v39 = vld [vmem:[#allocation15_spill] sm:$0xff] }
 0x4a2   : > { %v3470_v19 = vmax.f32 %v2967_v63, 0.0  ;;  %v2971_v26 = vadd.f32 %v2970_v13, %v13013_v30  ;;  %v13153_v21 = vpack.c.bf16 %v4226_v22, %v4223_v3 }
 0x4a3   : > { %v3973_v0 = vmax.f32 %v3445_v57, %v3469_v56  ;;  %v3475_v29 = vmax.f32 %v2969_v37, 0.0  ;;  %3233 = vmatmul.mubr.bf16.gmra.mrb[24].mxu0 %v11247_v46  ;;  %4802 = vmatprep.mubr.bf16.mxu1 %v13150_v8  ;;  %v10721_v37 = vld [vmem:[%s14633_s3 + $0x2b0] ss:$8 sps:$4 sm:$0xff]  }
 0x4a4   : > { %v3974_v55 = vmax.f32 %v3446_v59, %v3470_v19  ;;  %v3476_v11 = vmax.f32 %v2971_v26, 0.0  ;;  %4803 = vmatmul.mubr.bf16.gmra.mrb[8].mxu1 %v12498_v1  ;;  %9139 = vmatprep.mubr.msk.bf16.mxu0 %vm1630_vm0, %v11248_v33  ;;  %v11249_v59 = vld [vmem:[%s11598_s26 + $0x270] ss:$8 sps:$4 sm:$0xff]   ;;  %v11250_v26 = vld [vmem:[%s11598_s26 + $0x284] ss:$8 sps:$4 sm:$0xff]  }
 0x4a5   : > { %v4228_v20 = vmax.f32 %v14811_v10, %v3973_v0  ;;  %v3979_v3 = vmax.f32 %v3451_v2, %v3475_v29  ;;  %v14815_v19 = vld [vmem:[#allocation69_spill] sm:$0xff]  ;;  %v10726_v33 = vld [vmem:[%s14633_s3 + $0x2c4] ss:$8 sps:$4 sm:$0xff]  }
 0x4a6   : > { %v4229_v42 = vmax.f32 %v12500_v61, %v3974_v55  ;;  %v3980_v18 = vmax.f32 %v3452_v47, %v3476_v11  ;;  %v2974_v48 = vpop.f32.mrb[176].mxu0  ;;  %v10723_v61 = vld [vmem:[%s14633_s3 + $0x2b4] ss:$8 sps:$4 sm:$0xff]   ;;  %v11251_v47 = vld [vmem:[%s11598_s26 + $0x280] ss:$8 sps:$4 sm:$0xff]  }
 0x4a7   : > { %v4231_v49 = vmax.f32 %v14812_v39, %v3979_v3  ;;  %v2976_v22 = vpop.f32.mrb[177].mxu0  ;;  %4949 = vmatprep.subr.bf16.mxu1 %v10723_v61  ;;  %v11252_v55 = vld [vmem:[%s11598_s26 + $0x294] ss:$8 sps:$4 sm:$0xff]   ;;  %v10724_v11 = vld [vmem:[%s14633_s3 + $0x2c0] ss:$8 sps:$4 sm:$0xff]   ;;  %v2975_v10 = vadd.f32 %v2974_v48, %v13011_v9 }
 0x4a8   : > { %v4232_v63 = vmax.f32 %v14813_v27, %v3980_v18  ;;  %v2978_v4 = vpop.f32.mrb[178].mxu0  ;;  %4950 = vmatpush1.bf16.msra.mxu1 %v10721_v37 }
 0x4a9   : > { %v2980_v57 = vpop.f32.mrb[179].mxu0  ;;  %v13164_v56 = vpack.c.bf16 %v4231_v49, %v4228_v20  ;;  %v2977_v20 = vadd.f32 %v2976_v22, %v13013_v30  ;;  %4951 = vmatprep.subr.bf16.mxu1 %v10726_v33  ;;  %v3481_v37 = vmax.f32 %v2975_v10, 0.0 }
 0x4aa   : > { %v13172_v13 = vpack.c.bf16 %v4232_v63, %v4229_v42  ;;  %v2979_v42 = vadd.f32 %v2978_v4, %v13011_v9  ;;  %v2981_v49 = vadd.f32 %v2980_v57, %v13013_v30 }
 0x4ab   : > { %14814 = vst [vmem:[#allocation5_spill] sm:$0xff] %v13164_v56  ;;  %3243 = vmatmul.mubr.bf16.gmra.mrb[28].mxu0 %v11249_v59  ;;  %4812 = vmatprep.mubr.bf16.mxu1 %v13164_v56  ;;  %v3482_v59 = vmax.f32 %v2977_v20, 0.0 }
 0x4ac   : > { %4813 = vmatmul.mubr.bf16.gmra.mrb[12].mxu1 %v14815_v19  ;;  %9140 = vmatprep.mubr.msk.bf16.mxu0 %vm1630_vm0, %v11250_v26 }
 0x4ad   : > { %4952 = vmatpush1.bf16.msra.mxu1 %v10724_v11  ;;  %v3488_v11 = vmax.f32 %v2981_v49, 0.0 }
 0x4ae   : > { %v2984_v2 = vpop.f32.mrb[180].mxu0 }
 0x4af   : > { %v2986_v0 = vpop.f32.mrb[181].mxu0  ;;  %v2985_v10 = vadd.f32 %v2984_v2, %v13011_v9 }
 0x4b0   : > { %v2988_v29 = vpop.f32.mrb[182].mxu0  ;;  %v2987_v20 = vadd.f32 %v2986_v0, %v13013_v30 }
 0x4b1   : > { %v2990_v46 = vpop.f32.mrb[183].mxu0  ;;  %v3493_v0 = vmax.f32 %v2985_v10, 0.0 }
 0x4b3   : > { %3253 = vmatmul.mubr.bf16.gmra.mrb[32].mxu0 %v11251_v47  ;;  %v3487_v47 = vmax.f32 %v2979_v42, 0.0 }
 0x4b4   : > { %9141 = vmatprep.mubr.msk.bf16.mxu0 %vm1630_vm0, %v11252_v55 }
 0x4b6   : > { %v2994_v3 = vpop.f32.mrb[184].mxu0 }
 0x4b7   : > { %v2995_v18 = vadd.f32 %v2994_v3, %v13011_v9  ;;  %v2996_v39 = vpop.f32.mrb[185].mxu0  ;;  %v11253_v3 = vld [vmem:[%s11598_s26 + $0x290] ss:$8 sps:$4 sm:$0xff]  }
 0x4b8   : > { %v2997_v27 = vadd.f32 %v2996_v39, %v13013_v30  ;;  %v2998_v63 = vpop.f32.mrb[186].mxu0  ;;  %v11254_v39 = vld [vmem:[%s11598_s26 + $0x2a4] ss:$8 sps:$4 sm:$0xff]  }
 0x4b9   : > { %v3505_v61 = vmax.f32 %v2995_v18, 0.0  ;;  %v2999_v48 = vadd.f32 %v2998_v63, %v13011_v9  ;;  %v3000_v22 = vpop.f32.mrb[187].mxu0  ;;  %v14816_v18 = vld [vmem:[#allocation16_spill] sm:$0xff] }
 0x4ba   : > { %v3506_v26 = vmax.f32 %v2997_v27, 0.0  ;;  %v3001_v4 = vadd.f32 %v3000_v22, %v13013_v30 }
 0x4bb   : > { %v3985_v55 = vmax.f32 %v3481_v37, %v3505_v61  ;;  %v3511_v33 = vmax.f32 %v2999_v48, 0.0  ;;  %3263 = vmatmul.mubr.bf16.gmra.mrb[36].mxu0 %v11253_v3  ;;  %v2989_v61 = vadd.f32 %v2988_v29, %v13011_v9  ;;  %v14817_v48 = vld [vmem:[#allocation17_spill] sm:$0xff] }
 0x4bc   : > { %v3986_v57 = vmax.f32 %v3482_v59, %v3506_v26  ;;  %v3512_v19 = vmax.f32 %v3001_v4, 0.0  ;;  %9142 = vmatprep.mubr.msk.bf16.mxu0 %vm1630_vm0, %v11254_v39  ;;  %v2991_v26 = vadd.f32 %v2990_v46, %v13013_v30  ;;  %v11255_v39 = vld [vmem:[%s11598_s26 + $0x2a0] ss:$8 sps:$4 sm:$0xff]  }
 0x4bd   : > { %v4234_v63 = vmax.f32 %v14816_v18, %v3985_v55  ;;  %v3991_v56 = vmax.f32 %v3487_v47, %v3511_v33 }
 0x4be   : > { %v4235_v27 = vmax.f32 %v12525_v17, %v3986_v57  ;;  %v3992_v42 = vmax.f32 %v3488_v11, %v3512_v19  ;;  %v3004_v37 = vpop.f32.mrb[188].mxu0  ;;  %v3499_v11 = vmax.f32 %v2989_v61, 0.0  ;;  %v3500_v10 = vmax.f32 %v2991_v26, 0.0  ;;  %v14820_v26 = vld [vmem:[#allocation70_spill] sm:$0xff] }
 0x4bf   : > { %v4237_v49 = vmax.f32 %v14817_v48, %v3991_v56  ;;  %v3005_v22 = vadd.f32 %v3004_v37, %v13011_v9  ;;  %v3006_v59 = vpop.f32.mrb[189].mxu0  ;;  %v3494_v56 = vmax.f32 %v2987_v20, 0.0  ;;  %v14818_v20 = vld [vmem:[#allocation18_spill] sm:$0xff] }
 0x4c0   : > { %v4238_v2 = vmax.f32 %v12531_v5, %v3992_v42  ;;  %v3007_v4 = vadd.f32 %v3006_v59, %v13013_v30  ;;  %v3008_v47 = vpop.f32.mrb[190].mxu0  ;;  %v11256_v42 = vld [vmem:[%s11598_s26 + $0x2b4] ss:$8 sps:$4 sm:$0xff]  }
 0x4c1   : > { %v13209_v55 = vpack.c.bf16 %v4237_v49, %v4234_v63  ;;  %v3517_v17 = vmax.f32 %v3005_v22, 0.0  ;;  %v3009_v19 = vadd.f32 %v3008_v47, %v13011_v9  ;;  %v3010_v29 = vpop.f32.mrb[191].mxu0  ;;  %v14819_v22 = vld [vmem:[#allocation19_spill] sm:$0xff] }
 0x4c2   : > { %v13212_v33 = vpack.c.bf16 %v4238_v2, %v4235_v27  ;;  %v3518_v3 = vmax.f32 %v3007_v4, 0.0  ;;  %v3011_v46 = vadd.f32 %v3010_v29, %v13013_v30  ;;  %v10727_v29 = vld [vmem:[%s14633_s3 + $0x2d0] ss:$8 sps:$4 sm:$0xff]  }
 0x4c3   : > { %v3997_v57 = vmax.f32 %v3493_v0, %v3517_v17  ;;  %v3523_v5 = vmax.f32 %v3009_v19, 0.0  ;;  %3273 = vmatmul.mubr.bf16.gmra.mrb[40].mxu0 %v11255_v39  ;;  %4822 = vmatprep.mubr.bf16.mxu1 %v13209_v55 }
 0x4c4   : > { %v3998_v18 = vmax.f32 %v3494_v56, %v3518_v3  ;;  %v3524_v63 = vmax.f32 %v3011_v46, 0.0  ;;  %4823 = vmatmul.mubr.bf16.gmra.mrb[16].mxu1 %v12542_v54  ;;  %9143 = vmatprep.mubr.msk.bf16.mxu0 %vm1630_vm0, %v11256_v42  ;;  %v11257_v56 = vld [vmem:[%s11598_s26 + $0x2b0] ss:$8 sps:$4 sm:$0xff]   ;;  %v14822_v3 = vld [vmem:[#allocation71_spill] sm:$0xff] }
 0x4c5   : > { %v4240_v27 = vmax.f32 %v14818_v20, %v3997_v57  ;;  %v4003_v37 = vmax.f32 %v3499_v11, %v3523_v5  ;;  %v11258_v46 = vld [vmem:[%s11598_s26 + $0x2c4] ss:$8 sps:$4 sm:$0xff]  }
 0x4c6   : > { %v4241_v61 = vmax.f32 %v12544_v16, %v3998_v18  ;;  %v4004_v48 = vmax.f32 %v3500_v10, %v3524_v63  ;;  %v3014_v49 = vpop.f32.mrb[192].mxu0  ;;  %v10729_v16 = vld [vmem:[%s14633_s3 + $0x2d4] ss:$8 sps:$4 sm:$0xff]   ;;  %v11259_v10 = vld [vmem:[%s11598_s26 + $0x2c0] ss:$8 sps:$4 sm:$0xff]  }
 0x4c7   : > { %v4243_v59 = vmax.f32 %v14819_v22, %v4003_v37  ;;  %v3016_v2 = vpop.f32.mrb[193].mxu0  ;;  %4953 = vmatprep.subr.bf16.mxu1 %v10729_v16  ;;  %v11260_v18 = vld [vmem:[%s11598_s26 + $0x2d4] ss:$8 sps:$4 sm:$0xff]   ;;  %v10730_v63 = vld [vmem:[%s14633_s3 + $0x2e0] ss:$8 sps:$4 sm:$0xff]   ;;  %v3015_v20 = vadd.f32 %v3014_v49, %v13011_v9 }
 0x4c8   : > { %v4244_v4 = vmax.f32 %v14820_v26, %v4004_v48  ;;  %v3018_v47 = vpop.f32.mrb[194].mxu0  ;;  %4954 = vmatpush1.bf16.msra.mxu1 %v10727_v29  ;;  %v10732_v42 = vld [vmem:[%s14633_s3 + $0x2e4] ss:$8 sps:$4 sm:$0xff]  }
 0x4c9   : > { %v13224_v0 = vpack.c.bf16 %v4243_v59, %v4240_v27  ;;  %v3020_v17 = vpop.f32.mrb[195].mxu0  ;;  %v3017_v27 = vadd.f32 %v3016_v2, %v13013_v30  ;;  %4955 = vmatprep.subr.bf16.mxu1 %v10732_v42  ;;  %v3529_v29 = vmax.f32 %v3015_v20, 0.0 }
 0x4ca   : > { %v13226_v19 = vpack.c.bf16 %v4244_v4, %v4241_v61  ;;  %v3019_v61 = vadd.f32 %v3018_v47, %v13011_v9  ;;  %v3021_v59 = vadd.f32 %v3020_v17, %v13013_v30 }
 0x4cb   : > { %14821 = vst [vmem:[#allocation6_spill] sm:$0xff] %v13224_v0  ;;  %3283 = vmatmul.mubr.bf16.gmra.mrb[44].mxu0 %v11257_v56  ;;  %4832 = vmatprep.mubr.bf16.mxu1 %v13224_v0  ;;  %v3530_v56 = vmax.f32 %v3017_v27, 0.0 }
 0x4cc   : > { %4833 = vmatmul.mubr.bf16.gmra.mrb[20].mxu1 %v14822_v3  ;;  %9144 = vmatprep.mubr.msk.bf16.mxu0 %vm1630_vm0, %v11258_v46 }
 0x4cd   : > { %4956 = vmatpush1.bf16.msra.mxu1 %v10730_v63  ;;  %v3536_v63 = vmax.f32 %v3021_v59, 0.0 }
 0x4ce   : > { %v3024_v11 = vpop.f32.mrb[196].mxu0 }
 0x4cf   : > { %v3026_v57 = vpop.f32.mrb[197].mxu0  ;;  %v3025_v20 = vadd.f32 %v3024_v11, %v13011_v9 }
 0x4d0   : > { %v3028_v5 = vpop.f32.mrb[198].mxu0  ;;  %v3027_v27 = vadd.f32 %v3026_v57, %v13013_v30 }
 0x4d1   : > { %v3030_v39 = vpop.f32.mrb[199].mxu0  ;;  %v3541_v57 = vmax.f32 %v3025_v20, 0.0 }
 0x4d3   : > { %3293 = vmatmul.mubr.bf16.gmra.mrb[48].mxu0 %v11259_v10  ;;  %v3535_v10 = vmax.f32 %v3019_v61, 0.0 }
 0x4d4   : > { %9145 = vmatprep.mubr.msk.bf16.mxu0 %vm1630_vm0, %v11260_v18 }
 0x4d6   : > { %v3034_v37 = vpop.f32.mrb[200].mxu0 }
 0x4d7   : > { %v3035_v48 = vadd.f32 %v3034_v37, %v13011_v9  ;;  %v3036_v22 = vpop.f32.mrb[201].mxu0  ;;  %v11261_v37 = vld [vmem:[%s11598_s26 + $0x2d0] ss:$8 sps:$4 sm:$0xff]  }
 0x4d8   : > { %v3037_v26 = vadd.f32 %v3036_v22, %v13013_v30  ;;  %v3038_v4 = vpop.f32.mrb[202].mxu0  ;;  %v11262_v22 = vld [vmem:[%s11598_s26 + $0x2e4] ss:$8 sps:$4 sm:$0xff]  }
 0x4d9   : > { %v3553_v16 = vmax.f32 %v3035_v48, 0.0  ;;  %v3039_v49 = vadd.f32 %v3038_v4, %v13011_v9  ;;  %v3040_v2 = vpop.f32.mrb[203].mxu0  ;;  %v14823_v48 = vld [vmem:[#allocation20_spill] sm:$0xff] }
 0x4da   : > { %v3554_v46 = vmax.f32 %v3037_v26, 0.0  ;;  %v3041_v47 = vadd.f32 %v3040_v2, %v13013_v30 }
 0x4db   : > { %v4009_v18 = vmax.f32 %v3529_v29, %v3553_v16  ;;  %v3559_v42 = vmax.f32 %v3039_v49, 0.0  ;;  %3303 = vmatmul.mubr.bf16.gmra.mrb[52].mxu0 %v11261_v37  ;;  %v3029_v16 = vadd.f32 %v3028_v5, %v13011_v9  ;;  %v14824_v49 = vld [vmem:[#allocation21_spill] sm:$0xff] }
 0x4dc   : > { %v4010_v17 = vmax.f32 %v3530_v56, %v3554_v46  ;;  %v3560_v3 = vmax.f32 %v3041_v47, 0.0  ;;  %9146 = vmatprep.mubr.msk.bf16.mxu0 %vm1630_vm0, %v11262_v22  ;;  %v3031_v46 = vadd.f32 %v3030_v39, %v13013_v30  ;;  %v11263_v22 = vld [vmem:[%s11598_s26 + $0x2e0] ss:$8 sps:$4 sm:$0xff]  }
 0x4dd   : > { %v4246_v4 = vmax.f32 %v14823_v48, %v4009_v18  ;;  %v4015_v0 = vmax.f32 %v3535_v10, %v3559_v42 }
 0x4de   : > { %v4247_v26 = vmax.f32 %v12569_v24, %v4010_v17  ;;  %v4016_v61 = vmax.f32 %v3536_v63, %v3560_v3  ;;  %v3044_v29 = vpop.f32.mrb[204].mxu0  ;;  %v3547_v63 = vmax.f32 %v3029_v16, 0.0  ;;  %v3548_v20 = vmax.f32 %v3031_v46, 0.0 }
 0x4df   : > { %v4249_v59 = vmax.f32 %v14824_v49, %v4015_v0  ;;  %v3045_v2 = vadd.f32 %v3044_v29, %v13011_v9  ;;  %v3046_v56 = vpop.f32.mrb[205].mxu0  ;;  %v3542_v0 = vmax.f32 %v3027_v27, 0.0  ;;  %v14825_v27 = vld [vmem:[#allocation22_spill] sm:$0xff] }
 0x4e0   : > { %v4250_v11 = vmax.f32 %v12575_v53, %v4016_v61  ;;  %v3047_v47 = vadd.f32 %v3046_v56, %v13013_v30  ;;  %v3048_v10 = vpop.f32.mrb[206].mxu0  ;;  %v11264_v61 = vld [vmem:[%s11598_s26 + $0x2f4] ss:$8 sps:$4 sm:$0xff]  }
 0x4e1   : > { %v13269_v18 = vpack.c.bf16 %v4249_v59, %v4246_v4  ;;  %v3565_v24 = vmax.f32 %v3045_v2, 0.0  ;;  %v3049_v3 = vadd.f32 %v3048_v10, %v13011_v9  ;;  %v3050_v5 = vpop.f32.mrb[207].mxu0  ;;  %v14826_v2 = vld [vmem:[#allocation23_spill] sm:$0xff] }
 0x4e2   : > { %v13272_v42 = vpack.c.bf16 %v4250_v11, %v4247_v26  ;;  %v3566_v37 = vmax.f32 %v3047_v47, 0.0  ;;  %v3051_v39 = vadd.f32 %v3050_v5, %v13013_v30  ;;  %v14827_v47 = vld [vmem:[#allocation73_spill] sm:$0xff] }
 0x4e3   : > { %v4021_v17 = vmax.f32 %v3541_v57, %v3565_v24  ;;  %v3571_v53 = vmax.f32 %v3049_v3, 0.0  ;;  %3313 = vmatmul.mubr.bf16.gmra.mrb[56].mxu0 %v11263_v22  ;;  %4842 = vmatprep.mubr.bf16.mxu1 %v13269_v18  ;;  %v10733_v5 = vld [vmem:[%s14633_s3 + $0x2f0] ss:$8 sps:$4 sm:$0xff]   ;;  %v10738_v22 = vld [vmem:[%s14633_s3 + $0x4] ss:$8 sps:$4 sm:$0xff]  }
 0x4e4   : > { %v4022_v48 = vmax.f32 %v3542_v0, %v3566_v37  ;;  %v3572_v4 = vmax.f32 %v3051_v39, 0.0  ;;  %4843 = vmatmul.mubr.bf16.gmra.mrb[24].mxu1 %v12585_v35  ;;  %9147 = vmatprep.mubr.msk.bf16.mxu0 %vm1630_vm0, %v11264_v61  ;;  %v11265_v0 = vld [vmem:[%s11598_s26 + $0x2f0] ss:$8 sps:$4 sm:$0xff]  }
 0x4e5   : > { %v4252_v26 = vmax.f32 %v14825_v27, %v4021_v17  ;;  %v4027_v29 = vmax.f32 %v3547_v63, %v3571_v53  ;;  %v14829_v37 = vld [vmem:[#allocation74_spill] sm:$0xff] }
 0x4e6   : > { %v4253_v16 = vmax.f32 %v12588_v40, %v4022_v48  ;;  %v4028_v49 = vmax.f32 %v3548_v20, %v3572_v4  ;;  %v3054_v59 = vpop.f32.mrb[208].mxu0  ;;  %v10735_v40 = vld [vmem:[%s14633_s3 + $0x2f4] ss:$8 sps:$4 sm:$0xff]  }
 0x4e7   : > { %v4255_v56 = vmax.f32 %v14826_v2, %v4027_v29  ;;  %v3056_v11 = vpop.f32.mrb[209].mxu0  ;;  %4957 = vmatprep.subr.bf16.mxu1 %v10735_v40  ;;  %v3055_v20 = vadd.f32 %v3054_v59, %v13011_v9 }
 0x4e8   : > { %v4256_v46 = vmax.f32 %v14827_v47, %v4028_v49  ;;  %v3058_v10 = vpop.f32.mrb[210].mxu0  ;;  %4958 = vmatpush1.bf16.msra.mxu1 %v10733_v5  ;;  %v3057_v48 = vadd.f32 %v3056_v11, %v13013_v30 }
 0x4e9   : > { %v13284_v57 = vpack.c.bf16 %v4255_v56, %v4252_v26  ;;  %v3060_v24 = vpop.f32.mrb[211].mxu0  ;;  %5376 = vmatprep.subr.bf16.mxu1 %v10738_v22  ;;  %v3059_v61 = vadd.f32 %v3058_v10, %v13011_v9  ;;  %v3577_v2 = vmax.f32 %v3055_v20, 0.0 }
 0x4ea   : > { %v13286_v3 = vpack.c.bf16 %v4256_v46, %v4253_v16  ;;  %v3061_v29 = vadd.f32 %v3060_v24, %v13013_v30  ;;  %v3578_v59 = vmax.f32 %v3057_v48, 0.0 }
 0x4eb   : > { %14828 = vst [vmem:[#allocation7_spill] sm:$0xff] %v13284_v57  ;;  %3323 = vmatmul.mubr.bf16.gmra.mrb[60].mxu0 %v11265_v0  ;;  %4852 = vmatprep.mubr.bf16.mxu1 %v13284_v57  ;;  %v3583_v40 = vmax.f32 %v3059_v61, 0.0  ;;  %v14830_v57 = vld [vmem:[#allocation24_spill] sm:$0xff] }
 0x4ec   : > { %4853 = vmatmul.mubr.bf16.gmra.mrb[28].mxu1 %v14829_v37  ;;  %v3584_v22 = vmax.f32 %v3061_v29, 0.0 }
 0x4ee   : > { %v3064_v39 = vpop.f32.mrb[212].mxu0 }
 0x4ef   : > { %v3066_v63 = vpop.f32.mrb[213].mxu0  ;;  %v3065_v24 = vadd.f32 %v3064_v39, %v13011_v9 }
 0x4f0   : > { %v3068_v17 = vpop.f32.mrb[214].mxu0  ;;  %v3067_v20 = vadd.f32 %v3066_v63, %v13013_v30 }
 0x4f1   : > { %v3070_v53 = vpop.f32.mrb[215].mxu0 }
 0x4f6   : > { %v3074_v4 = vpop.f32.mrb[216].mxu0 }
 0x4f7   : > { %v3075_v27 = vadd.f32 %v3074_v4, %v13011_v9  ;;  %v3076_v26 = vpop.f32.mrb[217].mxu0 }
 0x4f8   : > { %v3077_v16 = vadd.f32 %v3076_v26, %v13013_v30  ;;  %v3078_v49 = vpop.f32.mrb[218].mxu0 }
 0x4f9   : > { %v3601_v56 = vmax.f32 %v3075_v27, 0.0  ;;  %v3079_v47 = vadd.f32 %v3078_v49, %v13011_v9  ;;  %v3080_v46 = vpop.f32.mrb[219].mxu0 }
 0x4fa   : > { %v3602_v5 = vmax.f32 %v3077_v16, 0.0  ;;  %v3081_v11 = vadd.f32 %v3080_v46, %v13013_v30  ;;  %v3069_v16 = vadd.f32 %v3068_v17, %v13011_v9  ;;  %v14831_v46 = vld [vmem:[#allocation25_spill] sm:$0xff]  ;;  %v3590_v17 = vmax.f32 %v3067_v20, 0.0 }
 0x4fb   : > { %v4033_v0 = vmax.f32 %v3577_v2, %v3601_v56  ;;  %v3607_v10 = vmax.f32 %v3079_v47, 0.0  ;;  %v3071_v56 = vadd.f32 %v3070_v53, %v13013_v30 }
 0x4fc   : > { %v4034_v4 = vmax.f32 %v3578_v59, %v3602_v5  ;;  %v3608_v37 = vmax.f32 %v3081_v11, 0.0  ;;  %v3589_v59 = vmax.f32 %v3065_v24, 0.0  ;;  %v14832_v24 = vld [vmem:[#allocation26_spill] sm:$0xff] }
 0x4fd   : > { %v4258_v26 = vmax.f32 %v14830_v57, %v4033_v0  ;;  %v4039_v35 = vmax.f32 %v3583_v40, %v3607_v10  ;;  %v3595_v0 = vmax.f32 %v3069_v16, 0.0  ;;  %v14834_v16 = vld [vmem:[#allocation75_spill] sm:$0xff] }
 0x4fe   : > { %v4259_v27 = vmax.f32 %v12613_v38, %v4034_v4  ;;  %v4040_v49 = vmax.f32 %v3584_v22, %v3608_v37  ;;  %v3084_v48 = vpop.f32.mrb[220].mxu0 }
 0x4ff   : > { %v4261_v61 = vmax.f32 %v14831_v46, %v4039_v35  ;;  %v3085_v2 = vadd.f32 %v3084_v48, %v13011_v9  ;;  %v3086_v29 = vpop.f32.mrb[221].mxu0  ;;  %v14833_v46 = vld [vmem:[#allocation27_spill] sm:$0xff] }
 0x500   : > { %v4262_v39 = vmax.f32 %v12619_v58, %v4040_v49  ;;  %v3087_v57 = vadd.f32 %v3086_v29, %v13013_v30  ;;  %v3088_v47 = vpop.f32.mrb[222].mxu0  ;;  %v3596_v58 = vmax.f32 %v3071_v56, 0.0 }
 0x501   : > { %v13318_v63 = vpack.c.bf16 %v4261_v61, %v4258_v26  ;;  %v3613_v38 = vmax.f32 %v3085_v2, 0.0  ;;  %v3089_v37 = vadd.f32 %v3088_v47, %v13011_v9  ;;  %v3090_v5 = vpop.f32.mrb[223].mxu0 }
 0x502   : > { %v13321_v11 = vpack.c.bf16 %v4262_v39, %v4259_v27  ;;  %v3614_v35 = vmax.f32 %v3087_v57, 0.0  ;;  %v3091_v40 = vadd.f32 %v3090_v5, %v13013_v30 }
 0x503   : > { %v4045_v53 = vmax.f32 %v3589_v59, %v3613_v38  ;;  %v3619_v10 = vmax.f32 %v3089_v37, 0.0  ;;  %4862 = vmatprep.mubr.bf16.mxu1 %v13318_v63  ;;  %v14837_v59 = vld [vmem:[#allocation76_spill] sm:$0xff] }
 0x504   : > { %v4046_v22 = vmax.f32 %v3590_v17, %v3614_v35  ;;  %v3620_v4 = vmax.f32 %v3091_v40, 0.0  ;;  %4863 = vmatmul.mubr.bf16.gmra.mrb[32].mxu1 %v12629_v23 }
 0x505   : > { %v4264_v26 = vmax.f32 %v14832_v24, %v4045_v53  ;;  %v4051_v49 = vmax.f32 %v3595_v0, %v3619_v10 }
 0x506   : > { %v4265_v20 = vmax.f32 %v12632_v32, %v4046_v22  ;;  %v4052_v27 = vmax.f32 %v3596_v58, %v3620_v4  ;;  %v3094_v48 = vpop.f32.mrb[224].mxu0 }
 0x507   : > { %v4267_v61 = vmax.f32 %v14833_v46, %v4051_v49  ;;  %v3096_v2 = vpop.f32.mrb[225].mxu0  ;;  %v3095_v17 = vadd.f32 %v3094_v48, %v13011_v9 }
 0x508   : > { %v4268_v29 = vmax.f32 %v14834_v16, %v4052_v27  ;;  %v3098_v39 = vpop.f32.mrb[226].mxu0  ;;  %v3097_v35 = vadd.f32 %v3096_v2, %v13013_v30 }
 0x509   : > { %v13330_v57 = vpack.c.bf16 %v4267_v61, %v4264_v26  ;;  %v3100_v56 = vpop.f32.mrb[227].mxu0  ;;  %v3099_v0 = vadd.f32 %v3098_v39, %v13011_v9  ;;  %v3625_v24 = vmax.f32 %v3095_v17, 0.0 }
 0x50a   : > { %v13332_v47 = vpack.c.bf16 %v4268_v29, %v4265_v20  ;;  %v3101_v58 = vadd.f32 %v3100_v56, %v13013_v30  ;;  %v3626_v27 = vmax.f32 %v3097_v35, 0.0 }
 0x50b   : > { %14835 = vst [vmem:[#allocation8_spill] sm:$0xff] %v13330_v57  ;;  %4872 = vmatprep.mubr.bf16.mxu1 %v13330_v57  ;;  %v3631_v61 = vmax.f32 %v3099_v0, 0.0 }
 0x50c   : > { %14836 = vst [vmem:[#allocation9_spill] sm:$0xff] %v13332_v47  ;;  %4873 = vmatmul.mubr.bf16.gmra.mrb[36].mxu1 %v14837_v59  ;;  %v3632_v29 = vmax.f32 %v3101_v58, 0.0  ;;  %v14838_v59 = vld [vmem:[#allocation28_spill] sm:$0xff] }
 0x50e   : > { %v3104_v38 = vpop.f32.mrb[228].mxu0 }
 0x50f   : > { %v3106_v37 = vpop.f32.mrb[229].mxu0  ;;  %v3105_v56 = vadd.f32 %v3104_v38, %v13011_v9 }
 0x510   : > { %v3108_v32 = vpop.f32.mrb[230].mxu0  ;;  %v3107_v17 = vadd.f32 %v3106_v37, %v13013_v30 }
 0x511   : > { %v3110_v5 = vpop.f32.mrb[231].mxu0 }
 0x516   : > { %v3114_v40 = vpop.f32.mrb[232].mxu0 }
 0x517   : > { %v3115_v53 = vadd.f32 %v3114_v40, %v13011_v9  ;;  %v3116_v10 = vpop.f32.mrb[233].mxu0 }
 0x518   : > { %v3117_v22 = vadd.f32 %v3116_v10, %v13013_v30  ;;  %v3118_v4 = vpop.f32.mrb[234].mxu0 }
 0x519   : > { %v3649_v26 = vmax.f32 %v3115_v53, 0.0  ;;  %v3119_v49 = vadd.f32 %v3118_v4, %v13011_v9  ;;  %v3120_v20 = vpop.f32.mrb[235].mxu0 }
 0x51a   : > { %v3650_v48 = vmax.f32 %v3117_v22, 0.0  ;;  %v3121_v46 = vadd.f32 %v3120_v20, %v13013_v30  ;;  %v3109_v22 = vadd.f32 %v3108_v32, %v13011_v9  ;;  %v14839_v20 = vld [vmem:[#allocation29_spill] sm:$0xff]  ;;  %v3638_v32 = vmax.f32 %v3107_v17, 0.0 }
 0x51b   : > { %v4057_v2 = vmax.f32 %v3625_v24, %v3649_v26  ;;  %v3655_v16 = vmax.f32 %v3119_v49, 0.0  ;;  %v3111_v26 = vadd.f32 %v3110_v5, %v13013_v30 }
 0x51c   : > { %v4058_v39 = vmax.f32 %v3626_v27, %v3650_v48  ;;  %v3656_v40 = vmax.f32 %v3121_v46, 0.0  ;;  %v3637_v27 = vmax.f32 %v3105_v56, 0.0  ;;  %v14840_v56 = vld [vmem:[#allocation30_spill] sm:$0xff] }
 0x51d   : > { %v4270_v10 = vmax.f32 %v14838_v59, %v4057_v2  ;;  %v4063_v57 = vmax.f32 %v3631_v61, %v3655_v16  ;;  %v3643_v16 = vmax.f32 %v3109_v22, 0.0  ;;  %v14842_v22 = vld [vmem:[#allocation77_spill] sm:$0xff] }
 0x51e   : > { %v4271_v53 = vmax.f32 %v12657_v43, %v4058_v39  ;;  %v4064_v4 = vmax.f32 %v3632_v29, %v3656_v40  ;;  %v3124_v35 = vpop.f32.mrb[236].mxu0 }
 0x51f   : > { %v4273_v0 = vmax.f32 %v14839_v20, %v4063_v57  ;;  %v3125_v24 = vadd.f32 %v3124_v35, %v13011_v9  ;;  %v3126_v58 = vpop.f32.mrb[237].mxu0  ;;  %v14841_v20 = vld [vmem:[#allocation31_spill] sm:$0xff] }
 0x520   : > { %v4274_v38 = vmax.f32 %v12663_v25, %v4064_v4  ;;  %v3127_v59 = vadd.f32 %v3126_v58, %v13013_v30  ;;  %v3128_v49 = vpop.f32.mrb[238].mxu0  ;;  %v3644_v25 = vmax.f32 %v3111_v26, 0.0 }
 0x521   : > { %v13354_v37 = vpack.c.bf16 %v4273_v0, %v4270_v10  ;;  %v3661_v43 = vmax.f32 %v3125_v24, 0.0  ;;  %v3129_v48 = vadd.f32 %v3128_v49, %v13011_v9  ;;  %v3130_v46 = vpop.f32.mrb[239].mxu0 }
 0x522   : > { %v13357_v61 = vpack.c.bf16 %v4274_v38, %v4271_v53  ;;  %v3662_v57 = vmax.f32 %v3127_v59, 0.0  ;;  %v3131_v2 = vadd.f32 %v3130_v46, %v13013_v30 }
 0x523   : > { %v4069_v5 = vmax.f32 %v3637_v27, %v3661_v43  ;;  %v3667_v29 = vmax.f32 %v3129_v48, 0.0  ;;  %4882 = vmatprep.mubr.bf16.mxu1 %v13354_v37  ;;  %v14844_v27 = vld [vmem:[#allocation78_spill] sm:$0xff] }
 0x524   : > { %v4070_v39 = vmax.f32 %v3638_v32, %v3662_v57  ;;  %v3668_v40 = vmax.f32 %v3131_v2, 0.0  ;;  %4883 = vmatmul.mubr.bf16.gmra.mrb[40].mxu1 %v12673_v52 }
 0x525   : > { %v4276_v10 = vmax.f32 %v14840_v56, %v4069_v5  ;;  %v4075_v4 = vmax.f32 %v3643_v16, %v3667_v29 }
 0x526   : > { %v4277_v17 = vmax.f32 %v12676_v15, %v4070_v39  ;;  %v4076_v53 = vmax.f32 %v3644_v25, %v3668_v40  ;;  %v3134_v35 = vpop.f32.mrb[240].mxu0 }
 0x527   : > { %v4279_v0 = vmax.f32 %v14841_v20, %v4075_v4  ;;  %v3136_v24 = vpop.f32.mrb[241].mxu0  ;;  %v3135_v32 = vadd.f32 %v3134_v35, %v13011_v9 }
 0x528   : > { %v4280_v58 = vmax.f32 %v14842_v22, %v4076_v53  ;;  %v3138_v38 = vpop.f32.mrb[242].mxu0  ;;  %v3137_v57 = vadd.f32 %v3136_v24, %v13013_v30 }
 0x529   : > { %v13366_v59 = vpack.c.bf16 %v4279_v0, %v4276_v10  ;;  %v3140_v26 = vpop.f32.mrb[243].mxu0  ;;  %v3139_v16 = vadd.f32 %v3138_v38, %v13011_v9  ;;  %v3673_v56 = vmax.f32 %v3135_v32, 0.0 }
 0x52a   : > { %v13368_v49 = vpack.c.bf16 %v4280_v58, %v4277_v17  ;;  %v3141_v25 = vadd.f32 %v3140_v26, %v13013_v30  ;;  %v3674_v53 = vmax.f32 %v3137_v57, 0.0 }
 0x52b   : > { %14843 = vst [vmem:[#allocation10_spill] sm:$0xff] %v13366_v59  ;;  %4892 = vmatprep.mubr.bf16.mxu1 %v13366_v59  ;;  %v3679_v0 = vmax.f32 %v3139_v16, 0.0 }
 0x52c   : > { %4893 = vmatmul.mubr.bf16.gmra.mrb[44].mxu1 %v14844_v27  ;;  %v3680_v58 = vmax.f32 %v3141_v25, 0.0  ;;  %v14845_v27 = vld [vmem:[#allocation32_spill] sm:$0xff] }
 0x52e   : > { %v3144_v43 = vpop.f32.mrb[244].mxu0 }
 0x52f   : > { %v3146_v48 = vpop.f32.mrb[245].mxu0  ;;  %v3145_v26 = vadd.f32 %v3144_v43, %v13011_v9 }
 0x530   : > { %v3148_v15 = vpop.f32.mrb[246].mxu0  ;;  %v3147_v32 = vadd.f32 %v3146_v48, %v13013_v30 }
 0x531   : > { %v3150_v46 = vpop.f32.mrb[247].mxu0 }
 0x536   : > { %v3154_v2 = vpop.f32.mrb[248].mxu0 }
 0x537   : > { %v3155_v5 = vadd.f32 %v3154_v2, %v13011_v9  ;;  %v3156_v29 = vpop.f32.mrb[249].mxu0 }
 0x538   : > { %v3157_v39 = vadd.f32 %v3156_v29, %v13013_v30  ;;  %v3158_v40 = vpop.f32.mrb[250].mxu0 }
 0x539   : > { %v3697_v10 = vmax.f32 %v3155_v5, 0.0  ;;  %v3159_v4 = vadd.f32 %v3158_v40, %v13011_v9  ;;  %v3160_v17 = vpop.f32.mrb[251].mxu0 }
 0x53a   : > { %v3698_v35 = vmax.f32 %v3157_v39, 0.0  ;;  %v3161_v20 = vadd.f32 %v3160_v17, %v13013_v30  ;;  %v3149_v39 = vadd.f32 %v3148_v15, %v13011_v9  ;;  %v14846_v17 = vld [vmem:[#allocation33_spill] sm:$0xff]  ;;  %v3686_v15 = vmax.f32 %v3147_v32, 0.0 }
 0x53b   : > { %v4081_v24 = vmax.f32 %v3673_v56, %v3697_v10  ;;  %v3703_v22 = vmax.f32 %v3159_v4, 0.0  ;;  %v3151_v10 = vadd.f32 %v3150_v46, %v13013_v30 }
 0x53c   : > { %v4082_v38 = vmax.f32 %v3674_v53, %v3698_v35  ;;  %v3704_v2 = vmax.f32 %v3161_v20, 0.0  ;;  %v3685_v53 = vmax.f32 %v3145_v26, 0.0  ;;  %v14847_v26 = vld [vmem:[#allocation34_spill] sm:$0xff] }
 0x53d   : > { %v4282_v29 = vmax.f32 %v14845_v27, %v4081_v24  ;;  %v4087_v59 = vmax.f32 %v3679_v0, %v3703_v22  ;;  %v3691_v22 = vmax.f32 %v3149_v39, 0.0 }
 0x53e   : > { %v4283_v5 = vmax.f32 %v12701_v45, %v4082_v38  ;;  %v4088_v40 = vmax.f32 %v3680_v58, %v3704_v2  ;;  %v3164_v57 = vpop.f32.mrb[252].mxu0 }
 0x53f   : > { %v4285_v16 = vmax.f32 %v14846_v17, %v4087_v59  ;;  %v3165_v56 = vadd.f32 %v3164_v57, %v13011_v9  ;;  %v3166_v25 = vpop.f32.mrb[253].mxu0  ;;  %v14848_v17 = vld [vmem:[#allocation35_spill] sm:$0xff] }
 0x540   : > { %v4286_v43 = vmax.f32 %v12707_v7, %v4088_v40  ;;  %v3167_v27 = vadd.f32 %v3166_v25, %v13013_v30  ;;  %v3168_v4 = vpop.f32.mrb[254].mxu0  ;;  %v3692_v7 = vmax.f32 %v3151_v10, 0.0 }
 0x541   : > { %v13390_v48 = vpack.c.bf16 %v4285_v16, %v4282_v29  ;;  %v3709_v45 = vmax.f32 %v3165_v56, 0.0  ;;  %v3169_v35 = vadd.f32 %v3168_v4, %v13011_v9  ;;  %v3170_v20 = vpop.f32.mrb[255].mxu0 }
 0x542   : > { %v13393_v0 = vpack.c.bf16 %v4286_v43, %v4283_v5  ;;  %v3710_v59 = vmax.f32 %v3167_v27, 0.0  ;;  %v3171_v24 = vadd.f32 %v3170_v20, %v13013_v30 }
 0x543   : > { %v4093_v46 = vmax.f32 %v3685_v53, %v3709_v45  ;;  %v3715_v58 = vmax.f32 %v3169_v35, 0.0  ;;  %4902 = vmatprep.mubr.bf16.mxu1 %v13390_v48 }
 0x544   : > { %v4094_v38 = vmax.f32 %v3686_v15, %v3710_v59  ;;  %v3716_v2 = vmax.f32 %v3171_v24, 0.0  ;;  %4903 = vmatmul.mubr.bf16.gmra.mrb[48].mxu1 %v12717_v6 }
 0x545   : > { %v4288_v29 = vmax.f32 %v14847_v26, %v4093_v46  ;;  %v4099_v40 = vmax.f32 %v3691_v22, %v3715_v58 }
 0x546   : > { %v4289_v32 = vmax.f32 %v12723_v51, %v4094_v38  ;;  %v4100_v5 = vmax.f32 %v3692_v7, %v3716_v2  ;;  %v3174_v57 = vpop.f32.mrb[0].mxu0 }
 0x547   : > { %v4291_v16 = vmax.f32 %v14848_v17, %v4099_v40  ;;  %v3176_v56 = vpop.f32.mrb[1].mxu0  ;;  %v3175_v35 = vadd.f32 %v3174_v57, %v13011_v9 }
 0x548   : > { %v4292_v39 = vmax.f32 %v12731_v60, %v4100_v5  ;;  %v3178_v25 = vpop.f32.mrb[2].mxu0  ;;  %v3177_v20 = vadd.f32 %v3176_v56, %v13013_v30 }
 0x549   : > { %v13402_v43 = vpack.c.bf16 %v4291_v16, %v4288_v29  ;;  %v3180_v10 = vpop.f32.mrb[3].mxu0  ;;  %v3179_v60 = vadd.f32 %v3178_v25, %v13011_v9  ;;  %v3721_v7 = vmax.f32 %v3175_v35, 0.0 }
 0x54a   : > { %v13404_v27 = vpack.c.bf16 %v4292_v39, %v4289_v32  ;;  %v3181_v22 = vadd.f32 %v3180_v10, %v13013_v30  ;;  %v3722_v29 = vmax.f32 %v3177_v20, 0.0  ;;  %v14849_v10 = vld [vmem:[#allocation36_spill] sm:$0xff] }
 0x54b   : > { %4912 = vmatprep.mubr.bf16.mxu1 %v13402_v43  ;;  %v3727_v5 = vmax.f32 %v3179_v60, 0.0 }
 0x54c   : > { %4913 = vmatmul.mubr.bf16.gmra.mrb[52].mxu1 %v12741_v31  ;;  %v3728_v16 = vmax.f32 %v3181_v22, 0.0 }
 0x54e   : > { %v3184_v4 = vpop.f32.mrb[4].mxu0 }
 0x54f   : > { %v3186_v53 = vpop.f32.mrb[5].mxu0  ;;  %v3185_v25 = vadd.f32 %v3184_v4, %v13011_v9 }
 0x550   : > { %v3188_v51 = vpop.f32.mrb[6].mxu0  ;;  %v3187_v35 = vadd.f32 %v3186_v53, %v13013_v30 }
 0x551   : > { %v3190_v45 = vpop.f32.mrb[7].mxu0 }
 0x556   : > { %v3194_v15 = vpop.f32.mrb[8].mxu0 }
 0x557   : > { %v3195_v59 = vadd.f32 %v3194_v15, %v13011_v9  ;;  %v3196_v24 = vpop.f32.mrb[9].mxu0 }
 0x558   : > { %v3197_v46 = vadd.f32 %v3196_v24, %v13013_v30  ;;  %v3198_v58 = vpop.f32.mrb[10].mxu0 }
 0x559   : > { %v3745_v38 = vmax.f32 %v3195_v59, 0.0  ;;  %v3199_v2 = vadd.f32 %v3198_v58, %v13011_v9  ;;  %v3200_v26 = vpop.f32.mrb[11].mxu0 }
 0x55a   : > { %v3746_v40 = vmax.f32 %v3197_v46, 0.0  ;;  %v3201_v32 = vadd.f32 %v3200_v26, %v13013_v30  ;;  %v3189_v46 = vadd.f32 %v3188_v51, %v13011_v9  ;;  %v14850_v26 = vld [vmem:[#allocation37_spill] sm:$0xff]  ;;  %v3734_v51 = vmax.f32 %v3187_v35, 0.0 }
 0x55b   : > { %v4105_v57 = vmax.f32 %v3721_v7, %v3745_v38  ;;  %v3751_v17 = vmax.f32 %v3199_v2, 0.0  ;;  %v3191_v38 = vadd.f32 %v3190_v45, %v13013_v30  ;;  %v14851_v2 = vld [vmem:[#allocation79_spill] sm:$0xff] }
 0x55c   : > { %v4106_v56 = vmax.f32 %v3722_v29, %v3746_v40  ;;  %v3752_v39 = vmax.f32 %v3201_v32, 0.0  ;;  %v3733_v32 = vmax.f32 %v3185_v25, 0.0 }
 0x55d   : > { %v4294_v15 = vmax.f32 %v14849_v10, %v4105_v57  ;;  %v4111_v24 = vmax.f32 %v3727_v5, %v3751_v17 }
 0x55e   : > { %v4295_v59 = vmax.f32 %v12784_v12, %v4106_v56  ;;  %v4112_v58 = vmax.f32 %v3728_v16, %v3752_v39  ;;  %v3204_v20 = vpop.f32.mrb[12].mxu0  ;;  %v3739_v39 = vmax.f32 %v3189_v46, 0.0  ;;  %v14857_v46 = vld [vmem:[#allocation82_spill] sm:$0xff] }
 0x55f   : > { %v4297_v60 = vmax.f32 %v14850_v26, %v4111_v24  ;;  %v3205_v7 = vadd.f32 %v3204_v20, %v13011_v9  ;;  %v3206_v22 = vpop.f32.mrb[13].mxu0  ;;  %v3740_v24 = vmax.f32 %v3191_v38, 0.0  ;;  %v14854_v20 = vld [vmem:[#allocation38_spill] sm:$0xff] }
 0x560   : > { %v4298_v4 = vmax.f32 %v14851_v2, %v4112_v58  ;;  %v3207_v29 = vadd.f32 %v3206_v22, %v13013_v30  ;;  %v3208_v40 = vpop.f32.mrb[14].mxu0  ;;  %v14856_v2 = vld [vmem:[#allocation40_spill] sm:$0xff] }
 0x561   : > { %v13426_v53 = vpack.c.bf16 %v4297_v60, %v4294_v15  ;;  %v3757_v12 = vmax.f32 %v3205_v7, 0.0  ;;  %v3209_v5 = vadd.f32 %v3208_v40, %v13011_v9  ;;  %v3210_v57 = vpop.f32.mrb[15].mxu0  ;;  %v14853_v15 = vld [vmem:[#allocation80_spill] sm:$0xff]  ;;  %v14855_v7 = vld [vmem:[#allocation81_spill] sm:$0xff] }
 0x562   : > { %v13429_v17 = vpack.c.bf16 %v4298_v4, %v4295_v59  ;;  %v3758_v16 = vmax.f32 %v3207_v29, 0.0  ;;  %v3211_v56 = vadd.f32 %v3210_v57, %v13013_v30  ;;  %v14859_v57 = vld [vmem:[#allocation39_spill] sm:$0xff] }
 0x563   : > { %14852 = vst [vmem:[#allocation11_spill] sm:$0xff] %v13426_v53  ;;  %v4117_v45 = vmax.f32 %v3733_v32, %v3757_v12  ;;  %v3763_v10 = vmax.f32 %v3209_v5, 0.0  ;;  %4922 = vmatprep.mubr.bf16.mxu1 %v13426_v53 }
 0x564   : > { %v4118_v58 = vmax.f32 %v3734_v51, %v3758_v16  ;;  %v3764_v25 = vmax.f32 %v3211_v56, 0.0  ;;  %4923 = vmatmul.mubr.bf16.gmra.mrb[56].mxu1 %v14853_v15  ;;  %v14669_v51 = vmov 0  }
 0x565   : > { %v4300_v26 = vmax.f32 %v14854_v20, %v4117_v45  ;;  %v4123_v60 = vmax.f32 %v3739_v39, %v3763_v10  ;;  %v10736_v45 = vld [vmem:[%s14633_s3] ss:$8 sps:$4 sm:$0xff]  }
 0x566   : > { %v4301_v35 = vmax.f32 %v14855_v7, %v4118_v58  ;;  %v4124_v59 = vmax.f32 %v3740_v24, %v3764_v25  ;;  %v3214_v22 = vpop.f32.mrb[16].mxu0  ;;  %v10741_v24 = vld [vmem:[%s14633_s3 + $0x14] ss:$8 sps:$4 sm:$0xff]  }
 0x567   : > { %v4303_v4 = vmax.f32 %v14856_v2, %v4123_v60  ;;  %v3216_v29 = vpop.f32.mrb[17].mxu0  ;;  %v3215_v58 = vadd.f32 %v3214_v22, %v13011_v9 }
 0x568   : > { %v4304_v40 = vmax.f32 %v14857_v46, %v4124_v59  ;;  %v3218_v32 = vpop.f32.mrb[18].mxu0  ;;  %v3217_v25 = vadd.f32 %v3216_v29, %v13013_v30 }
 0x569   : > { %v13438_v12 = vpack.c.bf16 %v4303_v4, %v4300_v26  ;;  %v3220_v38 = vpop.f32.mrb[19].mxu0  ;;  %v3219_v20 = vadd.f32 %v3218_v32, %v13011_v9  ;;  %v10739_v26 = vld [vmem:[%s14633_s3 + $0x10] ss:$8 sps:$4 sm:$0xff]   ;;  %v3769_v59 = vmax.f32 %v3215_v58, 0.0 }
 0x56a   : > { %v13440_v5 = vpack.c.bf16 %v4304_v40, %v4301_v35  ;;  %v3221_v60 = vadd.f32 %v3220_v38, %v13013_v30  ;;  %v10744_v35 = vld [vmem:[%s14633_s3 + $0x24] ss:$8 sps:$4 sm:$0xff]   ;;  %v3770_v4 = vmax.f32 %v3217_v25, 0.0  ;;  %v10742_v38 = vld [vmem:[%s14633_s3 + $0x20] ss:$8 sps:$4 sm:$0xff]  }
 0x56b   : > { %14858 = vst [vmem:[#allocation66_spill] sm:$0xff] %v13438_v12  ;;  %4932 = vmatprep.mubr.bf16.mxu1 %v13438_v12  ;;  %v3775_v40 = vmax.f32 %v3219_v20, 0.0  ;;  %v10747_v25 = vld [vmem:[%s14633_s3 + $0x34] ss:$8 sps:$4 sm:$0xff]  }
 0x56c   : > { %4933 = vmatmul.mubr.bf16.gmra.mrb[60].mxu1 %v14859_v57 }
 0x56d   : > { %4975 = vmatprep.mubr.bf16.mxu1 %v14669_v51 }
 0x56e   : > { %v3224_v16 = vpop.f32.mrb[20].mxu0 }
 0x56f   : > { %v3226_v56 = vpop.f32.mrb[21].mxu0  ;;  %v3225_v20 = vadd.f32 %v3224_v16, %v13011_v9  ;;  %v10745_v16 = vld [vmem:[%s14633_s3 + $0x30] ss:$8 sps:$4 sm:$0xff]  }
 0x570   : > { %v3228_v39 = vpop.f32.mrb[22].mxu0 }
 0x571   : > { %v3230_v10 = vpop.f32.mrb[23].mxu0 }
 0x574   : > { %4976 = vmatmul.mubr.bf16.vlgmr.msra.gmra.mrb[0].mxu1 %v13092_v50 }
 0x575   : > { %5377 = vmatpush1.bf16.msra.mxu1 %v10736_v45  ;;  %4985 = vmatprep.mubr.bf16.mxu1 %v14669_v51 }
 0x576   : > { %v3234_v7 = vpop.f32.mrb[24].mxu0  ;;  %5378 = vmatprep.subr.bf16.mxu1 %v10741_v24  ;;  %v3776_v24 = vmax.f32 %v3221_v60, 0.0  ;;  %v3229_v60 = vadd.f32 %v3228_v39, %v13011_v9  ;;  %v10750_v39 = vld [vmem:[%s14633_s3 + $0x44] ss:$8 sps:$4 sm:$0xff]  }
 0x577   : > { %v3235_v22 = vadd.f32 %v3234_v7, %v13011_v9  ;;  %v3236_v2 = vpop.f32.mrb[25].mxu0 }
 0x578   : > { %v3237_v29 = vadd.f32 %v3236_v2, %v13013_v30  ;;  %v3238_v46 = vpop.f32.mrb[26].mxu0  ;;  %v3227_v2 = vadd.f32 %v3226_v56, %v13013_v30 }
 0x579   : > { %v3793_v32 = vmax.f32 %v3235_v22, 0.0  ;;  %v3239_v45 = vadd.f32 %v3238_v46, %v13011_v9  ;;  %v3240_v51 = vpop.f32.mrb[27].mxu0  ;;  %5379 = vmatpush1.bf16.msra.mxu1 %v10739_v26 }
 0x57a   : > { %v3794_v57 = vmax.f32 %v3237_v29, 0.0  ;;  %v3241_v58 = vadd.f32 %v3240_v51, %v13013_v30  ;;  %5380 = vmatprep.subr.bf16.mxu1 %v10744_v35  ;;  %v14860_v29 = vld [vmem:[#allocation42_spill] sm:$0xff]  ;;  %v14861_v35 = vmov 0  }
 0x57b   : > { %v4129_v7 = vmax.f32 %v3769_v59, %v3793_v32  ;;  %v3799_v22 = vmax.f32 %v3239_v45, 0.0  ;;  %v3231_v59 = vadd.f32 %v3230_v10, %v13013_v30  ;;  %v14862_v32 = vld [vmem:[#allocation83_spill] sm:$0xff]  ;;  %v3781_v45 = vmax.f32 %v3225_v20, 0.0 }
 0x57c   : > { %v4130_v26 = vmax.f32 %v3770_v4, %v3794_v57  ;;  %v3800_v46 = vmax.f32 %v3241_v58, 0.0  ;;  %4986 = vmatmul.mubr.bf16.gmra.mrb[4].mxu1 %v13112_v14  ;;  %v10748_v20 = vld [vmem:[%s14633_s3 + $0x40] ss:$8 sps:$4 sm:$0xff]  }
 0x57d   : > { %v4306_v12 = vmax.f32 %v14860_v29, %v4129_v7  ;;  %v4135_v51 = vmax.f32 %v3775_v40, %v3799_v22  ;;  %4995 = vmatprep.mubr.bf16.mxu1 %v14861_v35  ;;  %5381 = vmatpush1.bf16.msra.mxu1 %v10742_v38  ;;  %v14863_v40 = vld [vmem:[#allocation44_spill] sm:$0xff]  ;;  %v3782_v22 = vmax.f32 %v3227_v2, 0.0 }
 0x57e   : > { %v4307_v56 = vmax.f32 %v14862_v32, %v4130_v26  ;;  %v4136_v57 = vmax.f32 %v3776_v24, %v3800_v46  ;;  %v3244_v4 = vpop.f32.mrb[28].mxu0  ;;  %5382 = vmatprep.subr.bf16.mxu1 %v10747_v25  ;;  %v14864_v29 = vld [vmem:[#allocation84_spill] sm:$0xff]  ;;  %v3787_v26 = vmax.f32 %v3229_v60, 0.0  ;;  %v3788_v32 = vmax.f32 %v3231_v59, 0.0  ;;  %v10753_v60 = vld [vmem:[%s14633_s3 + $0x54] ss:$8 sps:$4 sm:$0xff]  }
 0x57f   : > { %v4309_v58 = vmax.f32 %v14863_v40, %v4135_v51  ;;  %v3245_v38 = vadd.f32 %v3244_v4, %v13011_v9  ;;  %v3246_v7 = vpop.f32.mrb[29].mxu0  ;;  %v10751_v59 = vld [vmem:[%s14633_s3 + $0x50] ss:$8 sps:$4 sm:$0xff]  }
 0x580   : > { %v4310_v15 = vmax.f32 %v14864_v29, %v4136_v57  ;;  %v3247_v10 = vadd.f32 %v3246_v7, %v13013_v30  ;;  %v3248_v53 = vpop.f32.mrb[30].mxu0  ;;  %v14867_v7 = vld [vmem:[#allocation46_spill] sm:$0xff] }
 0x581   : > { %v3805_v24 = vmax.f32 %v3245_v38, 0.0  ;;  %v3249_v25 = vadd.f32 %v3248_v53, %v13011_v9  ;;  %v3250_v46 = vpop.f32.mrb[31].mxu0  ;;  %5383 = vmatpush1.bf16.msra.mxu1 %v10745_v16  ;;  %v13495_v51 = vpack.c.bf16 %v4309_v58, %v4306_v12 }
 0x582   : > { %v3806_v4 = vmax.f32 %v3247_v10, 0.0  ;;  %v3251_v2 = vadd.f32 %v3250_v46, %v13013_v30  ;;  %5384 = vmatprep.subr.bf16.mxu1 %v10750_v39  ;;  %v13501_v57 = vpack.c.bf16 %v4310_v15, %v4307_v56  ;;  %v14868_v39 = vld [vmem:[#allocation43_spill] sm:$0xff] }
 0x583   : > { %14865 = vst [vmem:[#allocation67_spill] sm:$0xff] %v13495_v51  ;;  %v4141_v53 = vmax.f32 %v3781_v45, %v3805_v24  ;;  %v3811_v40 = vmax.f32 %v3249_v25, 0.0  ;;  %v10756_v45 = vld [vmem:[%s14633_s3 + $0x64] ss:$8 sps:$4 sm:$0xff]  }
 0x584   : > { %14866 = vst [vmem:[#allocation12_spill] sm:$0xff] %v13501_v57  ;;  %v4142_v16 = vmax.f32 %v3782_v22, %v3806_v4  ;;  %v3812_v38 = vmax.f32 %v3251_v2, 0.0  ;;  %4996 = vmatmul.mubr.bf16.gmra.mrb[8].mxu1 %v13153_v21  ;;  %v14869_v22 = vld [vmem:[#allocation48_spill] sm:$0xff] }
 0x585   : > { %v4312_v12 = vmax.f32 %v14867_v7, %v4141_v53  ;;  %v4147_v58 = vmax.f32 %v3787_v26, %v3811_v40  ;;  %5005 = vmatprep.mubr.bf16.mxu1 %v14861_v35  ;;  %5385 = vmatpush1.bf16.msra.mxu1 %v10748_v20  ;;  %v14870_v26 = vld [vmem:[#allocation85_spill] sm:$0xff]  ;;  %v10754_v4 = vld [vmem:[%s14633_s3 + $0x60] ss:$8 sps:$4 sm:$0xff]  }
 0x586   : > { %v4313_v29 = vmax.f32 %v14868_v39, %v4142_v16  ;;  %v4148_v15 = vmax.f32 %v3788_v32, %v3812_v38  ;;  %v3254_v56 = vpop.f32.mrb[32].mxu0  ;;  %5386 = vmatprep.subr.bf16.mxu1 %v10753_v60  ;;  %v10759_v32 = vld [vmem:[%s14633_s3 + $0x74] ss:$8 sps:$4 sm:$0xff]   ;;  %v10757_v53 = vld [vmem:[%s14633_s3 + $0x70] ss:$8 sps:$4 sm:$0xff]  }
 0x587   : > { %v4315_v10 = vmax.f32 %v14869_v22, %v4147_v58  ;;  %v3256_v24 = vpop.f32.mrb[33].mxu0  ;;  %v10762_v16 = vld [vmem:[%s14633_s3 + $0x84] ss:$8 sps:$4 sm:$0xff]   ;;  %v10760_v58 = vld [vmem:[%s14633_s3 + $0x80] ss:$8 sps:$4 sm:$0xff]   ;;  %v3255_v39 = vadd.f32 %v3254_v56, %v13011_v9 }
 0x588   : > { %v4316_v25 = vmax.f32 %v14870_v26, %v4148_v15  ;;  %v3258_v46 = vpop.f32.mrb[34].mxu0  ;;  %v10768_v56 = vld [vmem:[%s14633_s3 + $0xa4] ss:$8 sps:$4 sm:$0xff]  }
 0x589   : > { %v3260_v20 = vpop.f32.mrb[35].mxu0  ;;  %5387 = vmatpush1.bf16.msra.mxu1 %v10751_v59  ;;  %v13518_v2 = vpack.c.bf16 %v4315_v10, %v4312_v12  ;;  %v10765_v59 = vld [vmem:[%s14633_s3 + $0x94] ss:$8 sps:$4 sm:$0xff]   ;;  %v3259_v15 = vadd.f32 %v3258_v46, %v13011_v9 }
 0x58a   : > { %5388 = vmatprep.subr.bf16.mxu1 %v10756_v45  ;;  %v13523_v60 = vpack.c.bf16 %v4316_v25, %v4313_v29  ;;  %v3257_v29 = vadd.f32 %v3256_v24, %v13013_v30  ;;  %v10763_v45 = vld [vmem:[%s14633_s3 + $0x90] ss:$8 sps:$4 sm:$0xff]   ;;  %v3261_v22 = vadd.f32 %v3260_v20, %v13013_v30  ;;  %v3817_v24 = vmax.f32 %v3255_v39, 0.0  ;;  %v10766_v20 = vld [vmem:[%s14633_s3 + $0xa0] ss:$8 sps:$4 sm:$0xff]  }
 0x58b   : > { %14871 = vst [vmem:[#allocation13_spill] sm:$0xff] %v13518_v2 }
 0x58c   : > { %14872 = vst [vmem:[#allocation14_spill] sm:$0xff] %v13523_v60  ;;  %5006 = vmatmul.mubr.bf16.gmra.mrb[12].mxu1 %v13172_v13  ;;  %v3818_v46 = vmax.f32 %v3257_v29, 0.0  ;;  %v10771_v29 = vld [vmem:[%s14633_s3 + $0xb4] ss:$8 sps:$4 sm:$0xff]  }
 0x58d   : > { %5015 = vmatprep.mubr.bf16.mxu1 %v14861_v35  ;;  %5389 = vmatpush1.bf16.msra.mxu1 %v10754_v4 }
 0x58e   : > { %v3264_v40 = vpop.f32.mrb[36].mxu0  ;;  %5390 = vmatprep.subr.bf16.mxu1 %v10759_v32 }
 0x58f   : > { %v3266_v38 = vpop.f32.mrb[37].mxu0 }
 0x590   : > { %v3268_v7 = vpop.f32.mrb[38].mxu0 }
 0x591   : > { %v3270_v12 = vpop.f32.mrb[39].mxu0  ;;  %5391 = vmatpush1.bf16.msra.mxu1 %v10757_v53  ;;  %v3823_v53 = vmax.f32 %v3259_v15, 0.0  ;;  %v3265_v15 = vadd.f32 %v3264_v40, %v13011_v9  ;;  %v10769_v40 = vld [vmem:[%s14633_s3 + $0xb0] ss:$8 sps:$4 sm:$0xff]  }
 0x592   : > { %5392 = vmatprep.subr.bf16.mxu1 %v10762_v16 }
 0x594   : > { %5016 = vmatmul.mubr.bf16.gmra.mrb[16].mxu1 %v13212_v33 }
 0x595   : > { %5025 = vmatprep.mubr.bf16.mxu1 %v14861_v35  ;;  %5393 = vmatpush1.bf16.msra.mxu1 %v10760_v58 }
 0x596   : > { %v3274_v10 = vpop.f32.mrb[40].mxu0  ;;  %5394 = vmatprep.subr.bf16.mxu1 %v10765_v59  ;;  %v3824_v59 = vmax.f32 %v3261_v22, 0.0  ;;  %v3269_v22 = vadd.f32 %v3268_v7, %v13011_v9  ;;  %v10774_v7 = vld [vmem:[%s14633_s3 + $0xc4] ss:$8 sps:$4 sm:$0xff]  }
 0x597   : > { %v3275_v26 = vadd.f32 %v3274_v10, %v13011_v9  ;;  %v3276_v25 = vpop.f32.mrb[41].mxu0 }
 0x598   : > { %v3277_v4 = vadd.f32 %v3276_v25, %v13013_v30  ;;  %v3278_v32 = vpop.f32.mrb[42].mxu0  ;;  %v3267_v25 = vadd.f32 %v3266_v38, %v13013_v30 }
 0x599   : > { %v3841_v16 = vmax.f32 %v3275_v26, 0.0  ;;  %v3279_v58 = vadd.f32 %v3278_v32, %v13011_v9  ;;  %v3280_v60 = vpop.f32.mrb[43].mxu0  ;;  %5395 = vmatpush1.bf16.msra.mxu1 %v10763_v45 }
 0x59a   : > { %v3842_v57 = vmax.f32 %v3277_v4, 0.0  ;;  %v3281_v39 = vadd.f32 %v3280_v60, %v13013_v30  ;;  %5396 = vmatprep.subr.bf16.mxu1 %v10768_v56  ;;  %v14873_v4 = vld [vmem:[#allocation50_spill] sm:$0xff]  ;;  %v3271_v56 = vadd.f32 %v3270_v12, %v13013_v30 }
 0x59b   : > { %v4153_v10 = vmax.f32 %v3817_v24, %v3841_v16  ;;  %v3847_v26 = vmax.f32 %v3279_v58, 0.0  ;;  %v14874_v24 = vld [vmem:[#allocation47_spill] sm:$0xff]  ;;  %v3829_v16 = vmax.f32 %v3265_v15, 0.0 }
 0x59c   : > { %v4154_v45 = vmax.f32 %v3818_v46, %v3842_v57  ;;  %v3848_v32 = vmax.f32 %v3281_v39, 0.0  ;;  %5026 = vmatmul.mubr.bf16.gmra.mrb[20].mxu1 %v13226_v19  ;;  %v10772_v15 = vld [vmem:[%s14633_s3 + $0xc0] ss:$8 sps:$4 sm:$0xff]  }
 0x59d   : > { %v4318_v2 = vmax.f32 %v14873_v4, %v4153_v10  ;;  %v4159_v60 = vmax.f32 %v3823_v53, %v3847_v26  ;;  %5035 = vmatprep.mubr.bf16.mxu1 %v14861_v35  ;;  %5397 = vmatpush1.bf16.msra.mxu1 %v10766_v20  ;;  %v14875_v53 = vld [vmem:[#allocation52_spill] sm:$0xff]  ;;  %v3830_v10 = vmax.f32 %v3267_v25, 0.0  ;;  %v14876_v26 = vld [vmem:[#allocation86_spill] sm:$0xff] }
 0x59e   : > { %v4319_v38 = vmax.f32 %v14874_v24, %v4154_v45  ;;  %v4160_v57 = vmax.f32 %v3824_v59, %v3848_v32  ;;  %v3284_v46 = vpop.f32.mrb[44].mxu0  ;;  %5398 = vmatprep.subr.bf16.mxu1 %v10771_v29  ;;  %v3835_v45 = vmax.f32 %v3269_v22, 0.0  ;;  %v3836_v24 = vmax.f32 %v3271_v56, 0.0  ;;  %v10777_v22 = vld [vmem:[%s14633_s3 + $0xd4] ss:$8 sps:$4 sm:$0xff]  }
 0x59f   : > { %v4321_v58 = vmax.f32 %v14875_v53, %v4159_v60  ;;  %v3285_v20 = vadd.f32 %v3284_v46, %v13011_v9  ;;  %v3286_v39 = vpop.f32.mrb[45].mxu0  ;;  %v10775_v56 = vld [vmem:[%s14633_s3 + $0xd0] ss:$8 sps:$4 sm:$0xff]  }
 0x5a0   : > { %v4322_v4 = vmax.f32 %v14876_v26, %v4160_v57  ;;  %v3287_v12 = vadd.f32 %v3286_v39, %v13013_v30  ;;  %v3288_v51 = vpop.f32.mrb[46].mxu0  ;;  %v14879_v39 = vld [vmem:[#allocation54_spill] sm:$0xff] }
 0x5a1   : > { %v3853_v59 = vmax.f32 %v3285_v20, 0.0  ;;  %v3289_v29 = vadd.f32 %v3288_v51, %v13011_v9  ;;  %v3290_v32 = vpop.f32.mrb[47].mxu0  ;;  %5399 = vmatpush1.bf16.msra.mxu1 %v10769_v40  ;;  %v13583_v60 = vpack.c.bf16 %v4321_v58, %v4318_v2 }
 0x5a2   : > { %v3854_v46 = vmax.f32 %v3287_v12, 0.0  ;;  %v3291_v25 = vadd.f32 %v3290_v32, %v13013_v30  ;;  %5400 = vmatprep.subr.bf16.mxu1 %v10774_v7  ;;  %v13589_v57 = vpack.c.bf16 %v4322_v4, %v4319_v38  ;;  %v14880_v7 = vld [vmem:[#allocation51_spill] sm:$0xff] }
 0x5a3   : > { %14877 = vst [vmem:[#allocation15_spill] sm:$0xff] %v13583_v60  ;;  %v4165_v51 = vmax.f32 %v3829_v16, %v3853_v59  ;;  %v3859_v53 = vmax.f32 %v3289_v29, 0.0  ;;  %v10780_v16 = vld [vmem:[%s14633_s3 + $0xe4] ss:$8 sps:$4 sm:$0xff]  }
 0x5a4   : > { %14878 = vst [vmem:[#allocation68_spill] sm:$0xff] %v13589_v57  ;;  %v4166_v40 = vmax.f32 %v3830_v10, %v3854_v46  ;;  %v3860_v20 = vmax.f32 %v3291_v25, 0.0  ;;  %5036 = vmatmul.mubr.bf16.gmra.mrb[24].mxu1 %v13272_v42  ;;  %v14881_v10 = vld [vmem:[#allocation56_spill] sm:$0xff] }
 0x5a5   : > { %v4324_v2 = vmax.f32 %v14879_v39, %v4165_v51  ;;  %v4171_v58 = vmax.f32 %v3835_v45, %v3859_v53  ;;  %5045 = vmatprep.mubr.bf16.mxu1 %v14861_v35  ;;  %5401 = vmatpush1.bf16.msra.mxu1 %v10772_v15  ;;  %v14882_v45 = vld [vmem:[#allocation87_spill] sm:$0xff]  ;;  %v10781_v51 = vld [vmem:[%s14633_s3 + $0xf0] ss:$8 sps:$4 sm:$0xff]   ;;  %v14888_v60 = vld [vmem:[#allocation88_spill] sm:$0xff] }
 0x5a6   : > { %v4325_v26 = vmax.f32 %v14880_v7, %v4166_v40  ;;  %v4172_v38 = vmax.f32 %v3836_v24, %v3860_v20  ;;  %v3294_v4 = vpop.f32.mrb[48].mxu0  ;;  %5402 = vmatprep.subr.bf16.mxu1 %v10777_v22  ;;  %v10778_v46 = vld [vmem:[%s14633_s3 + $0xe0] ss:$8 sps:$4 sm:$0xff]   ;;  %v10783_v24 = vld [vmem:[%s14633_s3 + $0xf4] ss:$8 sps:$4 sm:$0xff]  }
 0x5a7   : > { %v4327_v12 = vmax.f32 %v14881_v10, %v4171_v58  ;;  %v3296_v59 = vpop.f32.mrb[49].mxu0  ;;  %v10786_v40 = vld [vmem:[%s14633_s3 + $0x104] ss:$8 sps:$4 sm:$0xff]   ;;  %v3295_v58 = vadd.f32 %v3294_v4, %v13011_v9 }
 0x5a8   : > { %v4328_v29 = vmax.f32 %v14882_v45, %v4172_v38  ;;  %v3298_v32 = vpop.f32.mrb[50].mxu0 }
 0x5a9   : > { %v3300_v15 = vpop.f32.mrb[51].mxu0  ;;  %5403 = vmatpush1.bf16.msra.mxu1 %v10775_v56  ;;  %v13606_v25 = vpack.c.bf16 %v4327_v12, %v4324_v2  ;;  %v3297_v56 = vadd.f32 %v3296_v59, %v13013_v30  ;;  %v3299_v7 = vadd.f32 %v3298_v32, %v13011_v9 }
 0x5aa   : > { %5404 = vmatprep.subr.bf16.mxu1 %v10780_v16  ;;  %v13611_v22 = vpack.c.bf16 %v4328_v29, %v4325_v26  ;;  %v3301_v26 = vadd.f32 %v3300_v15, %v13013_v30  ;;  %v3865_v16 = vmax.f32 %v3295_v58, 0.0 }
 0x5ab   : > { %14883 = vst [vmem:[#allocation16_spill] sm:$0xff] %v13606_v25  ;;  %v3866_v45 = vmax.f32 %v3297_v56, 0.0  ;;  %v3871_v4 = vmax.f32 %v3299_v7, 0.0 }
 0x5ac   : > { %14884 = vst [vmem:[#allocation17_spill] sm:$0xff] %v13611_v22  ;;  %5046 = vmatmul.mubr.bf16.gmra.mrb[28].mxu1 %v13286_v3 }
 0x5ad   : > { %5055 = vmatprep.mubr.bf16.mxu1 %v14861_v35  ;;  %5405 = vmatpush1.bf16.msra.mxu1 %v10778_v46 }
 0x5ae   : > { %v3304_v53 = vpop.f32.mrb[52].mxu0  ;;  %5406 = vmatprep.subr.bf16.mxu1 %v10783_v24 }
 0x5af   : > { %v3306_v20 = vpop.f32.mrb[53].mxu0  ;;  %v3305_v15 = vadd.f32 %v3304_v53, %v13011_v9 }
 0x5b0   : > { %v3308_v39 = vpop.f32.mrb[54].mxu0 }
 0x5b1   : > { %v3310_v2 = vpop.f32.mrb[55].mxu0  ;;  %5407 = vmatpush1.bf16.msra.mxu1 %v10781_v51  ;;  %v3309_v7 = vadd.f32 %v3308_v39, %v13011_v9 }
 0x5b2   : > { %5569 = vmatprep.subr.bf16.mxu1 %v10786_v40  ;;  %v3872_v40 = vmax.f32 %v3301_v26, 0.0  ;;  %v3311_v26 = vadd.f32 %v3310_v2, %v13013_v30 }
 0x5b4   : > { %5056 = vmatmul.mubr.bf16.gmra.mrb[32].mxu1 %v13321_v11 }
 0x5b5   : > { %5065 = vmatprep.mubr.bf16.mxu1 %v14861_v35 }
 0x5b6   : > { %v3314_v38 = vpop.f32.mrb[56].mxu0 }
 0x5b7   : > { %v3315_v10 = vadd.f32 %v3314_v38, %v13011_v9  ;;  %v3316_v12 = vpop.f32.mrb[57].mxu0  ;;  %v3307_v38 = vadd.f32 %v3306_v20, %v13013_v30 }
 0x5b8   : > { %v3317_v29 = vadd.f32 %v3316_v12, %v13013_v30  ;;  %v3318_v46 = vpop.f32.mrb[58].mxu0 }
 0x5b9   : > { %v3889_v24 = vmax.f32 %v3315_v10, 0.0  ;;  %v3319_v59 = vadd.f32 %v3318_v46, %v13011_v9  ;;  %v3320_v51 = vpop.f32.mrb[59].mxu0  ;;  %v14885_v10 = vld [vmem:[#allocation57_spill] sm:$0xff] }
 0x5ba   : > { %v3890_v32 = vmax.f32 %v3317_v29, 0.0  ;;  %v3321_v22 = vadd.f32 %v3320_v51, %v13013_v30  ;;  %v14886_v29 = vld [vmem:[#allocation55_spill] sm:$0xff] }
 0x5bb   : > { %v4177_v57 = vmax.f32 %v3865_v16, %v3889_v24  ;;  %v3895_v58 = vmax.f32 %v3319_v59, 0.0  ;;  %v3877_v24 = vmax.f32 %v3305_v15, 0.0  ;;  %v14887_v59 = vld [vmem:[#allocation59_spill] sm:$0xff] }
 0x5bc   : > { %v4178_v25 = vmax.f32 %v3866_v45, %v3890_v32  ;;  %v3896_v56 = vmax.f32 %v3321_v22, 0.0  ;;  %5066 = vmatmul.mubr.bf16.gmra.mrb[36].mxu1 %v13332_v47  ;;  %v3878_v32 = vmax.f32 %v3307_v38, 0.0 }
 0x5bd   : > { %v4330_v12 = vmax.f32 %v14885_v10, %v4177_v57  ;;  %v4183_v46 = vmax.f32 %v3871_v4, %v3895_v58  ;;  %5075 = vmatprep.mubr.bf16.mxu1 %v14861_v35  ;;  %v3883_v58 = vmax.f32 %v3309_v7, 0.0 }
 0x5be   : > { %v4331_v51 = vmax.f32 %v14886_v29, %v4178_v25  ;;  %v4184_v53 = vmax.f32 %v3872_v40, %v3896_v56  ;;  %v3324_v16 = vpop.f32.mrb[60].mxu0  ;;  %v3884_v40 = vmax.f32 %v3311_v26, 0.0  ;;  %v14891_v26 = vld [vmem:[#allocation63_spill] sm:$0xff] }
 0x5bf   : > { %v4333_v20 = vmax.f32 %v14887_v59, %v4183_v46  ;;  %v3325_v22 = vadd.f32 %v3324_v16, %v13011_v9  ;;  %v3326_v45 = vpop.f32.mrb[61].mxu0 }
 0x5c0   : > { %v4334_v39 = vmax.f32 %v14888_v60, %v4184_v53  ;;  %v3327_v57 = vadd.f32 %v3326_v45, %v13013_v30  ;;  %v3328_v4 = vpop.f32.mrb[62].mxu0  ;;  %v14889_v53 = vld [vmem:[#allocation61_spill] sm:$0xff]  ;;  %v14892_v45 = vld [vmem:[#allocation90_spill] sm:$0xff] }
 0x5c1   : > { %v3901_v10 = vmax.f32 %v3325_v22, 0.0  ;;  %v3329_v2 = vadd.f32 %v3328_v4, %v13011_v9  ;;  %v3330_v47 = vpop.f32.mrb[63].mxu0  ;;  %v13644_v25 = vpack.c.bf16 %v4333_v20, %v4330_v12  ;;  %v14890_v9 = vld [vmem:[#allocation89_spill] sm:$0xff]  ;;  %v10790_v4 = vld [vmem:[%s14633_s3 + $0x120] ss:$8 sps:$4 sm:$0xff]  }
 0x5c2   : > { %v3902_v15 = vmax.f32 %v3327_v57, 0.0  ;;  %v3331_v56 = vadd.f32 %v3330_v47, %v13013_v30  ;;  %v13647_v46 = vpack.c.bf16 %v4334_v39, %v4331_v51  ;;  %v14893_v39 = vld [vmem:[#allocation64_spill] sm:$0xff]  ;;  %v10787_v57 = vld [vmem:[%s14633_s3 + $0x110] ss:$8 sps:$4 sm:$0xff]  }
 0x5c3   : > { %v4189_v29 = vmax.f32 %v3877_v24, %v3901_v10  ;;  %v3907_v38 = vmax.f32 %v3329_v2, 0.0  ;;  %v10784_v24 = vld [vmem:[%s14633_s3 + $0x100] ss:$8 sps:$4 sm:$0xff]   ;;  %v10793_v10 = vld [vmem:[%s14633_s3 + $0x130] ss:$8 sps:$4 sm:$0xff]  }
 0x5c4   : > { %v4190_v16 = vmax.f32 %v3878_v32, %v3902_v15  ;;  %v3908_v60 = vmax.f32 %v3331_v56, 0.0  ;;  %5076 = vmatmul.mubr.bf16.gmra.mrb[40].mxu1 %v13357_v61  ;;  %v10789_v32 = vld [vmem:[%s14633_s3 + $0x114] ss:$8 sps:$4 sm:$0xff]   ;;  %v10798_v2 = vld [vmem:[%s14633_s3 + $0x144] ss:$8 sps:$4 sm:$0xff]  }
 0x5c5   : > { %v4336_v7 = vmax.f32 %v14889_v53, %v4189_v29  ;;  %v4195_v59 = vmax.f32 %v3883_v58, %v3907_v38  ;;  %5085 = vmatprep.mubr.bf16.mxu1 %v14861_v35  ;;  %v14894_v58 = vld [vmem:[#allocation65_spill] sm:$0xff]  ;;  %v10804_v56 = vld [vmem:[%s14633_s3 + $0x164] ss:$8 sps:$4 sm:$0xff]   ;;  %v10802_v29 = vld [vmem:[%s14633_s3 + $0x160] ss:$8 sps:$4 sm:$0xff]  }
 0x5c6   : > { %v4337_v12 = vmax.f32 %v14890_v9, %v4190_v16  ;;  %v4196_v20 = vmax.f32 %v3884_v40, %v3908_v60  ;;  %v10796_v40 = vld [vmem:[%s14633_s3 + $0x140] ss:$8 sps:$4 sm:$0xff]   ;;  %v10799_v15 = vld [vmem:[%s14633_s3 + $0x150] ss:$8 sps:$4 sm:$0xff]   ;;  %v10810_v38 = vld [vmem:[%s14633_s3 + $0x304] ss:$8 sps:$4 sm:$0xff]  }
 0x5c7   : > { %v4339_v22 = vmax.f32 %v14891_v26, %v4195_v59  ;;  %v14895_v16 = vld [vmem:[#allocation5_spill] sm:$0xff]  ;;  %v14898_v53 = vld [vmem:[#allocation71_spill] sm:$0xff]  ;;  %v14901_v9 = vld [vmem:[#allocation74_spill] sm:$0xff] }
 0x5c8   : > { %v4340_v30 = vmax.f32 %v14892_v45, %v4196_v20  ;;  %v14896_v60 = vld [vmem:[#allocation69_spill] sm:$0xff]  ;;  %v14900_v59 = vld [vmem:[#allocation7_spill] sm:$0xff]  ;;  %v14903_v20 = vld [vmem:[#allocation76_spill] sm:$0xff] }
 0x5c9   : > { %v13655_v47 = vpack.c.bf16 %v4339_v22, %v4336_v7  ;;  %v14899_v7 = vld [vmem:[#allocation72_spill] sm:$0xff]  ;;  %v14904_v26 = vld [vmem:[#allocation10_spill] sm:$0xff] }
 0x5ca   : > { %v13657_v51 = vpack.c.bf16 %v4340_v30, %v4337_v12  ;;  %v14902_v12 = vld [vmem:[#allocation8_spill] sm:$0xff]  ;;  %v14905_v22 = vld [vmem:[#allocation78_spill] sm:$0xff] }
 0x5cb   : > { %v10808_v45 = vld [vmem:[%s14633_s3 + $0x300] ss:$8 sps:$4 sm:$0xff]   ;;  %v10813_v30 = vld [vmem:[%s14633_s3 + $0x314] ss:$8 sps:$4 sm:$0xff]  }
 0x5cc   : > { %5086 = vmatmul.mubr.bf16.gmra.mrb[44].mxu1 %v13368_v49 }
 0x5cd   : > { %5095 = vmatprep.mubr.bf16.mxu1 %v14861_v35 }
 0x5d4   : > { %5096 = vmatmul.mubr.bf16.gmra.mrb[48].mxu1 %v13393_v0 }
 0x5d5   : > { %5105 = vmatprep.mubr.bf16.mxu1 %v14861_v35 }
 0x5dc   : > { %5106 = vmatmul.mubr.bf16.gmra.mrb[52].mxu1 %v13404_v27 }
 0x5dd   : > { %5115 = vmatprep.mubr.bf16.mxu1 %v14861_v35 }
 0x5e4   : > { %5116 = vmatmul.mubr.bf16.gmra.mrb[56].mxu1 %v13429_v17 }
 0x5e5   : > { %5125 = vmatprep.mubr.bf16.mxu1 %v14861_v35 }
 0x5ec   : > { %5126 = vmatmul.mubr.bf16.gmra.mrb[60].mxu1 %v13440_v5 }
 0x5ed   : > { %5408 = vmatprep.mubr.bf16.mxu1 %v13040_v44  ;;  %v10792_v44 = vld [vmem:[%s14633_s3 + $0x124] ss:$8 sps:$4 sm:$0xff]  }
 0x5f4   : > { %5409 = vmatmul.mubr.bf16.vlgmr.msra.gmra.mrb[0].mxu1 %v14893_v39  ;;  %v10816_v39 = vld [vmem:[%s14633_s3 + $0x324] ss:$8 sps:$4 sm:$0xff]  }
 0x5f5   : > { %5418 = vmatprep.mubr.bf16.mxu1 %v13052_v36  ;;  %5570 = vmatpush1.bf16.msra.mxu1 %v10784_v24  ;;  %v10795_v36 = vld [vmem:[%s14633_s3 + $0x134] ss:$8 sps:$4 sm:$0xff]  }
 0x5f6   : > { %5571 = vmatprep.subr.bf16.mxu1 %v10789_v32  ;;  %v14906_v24 = vld [vmem:[#allocation62_spill] sm:$0xff] }
 0x5f7   : > { %v10811_v32 = vld [vmem:[%s14633_s3 + $0x310] ss:$8 sps:$4 sm:$0xff]  }
 0x5f9   : > { %5572 = vmatpush1.bf16.msra.mxu1 %v10787_v57  ;;  %v10814_v57 = vld [vmem:[%s14633_s3 + $0x320] ss:$8 sps:$4 sm:$0xff]  }
 0x5fa   : > { %5573 = vmatprep.subr.bf16.mxu1 %v10792_v44  ;;  %v10819_v44 = vld [vmem:[%s14633_s3 + $0x334] ss:$8 sps:$4 sm:$0xff]  }
 0x5fc   : > { %5419 = vmatmul.mubr.bf16.gmra.mrb[4].mxu1 %v14894_v58  ;;  %v10822_v58 = vld [vmem:[%s14633_s3 + $0x344] ss:$8 sps:$4 sm:$0xff]  }
 0x5fd   : > { %5428 = vmatprep.mubr.bf16.mxu1 %v13087_v28  ;;  %5574 = vmatpush1.bf16.msra.mxu1 %v10790_v4  ;;  %v10801_v28 = vld [vmem:[%s14633_s3 + $0x154] ss:$8 sps:$4 sm:$0xff]   ;;  %v14907_v4 = vld [vmem:[#allocation4_spill] sm:$0xff] }
 0x5fe   : > { %5575 = vmatprep.subr.bf16.mxu1 %v10795_v36  ;;  %v10817_v36 = vld [vmem:[%s14633_s3 + $0x330] ss:$8 sps:$4 sm:$0xff]  }
 0x601   : > { %5576 = vmatpush1.bf16.msra.mxu1 %v10793_v10  ;;  %v10820_v10 = vld [vmem:[%s14633_s3 + $0x340] ss:$8 sps:$4 sm:$0xff]  }
 0x602   : > { %5577 = vmatprep.subr.bf16.mxu1 %v10798_v2  ;;  %v10825_v2 = vld [vmem:[%s14633_s3 + $0x354] ss:$8 sps:$4 sm:$0xff]  }
 0x604   : > { %5429 = vmatmul.mubr.bf16.gmra.mrb[8].mxu1 %v12454_v34  ;;  %v10807_v34 = vld [vmem:[%s14633_s3 + $0x174] ss:$8 sps:$4 sm:$0xff]  }
 0x605   : > { %5438 = vmatprep.mubr.bf16.mxu1 %v13104_v62  ;;  %5578 = vmatpush1.bf16.msra.mxu1 %v10796_v40  ;;  %v10805_v62 = vld [vmem:[%s14633_s3 + $0x170] ss:$8 sps:$4 sm:$0xff]  }
 0x606   : > { %5579 = vmatprep.subr.bf16.mxu1 %v10801_v28  ;;  %v10823_v40 = vld [vmem:[%s14633_s3 + $0x350] ss:$8 sps:$4 sm:$0xff]   ;;  %v10828_v28 = vld [vmem:[%s14633_s3 + $0x364] ss:$8 sps:$4 sm:$0xff]  }
 0x609   : > { %5580 = vmatpush1.bf16.msra.mxu1 %v10799_v15  ;;  %v10826_v15 = vld [vmem:[%s14633_s3 + $0x360] ss:$8 sps:$4 sm:$0xff]  }
 0x60a   : > { %5581 = vmatprep.subr.bf16.mxu1 %v10804_v56  ;;  %v10829_v56 = vld [vmem:[%s14633_s3 + $0x370] ss:$8 sps:$4 sm:$0xff]  }
 0x60c   : > { %5439 = vmatmul.mubr.bf16.gmra.mrb[12].mxu1 %v14808_v41  ;;  %v14897_v41 = vld [vmem:[#allocation6_spill] sm:$0xff] }
 0x60d   : > { %5448 = vmatprep.mubr.bf16.mxu1 %v13150_v8  ;;  %5582 = vmatpush1.bf16.msra.mxu1 %v10802_v29  ;;  %v10834_v29 = vld [vmem:[%s14633_s3 + $0x384] ss:$8 sps:$4 sm:$0xff]  }
 0x60e   : > { %5583 = vmatprep.subr.bf16.mxu1 %v10807_v34  ;;  %v10832_v34 = vld [vmem:[%s14633_s3 + $0x380] ss:$8 sps:$4 sm:$0xff]  }
 0x611   : > { %5584 = vmatpush1.bf16.msra.mxu1 %v10805_v62  ;;  %v10835_v62 = vld [vmem:[%s14633_s3 + $0x390] ss:$8 sps:$4 sm:$0xff]  }
 0x612   : > { %6051 = vmatprep.subr.bf16.mxu1 %v10810_v38  ;;  %v10840_v38 = vld [vmem:[%s14633_s3 + $0x3a4] ss:$8 sps:$4 sm:$0xff]  }
 0x614   : > { %5449 = vmatmul.mubr.bf16.gmra.mrb[16].mxu1 %v12498_v1 }
 0x615   : > { %5458 = vmatprep.mubr.bf16.mxu1 %v14895_v16 }
 0x61c   : > { %5459 = vmatmul.mubr.bf16.gmra.mrb[20].mxu1 %v14896_v60 }
 0x61d   : > { %5468 = vmatprep.mubr.bf16.mxu1 %v13209_v55 }
 0x624   : > { %5469 = vmatmul.mubr.bf16.gmra.mrb[24].mxu1 %v12542_v54 }
 0x625   : > { %5478 = vmatprep.mubr.bf16.mxu1 %v14897_v41 }
 0x62c   : > { %5479 = vmatmul.mubr.bf16.gmra.mrb[28].mxu1 %v14898_v53 }
 0x62d   : > { %5488 = vmatprep.mubr.bf16.mxu1 %v13269_v18 }
 0x634   : > { %5489 = vmatmul.mubr.bf16.gmra.mrb[32].mxu1 %v14899_v7 }
 0x635   : > { %5498 = vmatprep.mubr.bf16.mxu1 %v14900_v59 }
 0x63c   : > { %5499 = vmatmul.mubr.bf16.gmra.mrb[36].mxu1 %v14901_v9 }
 0x63d   : > { %5508 = vmatprep.mubr.bf16.mxu1 %v13318_v63 }
 0x644   : > { %5509 = vmatmul.mubr.bf16.gmra.mrb[40].mxu1 %v12629_v23 }
 0x645   : > { %5518 = vmatprep.mubr.bf16.mxu1 %v14902_v12 }
 0x64c   : > { %5519 = vmatmul.mubr.bf16.gmra.mrb[44].mxu1 %v14903_v20 }
 0x64d   : > { %5528 = vmatprep.mubr.bf16.mxu1 %v13354_v37 }
 0x654   : > { %5529 = vmatmul.mubr.bf16.gmra.mrb[48].mxu1 %v12673_v52 }
 0x655   : > { %5538 = vmatprep.mubr.bf16.mxu1 %v14904_v26 }
 0x65c   : > { %5539 = vmatmul.mubr.bf16.gmra.mrb[52].mxu1 %v14905_v22 }
 0x65d   : > { %5548 = vmatprep.mubr.bf16.mxu1 %v13390_v48 }
 0x664   : > { %5549 = vmatmul.mubr.bf16.gmra.mrb[56].mxu1 %v12717_v6 }
 0x665   : > { %5558 = vmatprep.mubr.bf16.mxu1 %v13402_v43 }
 0x66c   : > { %5559 = vmatmul.mubr.bf16.gmra.mrb[60].mxu1 %v12741_v31 }
 0x66d   : > { %5601 = vmatprep.mubr.bf16.mxu1 %v14861_v35 }
 0x674   : > { %5602 = vmatmul.mubr.bf16.vlgmr.msra.gmra.mrb[0].mxu1 %v14906_v24  ;;  %v10841_v24 = vld [vmem:[%s14633_s3 + $0x3b0] ss:$8 sps:$4 sm:$0xff]  }
 0x675   : > { %6052 = vmatpush1.bf16.msra.mxu1 %v10808_v45  ;;  %5611 = vmatprep.mubr.bf16.mxu1 %v14861_v35  ;;  %v10838_v45 = vld [vmem:[%s14633_s3 + $0x3a0] ss:$8 sps:$4 sm:$0xff]  }
 0x676   : > { %6053 = vmatprep.subr.bf16.mxu1 %v10813_v30  ;;  %v10843_v30 = vld [vmem:[%s14633_s3 + $0x3b4] ss:$8 sps:$4 sm:$0xff]  }
 0x679   : > { %6054 = vmatpush1.bf16.msra.mxu1 %v10811_v32  ;;  %v10846_v32 = vld [vmem:[%s14633_s3 + $0x3c4] ss:$8 sps:$4 sm:$0xff]  }
 0x67a   : > { %6055 = vmatprep.subr.bf16.mxu1 %v10816_v39  ;;  %v10844_v39 = vld [vmem:[%s14633_s3 + $0x3c0] ss:$8 sps:$4 sm:$0xff]  }
 0x67c   : > { %5612 = vmatmul.mubr.bf16.gmra.mrb[4].mxu1 %v14907_v4  ;;  %v10852_v4 = vld [vmem:[%s14633_s3 + $0x3e4] ss:$8 sps:$4 sm:$0xff]  }
 0x67d   : > { %5621 = vmatprep.mubr.bf16.mxu1 %v14861_v35  ;;  %6056 = vmatpush1.bf16.msra.mxu1 %v10814_v57  ;;  %v10849_v57 = vld [vmem:[%s14633_s3 + $0x3d4] ss:$8 sps:$4 sm:$0xff]  }
 0x67e   : > { %6057 = vmatprep.subr.bf16.mxu1 %v10819_v44  ;;  %v10847_v44 = vld [vmem:[%s14633_s3 + $0x3d0] ss:$8 sps:$4 sm:$0xff]  }
 0x681   : > { %6058 = vmatpush1.bf16.msra.mxu1 %v10817_v36  ;;  %v10850_v36 = vld [vmem:[%s14633_s3 + $0x3e0] ss:$8 sps:$4 sm:$0xff]  }
 0x682   : > { %6059 = vmatprep.subr.bf16.mxu1 %v10822_v58  ;;  %v10855_v58 = vld [vmem:[%s14633_s3 + $0x3f4] ss:$8 sps:$4 sm:$0xff]  }
 0x684   : > { %5622 = vmatmul.mubr.bf16.gmra.mrb[8].mxu1 %v13092_v50  ;;  %v10831_v50 = vld [vmem:[%s14633_s3 + $0x374] ss:$8 sps:$4 sm:$0xff]  }
 0x685   : > { %5631 = vmatprep.mubr.bf16.mxu1 %v14861_v35  ;;  %6060 = vmatpush1.bf16.msra.mxu1 %v10820_v10  ;;  %v10853_v10 = vld [vmem:[%s14633_s3 + $0x3f0] ss:$8 sps:$4 sm:$0xff]  }
 0x686   : > { %6061 = vmatprep.subr.bf16.mxu1 %v10825_v2  ;;  %v10858_v2 = vld [vmem:[%s14633_s3 + $0x404] ss:$8 sps:$4 sm:$0xff]  }
 0x689   : > { %6062 = vmatpush1.bf16.msra.mxu1 %v10823_v40  ;;  %v14908_v40 = vld [vmem:[#allocation9_spill] sm:$0xff] }
 0x68a   : > { %6063 = vmatprep.subr.bf16.mxu1 %v10828_v28  ;;  %v10856_v28 = vld [vmem:[%s14633_s3 + $0x400] ss:$8 sps:$4 sm:$0xff]  }
 0x68c   : > { %5632 = vmatmul.mubr.bf16.gmra.mrb[12].mxu1 %v13112_v14  ;;  %v10837_v14 = vld [vmem:[%s14633_s3 + $0x394] ss:$8 sps:$4 sm:$0xff]  }
 0x68d   : > { %5641 = vmatprep.mubr.bf16.mxu1 %v14861_v35  ;;  %6064 = vmatpush1.bf16.msra.mxu1 %v10826_v15  ;;  %v10861_v15 = vld [vmem:[%s14633_s3 + $0x414] ss:$8 sps:$4 sm:$0xff]  }
 0x68e   : > { %6065 = vmatprep.subr.bf16.mxu1 %v10831_v50  ;;  %v10859_v50 = vld [vmem:[%s14633_s3 + $0x410] ss:$8 sps:$4 sm:$0xff]  }
 0x691   : > { %6066 = vmatpush1.bf16.msra.mxu1 %v10829_v56  ;;  %v10862_v56 = vld [vmem:[%s14633_s3 + $0x420] ss:$8 sps:$4 sm:$0xff]  }
 0x692   : > { %6067 = vmatprep.subr.bf16.mxu1 %v10834_v29  ;;  %v10870_v29 = vld [vmem:[%s14633_s3 + $0x444] ss:$8 sps:$4 sm:$0xff]  }
 0x694   : > { %5642 = vmatmul.mubr.bf16.gmra.mrb[16].mxu1 %v13153_v21 }
 0x695   : > { %5651 = vmatprep.mubr.bf16.mxu1 %v14861_v35  ;;  %6068 = vmatpush1.bf16.msra.mxu1 %v10832_v34  ;;  %v10868_v34 = vld [vmem:[%s14633_s3 + $0x440] ss:$8 sps:$4 sm:$0xff]  }
 0x696   : > { %6069 = vmatprep.subr.bf16.mxu1 %v10837_v14  ;;  %v10871_v14 = vld [vmem:[%s14633_s3 + $0x450] ss:$8 sps:$4 sm:$0xff]  }
 0x699   : > { %6070 = vmatpush1.bf16.msra.mxu1 %v10835_v62  ;;  %v10876_v62 = vld [vmem:[%s14633_s3 + $0x464] ss:$8 sps:$4 sm:$0xff]  }
 0x69a   : > { %6071 = vmatprep.subr.bf16.mxu1 %v10840_v38  ;;  %v10874_v38 = vld [vmem:[%s14633_s3 + $0x460] ss:$8 sps:$4 sm:$0xff]  }
 0x69c   : > { %5652 = vmatmul.mubr.bf16.gmra.mrb[20].mxu1 %v13172_v13 }
 0x69d   : > { %5661 = vmatprep.mubr.bf16.mxu1 %v14861_v35  ;;  %6072 = vmatpush1.bf16.msra.mxu1 %v10838_v45  ;;  %v10879_v45 = vld [vmem:[%s14633_s3 + $0x474] ss:$8 sps:$4 sm:$0xff]  }
 0x69e   : > { %6073 = vmatprep.subr.bf16.mxu1 %v10843_v30  ;;  %v10877_v30 = vld [vmem:[%s14633_s3 + $0x470] ss:$8 sps:$4 sm:$0xff]  }
 0x6a1   : > { %6074 = vmatpush1.bf16.msra.mxu1 %v10841_v24  ;;  %v10882_v24 = vld [vmem:[%s14633_s3 + $0x484] ss:$8 sps:$4 sm:$0xff]  }
 0x6a2   : > { %6075 = vmatprep.subr.bf16.mxu1 %v10846_v32  ;;  %v14909_v32 = vld [vmem:[#allocation11_spill] sm:$0xff] }
 0x6a4   : > { %5662 = vmatmul.mubr.bf16.gmra.mrb[24].mxu1 %v13212_v33 }
 0x6a5   : > { %5671 = vmatprep.mubr.bf16.mxu1 %v14861_v35  ;;  %6076 = vmatpush1.bf16.msra.mxu1 %v10844_v39  ;;  %v14910_v39 = vld [vmem:[#allocation80_spill] sm:$0xff] }
 0x6a6   : > { %6077 = vmatprep.subr.bf16.mxu1 %v10849_v57  ;;  %v14911_v57 = vld [vmem:[#allocation66_spill] sm:$0xff] }
 0x6a9   : > { %6078 = vmatpush1.bf16.msra.mxu1 %v10847_v44  ;;  %v14912_v44 = vld [vmem:[#allocation39_spill] sm:$0xff] }
 0x6aa   : > { %6079 = vmatprep.subr.bf16.mxu1 %v10852_v4  ;;  %v14913_v4 = vld [vmem:[#allocation67_spill] sm:$0xff] }
 0x6ac   : > { %5672 = vmatmul.mubr.bf16.gmra.mrb[28].mxu1 %v13226_v19 }
 0x6ad   : > { %5681 = vmatprep.mubr.bf16.mxu1 %v14861_v35  ;;  %6080 = vmatpush1.bf16.msra.mxu1 %v10850_v36  ;;  %v14914_v36 = vld [vmem:[#allocation41_spill] sm:$0xff] }
 0x6ae   : > { %6081 = vmatprep.subr.bf16.mxu1 %v10855_v58  ;;  %v14915_v58 = vld [vmem:[#allocation13_spill] sm:$0xff] }
 0x6b1   : > { %6082 = vmatpush1.bf16.msra.mxu1 %v10853_v10  ;;  %v14916_v10 = vld [vmem:[#allocation45_spill] sm:$0xff] }
 0x6b2   : > { %6244 = vmatprep.subr.bf16.mxu1 %v10858_v2  ;;  %v10880_v2 = vld [vmem:[%s14633_s3 + $0x480] ss:$8 sps:$4 sm:$0xff]  }
 0x6b4   : > { %5682 = vmatmul.mubr.bf16.gmra.mrb[32].mxu1 %v13272_v42 }
 0x6b5   : > { %5691 = vmatprep.mubr.bf16.mxu1 %v14861_v35 }
 0x6bc   : > { %5692 = vmatmul.mubr.bf16.gmra.mrb[36].mxu1 %v13286_v3 }
 0x6bd   : > { %5701 = vmatprep.mubr.bf16.mxu1 %v14861_v35 }
 0x6c4   : > { %5702 = vmatmul.mubr.bf16.gmra.mrb[40].mxu1 %v13321_v11 }
 0x6c5   : > { %5711 = vmatprep.mubr.bf16.mxu1 %v14861_v35 }
 0x6cc   : > { %5712 = vmatmul.mubr.bf16.gmra.mrb[44].mxu1 %v14908_v40 }
 0x6cd   : > { %5721 = vmatprep.mubr.bf16.mxu1 %v14861_v35 }
 0x6d4   : > { %5722 = vmatmul.mubr.bf16.gmra.mrb[48].mxu1 %v13357_v61 }
 0x6d5   : > { %5731 = vmatprep.mubr.bf16.mxu1 %v14861_v35 }
 0x6dc   : > { %5732 = vmatmul.mubr.bf16.gmra.mrb[52].mxu1 %v13368_v49 }
 0x6dd   : > { %5741 = vmatprep.mubr.bf16.mxu1 %v14861_v35 }
 0x6e4   : > { %5742 = vmatmul.mubr.bf16.gmra.mrb[56].mxu1 %v13393_v0 }
 0x6e5   : > { %5751 = vmatprep.mubr.bf16.mxu1 %v14861_v35 }
 0x6ec   : > { %5752 = vmatmul.mubr.bf16.gmra.mrb[60].mxu1 %v13404_v27 }
 0x6ed   : > { %6083 = vmatprep.mubr.bf16.mxu1 %v13150_v8  ;;  %v10864_v8 = vld [vmem:[%s14633_s3 + $0x424] ss:$8 sps:$4 sm:$0xff]  }
 0x6f4   : > { %6084 = vmatmul.mubr.bf16.vlgmr.msra.gmra.mrb[0].mxu1 %v12498_v1  ;;  %v10867_v1 = vld [vmem:[%s14633_s3 + $0x434] ss:$8 sps:$4 sm:$0xff]  }
 0x6f5   : > { %6093 = vmatprep.mubr.bf16.mxu1 %v14895_v16  ;;  %6245 = vmatpush1.bf16.msra.mxu1 %v10856_v28  ;;  %v10865_v16 = vld [vmem:[%s14633_s3 + $0x430] ss:$8 sps:$4 sm:$0xff]   ;;  %v10885_v28 = vld [vmem:[%s14633_s3 + $0x494] ss:$8 sps:$4 sm:$0xff]  }
 0x6f6   : > { %6246 = vmatprep.subr.bf16.mxu1 %v10861_v15  ;;  %v10883_v15 = vld [vmem:[%s14633_s3 + $0x490] ss:$8 sps:$4 sm:$0xff]  }
 0x6f9   : > { %6247 = vmatpush1.bf16.msra.mxu1 %v10859_v50  ;;  %v10888_v50 = vld [vmem:[%s14633_s3 + $0x4a4] ss:$8 sps:$4 sm:$0xff]  }
 0x6fa   : > { %6248 = vmatprep.subr.bf16.mxu1 %v10864_v8  ;;  %v10886_v8 = vld [vmem:[%s14633_s3 + $0x4a0] ss:$8 sps:$4 sm:$0xff]  }
 0x6fc   : > { %6094 = vmatmul.mubr.bf16.gmra.mrb[4].mxu1 %v14896_v60  ;;  %v10873_v60 = vld [vmem:[%s14633_s3 + $0x454] ss:$8 sps:$4 sm:$0xff]  }
 0x6fd   : > { %6103 = vmatprep.mubr.bf16.mxu1 %v13209_v55  ;;  %6249 = vmatpush1.bf16.msra.mxu1 %v10862_v56  ;;  %v10889_v56 = vld [vmem:[%s14633_s3 + $0x4b0] ss:$8 sps:$4 sm:$0xff]  }
 0x6fe   : > { %6250 = vmatprep.subr.bf16.mxu1 %v10867_v1  ;;  %v10894_v1 = vld [vmem:[%s14633_s3 + $0x4c4] ss:$8 sps:$4 sm:$0xff]  }
 0x701   : > { %6251 = vmatpush1.bf16.msra.mxu1 %v10865_v16  ;;  %v10892_v16 = vld [vmem:[%s14633_s3 + $0x4c0] ss:$8 sps:$4 sm:$0xff]  }
 0x702   : > { %6252 = vmatprep.subr.bf16.mxu1 %v10870_v29  ;;  %v10895_v29 = vld [vmem:[%s14633_s3 + $0x4d0] ss:$8 sps:$4 sm:$0xff]  }
 0x704   : > { %6104 = vmatmul.mubr.bf16.gmra.mrb[8].mxu1 %v12542_v54 }
 0x705   : > { %6113 = vmatprep.mubr.bf16.mxu1 %v14897_v41  ;;  %6253 = vmatpush1.bf16.msra.mxu1 %v10868_v34  ;;  %v10900_v34 = vld [vmem:[%s14633_s3 + $0x4e4] ss:$8 sps:$4 sm:$0xff]  }
 0x706   : > { %6254 = vmatprep.subr.bf16.mxu1 %v10873_v60  ;;  %v10898_v60 = vld [vmem:[%s14633_s3 + $0x4e0] ss:$8 sps:$4 sm:$0xff]  }
 0x709   : > { %6255 = vmatpush1.bf16.msra.mxu1 %v10871_v14  ;;  %v10903_v14 = vld [vmem:[%s14633_s3 + $0x4f4] ss:$8 sps:$4 sm:$0xff]  }
 0x70a   : > { %6256 = vmatprep.subr.bf16.mxu1 %v10876_v62  ;;  %v10901_v62 = vld [vmem:[%s14633_s3 + $0x4f0] ss:$8 sps:$4 sm:$0xff]  }
 0x70c   : > { %6114 = vmatmul.mubr.bf16.gmra.mrb[12].mxu1 %v14898_v53 }
 0x70d   : > { %6123 = vmatprep.mubr.bf16.mxu1 %v13269_v18  ;;  %6257 = vmatpush1.bf16.msra.mxu1 %v10874_v38  ;;  %v10906_v38 = vld [vmem:[%s14633_s3 + $0x504] ss:$8 sps:$4 sm:$0xff]  }
 0x70e   : > { %6258 = vmatprep.subr.bf16.mxu1 %v10879_v45  ;;  %v10904_v45 = vld [vmem:[%s14633_s3 + $0x500] ss:$8 sps:$4 sm:$0xff]  }
 0x711   : > { %6259 = vmatpush1.bf16.msra.mxu1 %v10877_v30  ;;  %v10909_v30 = vld [vmem:[%s14633_s3 + $0x514] ss:$8 sps:$4 sm:$0xff]  }
 0x712   : > { %6790 = vmatprep.subr.bf16.mxu1 %v10882_v24  ;;  %v10907_v24 = vld [vmem:[%s14633_s3 + $0x510] ss:$8 sps:$4 sm:$0xff]  }
 0x714   : > { %6124 = vmatmul.mubr.bf16.gmra.mrb[16].mxu1 %v14899_v7 }
 0x715   : > { %6133 = vmatprep.mubr.bf16.mxu1 %v14900_v59 }
 0x71c   : > { %6134 = vmatmul.mubr.bf16.gmra.mrb[20].mxu1 %v14901_v9 }
 0x71d   : > { %6143 = vmatprep.mubr.bf16.mxu1 %v13318_v63 }
 0x724   : > { %6144 = vmatmul.mubr.bf16.gmra.mrb[24].mxu1 %v12629_v23 }
 0x725   : > { %6153 = vmatprep.mubr.bf16.mxu1 %v14902_v12 }
 0x72c   : > { %6154 = vmatmul.mubr.bf16.gmra.mrb[28].mxu1 %v14903_v20 }
 0x72d   : > { %6163 = vmatprep.mubr.bf16.mxu1 %v13354_v37 }
 0x734   : > { %6164 = vmatmul.mubr.bf16.gmra.mrb[32].mxu1 %v12673_v52 }
 0x735   : > { %6173 = vmatprep.mubr.bf16.mxu1 %v14904_v26 }
 0x73c   : > { %6174 = vmatmul.mubr.bf16.gmra.mrb[36].mxu1 %v14905_v22 }
 0x73d   : > { %6183 = vmatprep.mubr.bf16.mxu1 %v13390_v48 }
 0x744   : > { %6184 = vmatmul.mubr.bf16.gmra.mrb[40].mxu1 %v12717_v6 }
 0x745   : > { %6193 = vmatprep.mubr.bf16.mxu1 %v13402_v43 }
 0x74c   : > { %6194 = vmatmul.mubr.bf16.gmra.mrb[44].mxu1 %v12741_v31 }
 0x74d   : > { %6203 = vmatprep.mubr.bf16.mxu1 %v14909_v32 }
 0x754   : > { %6204 = vmatmul.mubr.bf16.gmra.mrb[48].mxu1 %v14910_v39 }
 0x755   : > { %6213 = vmatprep.mubr.bf16.mxu1 %v14911_v57 }
 0x75c   : > { %6214 = vmatmul.mubr.bf16.gmra.mrb[52].mxu1 %v14912_v44 }
 0x75d   : > { %6223 = vmatprep.mubr.bf16.mxu1 %v14913_v4 }
 0x764   : > { %6224 = vmatmul.mubr.bf16.gmra.mrb[56].mxu1 %v14914_v36 }
 0x765   : > { %6233 = vmatprep.mubr.bf16.mxu1 %v14915_v58 }
 0x76c   : > { %6234 = vmatmul.mubr.bf16.gmra.mrb[60].mxu1 %v14916_v10 }
 0x76d   : > { %6276 = vmatprep.mubr.bf16.mxu1 %v14861_v35 }
 0x774   : > { %6277 = vmatmul.mubr.bf16.vlgmr.msra.gmra.mrb[0].mxu1 %v13153_v21  ;;  %v10891_v21 = vld [vmem:[%s14633_s3 + $0x4b4] ss:$8 sps:$4 sm:$0xff]  }
 0x775   : > { %6791 = vmatpush1.bf16.msra.mxu1 %v10880_v2  ;;  %6286 = vmatprep.mubr.bf16.mxu1 %v14861_v35  ;;  %v10912_v2 = vld [vmem:[%s14633_s3 + $0x524] ss:$8 sps:$4 sm:$0xff]  }
 0x776   : > { %6792 = vmatprep.subr.bf16.mxu1 %v10885_v28  ;;  %v10910_v28 = vld [vmem:[%s14633_s3 + $0x520] ss:$8 sps:$4 sm:$0xff]  }
 0x779   : > { %6793 = vmatpush1.bf16.msra.mxu1 %v10883_v15  ;;  %v10915_v15 = vld [vmem:[%s14633_s3 + $0x534] ss:$8 sps:$4 sm:$0xff]  }
 0x77a   : > { %6794 = vmatprep.subr.bf16.mxu1 %v10888_v50  ;;  %v10913_v50 = vld [vmem:[%s14633_s3 + $0x530] ss:$8 sps:$4 sm:$0xff]  }
 0x77c   : > { %6287 = vmatmul.mubr.bf16.gmra.mrb[4].mxu1 %v13172_v13  ;;  %v10897_v13 = vld [vmem:[%s14633_s3 + $0x4d4] ss:$8 sps:$4 sm:$0xff]  }
 0x77d   : > { %6296 = vmatprep.mubr.bf16.mxu1 %v14861_v35  ;;  %6795 = vmatpush1.bf16.msra.mxu1 %v10886_v8  ;;  %v10918_v8 = vld [vmem:[%s14633_s3 + $0x544] ss:$8 sps:$4 sm:$0xff]  }
 0x77e   : > { %6796 = vmatprep.subr.bf16.mxu1 %v10891_v21  ;;  %v10916_v21 = vld [vmem:[%s14633_s3 + $0x540] ss:$8 sps:$4 sm:$0xff]  }
 0x781   : > { %6797 = vmatpush1.bf16.msra.mxu1 %v10889_v56  ;;  %v10921_v56 = vld [vmem:[%s14633_s3 + $0x554] ss:$8 sps:$4 sm:$0xff]  }
 0x782   : > { %6798 = vmatprep.subr.bf16.mxu1 %v10894_v1  ;;  %v10919_v1 = vld [vmem:[%s14633_s3 + $0x550] ss:$8 sps:$4 sm:$0xff]  }
 0x784   : > { %6297 = vmatmul.mubr.bf16.gmra.mrb[8].mxu1 %v13212_v33 }
 0x785   : > { %6306 = vmatprep.mubr.bf16.mxu1 %v14861_v35  ;;  %6799 = vmatpush1.bf16.msra.mxu1 %v10892_v16  ;;  %v10924_v16 = vld [vmem:[%s14633_s3 + $0x564] ss:$8 sps:$4 sm:$0xff]  }
 0x786   : > { %6800 = vmatprep.subr.bf16.mxu1 %v10897_v13  ;;  %v10922_v13 = vld [vmem:[%s14633_s3 + $0x560] ss:$8 sps:$4 sm:$0xff]  }
 0x789   : > { %6801 = vmatpush1.bf16.msra.mxu1 %v10895_v29  ;;  %v10927_v29 = vld [vmem:[%s14633_s3 + $0x574] ss:$8 sps:$4 sm:$0xff]  }
 0x78a   : > { %6802 = vmatprep.subr.bf16.mxu1 %v10900_v34  ;;  %v10925_v34 = vld [vmem:[%s14633_s3 + $0x570] ss:$8 sps:$4 sm:$0xff]  }
 0x78c   : > { %6307 = vmatmul.mubr.bf16.gmra.mrb[12].mxu1 %v13226_v19 }
 0x78d   : > { %6316 = vmatprep.mubr.bf16.mxu1 %v14861_v35  ;;  %6803 = vmatpush1.bf16.msra.mxu1 %v10898_v60  ;;  %v10930_v60 = vld [vmem:[%s14633_s3 + $0x584] ss:$8 sps:$4 sm:$0xff]  }
 0x78e   : > { %6804 = vmatprep.subr.bf16.mxu1 %v10903_v14  ;;  %v14917_v14 = vld [vmem:[#allocation12_spill] sm:$0xff] }
 0x791   : > { %6805 = vmatpush1.bf16.msra.mxu1 %v10901_v62  ;;  %v14918_v62 = vld [vmem:[#allocation14_spill] sm:$0xff] }
 0x792   : > { %6806 = vmatprep.subr.bf16.mxu1 %v10906_v38  ;;  %v10928_v38 = vld [vmem:[%s14633_s3 + $0x580] ss:$8 sps:$4 sm:$0xff]  }
 0x794   : > { %6317 = vmatmul.mubr.bf16.gmra.mrb[16].mxu1 %v13272_v42 }
 0x795   : > { %6326 = vmatprep.mubr.bf16.mxu1 %v14861_v35  ;;  %6807 = vmatpush1.bf16.msra.mxu1 %v10904_v45  ;;  %v10933_v45 = vld [vmem:[%s14633_s3 + $0x594] ss:$8 sps:$4 sm:$0xff]  }
 0x796   : > { %6808 = vmatprep.subr.bf16.mxu1 %v10909_v30  ;;  %v10931_v30 = vld [vmem:[%s14633_s3 + $0x590] ss:$8 sps:$4 sm:$0xff]  }
 0x799   : > { %6809 = vmatpush1.bf16.msra.mxu1 %v10907_v24  ;;  %v10934_v24 = vld [vmem:[%s14633_s3 + $0x5a0] ss:$8 sps:$4 sm:$0xff]  }
 0x79a   : > { %6810 = vmatprep.subr.bf16.mxu1 %v10912_v2  ;;  %v10942_v2 = vld [vmem:[%s14633_s3 + $0x5c4] ss:$8 sps:$4 sm:$0xff]  }
 0x79c   : > { %6327 = vmatmul.mubr.bf16.gmra.mrb[20].mxu1 %v13286_v3 }
 0x79d   : > { %6336 = vmatprep.mubr.bf16.mxu1 %v14861_v35  ;;  %6811 = vmatpush1.bf16.msra.mxu1 %v10910_v28  ;;  %v10940_v28 = vld [vmem:[%s14633_s3 + $0x5c0] ss:$8 sps:$4 sm:$0xff]  }
 0x79e   : > { %6812 = vmatprep.subr.bf16.mxu1 %v10915_v15  ;;  %v10943_v15 = vld [vmem:[%s14633_s3 + $0x5d0] ss:$8 sps:$4 sm:$0xff]  }
 0x7a1   : > { %6813 = vmatpush1.bf16.msra.mxu1 %v10913_v50  ;;  %v10948_v50 = vld [vmem:[%s14633_s3 + $0x5e4] ss:$8 sps:$4 sm:$0xff]  }
 0x7a2   : > { %6814 = vmatprep.subr.bf16.mxu1 %v10918_v8  ;;  %v10946_v8 = vld [vmem:[%s14633_s3 + $0x5e0] ss:$8 sps:$4 sm:$0xff]  }
 0x7a4   : > { %6337 = vmatmul.mubr.bf16.gmra.mrb[24].mxu1 %v13321_v11 }
 0x7a5   : > { %6346 = vmatprep.mubr.bf16.mxu1 %v14861_v35  ;;  %6815 = vmatpush1.bf16.msra.mxu1 %v10916_v21  ;;  %v10951_v21 = vld [vmem:[%s14633_s3 + $0x5f4] ss:$8 sps:$4 sm:$0xff]  }
 0x7a6   : > { %6816 = vmatprep.subr.bf16.mxu1 %v10921_v56  ;;  %v10949_v56 = vld [vmem:[%s14633_s3 + $0x5f0] ss:$8 sps:$4 sm:$0xff]  }
 0x7a9   : > { %6817 = vmatpush1.bf16.msra.mxu1 %v10919_v1  ;;  %v10954_v1 = vld [vmem:[%s14633_s3 + $0x604] ss:$8 sps:$4 sm:$0xff]  }
 0x7aa   : > { %6818 = vmatprep.subr.bf16.mxu1 %v10924_v16  ;;  %v14919_v16 = vld [vmem:[#allocation15_spill] sm:$0xff] }
 0x7ac   : > { %6347 = vmatmul.mubr.bf16.gmra.mrb[28].mxu1 %v14908_v40 }
 0x7ad   : > { %6356 = vmatprep.mubr.bf16.mxu1 %v14861_v35  ;;  %6819 = vmatpush1.bf16.msra.mxu1 %v10922_v13  ;;  %v14920_v13 = vld [vmem:[#allocation49_spill] sm:$0xff] }
 0x7ae   : > { %6820 = vmatprep.subr.bf16.mxu1 %v10927_v29  ;;  %v14921_v29 = vld [vmem:[#allocation16_spill] sm:$0xff] }
 0x7b1   : > { %6821 = vmatpush1.bf16.msra.mxu1 %v10925_v34  ;;  %v14922_v34 = vld [vmem:[#allocation53_spill] sm:$0xff] }
 0x7b2   : > { %6983 = vmatprep.subr.bf16.mxu1 %v10930_v60  ;;  %v10952_v60 = vld [vmem:[%s14633_s3 + $0x600] ss:$8 sps:$4 sm:$0xff]  }
 0x7b4   : > { %6357 = vmatmul.mubr.bf16.gmra.mrb[32].mxu1 %v13357_v61 }
 0x7b5   : > { %6366 = vmatprep.mubr.bf16.mxu1 %v14861_v35 }
 0x7bc   : > { %6367 = vmatmul.mubr.bf16.gmra.mrb[36].mxu1 %v13368_v49 }
 0x7bd   : > { %6376 = vmatprep.mubr.bf16.mxu1 %v14861_v35 }
 0x7c4   : > { %6377 = vmatmul.mubr.bf16.gmra.mrb[40].mxu1 %v13393_v0 }
 0x7c5   : > { %6386 = vmatprep.mubr.bf16.mxu1 %v14861_v35 }
 0x7cc   : > { %6387 = vmatmul.mubr.bf16.gmra.mrb[44].mxu1 %v13404_v27 }
 0x7cd   : > { %6396 = vmatprep.mubr.bf16.mxu1 %v14861_v35 }
 0x7d4   : > { %6397 = vmatmul.mubr.bf16.gmra.mrb[48].mxu1 %v13429_v17 }
 0x7d5   : > { %6406 = vmatprep.mubr.bf16.mxu1 %v14861_v35 }
 0x7dc   : > { %6407 = vmatmul.mubr.bf16.gmra.mrb[52].mxu1 %v13440_v5 }
 0x7dd   : > { %6416 = vmatprep.mubr.bf16.mxu1 %v14861_v35 }
 0x7e4   : > { %6417 = vmatmul.mubr.bf16.gmra.mrb[56].mxu1 %v14917_v14 }
 0x7e5   : > { %6426 = vmatprep.mubr.bf16.mxu1 %v14861_v35 }
 0x7ec   : > { %6427 = vmatmul.mubr.bf16.gmra.mrb[60].mxu1 %v14918_v62 }
 0x7ed   : > { %6822 = vmatprep.mubr.bf16.mxu1 %v13209_v55  ;;  %v10936_v55 = vld [vmem:[%s14633_s3 + $0x5a4] ss:$8 sps:$4 sm:$0xff]  }
 0x7f4   : > { %6823 = vmatmul.mubr.bf16.vlgmr.msra.gmra.mrb[0].mxu1 %v12542_v54  ;;  %v10939_v54 = vld [vmem:[%s14633_s3 + $0x5b4] ss:$8 sps:$4 sm:$0xff]  }
 0x7f5   : > { %6832 = vmatprep.mubr.bf16.mxu1 %v14897_v41  ;;  %6984 = vmatpush1.bf16.msra.mxu1 %v10928_v38  ;;  %v10937_v41 = vld [vmem:[%s14633_s3 + $0x5b0] ss:$8 sps:$4 sm:$0xff]   ;;  %v10957_v38 = vld [vmem:[%s14633_s3 + $0x614] ss:$8 sps:$4 sm:$0xff]  }
 0x7f6   : > { %6985 = vmatprep.subr.bf16.mxu1 %v10933_v45  ;;  %v10955_v45 = vld [vmem:[%s14633_s3 + $0x610] ss:$8 sps:$4 sm:$0xff]  }
 0x7f9   : > { %6986 = vmatpush1.bf16.msra.mxu1 %v10931_v30  ;;  %v10960_v30 = vld [vmem:[%s14633_s3 + $0x624] ss:$8 sps:$4 sm:$0xff]  }
 0x7fa   : > { %6987 = vmatprep.subr.bf16.mxu1 %v10936_v55  ;;  %v10958_v55 = vld [vmem:[%s14633_s3 + $0x620] ss:$8 sps:$4 sm:$0xff]  }
 0x7fc   : > { %6833 = vmatmul.mubr.bf16.gmra.mrb[4].mxu1 %v14898_v53  ;;  %v10945_v53 = vld [vmem:[%s14633_s3 + $0x5d4] ss:$8 sps:$4 sm:$0xff]  }
 0x7fd   : > { %6842 = vmatprep.mubr.bf16.mxu1 %v13269_v18  ;;  %6988 = vmatpush1.bf16.msra.mxu1 %v10934_v24  ;;  %v10961_v24 = vld [vmem:[%s14633_s3 + $0x630] ss:$8 sps:$4 sm:$0xff]  }
 0x7fe   : > { %6989 = vmatprep.subr.bf16.mxu1 %v10939_v54  ;;  %v10966_v54 = vld [vmem:[%s14633_s3 + $0x644] ss:$8 sps:$4 sm:$0xff]  }
 0x801   : > { %6990 = vmatpush1.bf16.msra.mxu1 %v10937_v41  ;;  %v10964_v41 = vld [vmem:[%s14633_s3 + $0x640] ss:$8 sps:$4 sm:$0xff]  }
 0x802   : > { %6991 = vmatprep.subr.bf16.mxu1 %v10942_v2  ;;  %v10967_v2 = vld [vmem:[%s14633_s3 + $0x650] ss:$8 sps:$4 sm:$0xff]  }
 0x804   : > { %6843 = vmatmul.mubr.bf16.gmra.mrb[8].mxu1 %v14899_v7 }
 0x805   : > { %6852 = vmatprep.mubr.bf16.mxu1 %v14900_v59  ;;  %6992 = vmatpush1.bf16.msra.mxu1 %v10940_v28  ;;  %v10972_v28 = vld [vmem:[%s14633_s3 + $0x664] ss:$8 sps:$4 sm:$0xff]  }
 0x806   : > { %6993 = vmatprep.subr.bf16.mxu1 %v10945_v53  ;;  %v10970_v53 = vld [vmem:[%s14633_s3 + $0x660] ss:$8 sps:$4 sm:$0xff]  }
 0x809   : > { %6994 = vmatpush1.bf16.msra.mxu1 %v10943_v15  ;;  %v10975_v15 = vld [vmem:[%s14633_s3 + $0x674] ss:$8 sps:$4 sm:$0xff]  }
 0x80a   : > { %6995 = vmatprep.subr.bf16.mxu1 %v10948_v50  ;;  %v10973_v50 = vld [vmem:[%s14633_s3 + $0x670] ss:$8 sps:$4 sm:$0xff]  }
 0x80c   : > { %6853 = vmatmul.mubr.bf16.gmra.mrb[12].mxu1 %v14901_v9 }
 0x80d   : > { %6862 = vmatprep.mubr.bf16.mxu1 %v13318_v63  ;;  %6996 = vmatpush1.bf16.msra.mxu1 %v10946_v8  ;;  %v11006_v8 = vld [vmem:[%s14635_s5 + $0x40] sm:$0xff]  }
 0x80e   : > { %6997 = vmatprep.subr.bf16.mxu1 %v10951_v21  ;;  %v10978_v21 = vld [vmem:[%s14633_s3 + $0x684] ss:$8 sps:$4 sm:$0xff]   ;;  %9724 = vmatprep.subr.bf16.mxu0 %v11006_v8 }
 0x80f   : > { %9725 = vmatpush3.bf16.msra.mxu0 %v11006_v8  ;;  %v14923_v8 = vld [vmem:[#allocation68_spill] sm:$0xff] }
 0x811   : > { %6998 = vmatpush1.bf16.msra.mxu1 %v10949_v56  ;;  %v10976_v56 = vld [vmem:[%s14633_s3 + $0x680] ss:$8 sps:$4 sm:$0xff]  }
 0x812   : > { %7529 = vmatprep.subr.bf16.mxu1 %v10954_v1  ;;  %v10981_v1 = vld [vmem:[%s14633_s3 + $0x694] ss:$8 sps:$4 sm:$0xff]  }
 0x814   : > { %6863 = vmatmul.mubr.bf16.gmra.mrb[16].mxu1 %v12629_v23 }
 0x815   : > { %6872 = vmatprep.mubr.bf16.mxu1 %v14902_v12 }
 0x81c   : > { %6873 = vmatmul.mubr.bf16.gmra.mrb[20].mxu1 %v14903_v20 }
 0x81d   : > { %6882 = vmatprep.mubr.bf16.mxu1 %v13354_v37 }
 0x824   : > { %6883 = vmatmul.mubr.bf16.gmra.mrb[24].mxu1 %v12673_v52 }
 0x825   : > { %6892 = vmatprep.mubr.bf16.mxu1 %v14904_v26 }
 0x82c   : > { %6893 = vmatmul.mubr.bf16.gmra.mrb[28].mxu1 %v14905_v22 }
 0x82d   : > { %6902 = vmatprep.mubr.bf16.mxu1 %v13390_v48 }
 0x834   : > { %6903 = vmatmul.mubr.bf16.gmra.mrb[32].mxu1 %v12717_v6 }
 0x835   : > { %6912 = vmatprep.mubr.bf16.mxu1 %v13402_v43 }
 0x83c   : > { %6913 = vmatmul.mubr.bf16.gmra.mrb[36].mxu1 %v12741_v31 }
 0x83d   : > { %6922 = vmatprep.mubr.bf16.mxu1 %v14909_v32 }
 0x844   : > { %6923 = vmatmul.mubr.bf16.gmra.mrb[40].mxu1 %v14910_v39 }
 0x845   : > { %6932 = vmatprep.mubr.bf16.mxu1 %v14911_v57 }
 0x84c   : > { %6933 = vmatmul.mubr.bf16.gmra.mrb[44].mxu1 %v14912_v44 }
 0x84d   : > { %6942 = vmatprep.mubr.bf16.mxu1 %v14913_v4 }
 0x854   : > { %6943 = vmatmul.mubr.bf16.gmra.mrb[48].mxu1 %v14914_v36 }
 0x855   : > { %6952 = vmatprep.mubr.bf16.mxu1 %v14915_v58 }
 0x85c   : > { %6953 = vmatmul.mubr.bf16.gmra.mrb[52].mxu1 %v14916_v10 }
 0x85d   : > { %6962 = vmatprep.mubr.bf16.mxu1 %v14919_v16 }
 0x864   : > { %6963 = vmatmul.mubr.bf16.gmra.mrb[56].mxu1 %v14920_v13 }
 0x865   : > { %6972 = vmatprep.mubr.bf16.mxu1 %v14921_v29 }
 0x86c   : > { %6973 = vmatmul.mubr.bf16.gmra.mrb[60].mxu1 %v14922_v34 }
 0x86d   : > { %7015 = vmatprep.mubr.bf16.mxu1 %v14861_v35 }
 0x874   : > { %7016 = vmatmul.mubr.bf16.vlgmr.msra.gmra.mrb[0].mxu1 %v13212_v33  ;;  %v10963_v33 = vld [vmem:[%s14633_s3 + $0x634] ss:$8 sps:$4 sm:$0xff]  }
 0x875   : > { %7530 = vmatpush1.bf16.msra.mxu1 %v10952_v60  ;;  %7025 = vmatprep.mubr.bf16.mxu1 %v14861_v35  ;;  %v10979_v60 = vld [vmem:[%s14633_s3 + $0x690] ss:$8 sps:$4 sm:$0xff]  }
 0x876   : > { %7531 = vmatprep.subr.bf16.mxu1 %v10957_v38  ;;  %v10984_v38 = vld [vmem:[%s14633_s3 + $0x6a4] ss:$8 sps:$4 sm:$0xff]  }
 0x879   : > { %7532 = vmatpush1.bf16.msra.mxu1 %v10955_v45  ;;  %v10982_v45 = vld [vmem:[%s14633_s3 + $0x6a0] ss:$8 sps:$4 sm:$0xff]  }
 0x87a   : > { %7533 = vmatprep.subr.bf16.mxu1 %v10960_v30  ;;  %v10987_v30 = vld [vmem:[%s14633_s3 + $0x6b4] ss:$8 sps:$4 sm:$0xff]  }
 0x87c   : > { %7026 = vmatmul.mubr.bf16.gmra.mrb[4].mxu1 %v13226_v19  ;;  %v10969_v19 = vld [vmem:[%s14633_s3 + $0x654] ss:$8 sps:$4 sm:$0xff]  }
 0x87d   : > { %7035 = vmatprep.mubr.bf16.mxu1 %v14861_v35  ;;  %7534 = vmatpush1.bf16.msra.mxu1 %v10958_v55  ;;  %v10985_v55 = vld [vmem:[%s14633_s3 + $0x6b0] ss:$8 sps:$4 sm:$0xff]  }
 0x87e   : > { %7535 = vmatprep.subr.bf16.mxu1 %v10963_v33  ;;  %v10990_v33 = vld [vmem:[%s14633_s3 + $0x6c4] ss:$8 sps:$4 sm:$0xff]  }
 0x881   : > { %7536 = vmatpush1.bf16.msra.mxu1 %v10961_v24  ;;  %v10988_v24 = vld [vmem:[%s14633_s3 + $0x6c0] ss:$8 sps:$4 sm:$0xff]  }
 0x882   : > { %7537 = vmatprep.subr.bf16.mxu1 %v10966_v54  ;;  %v10993_v54 = vld [vmem:[%s14633_s3 + $0x6d4] ss:$8 sps:$4 sm:$0xff]  }
 0x884   : > { %7036 = vmatmul.mubr.bf16.gmra.mrb[8].mxu1 %v13272_v42 }
 0x885   : > { %7045 = vmatprep.mubr.bf16.mxu1 %v14861_v35  ;;  %7538 = vmatpush1.bf16.msra.mxu1 %v10964_v41  ;;  %v10991_v41 = vld [vmem:[%s14633_s3 + $0x6d0] ss:$8 sps:$4 sm:$0xff]  }
 0x886   : > { %7539 = vmatprep.subr.bf16.mxu1 %v10969_v19  ;;  %v10996_v19 = vld [vmem:[%s14633_s3 + $0x6e4] ss:$8 sps:$4 sm:$0xff]  }
 0x889   : > { %7540 = vmatpush1.bf16.msra.mxu1 %v10967_v2  ;;  %v10994_v2 = vld [vmem:[%s14633_s3 + $0x6e0] ss:$8 sps:$4 sm:$0xff]  }
 0x88a   : > { %7541 = vmatprep.subr.bf16.mxu1 %v10972_v28  ;;  %v10999_v28 = vld [vmem:[%s14633_s3 + $0x6f4] ss:$8 sps:$4 sm:$0xff]  }
 0x88c   : > { %7046 = vmatmul.mubr.bf16.gmra.mrb[12].mxu1 %v13286_v3 }
 0x88d   : > { %7055 = vmatprep.mubr.bf16.mxu1 %v14861_v35  ;;  %7542 = vmatpush1.bf16.msra.mxu1 %v10970_v53  ;;  %v10997_v53 = vld [vmem:[%s14633_s3 + $0x6f0] ss:$8 sps:$4 sm:$0xff]  }
 0x88e   : > { %7543 = vmatprep.subr.bf16.mxu1 %v10975_v15  ;;  %v11002_v15 = vld [vmem:[%s14633_s3 + $0x704] ss:$8 sps:$4 sm:$0xff]  }
 0x891   : > { %7544 = vmatpush1.bf16.msra.mxu1 %v10973_v50  ;;  %v11016_v50 = vld [vmem:[%s14635_s5 + $0x48] sm:$0xff]  }
 0x892   : > { %7545 = vmatprep.subr.bf16.mxu1 %v10978_v21  ;;  %9726 = vmatprep.subr.bf16.mxu0 %v11016_v50  ;;  %v14924_v21 = vld [vmem:[#allocation17_spill] sm:$0xff] }
 0x893   : > { %9727 = vmatpush3.bf16.msra.mxu0 %v11016_v50 }
 0x894   : > { %7056 = vmatmul.mubr.bf16.gmra.mrb[16].mxu1 %v13321_v11 }
 0x895   : > { %7065 = vmatprep.mubr.bf16.mxu1 %v14861_v35  ;;  %7546 = vmatpush1.bf16.msra.mxu1 %v10976_v56  ;;  %v11026_v56 = vld [vmem:[%s14635_s5 + $0x50] sm:$0xff]  }
 0x896   : > { %7547 = vmatprep.subr.bf16.mxu1 %v10981_v1  ;;  %9728 = vmatprep.subr.bf16.mxu0 %v11026_v56  ;;  %v11000_v1 = vld [vmem:[%s14633_s3 + $0x700] ss:$8 sps:$4 sm:$0xff]  }
 0x897   : > { %9729 = vmatpush3.bf16.msra.mxu0 %v11026_v56 }
 0x899   : > { %7548 = vmatpush1.bf16.msra.mxu1 %v10979_v60  ;;  %v11005_v60 = vld [vmem:[%s14633_s3 + $0x714] ss:$8 sps:$4 sm:$0xff]  }
 0x89a   : > { %7549 = vmatprep.subr.bf16.mxu1 %v10984_v38  ;;  %v11003_v38 = vld [vmem:[%s14633_s3 + $0x710] ss:$8 sps:$4 sm:$0xff]  }
 0x89c   : > { %7066 = vmatmul.mubr.bf16.gmra.mrb[20].mxu1 %v14908_v40 }
 0x89d   : > { %7075 = vmatprep.mubr.bf16.mxu1 %v14861_v35  ;;  %7550 = vmatpush1.bf16.msra.mxu1 %v10982_v45  ;;  %v11007_v45 = vld [vmem:[%s14633_s3 + $0x720] ss:$8 sps:$4 sm:$0xff]  }
 0x89e   : > { %7551 = vmatprep.subr.bf16.mxu1 %v10987_v30  ;;  %v11015_v30 = vld [vmem:[%s14633_s3 + $0x744] ss:$8 sps:$4 sm:$0xff]  }
 0x8a1   : > { %7552 = vmatpush1.bf16.msra.mxu1 %v10985_v55  ;;  %v11013_v55 = vld [vmem:[%s14633_s3 + $0x740] ss:$8 sps:$4 sm:$0xff]  }
 0x8a2   : > { %7553 = vmatprep.subr.bf16.mxu1 %v10990_v33  ;;  %v11022_v33 = vld [vmem:[%s14633_s3 + $0x764] ss:$8 sps:$4 sm:$0xff]  }
 0x8a4   : > { %7076 = vmatmul.mubr.bf16.gmra.mrb[24].mxu1 %v13357_v61 }
 0x8a5   : > { %7085 = vmatprep.mubr.bf16.mxu1 %v14861_v35  ;;  %7554 = vmatpush1.bf16.msra.mxu1 %v10988_v24  ;;  %v11020_v24 = vld [vmem:[%s14633_s3 + $0x760] ss:$8 sps:$4 sm:$0xff]  }
 0x8a6   : > { %7555 = vmatprep.subr.bf16.mxu1 %v10993_v54  ;;  %v11027_v54 = vld [vmem:[%s14635_s5 + $0x58] sm:$0xff]  }
 0x8a7   : > { %9730 = vmatprep.subr.bf16.mxu0 %v11027_v54 }
 0x8a8   : > { %9731 = vmatpush3.bf16.msra.mxu0 %v11027_v54 }
 0x8a9   : > { %7556 = vmatpush1.bf16.msra.mxu1 %v10991_v41 }
 0x8aa   : > { %7557 = vmatprep.subr.bf16.mxu1 %v10996_v19 }
 0x8ac   : > { %7086 = vmatmul.mubr.bf16.gmra.mrb[28].mxu1 %v13368_v49 }
 0x8ad   : > { %7095 = vmatprep.mubr.bf16.mxu1 %v14861_v35  ;;  %7558 = vmatpush1.bf16.msra.mxu1 %v10994_v2 }
 0x8ae   : > { %7559 = vmatprep.subr.bf16.mxu1 %v10999_v28 }
 0x8b1   : > { %7560 = vmatpush1.bf16.msra.mxu1 %v10997_v53 }
 0x8b2   : > { %7722 = vmatprep.subr.bf16.mxu1 %v11002_v15 }
 0x8b4   : > { %7096 = vmatmul.mubr.bf16.gmra.mrb[32].mxu1 %v13393_v0 }
 0x8b5   : > { %7105 = vmatprep.mubr.bf16.mxu1 %v14861_v35 }
 0x8bc   : > { %7106 = vmatmul.mubr.bf16.gmra.mrb[36].mxu1 %v13404_v27 }
 0x8bd   : > { %7115 = vmatprep.mubr.bf16.mxu1 %v14861_v35 }
 0x8c4   : > { %7116 = vmatmul.mubr.bf16.gmra.mrb[40].mxu1 %v13429_v17 }
 0x8c5   : > { %7125 = vmatprep.mubr.bf16.mxu1 %v14861_v35 }
 0x8cc   : > { %7126 = vmatmul.mubr.bf16.gmra.mrb[44].mxu1 %v13440_v5 }
 0x8cd   : > { %7135 = vmatprep.mubr.bf16.mxu1 %v14861_v35 }
 0x8d4   : > { %7136 = vmatmul.mubr.bf16.gmra.mrb[48].mxu1 %v14917_v14 }
 0x8d5   : > { %7145 = vmatprep.mubr.bf16.mxu1 %v14861_v35 }
 0x8dc   : > { %7146 = vmatmul.mubr.bf16.gmra.mrb[52].mxu1 %v14918_v62 }
 0x8dd   : > { %7155 = vmatprep.mubr.bf16.mxu1 %v14861_v35 }
 0x8e4   : > { %7156 = vmatmul.mubr.bf16.gmra.mrb[56].mxu1 %v14923_v8 }
 0x8e5   : > { %7165 = vmatprep.mubr.bf16.mxu1 %v14861_v35 }
 0x8ec   : > { %7166 = vmatmul.mubr.bf16.gmra.mrb[60].mxu1 %v14924_v21 }
 0x8ed   : > { %7561 = vmatprep.mubr.bf16.mxu1 %v13269_v18  ;;  %v11009_v18 = vld [vmem:[%s14633_s3 + $0x724] ss:$8 sps:$4 sm:$0xff]  }
 0x8f4   : > { %7562 = vmatmul.mubr.bf16.vlgmr.msra.gmra.mrb[0].mxu1 %v14899_v7  ;;  %v11012_v7 = vld [vmem:[%s14633_s3 + $0x734] ss:$8 sps:$4 sm:$0xff]  }
 0x8f5   : > { %7571 = vmatprep.mubr.bf16.mxu1 %v14900_v59  ;;  %7723 = vmatpush1.bf16.msra.mxu1 %v11000_v1  ;;  %v11010_v59 = vld [vmem:[%s14633_s3 + $0x730] ss:$8 sps:$4 sm:$0xff]  }
 0x8f6   : > { %7724 = vmatprep.subr.bf16.mxu1 %v11005_v60 }
 0x8f9   : > { %7725 = vmatpush1.bf16.msra.mxu1 %v11003_v38 }
 0x8fa   : > { %7726 = vmatprep.subr.bf16.mxu1 %v11009_v18 }
 0x8fc   : > { %7572 = vmatmul.mubr.bf16.gmra.mrb[4].mxu1 %v14901_v9  ;;  %v11017_v9 = vld [vmem:[%s14633_s3 + $0x750] ss:$8 sps:$4 sm:$0xff]  }
 0x8fd   : > { %7581 = vmatprep.mubr.bf16.mxu1 %v13318_v63  ;;  %7727 = vmatpush1.bf16.msra.mxu1 %v11007_v45  ;;  %v11019_v63 = vld [vmem:[%s14633_s3 + $0x754] ss:$8 sps:$4 sm:$0xff]  }
 0x8fe   : > { %7728 = vmatprep.subr.bf16.mxu1 %v11012_v7 }
 0x901   : > { %7729 = vmatpush1.bf16.msra.mxu1 %v11010_v59 }
 0x902   : > { %7730 = vmatprep.subr.bf16.mxu1 %v11015_v30 }
 0x904   : > { %7582 = vmatmul.mubr.bf16.gmra.mrb[8].mxu1 %v12629_v23  ;;  %v11025_v23 = vld [vmem:[%s14633_s3 + $0x774] ss:$8 sps:$4 sm:$0xff]  }
 0x905   : > { %7591 = vmatprep.mubr.bf16.mxu1 %v14902_v12  ;;  %7731 = vmatpush1.bf16.msra.mxu1 %v11013_v55  ;;  %v11023_v12 = vld [vmem:[%s14633_s3 + $0x770] ss:$8 sps:$4 sm:$0xff]  }
 0x906   : > { %7732 = vmatprep.subr.bf16.mxu1 %v11019_v63 }
 0x909   : > { %7733 = vmatpush1.bf16.msra.mxu1 %v11017_v9 }
 0x90a   : > { %7734 = vmatprep.subr.bf16.mxu1 %v11022_v33 }
 0x90c   : > { %7592 = vmatmul.mubr.bf16.gmra.mrb[12].mxu1 %v14903_v20 }
 0x90d   : > { %7601 = vmatprep.mubr.bf16.mxu1 %v13354_v37  ;;  %7735 = vmatpush1.bf16.msra.mxu1 %v11020_v24  ;;  %v11029_v37 = vld [vmem:[%s14635_s5 + $0x68] sm:$0xff]  }
 0x90e   : > { %7736 = vmatprep.subr.bf16.mxu1 %v11025_v23 }
 0x911   : > { %7737 = vmatpush1.bf16.msra.mxu1 %v11023_v12 }
 0x914   : > { %7602 = vmatmul.mubr.bf16.gmra.mrb[16].mxu1 %v12673_v52  ;;  %v11028_v52 = vld [vmem:[%s14635_s5 + $0x60] sm:$0xff]  }
 0x915   : > { %7611 = vmatprep.mubr.bf16.mxu1 %v14904_v26  ;;  %9732 = vmatprep.subr.bf16.mxu0 %v11028_v52 }
 0x916   : > { %9733 = vmatpush3.bf16.msra.mxu0 %v11028_v52 }
 0x917   : > { %9734 = vmatprep.subr.bf16.mxu0 %v11029_v37 }
 0x91a   : > { %9735 = vmatpush3.bf16.msra.mxu0 %v11029_v37 }
 0x91c   : > { %7612 = vmatmul.mubr.bf16.gmra.mrb[20].mxu1 %v14905_v22 }
 0x91d   : > { %7621 = vmatprep.mubr.bf16.mxu1 %v13390_v48  ;;  %v11030_v48 = vld [vmem:[%s14635_s5 + $0x70] sm:$0xff]  }
 0x91e   : > { %9736 = vmatprep.subr.bf16.mxu0 %v11030_v48 }
 0x91f   : > { %9737 = vmatpush3.bf16.msra.mxu0 %v11030_v48 }
 0x924   : > { %7622 = vmatmul.mubr.bf16.gmra.mrb[24].mxu1 %v12717_v6  ;;  %v14925_v6 = vld [vmem:[#allocation58_spill] sm:$0xff] }
 0x925   : > { %7631 = vmatprep.mubr.bf16.mxu1 %v13402_v43  ;;  %v7979_v43 = vld [vmem:[%s14634_s4] sm:$0x3] }
 0x92c   : > { %7632 = vmatmul.mubr.bf16.gmra.mrb[28].mxu1 %v12741_v31  ;;  %v14926_v31 = vld [vmem:[#allocation60_spill] sm:$0xff] }
 0x92d   : > { %7641 = vmatprep.mubr.bf16.mxu1 %v14909_v32 }
 0x934   : > { %7642 = vmatmul.mubr.bf16.gmra.mrb[32].mxu1 %v14910_v39 }
 0x935   : > { %7651 = vmatprep.mubr.bf16.mxu1 %v14911_v57 }
 0x93c   : > { %7652 = vmatmul.mubr.bf16.gmra.mrb[36].mxu1 %v14912_v44 }
 0x93d   : > { %7661 = vmatprep.mubr.bf16.mxu1 %v14913_v4 }
 0x944   : > { %7662 = vmatmul.mubr.bf16.gmra.mrb[40].mxu1 %v14914_v36 }
 0x945   : > { %7671 = vmatprep.mubr.bf16.mxu1 %v14915_v58 }
 0x94c   : > { %7672 = vmatmul.mubr.bf16.gmra.mrb[44].mxu1 %v14916_v10 }
 0x94d   : > { %7681 = vmatprep.mubr.bf16.mxu1 %v14919_v16 }
 0x954   : > { %7682 = vmatmul.mubr.bf16.gmra.mrb[48].mxu1 %v14920_v13 }
 0x955   : > { %7691 = vmatprep.mubr.bf16.mxu1 %v14921_v29 }
 0x95c   : > { %7692 = vmatmul.mubr.bf16.gmra.mrb[52].mxu1 %v14922_v34 }
 0x95d   : > { %7701 = vmatprep.mubr.bf16.mxu1 %v13644_v25 }
 0x964   : > { %7702 = vmatmul.mubr.bf16.gmra.mrb[56].mxu1 %v14925_v6 }
 0x965   : > { %7711 = vmatprep.mubr.bf16.mxu1 %v13655_v47 }
 0x96c   : > { %7712 = vmatmul.mubr.bf16.gmra.mrb[60].mxu1 %v14926_v31 }
 0x96d   : > { %7754 = vmatprep.mubr.bf16.mxu1 %v14861_v35 }
 0x974   : > { %7755 = vmatmul.mubr.bf16.vlgmr.msra.gmra.mrb[0].mxu1 %v13272_v42  ;;  %v11031_v42 = vld [vmem:[%s14635_s5 + $0x78] sm:$0xff]  }
 0x975   : > { %7764 = vmatprep.mubr.bf16.mxu1 %v14861_v35  ;;  %9738 = vmatprep.subr.bf16.mxu0 %v11031_v42 }
 0x976   : > { %9739 = vmatpush3.bf16.msra.mxu0 %v11031_v42 }
 0x97c   : > { %7765 = vmatmul.mubr.bf16.gmra.mrb[4].mxu1 %v13286_v3  ;;  %v14428_v3 = vld [vmem:[%s14635_s5] sm:$0xff]  }
 0x97d   : > { %7774 = vmatprep.mubr.bf16.mxu1 %v14861_v35  ;;  %9744 = vmatprep.subr.bf16.mxu0 %v14428_v3 }
 0x984   : > { %7775 = vmatmul.mubr.bf16.gmra.mrb[8].mxu1 %v13321_v11 }
 0x985   : > { %7784 = vmatprep.mubr.bf16.mxu1 %v14861_v35 }
 0x98c   : > { %7785 = vmatmul.mubr.bf16.gmra.mrb[12].mxu1 %v14908_v40 }
 0x98d   : > { %7794 = vmatprep.mubr.bf16.mxu1 %v14861_v35 }
 0x994   : > { %7795 = vmatmul.mubr.bf16.gmra.mrb[16].mxu1 %v13357_v61 }
 0x995   : > { %7804 = vmatprep.mubr.bf16.mxu1 %v14861_v35 }
 0x99c   : > { %7805 = vmatmul.mubr.bf16.gmra.mrb[20].mxu1 %v13368_v49 }
 0x99d   : > { %7814 = vmatprep.mubr.bf16.mxu1 %v14861_v35 }
 0x9a4   : > { %7815 = vmatmul.mubr.bf16.gmra.mrb[24].mxu1 %v13393_v0 }
 0x9a5   : > { %7824 = vmatprep.mubr.bf16.mxu1 %v14861_v35 }
 0x9ac   : > { %7825 = vmatmul.mubr.bf16.gmra.mrb[28].mxu1 %v13404_v27 }
 0x9ad   : > { %7834 = vmatprep.mubr.bf16.mxu1 %v14861_v35 }
 0x9b4   : > { %7835 = vmatmul.mubr.bf16.gmra.mrb[32].mxu1 %v13429_v17 }
 0x9b5   : > { %7844 = vmatprep.mubr.bf16.mxu1 %v14861_v35 }
 0x9bc   : > { %7845 = vmatmul.mubr.bf16.gmra.mrb[36].mxu1 %v13440_v5 }
 0x9bd   : > { %7854 = vmatprep.mubr.bf16.mxu1 %v14861_v35 }
 0x9c4   : > { %7855 = vmatmul.mubr.bf16.gmra.mrb[40].mxu1 %v14917_v14 }
 0x9c5   : > { %7864 = vmatprep.mubr.bf16.mxu1 %v14861_v35 }
 0x9cc   : > { %7865 = vmatmul.mubr.bf16.gmra.mrb[44].mxu1 %v14918_v62 }
 0x9cd   : > { %7874 = vmatprep.mubr.bf16.mxu1 %v14861_v35 }
 0x9d4   : > { %7875 = vmatmul.mubr.bf16.gmra.mrb[48].mxu1 %v14923_v8 }
 0x9d5   : > { %7884 = vmatprep.mubr.bf16.mxu1 %v14861_v35 }
 0x9dc   : > { %7885 = vmatmul.mubr.bf16.gmra.mrb[52].mxu1 %v14924_v21 }
 0x9dd   : > { %7894 = vmatprep.mubr.bf16.mxu1 %v14861_v35 }
 0x9e4   : > { %7895 = vmatmul.mubr.bf16.gmra.mrb[56].mxu1 %v13647_v46 }
 0x9e5   : > { %7904 = vmatprep.mubr.bf16.mxu1 %v14861_v35  ;;  %v14927_v35 = vld [vmem:[#allocation3_spill] sm:$0xff] }
 0x9e6   : > { %v14928_v25 = vsub.s32 0, %v14927_v35 }
 0x9e8   : > { %v14436_v46 = vrot.slane %v7979_v43, %v14928_v25 }
 0x9ec   : > { %7905 = vmatmul.mubr.bf16.gmra.mrb[60].mxu1 %v13657_v51  ;;  %v14929_v51 = vsub.s32 1, %v14927_v35 }
 0x9ee   : > { %v14440_v20 = vrot.slane %v7979_v43, %v14929_v51 }
 0xa47   : > { %v7756_v11 = vpop.f32.mrb[0].mxu1 }
 0xa48   : > { %v7758_v61 = vpop.f32.mrb[1].mxu1  ;;  %v7991_v26 = vadd.f32 %v14436_v46, %v7756_v11 }
 0xa49   : > { %v7760_v49 = vpop.f32.mrb[2].mxu1  ;;  %v7992_v22 = vadd.f32 %v14440_v20, %v7758_v61 }
 0xa4a   : > { %v7762_v0 = vpop.f32.mrb[3].mxu1  ;;  %v7993_v32 = vadd.f32 %v14436_v46, %v7760_v49  ;;  %v8055_v58 = vmax.f32 %v7991_v26, 0.0 }
 0xa4b   : > { %v7994_v44 = vadd.f32 %v14440_v20, %v7762_v0  ;;  %v8056_v16 = vmax.f32 %v7992_v22, 0.0 }
 0xa4c   : > { %v8057_v34 = vmax.f32 %v7993_v32, 0.0 }
 0xa4d   : > { %v8058_v2 = vmax.f32 %v7994_v44, 0.0 }
 0xa4f   : > { %v7766_v27 = vpop.f32.mrb[4].mxu1 }
 0xa50   : > { %v7768_v17 = vpop.f32.mrb[5].mxu1  ;;  %v7995_v15 = vadd.f32 %v14436_v46, %v7766_v27 }
 0xa51   : > { %v7770_v5 = vpop.f32.mrb[6].mxu1  ;;  %v7996_v8 = vadd.f32 %v14440_v20, %v7768_v17 }
 0xa52   : > { %v7772_v47 = vpop.f32.mrb[7].mxu1  ;;  %v7997_v60 = vadd.f32 %v14436_v46, %v7770_v5  ;;  %v8059_v55 = vmax.f32 %v7995_v15, 0.0 }
 0xa53   : > { %v7998_v45 = vadd.f32 %v14440_v20, %v7772_v47  ;;  %v8060_v24 = vmax.f32 %v7996_v8, 0.0 }
 0xa54   : > { %v8061_v52 = vmax.f32 %v7997_v60, 0.0 }
 0xa55   : > { %v8062_v37 = vmax.f32 %v7998_v45, 0.0 }
 0xa57   : > { %v7776_v40 = vpop.f32.mrb[8].mxu1 }
 0xa58   : > { %v7999_v39 = vadd.f32 %v14436_v46, %v7776_v40  ;;  %v7778_v57 = vpop.f32.mrb[9].mxu1 }
 0xa59   : > { %v8000_v4 = vadd.f32 %v14440_v20, %v7778_v57  ;;  %v7780_v36 = vpop.f32.mrb[10].mxu1 }
 0xa5a   : > { %v8063_v10 = vmax.f32 %v7999_v39, 0.0  ;;  %v8001_v14 = vadd.f32 %v14436_v46, %v7780_v36  ;;  %v7782_v62 = vpop.f32.mrb[11].mxu1 }
 0xa5b   : > { %v8064_v13 = vmax.f32 %v8000_v4, 0.0  ;;  %v8002_v29 = vadd.f32 %v14440_v20, %v7782_v62 }
 0xa5c   : > { %v8119_v41 = vmax.f32 %v8055_v58, %v8063_v10  ;;  %v8065_v19 = vmax.f32 %v8001_v14, 0.0 }
 0xa5d   : > { %v8120_v28 = vmax.f32 %v8056_v16, %v8064_v13  ;;  %v8066_v53 = vmax.f32 %v8002_v29, 0.0 }
 0xa5e   : > { %v8121_v50 = vmax.f32 %v8057_v34, %v8065_v19 }
 0xa5f   : > { %v8151_v21 = vmax.f32 %v8119_v41, %v8120_v28  ;;  %v8122_v56 = vmax.f32 %v8058_v2, %v8066_v53  ;;  %v7786_v1 = vpop.f32.mrb[12].mxu1 }
 0xa60   : > { %v8003_v38 = vadd.f32 %v14436_v46, %v7786_v1  ;;  %v7788_v18 = vpop.f32.mrb[13].mxu1 }
 0xa61   : > { %v8152_v7 = vmax.f32 %v8121_v50, %v8122_v56  ;;  %v8004_v59 = vadd.f32 %v14440_v20, %v7788_v18  ;;  %v7790_v30 = vpop.f32.mrb[14].mxu1 }
 0xa62   : > { %v8067_v63 = vmax.f32 %v8003_v38, 0.0  ;;  %v8005_v9 = vadd.f32 %v14436_v46, %v7790_v30  ;;  %v7792_v33 = vpop.f32.mrb[15].mxu1 }
 0xa63   : > { %v8068_v23 = vmax.f32 %v8004_v59, 0.0  ;;  %v8006_v12 = vadd.f32 %v14440_v20, %v7792_v33  ;;  %v14458_v54 = vpack.c.bf16 %v8152_v7, %v8151_v21 }
 0xa64   : > { %v8123_v6 = vmax.f32 %v8059_v55, %v8067_v63  ;;  %v8069_v31 = vmax.f32 %v8005_v9, 0.0 }
 0xa65   : > { %v8124_v48 = vmax.f32 %v8060_v24, %v8068_v23  ;;  %v8070_v42 = vmax.f32 %v8006_v12, 0.0 }
 0xa66   : > { %v8125_v11 = vmax.f32 %v8061_v52, %v8069_v31 }
 0xa67   : > { %v8153_v61 = vmax.f32 %v8123_v6, %v8124_v48  ;;  %v8126_v49 = vmax.f32 %v8062_v37, %v8070_v42  ;;  %v7796_v0 = vpop.f32.mrb[16].mxu1 }
 0xa68   : > { %v7798_v43 = vpop.f32.mrb[17].mxu1  ;;  %v8007_v22 = vadd.f32 %v14436_v46, %v7796_v0 }
 0xa69   : > { %v8154_v27 = vmax.f32 %v8125_v11, %v8126_v49  ;;  %v7800_v17 = vpop.f32.mrb[18].mxu1  ;;  %v8008_v40 = vadd.f32 %v14440_v20, %v7798_v43 }
 0xa6a   : > { %v7802_v5 = vpop.f32.mrb[19].mxu1  ;;  %v8009_v39 = vadd.f32 %v14436_v46, %v7800_v17  ;;  %v8071_v10 = vmax.f32 %v8007_v22, 0.0 }
 0xa6b   : > { %v14460_v35 = vpack.c.bf16 %v8154_v27, %v8153_v61  ;;  %v8010_v4 = vadd.f32 %v14440_v20, %v7802_v5  ;;  %v8072_v13 = vmax.f32 %v8008_v40, 0.0  ;;  %v11034_v40 = vld [vmem:[%s14635_s5 + $0x10] sm:$0xff]  }
 0xa6c   : > { %v8073_v41 = vmax.f32 %v8009_v39, 0.0 }
 0xa6d   : > { %v8074_v28 = vmax.f32 %v8010_v4, 0.0 }
 0xa6f   : > { %v7806_v25 = vpop.f32.mrb[20].mxu1 }
 0xa70   : > { %v7808_v47 = vpop.f32.mrb[21].mxu1  ;;  %v8011_v50 = vadd.f32 %v14436_v46, %v7806_v25 }
 0xa71   : > { %v7810_v51 = vpop.f32.mrb[22].mxu1  ;;  %v8012_v21 = vadd.f32 %v14440_v20, %v7808_v47 }
 0xa72   : > { %v7812_v26 = vpop.f32.mrb[23].mxu1  ;;  %v8013_v38 = vadd.f32 %v14436_v46, %v7810_v51  ;;  %v8075_v63 = vmax.f32 %v8011_v50, 0.0 }
 0xa73   : > { %v8014_v7 = vadd.f32 %v14440_v20, %v7812_v26  ;;  %v8076_v23 = vmax.f32 %v8012_v21, 0.0  ;;  %v11033_v26 = vld [vmem:[%s14635_s5 + $0x8] sm:$0xff]  }
 0xa74   : > { %v8077_v31 = vmax.f32 %v8013_v38, 0.0 }
 0xa75   : > { %v8078_v42 = vmax.f32 %v8014_v7, 0.0 }
 0xa77   : > { %v7816_v32 = vpop.f32.mrb[24].mxu1 }
 0xa78   : > { %v8015_v57 = vadd.f32 %v14436_v46, %v7816_v32  ;;  %v7818_v44 = vpop.f32.mrb[25].mxu1 }
 0xa79   : > { %v8016_v36 = vadd.f32 %v14440_v20, %v7818_v44  ;;  %v7820_v58 = vpop.f32.mrb[26].mxu1  ;;  %v11035_v44 = vld [vmem:[%s14635_s5 + $0x18] sm:$0xff]  }
 0xa7a   : > { %v8079_v14 = vmax.f32 %v8015_v57, 0.0  ;;  %v8017_v62 = vadd.f32 %v14436_v46, %v7820_v58  ;;  %v7822_v16 = vpop.f32.mrb[27].mxu1 }
 0xa7b   : > { %v8080_v29 = vmax.f32 %v8016_v36, 0.0  ;;  %v8018_v34 = vadd.f32 %v14440_v20, %v7822_v16  ;;  %v11036_v36 = vld [vmem:[%s14635_s5 + $0x20] sm:$0xff]  }
 0xa7c   : > { %v8127_v19 = vmax.f32 %v8071_v10, %v8079_v14  ;;  %v8081_v2 = vmax.f32 %v8017_v62, 0.0 }
 0xa7d   : > { %v8128_v53 = vmax.f32 %v8072_v13, %v8080_v29  ;;  %v8082_v15 = vmax.f32 %v8018_v34, 0.0 }
 0xa7e   : > { %v8129_v8 = vmax.f32 %v8073_v41, %v8081_v2 }
 0xa7f   : > { %v8155_v56 = vmax.f32 %v8127_v19, %v8128_v53  ;;  %v8130_v1 = vmax.f32 %v8074_v28, %v8082_v15  ;;  %v7826_v60 = vpop.f32.mrb[28].mxu1  ;;  %v11037_v15 = vld [vmem:[%s14635_s5 + $0x28] sm:$0xff]  }
 0xa80   : > { %v8019_v18 = vadd.f32 %v14436_v46, %v7826_v60  ;;  %v7828_v45 = vpop.f32.mrb[29].mxu1 }
 0xa81   : > { %v8156_v59 = vmax.f32 %v8129_v8, %v8130_v1  ;;  %v8020_v30 = vadd.f32 %v14440_v20, %v7828_v45  ;;  %v7830_v55 = vpop.f32.mrb[30].mxu1 }
 0xa82   : > { %v8083_v9 = vmax.f32 %v8019_v18, 0.0  ;;  %v8021_v33 = vadd.f32 %v14436_v46, %v7830_v55  ;;  %v7832_v24 = vpop.f32.mrb[31].mxu1  ;;  %v11038_v55 = vld [vmem:[%s14635_s5 + $0x30] sm:$0xff]  }
 0xa83   : > { %v8084_v12 = vmax.f32 %v8020_v30, 0.0  ;;  %v8022_v52 = vadd.f32 %v14440_v20, %v7832_v24  ;;  %v8169_v6 = vpack.c.bf16 %v8156_v59, %v8155_v56 }
 0xa84   : > { %v8131_v37 = vmax.f32 %v8075_v63, %v8083_v9  ;;  %v8085_v48 = vmax.f32 %v8021_v33, 0.0 }
 0xa85   : > { %v8132_v11 = vmax.f32 %v8076_v23, %v8084_v12  ;;  %v8086_v61 = vmax.f32 %v8022_v52, 0.0  ;;  %9740 = vmatprep.mubr.bf16.mxu0 %v8169_v6 }
 0xa86   : > { %v8133_v49 = vmax.f32 %v8077_v31, %v8085_v48 }
 0xa87   : > { %v8157_v0 = vmax.f32 %v8131_v37, %v8132_v11  ;;  %v8134_v43 = vmax.f32 %v8078_v42, %v8086_v61  ;;  %v7836_v27 = vpop.f32.mrb[32].mxu1 }
 0xa88   : > { %v7838_v17 = vpop.f32.mrb[33].mxu1  ;;  %v8023_v4 = vadd.f32 %v14436_v46, %v7836_v27 }
 0xa89   : > { %v8158_v5 = vmax.f32 %v8133_v49, %v8134_v43  ;;  %v7840_v25 = vpop.f32.mrb[34].mxu1  ;;  %v11039_v49 = vld [vmem:[%s14635_s5 + $0x38] sm:$0xff]  }
 0xa8a   : > { %v7842_v47 = vpop.f32.mrb[35].mxu1  ;;  %v8025_v58 = vadd.f32 %v14436_v46, %v7840_v25  ;;  %v8087_v29 = vmax.f32 %v8023_v4, 0.0 }
 0xa8b   : > { %v8170_v51 = vpack.c.bf16 %v8158_v5, %v8157_v0  ;;  %v8026_v62 = vadd.f32 %v14440_v20, %v7842_v47 }
 0xa8c   : > { %v8089_v50 = vmax.f32 %v8025_v58, 0.0  ;;  %v11042_v58 = vld [vmem:[%s14635_s5 + $0x90] sm:$0xff]  }
 0xa8d   : > { %9741 = vmatmul.mubr.bf16.vlgmr.msra.gmra.mrb[64].mxu0 %v8170_v51  ;;  %v8090_v56 = vmax.f32 %v8026_v62, 0.0 }
 0xa8e   : > { %9745 = vmatpush3.bf16.msra.mxu0 %v14428_v3  ;;  %9760 = vmatprep.mubr.bf16.mxu0 %v14458_v54  ;;  %v8024_v3 = vadd.f32 %v14440_v20, %v7838_v17 }
 0xa8f   : > { %v7846_v22 = vpop.f32.mrb[36].mxu1  ;;  %9746 = vmatprep.subr.bf16.mxu0 %v11033_v26 }
 0xa90   : > { %v7848_v32 = vpop.f32.mrb[37].mxu1  ;;  %v8088_v2 = vmax.f32 %v8024_v3, 0.0  ;;  %v8027_v38 = vadd.f32 %v14436_v46, %v7846_v22 }
 0xa91   : > { %v7850_v39 = vpop.f32.mrb[38].mxu1  ;;  %v8028_v45 = vadd.f32 %v14440_v20, %v7848_v32  ;;  %v11040_v32 = vld [vmem:[%s14635_s5 + $0x80] sm:$0xff]  }
 0xa92   : > { %9747 = vmatpush3.bf16.msra.mxu0 %v11033_v26  ;;  %v7852_v57 = vpop.f32.mrb[39].mxu1  ;;  %v8029_v63 = vadd.f32 %v14436_v46, %v7850_v39  ;;  %v8091_v6 = vmax.f32 %v8027_v38, 0.0 }
 0xa93   : > { %9748 = vmatprep.subr.bf16.mxu0 %v11034_v40  ;;  %v8030_v24 = vadd.f32 %v14440_v20, %v7852_v57  ;;  %v8092_v42 = vmax.f32 %v8028_v45, 0.0 }
 0xa94   : > { %v8093_v43 = vmax.f32 %v8029_v63, 0.0 }
 0xa95   : > { %v8094_v5 = vmax.f32 %v8030_v24, 0.0 }
 0xa96   : > { %9749 = vmatpush3.bf16.msra.mxu0 %v11034_v40 }
 0xa97   : > { %v7856_v54 = vpop.f32.mrb[40].mxu1  ;;  %9750 = vmatprep.subr.bf16.mxu0 %v11035_v44 }
 0xa98   : > { %v8031_v10 = vadd.f32 %v14436_v46, %v7856_v54  ;;  %v7858_v14 = vpop.f32.mrb[41].mxu1  ;;  %v11041_v54 = vld [vmem:[%s14635_s5 + $0x88] sm:$0xff]  }
 0xa99   : > { %v8032_v16 = vadd.f32 %v14440_v20, %v7858_v14  ;;  %v7860_v13 = vpop.f32.mrb[42].mxu1 }
 0xa9a   : > { %v8095_v34 = vmax.f32 %v8031_v10, 0.0  ;;  %v8033_v41 = vadd.f32 %v14436_v46, %v7860_v13  ;;  %9751 = vmatpush3.bf16.msra.mxu0 %v11035_v44  ;;  %v7862_v19 = vpop.f32.mrb[43].mxu1 }
 0xa9b   : > { %v8096_v28 = vmax.f32 %v8032_v16, 0.0  ;;  %v8034_v53 = vadd.f32 %v14440_v20, %v7862_v19  ;;  %9752 = vmatprep.subr.bf16.mxu0 %v11036_v36  ;;  %v11043_v16 = vld [vmem:[%s14635_s5 + $0x98] sm:$0xff]  }
 0xa9c   : > { %v8135_v8 = vmax.f32 %v8087_v29, %v8095_v34  ;;  %v8097_v21 = vmax.f32 %v8033_v41, 0.0  ;;  %v11044_v34 = vld [vmem:[%s14635_s5 + $0xa0] sm:$0xff]  }
 0xa9d   : > { %v8136_v1 = vmax.f32 %v8088_v2, %v8096_v28  ;;  %v8098_v60 = vmax.f32 %v8034_v53, 0.0 }
 0xa9e   : > { %v8137_v18 = vmax.f32 %v8089_v50, %v8097_v21  ;;  %9753 = vmatpush3.bf16.msra.mxu0 %v11036_v36 }
 0xa9f   : > { %v8159_v7 = vmax.f32 %v8135_v8, %v8136_v1  ;;  %v8138_v59 = vmax.f32 %v8090_v56, %v8098_v60  ;;  %v7866_v30 = vpop.f32.mrb[44].mxu1  ;;  %9754 = vmatprep.subr.bf16.mxu0 %v11037_v15 }
 0xaa0   : > { %v8035_v9 = vadd.f32 %v14436_v46, %v7866_v30  ;;  %v7868_v33 = vpop.f32.mrb[45].mxu1 }
 0xaa1   : > { %v8160_v23 = vmax.f32 %v8137_v18, %v8138_v59  ;;  %v8036_v12 = vadd.f32 %v14440_v20, %v7868_v33  ;;  %v7870_v52 = vpop.f32.mrb[46].mxu1  ;;  %v11045_v18 = vld [vmem:[%s14635_s5 + $0xa8] sm:$0xff]  }
 0xaa2   : > { %v8099_v31 = vmax.f32 %v8035_v9, 0.0  ;;  %v8037_v37 = vadd.f32 %v14436_v46, %v7870_v52  ;;  %9755 = vmatpush3.bf16.msra.mxu0 %v11037_v15  ;;  %v7872_v48 = vpop.f32.mrb[47].mxu1 }
 0xaa3   : > { %v8100_v11 = vmax.f32 %v8036_v12, 0.0  ;;  %v8038_v61 = vadd.f32 %v14440_v20, %v7872_v48  ;;  %9756 = vmatprep.subr.bf16.mxu0 %v11038_v55  ;;  %v8171_v0 = vpack.c.bf16 %v8160_v23, %v8159_v7 }
 0xaa4   : > { %v8139_v27 = vmax.f32 %v8091_v6, %v8099_v31  ;;  %v8101_v17 = vmax.f32 %v8037_v37, 0.0  ;;  %v11046_v6 = vld [vmem:[%s14635_s5 + $0xb0] sm:$0xff]  }
 0xaa5   : > { %v8140_v25 = vmax.f32 %v8092_v42, %v8100_v11  ;;  %v8102_v47 = vmax.f32 %v8038_v61, 0.0 }
 0xaa6   : > { %v8141_v51 = vmax.f32 %v8093_v43, %v8101_v17  ;;  %9757 = vmatpush3.bf16.msra.mxu0 %v11038_v55 }
 0xaa7   : > { %v8161_v26 = vmax.f32 %v8139_v27, %v8140_v25  ;;  %v8142_v22 = vmax.f32 %v8094_v5, %v8102_v47  ;;  %v7876_v40 = vpop.f32.mrb[48].mxu1  ;;  %9758 = vmatprep.subr.bf16.mxu0 %v11039_v49 }
 0xaa8   : > { %v7878_v39 = vpop.f32.mrb[49].mxu1  ;;  %v8039_v13 = vadd.f32 %v14436_v46, %v7876_v40 }
 0xaa9   : > { %v8162_v57 = vmax.f32 %v8141_v51, %v8142_v22  ;;  %v7880_v44 = vpop.f32.mrb[50].mxu1  ;;  %v11047_v51 = vld [vmem:[%s14635_s5 + $0xb8] sm:$0xff]  }
 0xaaa   : > { %9759 = vmatpush3.bf16.msra.mxu0 %v11039_v49  ;;  %v7882_v4 = vpop.f32.mrb[51].mxu1  ;;  %v8041_v41 = vadd.f32 %v14436_v46, %v7880_v44  ;;  %v8103_v50 = vmax.f32 %v8039_v13, 0.0  ;;  %v11054_v13 = vld [vmem:[%s14635_s5 + $0xf0] sm:$0xff]  }
 0xaab   : > { %v14520_v3 = vpack.c.bf16 %v8162_v57, %v8161_v26  ;;  %9764 = vmatprep.subr.bf16.mxu0 %v11040_v32  ;;  %v8042_v28 = vadd.f32 %v14440_v20, %v7882_v4 }
 0xaac   : > { %v8105_v45 = vmax.f32 %v8041_v41, 0.0  ;;  %v11058_v41 = vld [vmem:[%s14637_s7 + $0x10] sm:$0xff]  }
 0xaad   : > { %9761 = vmatmul.mubr.bf16.vlgmr.msra.gmra.mrb[64].mxu0 %v14460_v35  ;;  %v8040_v35 = vadd.f32 %v14440_v20, %v7878_v39  ;;  %v8106_v30 = vmax.f32 %v8042_v28, 0.0  ;;  %v11061_v28 = vld [vmem:[%s14637_s7 + $0x28] sm:$0xff]  }
 0xaae   : > { %9765 = vmatpush3.bf16.msra.mxu0 %v11040_v32  ;;  %9780 = vmatprep.mubr.bf16.mxu0 %v8171_v0 }
 0xaaf   : > { %v7886_v36 = vpop.f32.mrb[52].mxu1  ;;  %9766 = vmatprep.subr.bf16.mxu0 %v11041_v54  ;;  %v8104_v1 = vmax.f32 %v8040_v35, 0.0  ;;  %v11055_v35 = vld [vmem:[%s14635_s5 + $0xf8] sm:$0xff]  }
 0xab0   : > { %v7888_v10 = vpop.f32.mrb[53].mxu1  ;;  %v8043_v9 = vadd.f32 %v14436_v46, %v7886_v36 }
 0xab1   : > { %v7890_v14 = vpop.f32.mrb[54].mxu1  ;;  %v8044_v24 = vadd.f32 %v14440_v20, %v7888_v10  ;;  %v11049_v10 = vld [vmem:[%s14635_s5 + $0xc8] sm:$0xff]  }
 0xab2   : > { %9767 = vmatpush3.bf16.msra.mxu0 %v11041_v54  ;;  %v7892_v62 = vpop.f32.mrb[55].mxu1  ;;  %v8045_v31 = vadd.f32 %v14436_v46, %v7890_v14  ;;  %v8107_v0 = vmax.f32 %v8043_v9, 0.0  ;;  %v11050_v14 = vld [vmem:[%s14635_s5 + $0xd0] sm:$0xff]  }
 0xab3   : > { %9768 = vmatprep.subr.bf16.mxu0 %v11042_v58  ;;  %v8046_v42 = vadd.f32 %v14440_v20, %v7892_v62  ;;  %v8108_v5 = vmax.f32 %v8044_v24, 0.0  ;;  %v11051_v62 = vld [vmem:[%s14635_s5 + $0xd8] sm:$0xff]  }
 0xab4   : > { %v8109_v22 = vmax.f32 %v8045_v31, 0.0 }
 0xab5   : > { %v8110_v39 = vmax.f32 %v8046_v42, 0.0 }
 0xab6   : > { %9769 = vmatpush3.bf16.msra.mxu0 %v11042_v58 }
 0xab7   : > { %v7896_v29 = vpop.f32.mrb[56].mxu1  ;;  %9770 = vmatprep.subr.bf16.mxu0 %v11043_v16 }
 0xab8   : > { %v8047_v19 = vadd.f32 %v14436_v46, %v7896_v29  ;;  %v7898_v2 = vpop.f32.mrb[57].mxu1  ;;  %v11056_v29 = vld [vmem:[%s14637_s7] sm:$0xff]  }
 0xab9   : > { %v8048_v53 = vadd.f32 %v14440_v20, %v7898_v2  ;;  %v7900_v15 = vpop.f32.mrb[58].mxu1  ;;  %v11060_v2 = vld [vmem:[%s14637_s7 + $0x20] sm:$0xff]  }
 0xaba   : > { %v8111_v8 = vmax.f32 %v8047_v19, 0.0  ;;  %v8049_v21 = vadd.f32 %v14436_v46, %v7900_v15  ;;  %9771 = vmatpush3.bf16.msra.mxu0 %v11043_v16  ;;  %v7902_v56 = vpop.f32.mrb[59].mxu1  ;;  %v11052_v16 = vld [vmem:[%s14635_s5 + $0xe0] sm:$0xff]   ;;  %v11059_v19 = vld [vmem:[%s14637_s7 + $0x18] sm:$0xff]  }
 0xabb   : > { %v8112_v60 = vmax.f32 %v8048_v53, 0.0  ;;  %v8050_v38 = vadd.f32 %v14440_v20, %v7902_v56  ;;  %9772 = vmatprep.subr.bf16.mxu0 %v11044_v34  ;;  %v11062_v53 = vld [vmem:[%s14637_s7 + $0x30] sm:$0xff]   ;;  %v11063_v15 = vld [vmem:[%s14637_s7 + $0x38] sm:$0xff]  }
 0xabc   : > { %v8143_v7 = vmax.f32 %v8103_v50, %v8111_v8  ;;  %v8113_v59 = vmax.f32 %v8049_v21, 0.0  ;;  %v9660_v50 = vld [vmem:[%s14636_s6] ss:$0 sm:$0xff] }
 0xabd   : > { %v8144_v55 = vmax.f32 %v8104_v1, %v8112_v60  ;;  %v8114_v63 = vmax.f32 %v8050_v38, 0.0 }
 0xabe   : > { %v8145_v33 = vmax.f32 %v8105_v45, %v8113_v59  ;;  %9773 = vmatpush3.bf16.msra.mxu0 %v11044_v34  ;;  %v11057_v34 = vld [vmem:[%s14637_s7 + $0x8] sm:$0xff]  }
 0xabf   : > { %v8163_v23 = vmax.f32 %v8143_v7, %v8144_v55  ;;  %v8146_v12 = vmax.f32 %v8106_v30, %v8114_v63  ;;  %v7906_v52 = vpop.f32.mrb[60].mxu1  ;;  %9774 = vmatprep.subr.bf16.mxu0 %v11045_v18 }
 0xac0   : > { %v8051_v37 = vadd.f32 %v14436_v46, %v7906_v52  ;;  %v7908_v48 = vpop.f32.mrb[61].mxu1 }
 0xac1   : > { %v8164_v11 = vmax.f32 %v8145_v33, %v8146_v12  ;;  %v8052_v61 = vadd.f32 %v14440_v20, %v7908_v48  ;;  %v7910_v49 = vpop.f32.mrb[62].mxu1  ;;  %v9661_v33 = vld [vmem:[%s14638_s8] ss:$0 sm:$0xff] }
 0xac2   : > { %v8115_v43 = vmax.f32 %v8051_v37, 0.0  ;;  %v8053_v27 = vadd.f32 %v14436_v46, %v7910_v49  ;;  %9775 = vmatpush3.bf16.msra.mxu0 %v11045_v18  ;;  %v7912_v17 = vpop.f32.mrb[63].mxu1 }
 0xac3   : > { %v8116_v25 = vmax.f32 %v8052_v61, 0.0  ;;  %v8054_v47 = vadd.f32 %v14440_v20, %v7912_v17  ;;  %9776 = vmatprep.subr.bf16.mxu0 %v11046_v6  ;;  %v8173_v26 = vpack.c.bf16 %v8164_v11, %v8163_v23  ;;  %v11048_v20 = vld [vmem:[%s14635_s5 + $0xc0] sm:$0xff]  }
 0xac4   : > { %v8147_v40 = vmax.f32 %v8107_v0, %v8115_v43  ;;  %v8117_v32 = vmax.f32 %v8053_v27, 0.0 }
 0xac5   : > { %v8148_v57 = vmax.f32 %v8108_v5, %v8116_v25  ;;  %v8118_v44 = vmax.f32 %v8054_v47, 0.0 }
 0xac6   : > { %v8149_v4 = vmax.f32 %v8109_v22, %v8117_v32  ;;  %9777 = vmatpush3.bf16.msra.mxu0 %v11046_v6 }
 0xac7   : > { %v8165_v46 = vmax.f32 %v8147_v40, %v8148_v57  ;;  %v8150_v54 = vmax.f32 %v8110_v39, %v8118_v44  ;;  %9778 = vmatprep.subr.bf16.mxu0 %v11047_v51 }
 0xac9   : > { %v8166_v36 = vmax.f32 %v8149_v4, %v8150_v54 }
 0xaca   : > { %9779 = vmatpush3.bf16.msra.mxu0 %v11047_v51 }
 0xacb   : > { %v8174_v58 = vpack.c.bf16 %v8166_v36, %v8165_v46  ;;  %9784 = vmatprep.subr.bf16.mxu0 %v11048_v20 }
 0xacd   : > { %9781 = vmatmul.mubr.bf16.vlgmr.msra.gmra.mrb[64].mxu0 %v14520_v3  ;;  %v11053_v3 = vld [vmem:[%s14635_s5 + $0xe8] sm:$0xff]  }
 0xace   : > { %9785 = vmatpush3.bf16.msra.mxu0 %v11048_v20  ;;  %9800 = vmatprep.mubr.bf16.mxu0 %v8173_v26 }
 0xacf   : > { %9786 = vmatprep.subr.bf16.mxu0 %v11049_v10 }
 0xad2   : > { %9787 = vmatpush3.bf16.msra.mxu0 %v11049_v10 }
 0xad3   : > { %9788 = vmatprep.subr.bf16.mxu0 %v11050_v14 }
 0xad6   : > { %9789 = vmatpush3.bf16.msra.mxu0 %v11050_v14 }
 0xad7   : > { %9790 = vmatprep.subr.bf16.mxu0 %v11051_v62 }
 0xada   : > { %9791 = vmatpush3.bf16.msra.mxu0 %v11051_v62 }
 0xadb   : > { %9792 = vmatprep.subr.bf16.mxu0 %v11052_v16 }
 0xade   : > { %9793 = vmatpush3.bf16.msra.mxu0 %v11052_v16 }
 0xadf   : > { %9794 = vmatprep.subr.bf16.mxu0 %v11053_v3 }
 0xae2   : > { %9795 = vmatpush3.bf16.msra.mxu0 %v11053_v3 }
 0xae3   : > { %9796 = vmatprep.subr.bf16.mxu0 %v11054_v13 }
 0xae6   : > { %9797 = vmatpush3.bf16.msra.mxu0 %v11054_v13 }
 0xae7   : > { %9798 = vmatprep.subr.bf16.mxu0 %v11055_v35 }
 0xaea   : > { %9799 = vmatpush3.bf16.msra.mxu0 %v11055_v35 }
 0xaeb   : > { %9804 = vmatprep.subr.bf16.mxu0 %v11056_v29 }
 0xaed   : > { %9801 = vmatmul.mubr.bf16.vlgmr.msra.gmra.mrb[64].mxu0 %v8174_v58 }
 0xaee   : > { %9805 = vmatpush3.bf16.msra.mxu0 %v11056_v29 }
 0xaef   : > { %9806 = vmatprep.subr.bf16.mxu0 %v11057_v34 }
 0xaf2   : > { %9807 = vmatpush3.bf16.msra.mxu0 %v11057_v34 }
 0xaf3   : > { %9808 = vmatprep.subr.bf16.mxu0 %v11058_v41 }
 0xaf6   : > { %9809 = vmatpush3.bf16.msra.mxu0 %v11058_v41 }
 0xaf7   : > { %9810 = vmatprep.subr.bf16.mxu0 %v11059_v19 }
 0xafa   : > { %9811 = vmatpush3.bf16.msra.mxu0 %v11059_v19 }
 0xafb   : > { %9812 = vmatprep.subr.bf16.mxu0 %v11060_v2 }
 0xafe   : > { %9813 = vmatpush3.bf16.msra.mxu0 %v11060_v2 }
 0xaff   : > { %9814 = vmatprep.subr.bf16.mxu0 %v11061_v28 }
 0xb02   : > { %9815 = vmatpush3.bf16.msra.mxu0 %v11061_v28 }
 0xb03   : > { %9816 = vmatprep.subr.bf16.mxu0 %v11062_v53 }
 0xb06   : > { %9817 = vmatpush3.bf16.msra.mxu0 %v11062_v53 }
 0xb07   : > { %9818 = vmatprep.subr.bf16.mxu0 %v11063_v15 }
 0xb0a   : > { %9819 = vmatpush3.bf16.msra.mxu0 %v11063_v15 }
 0xbc0   : > { %v9802_v8 = vpop.f32.mrb[64].mxu0 }
 0xbc1   : > { %v8647_v21 = vadd.f32 %v9802_v8, %v9660_v50  ;;  %v8619_v56 = vpop.f32.mrb[65].mxu0 }
 0xbc2   : > { %v8645_v1 = vadd.f32 %v9660_v50, %v8619_v56  ;;  %v9803_v60 = vpop.f32.mrb[66].mxu0 }
 0xbc3   : > { %11064 = vtanh.f32 %v8647_v21  ;;  %v8648_v38 = vadd.f32 %v9803_v60, %v9660_v50  ;;  %v8622_v18 = vpop.f32.mrb[67].mxu0 }
 0xbc4   : > { %11066 = vtanh.f32 %v8645_v1  ;;  %v8646_v45 = vadd.f32 %v9660_v50, %v8622_v18 }
 0xbc5   : > { %11068 = vtanh.f32 %v8648_v38 }
 0xbc6   : > { %11070 = vtanh.f32 %v8646_v45 }
 0xbcd   : > { %v11065_v7 = vpop.eup %11064 }
 0xbce   : > { %v11067_v59 = vpop.eup %11066 }
 0xbcf   : > { %v11069_v30 = vpop.eup %11068 }
 0xbd0   : > { %v11071_v55 = vpop.eup %11070  ;;  %v8654_v63 = vpack.c.bf16 %v11069_v30, %v11065_v7 }
 0xbd1   : > { %v8653_v9 = vpack.c.bf16 %v11071_v55, %v11067_v59 }
 0xbd3   : > { %9820 = vmatprep.mubr.bf16.mxu0 %v8653_v9 }
 0xbd4   : > { %9821 = vmatmul.mubr.bf16.vlgmr.msra.gmra.mrb[68].mxu0 %v8654_v63 }
 0xca7   : > { %v9822_v24 = vpop.f32.mrb[68].mxu0 }
 0xca8   : > { %v8760_v23 = vpop.f32.mrb[69].mxu0  ;;  %v8769_v37 = vadd.f32 %v9822_v24, %v9661_v33 }
 0xca9   : > { %v8761_v12 = vadd.f32 %v9661_v33, %v8760_v23  ;;  %v9823_v52 = vpop.f32.mrb[70].mxu0 }
 0xcaa   : > { %v8763_v6 = vpop.f32.mrb[71].mxu0  ;;  %v8772_v48 = vadd.f32 %v9823_v52, %v9661_v33  ;;  %8777 = vst [vmem:[%s749_s20 + $0x10] sm:$0xff] %v8769_v37 }
 0xcab   : > { %8775 = vst [vmem:[%s749_s20] sm:$0xff] %v8761_v12  ;;  %v8764_v31 = vadd.f32 %v9661_v33, %v8763_v6 }
 0xcac   : > { %8778 = vst [vmem:[%s749_s20 + $0x18] sm:$0xff] %v8772_v48 }
 0xcad   : > { %8776 = vst [vmem:[%s749_s20 + $0x8] sm:$0xff] %v8764_v31 }
 0xcae PF: > { %p16_p9 = scmp.ge.s32.totalorder %s11358_s13, 4   ;;  %s14930_s30 = smov %s11284_s10 }
 0xcaf   : > { %s14931_s10 = smov %s11367_s16  ;;  %s14932_s11 = smov %s11358_s13 }
 0xcb0   :  { %18 = sbr.rel (!%p16_p9) target bundleno = 2 (0x2), region = 136 }

</bundles_post_ra>
